<compile_context>
chip_gen: v6e
topology: v6e:2x2x1
jax: 0.10.0
libtpu: 0.0.40
codegen_flags: <defaults>
</compile_context>

<pallas_src>
import jax
import jax.numpy as jnp
from jax.experimental import pallas as pl
from jax.experimental.pallas import tpu as pltpu

C = 192            # fixed by the module: ResnetBlock(dim=192)
NUM_BLOCKS = 9


# ----------------------------------------------------------------------------
# Fused Pallas kernel: 9 ResnetBlocks (2 convs each) + 2x2 avg-pool epilogue
# ----------------------------------------------------------------------------
def _make_fused_kernel(N, H, W, num_blocks):
    M = N * H * W

    def reflect_pad(pad_ref, v4):
        """ReflectionPad2d(1): v4 (N,H,W,C) bf16 -> pad_ref (N,H+2,W+2,C)."""
        pad_ref[:, 1:H + 1, 1:W + 1, :] = v4
        pad_ref[:, 0:1, 1:W + 1, :] = v4[:, 1:2]                    # top    <- row 1
        pad_ref[:, H + 1:H + 2, 1:W + 1, :] = v4[:, H - 2:H - 1]    # bottom <- row H-2
        pad_ref[:, :, 0:1, :] = pad_ref[:, :, 2:3, :]               # left   <- col 1
        pad_ref[:, :, W + 1:W + 2, :] = pad_ref[:, :, W - 1:W, :]   # right  <- col W-2

    def conv3x3_bn(pad_ref, col_ref, w, s, b):
        """3x3 conv as bf16 im2col + ONE K=9*C MXU matmul, then folded BN (f32)."""
        for dy in range(3):
            for dx in range(3):
                t = dy * 3 + dx
                col_ref[:, t * C:(t + 1) * C] = (
                    pad_ref[:, dy:dy + H, dx:dx + W, :].reshape(M, C))
        acc = jnp.dot(col_ref[...], w, preferred_element_type=jnp.float32)
        return acc * s + b

    def kernel(x_ref, w_ref, s_ref, b_ref, pm_ref, out_ref, pool_ref,
               pad_ref, col_ref):
        blk = pl.program_id(0)

        # Step 0: seed the VMEM-resident residual stream with the input.
        @pl.when(blk == 0)
        def _():
            out_ref[...] = x_ref[...]

        x = out_ref[...]                                   # (M, C) f32 residual stream

        # ---- conv1 + BN1 + ReLU ---------------------------------------------
        reflect_pad(pad_ref, x.reshape(N, H, W, C).astype(jnp.bfloat16))
        h = conv3x3_bn(pad_ref, col_ref, w_ref[0, 0], s_ref[0, 0], b_ref[0, 0])
        h = jnp.maximum(h, 0.0)

        # ---- conv2 + BN2 + residual add --------------------------------------
        reflect_pad(pad_ref, h.reshape(N, H, W, C).astype(jnp.bfloat16))
        y = conv3x3_bn(pad_ref, col_ref, w_ref[0, 1], s_ref[0, 1], b_ref[0, 1])
        new_x = x + y
        out_ref[...] = new_x                               # carry + final features

        # ---- final step: fused AvgPool2d(2,2) as one small f32 matmul --------
        @pl.when(blk == num_blocks - 1)
        def _():
            pool_ref[...] = jnp.dot(pm_ref[...], new_x,
                                    preferred_element_type=jnp.float32)

    return kernel


def _pool_matrix(N, H, W):
    """(N*Hh*Wh, N*H*W) matrix averaging each 2x2 spatial cell (0.25 one-hots)."""
    Hh, Wh = H // 2, W // 2
    m = jnp.arange(N * H * W)
    n_i = m // (H * W)
    h_i = (m // W) % H
    w_i = m % W
    cell = n_i * (Hh * Wh) + (h_i // 2) * Wh + (w_i // 2)
    onehot = jnp.arange(N * Hh * Wh)[:, None] == cell[None, :]
    return onehot.astype(jnp.float32) * 0.25


def alexnet_deep_shape_pallas(x_nhwc, w_all, s_all, b_all):
    """x_nhwc: (N,H,W,C) f32; w_all: (B,2,9C,C) bf16; s/b: (B,2,1,C) f32."""
    N, H, W, _ = x_nhwc.shape
    Hh, Wh = H // 2, W // 2
    M, NP = N * H * W, N * Hh * Wh
    num_blocks = w_all.shape[0]
    pool_mat = _pool_matrix(N, H, W)

    out_flat, pool_flat = pl.pallas_call(
        _make_fused_kernel(N, H, W, num_blocks),
        out_shape=(jax.ShapeDtypeStruct((M, C), jnp.float32),
                   jax.ShapeDtypeStruct((NP, C), jnp.float32)),
        grid=(num_blocks,),
        in_specs=[
            pl.BlockSpec((M, C), lambda b: (0, 0)),                  # input (loaded once)
            pl.BlockSpec((1, 2, 9 * C, C), lambda b: (b, 0, 0, 0)),  # streamed bf16 weights
            pl.BlockSpec((1, 2, 1, C), lambda b: (b, 0, 0, 0)),      # folded BN scale
            pl.BlockSpec((1, 2, 1, C), lambda b: (b, 0, 0, 0)),      # folded BN bias
            pl.BlockSpec((NP, M), lambda b: (0, 0)),                 # avg-pool matrix
        ],
        out_specs=(
            pl.BlockSpec((M, C), lambda b: (0, 0)),     # VMEM-resident residual / features
            pl.BlockSpec((NP, C), lambda b: (0, 0)),    # pooled output
        ),
        scratch_shapes=[
            pltpu.VMEM((N, H + 2, W + 2, C), jnp.bfloat16),   # reflect-pad halo (bf16)
            pltpu.VMEM((M, 9 * C), jnp.bfloat16),             # im2col buffer   (bf16)
        ],
        compiler_params=pltpu.CompilerParams(
            dimension_semantics=("arbitrary",)),
    )(x_nhwc.reshape(M, C), w_all, s_all, b_all, pool_mat)

    return out_flat.reshape(N, H, W, C), pool_flat.reshape(N, Hh, Wh, C)


# ----------------------------------------------------------------------------
# Parameters (deterministic, synthetic) and forward
# ----------------------------------------------------------------------------
def init_params(key, num_blocks=NUM_BLOCKS, eps=1e-5):
    params = []
    for i in range(num_blocks):
        ks = jax.random.split(jax.random.fold_in(key, i), 10)
        # conv weights in HWIO layout (3, 3, Cin, Cout); no bias (use_bias=False).
        w1 = jax.random.normal(ks[0], (3, 3, C, C), jnp.float32) * 0.02
        w2 = jax.random.normal(ks[1], (3, 3, C, C), jnp.float32) * 0.02

        def bn(kg, kb, km, kv):
            gamma = 1.0 + 0.1 * jax.random.normal(kg, (C,), jnp.float32)
            beta = 0.1 * jax.random.normal(kb, (C,), jnp.float32)
            mean = 0.1 * jax.random.normal(km, (C,), jnp.float32)
            var = 0.5 + jax.random.uniform(kv, (C,), jnp.float32)
            scale = gamma * jax.lax.rsqrt(var + eps)
            bias = beta - mean * scale
            return scale.reshape(1, C), bias.reshape(1, C)

        s1, b1 = bn(ks[2], ks[3], ks[4], ks[5])
        s2, b2 = bn(ks[6], ks[7], ks[8], ks[9])
        params.append(
            {"w1": w1, "w2": w2, "s1": s1, "b1": b1, "s2": s2, "b2": b2})
    return params


def stack_params(params):
    """Pack per-block weights (bf16, tap-major rows) and folded BN scale/bias (f32)."""
    wb, sb, bb = [], [], []
    for p in params:
        wb.append(jnp.stack([p["w1"].reshape(9 * C, C),
                             p["w2"].reshape(9 * C, C)]))        # (2, 9C, C)
        sb.append(jnp.stack([p["s1"], p["s2"]]))                 # (2, 1, C)
        bb.append(jnp.stack([p["b1"], p["b2"]]))
    w_all = jnp.stack(wb).astype(jnp.bfloat16)                   # (B, 2, 9C, C)
    s_all = jnp.stack(sb)                                        # (B, 2, 1, C) f32
    b_all = jnp.stack(bb)                                        # (B, 2, 1, C) f32
    return w_all, s_all, b_all


def forward(x_nchw, params):
    """Pallas implementation of AlexNet_deep_shape.forward.  Returns NCHW pair."""
    x = jnp.transpose(x_nchw, (0, 2, 3, 1)).astype(jnp.float32)   # -> NHWC
    w_all, s_all, b_all = stack_params(params)
    feat, pooled = alexnet_deep_shape_pallas(x, w_all, s_all, b_all)
    return (jnp.transpose(feat, (0, 3, 1, 2)),
            jnp.transpose(pooled, (0, 3, 1, 2)))


# ----------------------------------------------------------------------------
# Plain-JAX f32 reference (numerical sanity check)
# ----------------------------------------------------------------------------
def _reflect_pad1(x):
    return jnp.pad(x, ((0, 0), (1, 1), (1, 1), (0, 0)), mode="reflect")


def _ref_conv(xpad, w):
    return jax.lax.conv_general_dilated(
        xpad, w, window_strides=(1, 1), padding="VALID",
        dimension_numbers=("NHWC", "HWIO", "NHWC"))


def ref_forward(x_nchw, params):
    x = jnp.transpose(x_nchw, (0, 2, 3, 1)).astype(jnp.float32)
    for p in params:
        h = jnp.maximum(
            _ref_conv(_reflect_pad1(x), p["w1"]) * p["s1"] + p["b1"], 0.0)
        x = x + _ref_conv(_reflect_pad1(h), p["w2"]) * p["s2"] + p["b2"]
    N, H, W, _ = x.shape
    ret = x.reshape(N, H // 2, 2, W // 2, 2, C).mean(axis=(2, 4))
    return jnp.transpose(x, (0, 3, 1, 2)), jnp.transpose(ret, (0, 3, 1, 2))


def _rel_err(a, b):
    return float(jnp.max(jnp.abs(a - b)) / (jnp.max(jnp.abs(b)) + 1e-6))


# ----------------------------------------------------------------------------
if __name__ == "__main__":
    key = jax.random.PRNGKey(0)
    kx, kp = jax.random.split(key)

    N, H, W = 2, 8, 8                    # small, even spatial for the 2x2 pool
    x = jax.random.normal(kx, (N, C, H, W), jnp.float32)    # PyTorch NCHW input
    params = init_params(kp, num_blocks=NUM_BLOCKS)

    out_x, out_ret = jax.jit(forward)(x, params)
    jax.block_until_ready((out_x, out_ret))

    assert out_x.shape == (N, C, H, W)
    assert out_ret.shape == (N, C, H // 2, W // 2)

    # Kernel uses bf16 MXU operands (f32 accumulation) -> compare against the
    # pure-f32 reference with a bf16-appropriate relative tolerance.
    ref_x, ref_ret = ref_forward(x, params)
    err_x = _rel_err(out_x, ref_x)
    err_r = _rel_err(out_ret, ref_ret)
    assert err_x < 5e-2 and err_r < 5e-2, (err_x, err_r)

    print("KERNEL_OK")
</pallas_src>

<mosaic_0001>
module attributes {stable_mosaic.version = 11 : i64} {
  func.func @kernel(%arg0: i32, %arg1: memref<128x192xf32, #tpu.memory_space<vmem>>, %arg2: memref<1x2x1728x192xbf16, #tpu.memory_space<vmem>>, %arg3: memref<1x2x1x192xf32, #tpu.memory_space<vmem>>, %arg4: memref<1x2x1x192xf32, #tpu.memory_space<vmem>>, %arg5: memref<32x128xf32, #tpu.memory_space<vmem>>, %arg6: memref<128x192xf32, #tpu.memory_space<vmem>>, %arg7: memref<32x192xf32, #tpu.memory_space<vmem>>, %arg8: memref<2x10x10x192xbf16, #tpu.memory_space<vmem>>, %arg9: memref<128x1728xbf16, #tpu.memory_space<vmem>>) attributes {dimension_semantics = [#tpu.dimension_semantics<arbitrary>], iteration_bounds = array<i64: 9>, scalar_prefetch = 0 : i64, scratch_operands = 2 : i64, tpu.core_type = #tpu.core_type<tc>, window_params = [{pipeline_mode = #tpu.pipeline_mode<synchronous>, transform_indices = @transform_0, window_bounds = array<i64: 128, 192>}, {transform_indices = @transform_1, window_bounds = array<i64: 1, 2, 1728, 192>}, {transform_indices = @transform_2, window_bounds = array<i64: 1, 2, 1, 192>}, {transform_indices = @transform_3, window_bounds = array<i64: 1, 2, 1, 192>}, {pipeline_mode = #tpu.pipeline_mode<synchronous>, transform_indices = @transform_4, window_bounds = array<i64: 32, 128>}, {pipeline_mode = #tpu.pipeline_mode<synchronous>, transform_indices = @transform_5, window_bounds = array<i64: 128, 192>}, {pipeline_mode = #tpu.pipeline_mode<synchronous>, transform_indices = @transform_6, window_bounds = array<i64: 32, 192>}]} {
    %c0_i32 = arith.constant 0 : i32
    %0 = arith.cmpi eq, %arg0, %c0_i32 : i32
    %1 = arith.extui %0 : i1 to i32
    %c0_i32_0 = arith.constant 0 : i32
    %2 = arith.cmpi ne, %1, %c0_i32_0 : i32
    scf.if %2 {
      %c0_187 = arith.constant 0 : index
      %c0_188 = arith.constant 0 : index
      %111 = vector.load %arg1[%c0_187, %c0_188] : memref<128x192xf32, #tpu.memory_space<vmem>>, vector<128x192xf32>
      %c0_189 = arith.constant 0 : index
      %c0_190 = arith.constant 0 : index
      %112 = vector.load %arg6[%c0_189, %c0_190] : memref<128x192xf32, #tpu.memory_space<vmem>>, vector<128x192xf32>
      tpu.vector_store %arg6[%c0_189, %c0_190], %111 {strides = array<i32>} : memref<128x192xf32, #tpu.memory_space<vmem>>, vector<128x192xf32>,
    } else {
    }
    %c0 = arith.constant 0 : index
    %c0_1 = arith.constant 0 : index
    %3 = vector.load %arg6[%c0, %c0_1] : memref<128x192xf32, #tpu.memory_space<vmem>>, vector<128x192xf32>
    %4 = vector.shape_cast %3 : vector<128x192xf32> to vector<2x8x8x192xf32>
    %5 = arith.truncf %4 : vector<2x8x8x192xf32> to vector<2x8x8x192xbf16>
    %c0_2 = arith.constant 0 : index
    %c1 = arith.constant 1 : index
    %c1_3 = arith.constant 1 : index
    %c0_4 = arith.constant 0 : index
    %6 = vector.load %arg8[%c0_2, %c1, %c1_3, %c0_4] : memref<2x10x10x192xbf16, #tpu.memory_space<vmem>>, vector<2x8x8x192xbf16>
    tpu.vector_store %arg8[%c0_2, %c1, %c1_3, %c0_4], %5 {strides = array<i32>} : memref<2x10x10x192xbf16, #tpu.memory_space<vmem>>, vector<2x8x8x192xbf16>,
    %7 = vector.extract_strided_slice %5 {offsets = [0, 1, 0, 0], sizes = [2, 1, 8, 192], strides = [1, 1, 1, 1]} : vector<2x8x8x192xbf16> to vector<2x1x8x192xbf16>
    %c0_5 = arith.constant 0 : index
    %c0_6 = arith.constant 0 : index
    %c1_7 = arith.constant 1 : index
    %c0_8 = arith.constant 0 : index
    %8 = vector.load %arg8[%c0_5, %c0_6, %c1_7, %c0_8] : memref<2x10x10x192xbf16, #tpu.memory_space<vmem>>, vector<2x1x8x192xbf16>
    tpu.vector_store %arg8[%c0_5, %c0_6, %c1_7, %c0_8], %7 {strides = array<i32>} : memref<2x10x10x192xbf16, #tpu.memory_space<vmem>>, vector<2x1x8x192xbf16>,
    %9 = vector.extract_strided_slice %5 {offsets = [0, 6, 0, 0], sizes = [2, 1, 8, 192], strides = [1, 1, 1, 1]} : vector<2x8x8x192xbf16> to vector<2x1x8x192xbf16>
    %c0_9 = arith.constant 0 : index
    %c9 = arith.constant 9 : index
    %c1_10 = arith.constant 1 : index
    %c0_11 = arith.constant 0 : index
    %10 = vector.load %arg8[%c0_9, %c9, %c1_10, %c0_11] : memref<2x10x10x192xbf16, #tpu.memory_space<vmem>>, vector<2x1x8x192xbf16>
    tpu.vector_store %arg8[%c0_9, %c9, %c1_10, %c0_11], %9 {strides = array<i32>} : memref<2x10x10x192xbf16, #tpu.memory_space<vmem>>, vector<2x1x8x192xbf16>,
    %c0_12 = arith.constant 0 : index
    %c0_13 = arith.constant 0 : index
    %c2 = arith.constant 2 : index
    %c0_14 = arith.constant 0 : index
    %11 = vector.load %arg8[%c0_12, %c0_13, %c2, %c0_14] : memref<2x10x10x192xbf16, #tpu.memory_space<vmem>>, vector<2x10x1x192xbf16>
    %c0_15 = arith.constant 0 : index
    %c0_16 = arith.constant 0 : index
    %c0_17 = arith.constant 0 : index
    %c0_18 = arith.constant 0 : index
    %12 = vector.load %arg8[%c0_15, %c0_16, %c0_17, %c0_18] : memref<2x10x10x192xbf16, #tpu.memory_space<vmem>>, vector<2x10x1x192xbf16>
    tpu.vector_store %arg8[%c0_15, %c0_16, %c0_17, %c0_18], %11 {strides = array<i32>} : memref<2x10x10x192xbf16, #tpu.memory_space<vmem>>, vector<2x10x1x192xbf16>,
    %c0_19 = arith.constant 0 : index
    %c0_20 = arith.constant 0 : index
    %c7 = arith.constant 7 : index
    %c0_21 = arith.constant 0 : index
    %13 = vector.load %arg8[%c0_19, %c0_20, %c7, %c0_21] : memref<2x10x10x192xbf16, #tpu.memory_space<vmem>>, vector<2x10x1x192xbf16>
    %c0_22 = arith.constant 0 : index
    %c0_23 = arith.constant 0 : index
    %c9_24 = arith.constant 9 : index
    %c0_25 = arith.constant 0 : index
    %14 = vector.load %arg8[%c0_22, %c0_23, %c9_24, %c0_25] : memref<2x10x10x192xbf16, #tpu.memory_space<vmem>>, vector<2x10x1x192xbf16>
    tpu.vector_store %arg8[%c0_22, %c0_23, %c9_24, %c0_25], %13 {strides = array<i32>} : memref<2x10x10x192xbf16, #tpu.memory_space<vmem>>, vector<2x10x1x192xbf16>,
    %c0_26 = arith.constant 0 : index
    %c0_27 = arith.constant 0 : index
    %c0_28 = arith.constant 0 : index
    %c0_29 = arith.constant 0 : index
    %15 = vector.load %arg2[%c0_26, %c0_27, %c0_28, %c0_29] : memref<1x2x1728x192xbf16, #tpu.memory_space<vmem>>, vector<1x1x1728x192xbf16>
    %16 = vector.shape_cast %15 : vector<1x1x1728x192xbf16> to vector<1728x192xbf16>
    %c0_30 = arith.constant 0 : index
    %c0_31 = arith.constant 0 : index
    %c0_32 = arith.constant 0 : index
    %c0_33 = arith.constant 0 : index
    %17 = vector.load %arg3[%c0_30, %c0_31, %c0_32, %c0_33] : memref<1x2x1x192xf32, #tpu.memory_space<vmem>>, vector<1x1x1x192xf32>
    %18 = vector.shape_cast %17 : vector<1x1x1x192xf32> to vector<1x192xf32>
    %c0_34 = arith.constant 0 : index
    %c0_35 = arith.constant 0 : index
    %c0_36 = arith.constant 0 : index
    %c0_37 = arith.constant 0 : index
    %19 = vector.load %arg4[%c0_34, %c0_35, %c0_36, %c0_37] : memref<1x2x1x192xf32, #tpu.memory_space<vmem>>, vector<1x1x1x192xf32>
    %20 = vector.shape_cast %19 : vector<1x1x1x192xf32> to vector<1x192xf32>
    %c0_38 = arith.constant 0 : index
    %c0_39 = arith.constant 0 : index
    %c0_40 = arith.constant 0 : index
    %c0_41 = arith.constant 0 : index
    %21 = vector.load %arg8[%c0_38, %c0_39, %c0_40, %c0_41] : memref<2x10x10x192xbf16, #tpu.memory_space<vmem>>, vector<2x8x8x192xbf16>
    %22 = vector.shape_cast %21 : vector<2x8x8x192xbf16> to vector<128x192xbf16>
    %c0_42 = arith.constant 0 : index
    %c0_43 = arith.constant 0 : index
    %23 = vector.load %arg9[%c0_42, %c0_43] : memref<128x1728xbf16, #tpu.memory_space<vmem>>, vector<128x192xbf16>
    tpu.vector_store %arg9[%c0_42, %c0_43], %22 {strides = array<i32>} : memref<128x1728xbf16, #tpu.memory_space<vmem>>, vector<128x192xbf16>,
    %c0_44 = arith.constant 0 : index
    %c0_45 = arith.constant 0 : index
    %c1_46 = arith.constant 1 : index
    %c0_47 = arith.constant 0 : index
    %24 = vector.load %arg8[%c0_44, %c0_45, %c1_46, %c0_47] : memref<2x10x10x192xbf16, #tpu.memory_space<vmem>>, vector<2x8x8x192xbf16>
    %25 = vector.shape_cast %24 : vector<2x8x8x192xbf16> to vector<128x192xbf16>
    %c0_48 = arith.constant 0 : index
    %c192 = arith.constant 192 : index
    %26 = vector.load %arg9[%c0_48, %c192] : memref<128x1728xbf16, #tpu.memory_space<vmem>>, vector<128x192xbf16>
    tpu.vector_store %arg9[%c0_48, %c192], %25 {strides = array<i32>} : memref<128x1728xbf16, #tpu.memory_space<vmem>>, vector<128x192xbf16>,
    %c0_49 = arith.constant 0 : index
    %c0_50 = arith.constant 0 : index
    %c2_51 = arith.constant 2 : index
    %c0_52 = arith.constant 0 : index
    %27 = vector.load %arg8[%c0_49, %c0_50, %c2_51, %c0_52] : memref<2x10x10x192xbf16, #tpu.memory_space<vmem>>, vector<2x8x8x192xbf16>
    %28 = vector.shape_cast %27 : vector<2x8x8x192xbf16> to vector<128x192xbf16>
    %c0_53 = arith.constant 0 : index
    %c384 = arith.constant 384 : index
    %29 = vector.load %arg9[%c0_53, %c384] : memref<128x1728xbf16, #tpu.memory_space<vmem>>, vector<128x192xbf16>
    tpu.vector_store %arg9[%c0_53, %c384], %28 {strides = array<i32>} : memref<128x1728xbf16, #tpu.memory_space<vmem>>, vector<128x192xbf16>,
    %c0_54 = arith.constant 0 : index
    %c1_55 = arith.constant 1 : index
    %c0_56 = arith.constant 0 : index
    %c0_57 = arith.constant 0 : index
    %30 = vector.load %arg8[%c0_54, %c1_55, %c0_56, %c0_57] : memref<2x10x10x192xbf16, #tpu.memory_space<vmem>>, vector<2x8x8x192xbf16>
    %31 = vector.shape_cast %30 : vector<2x8x8x192xbf16> to vector<128x192xbf16>
    %c0_58 = arith.constant 0 : index
    %c576 = arith.constant 576 : index
    %32 = vector.load %arg9[%c0_58, %c576] : memref<128x1728xbf16, #tpu.memory_space<vmem>>, vector<128x192xbf16>
    tpu.vector_store %arg9[%c0_58, %c576], %31 {strides = array<i32>} : memref<128x1728xbf16, #tpu.memory_space<vmem>>, vector<128x192xbf16>,
    %c0_59 = arith.constant 0 : index
    %c1_60 = arith.constant 1 : index
    %c1_61 = arith.constant 1 : index
    %c0_62 = arith.constant 0 : index
    %33 = vector.load %arg8[%c0_59, %c1_60, %c1_61, %c0_62] : memref<2x10x10x192xbf16, #tpu.memory_space<vmem>>, vector<2x8x8x192xbf16>
    %34 = vector.shape_cast %33 : vector<2x8x8x192xbf16> to vector<128x192xbf16>
    %c0_63 = arith.constant 0 : index
    %c768 = arith.constant 768 : index
    %35 = vector.load %arg9[%c0_63, %c768] : memref<128x1728xbf16, #tpu.memory_space<vmem>>, vector<128x192xbf16>
    tpu.vector_store %arg9[%c0_63, %c768], %34 {strides = array<i32>} : memref<128x1728xbf16, #tpu.memory_space<vmem>>, vector<128x192xbf16>,
    %c0_64 = arith.constant 0 : index
    %c1_65 = arith.constant 1 : index
    %c2_66 = arith.constant 2 : index
    %c0_67 = arith.constant 0 : index
    %36 = vector.load %arg8[%c0_64, %c1_65, %c2_66, %c0_67] : memref<2x10x10x192xbf16, #tpu.memory_space<vmem>>, vector<2x8x8x192xbf16>
    %37 = vector.shape_cast %36 : vector<2x8x8x192xbf16> to vector<128x192xbf16>
    %c0_68 = arith.constant 0 : index
    %c960 = arith.constant 960 : index
    %38 = vector.load %arg9[%c0_68, %c960] : memref<128x1728xbf16, #tpu.memory_space<vmem>>, vector<128x192xbf16>
    tpu.vector_store %arg9[%c0_68, %c960], %37 {strides = array<i32>} : memref<128x1728xbf16, #tpu.memory_space<vmem>>, vector<128x192xbf16>,
    %c0_69 = arith.constant 0 : index
    %c2_70 = arith.constant 2 : index
    %c0_71 = arith.constant 0 : index
    %c0_72 = arith.constant 0 : index
    %39 = vector.load %arg8[%c0_69, %c2_70, %c0_71, %c0_72] : memref<2x10x10x192xbf16, #tpu.memory_space<vmem>>, vector<2x8x8x192xbf16>
    %40 = vector.shape_cast %39 : vector<2x8x8x192xbf16> to vector<128x192xbf16>
    %c0_73 = arith.constant 0 : index
    %c1152 = arith.constant 1152 : index
    %41 = vector.load %arg9[%c0_73, %c1152] : memref<128x1728xbf16, #tpu.memory_space<vmem>>, vector<128x192xbf16>
    tpu.vector_store %arg9[%c0_73, %c1152], %40 {strides = array<i32>} : memref<128x1728xbf16, #tpu.memory_space<vmem>>, vector<128x192xbf16>,
    %c0_74 = arith.constant 0 : index
    %c2_75 = arith.constant 2 : index
    %c1_76 = arith.constant 1 : index
    %c0_77 = arith.constant 0 : index
    %42 = vector.load %arg8[%c0_74, %c2_75, %c1_76, %c0_77] : memref<2x10x10x192xbf16, #tpu.memory_space<vmem>>, vector<2x8x8x192xbf16>
    %43 = vector.shape_cast %42 : vector<2x8x8x192xbf16> to vector<128x192xbf16>
    %c0_78 = arith.constant 0 : index
    %c1344 = arith.constant 1344 : index
    %44 = vector.load %arg9[%c0_78, %c1344] : memref<128x1728xbf16, #tpu.memory_space<vmem>>, vector<128x192xbf16>
    tpu.vector_store %arg9[%c0_78, %c1344], %43 {strides = array<i32>} : memref<128x1728xbf16, #tpu.memory_space<vmem>>, vector<128x192xbf16>,
    %c0_79 = arith.constant 0 : index
    %c2_80 = arith.constant 2 : index
    %c2_81 = arith.constant 2 : index
    %c0_82 = arith.constant 0 : index
    %45 = vector.load %arg8[%c0_79, %c2_80, %c2_81, %c0_82] : memref<2x10x10x192xbf16, #tpu.memory_space<vmem>>, vector<2x8x8x192xbf16>
    %46 = vector.shape_cast %45 : vector<2x8x8x192xbf16> to vector<128x192xbf16>
    %c0_83 = arith.constant 0 : index
    %c1536 = arith.constant 1536 : index
    %47 = vector.load %arg9[%c0_83, %c1536] : memref<128x1728xbf16, #tpu.memory_space<vmem>>, vector<128x192xbf16>
    tpu.vector_store %arg9[%c0_83, %c1536], %46 {strides = array<i32>} : memref<128x1728xbf16, #tpu.memory_space<vmem>>, vector<128x192xbf16>,
    %c0_84 = arith.constant 0 : index
    %c0_85 = arith.constant 0 : index
    %48 = vector.load %arg9[%c0_84, %c0_85] : memref<128x1728xbf16, #tpu.memory_space<vmem>>, vector<128x1728xbf16>
    %cst = arith.constant dense<0.000000e+00> : vector<128x192xf32>
    %49 = tpu.matmul %48, %16, %cst {dimension_numbers = #tpu.dot_dimension_numbers<[1], [0], [0], [1], [0, 0, 1, 1], [], []>} : vector<128x1728xbf16>, vector<1728x192xbf16>, vector<128x192xf32> -> vector<128x192xf32>
    %50 = vector.broadcast %18 : vector<1x192xf32> to vector<128x192xf32>
    %51 = arith.mulf %49, %50 : vector<128x192xf32>
    %52 = vector.broadcast %20 : vector<1x192xf32> to vector<128x192xf32>
    %53 = arith.addf %51, %52 : vector<128x192xf32>
    %cst_86 = arith.constant 0.000000e+00 : f32
    %54 = vector.broadcast %cst_86 : f32 to vector<128x192xf32>
    %55 = arith.maximumf %53, %54 : vector<128x192xf32>
    %56 = vector.shape_cast %55 : vector<128x192xf32> to vector<2x8x8x192xf32>
    %57 = arith.truncf %56 : vector<2x8x8x192xf32> to vector<2x8x8x192xbf16>
    %c0_87 = arith.constant 0 : index
    %c1_88 = arith.constant 1 : index
    %c1_89 = arith.constant 1 : index
    %c0_90 = arith.constant 0 : index
    %58 = vector.load %arg8[%c0_87, %c1_88, %c1_89, %c0_90] : memref<2x10x10x192xbf16, #tpu.memory_space<vmem>>, vector<2x8x8x192xbf16>
    tpu.vector_store %arg8[%c0_87, %c1_88, %c1_89, %c0_90], %57 {strides = array<i32>} : memref<2x10x10x192xbf16, #tpu.memory_space<vmem>>, vector<2x8x8x192xbf16>,
    %59 = vector.extract_strided_slice %57 {offsets = [0, 1, 0, 0], sizes = [2, 1, 8, 192], strides = [1, 1, 1, 1]} : vector<2x8x8x192xbf16> to vector<2x1x8x192xbf16>
    %c0_91 = arith.constant 0 : index
    %c0_92 = arith.constant 0 : index
    %c1_93 = arith.constant 1 : index
    %c0_94 = arith.constant 0 : index
    %60 = vector.load %arg8[%c0_91, %c0_92, %c1_93, %c0_94] : memref<2x10x10x192xbf16, #tpu.memory_space<vmem>>, vector<2x1x8x192xbf16>
    tpu.vector_store %arg8[%c0_91, %c0_92, %c1_93, %c0_94], %59 {strides = array<i32>} : memref<2x10x10x192xbf16, #tpu.memory_space<vmem>>, vector<2x1x8x192xbf16>,
    %61 = vector.extract_strided_slice %57 {offsets = [0, 6, 0, 0], sizes = [2, 1, 8, 192], strides = [1, 1, 1, 1]} : vector<2x8x8x192xbf16> to vector<2x1x8x192xbf16>
    %c0_95 = arith.constant 0 : index
    %c9_96 = arith.constant 9 : index
    %c1_97 = arith.constant 1 : index
    %c0_98 = arith.constant 0 : index
    %62 = vector.load %arg8[%c0_95, %c9_96, %c1_97, %c0_98] : memref<2x10x10x192xbf16, #tpu.memory_space<vmem>>, vector<2x1x8x192xbf16>
    tpu.vector_store %arg8[%c0_95, %c9_96, %c1_97, %c0_98], %61 {strides = array<i32>} : memref<2x10x10x192xbf16, #tpu.memory_space<vmem>>, vector<2x1x8x192xbf16>,
    %c0_99 = arith.constant 0 : index
    %c0_100 = arith.constant 0 : index
    %c2_101 = arith.constant 2 : index
    %c0_102 = arith.constant 0 : index
    %63 = vector.load %arg8[%c0_99, %c0_100, %c2_101, %c0_102] : memref<2x10x10x192xbf16, #tpu.memory_space<vmem>>, vector<2x10x1x192xbf16>
    %c0_103 = arith.constant 0 : index
    %c0_104 = arith.constant 0 : index
    %c0_105 = arith.constant 0 : index
    %c0_106 = arith.constant 0 : index
    %64 = vector.load %arg8[%c0_103, %c0_104, %c0_105, %c0_106] : memref<2x10x10x192xbf16, #tpu.memory_space<vmem>>, vector<2x10x1x192xbf16>
    tpu.vector_store %arg8[%c0_103, %c0_104, %c0_105, %c0_106], %63 {strides = array<i32>} : memref<2x10x10x192xbf16, #tpu.memory_space<vmem>>, vector<2x10x1x192xbf16>,
    %c0_107 = arith.constant 0 : index
    %c0_108 = arith.constant 0 : index
    %c7_109 = arith.constant 7 : index
    %c0_110 = arith.constant 0 : index
    %65 = vector.load %arg8[%c0_107, %c0_108, %c7_109, %c0_110] : memref<2x10x10x192xbf16, #tpu.memory_space<vmem>>, vector<2x10x1x192xbf16>
    %c0_111 = arith.constant 0 : index
    %c0_112 = arith.constant 0 : index
    %c9_113 = arith.constant 9 : index
    %c0_114 = arith.constant 0 : index
    %66 = vector.load %arg8[%c0_111, %c0_112, %c9_113, %c0_114] : memref<2x10x10x192xbf16, #tpu.memory_space<vmem>>, vector<2x10x1x192xbf16>
    tpu.vector_store %arg8[%c0_111, %c0_112, %c9_113, %c0_114], %65 {strides = array<i32>} : memref<2x10x10x192xbf16, #tpu.memory_space<vmem>>, vector<2x10x1x192xbf16>,
    %c0_115 = arith.constant 0 : index
    %c1_116 = arith.constant 1 : index
    %c0_117 = arith.constant 0 : index
    %c0_118 = arith.constant 0 : index
    %67 = vector.load %arg2[%c0_115, %c1_116, %c0_117, %c0_118] : memref<1x2x1728x192xbf16, #tpu.memory_space<vmem>>, vector<1x1x1728x192xbf16>
    %68 = vector.shape_cast %67 : vector<1x1x1728x192xbf16> to vector<1728x192xbf16>
    %c0_119 = arith.constant 0 : index
    %c1_120 = arith.constant 1 : index
    %c0_121 = arith.constant 0 : index
    %c0_122 = arith.constant 0 : index
    %69 = vector.load %arg3[%c0_119, %c1_120, %c0_121, %c0_122] : memref<1x2x1x192xf32, #tpu.memory_space<vmem>>, vector<1x1x1x192xf32>
    %70 = vector.shape_cast %69 : vector<1x1x1x192xf32> to vector<1x192xf32>
    %c0_123 = arith.constant 0 : index
    %c1_124 = arith.constant 1 : index
    %c0_125 = arith.constant 0 : index
    %c0_126 = arith.constant 0 : index
    %71 = vector.load %arg4[%c0_123, %c1_124, %c0_125, %c0_126] : memref<1x2x1x192xf32, #tpu.memory_space<vmem>>, vector<1x1x1x192xf32>
    %72 = vector.shape_cast %71 : vector<1x1x1x192xf32> to vector<1x192xf32>
    %c0_127 = arith.constant 0 : index
    %c0_128 = arith.constant 0 : index
    %c0_129 = arith.constant 0 : index
    %c0_130 = arith.constant 0 : index
    %73 = vector.load %arg8[%c0_127, %c0_128, %c0_129, %c0_130] : memref<2x10x10x192xbf16, #tpu.memory_space<vmem>>, vector<2x8x8x192xbf16>
    %74 = vector.shape_cast %73 : vector<2x8x8x192xbf16> to vector<128x192xbf16>
    %c0_131 = arith.constant 0 : index
    %c0_132 = arith.constant 0 : index
    %75 = vector.load %arg9[%c0_131, %c0_132] : memref<128x1728xbf16, #tpu.memory_space<vmem>>, vector<128x192xbf16>
    tpu.vector_store %arg9[%c0_131, %c0_132], %74 {strides = array<i32>} : memref<128x1728xbf16, #tpu.memory_space<vmem>>, vector<128x192xbf16>,
    %c0_133 = arith.constant 0 : index
    %c0_134 = arith.constant 0 : index
    %c1_135 = arith.constant 1 : index
    %c0_136 = arith.constant 0 : index
    %76 = vector.load %arg8[%c0_133, %c0_134, %c1_135, %c0_136] : memref<2x10x10x192xbf16, #tpu.memory_space<vmem>>, vector<2x8x8x192xbf16>
    %77 = vector.shape_cast %76 : vector<2x8x8x192xbf16> to vector<128x192xbf16>
    %c0_137 = arith.constant 0 : index
    %c192_138 = arith.constant 192 : index
    %78 = vector.load %arg9[%c0_137, %c192_138] : memref<128x1728xbf16, #tpu.memory_space<vmem>>, vector<128x192xbf16>
    tpu.vector_store %arg9[%c0_137, %c192_138], %77 {strides = array<i32>} : memref<128x1728xbf16, #tpu.memory_space<vmem>>, vector<128x192xbf16>,
    %c0_139 = arith.constant 0 : index
    %c0_140 = arith.constant 0 : index
    %c2_141 = arith.constant 2 : index
    %c0_142 = arith.constant 0 : index
    %79 = vector.load %arg8[%c0_139, %c0_140, %c2_141, %c0_142] : memref<2x10x10x192xbf16, #tpu.memory_space<vmem>>, vector<2x8x8x192xbf16>
    %80 = vector.shape_cast %79 : vector<2x8x8x192xbf16> to vector<128x192xbf16>
    %c0_143 = arith.constant 0 : index
    %c384_144 = arith.constant 384 : index
    %81 = vector.load %arg9[%c0_143, %c384_144] : memref<128x1728xbf16, #tpu.memory_space<vmem>>, vector<128x192xbf16>
    tpu.vector_store %arg9[%c0_143, %c384_144], %80 {strides = array<i32>} : memref<128x1728xbf16, #tpu.memory_space<vmem>>, vector<128x192xbf16>,
    %c0_145 = arith.constant 0 : index
    %c1_146 = arith.constant 1 : index
    %c0_147 = arith.constant 0 : index
    %c0_148 = arith.constant 0 : index
    %82 = vector.load %arg8[%c0_145, %c1_146, %c0_147, %c0_148] : memref<2x10x10x192xbf16, #tpu.memory_space<vmem>>, vector<2x8x8x192xbf16>
    %83 = vector.shape_cast %82 : vector<2x8x8x192xbf16> to vector<128x192xbf16>
    %c0_149 = arith.constant 0 : index
    %c576_150 = arith.constant 576 : index
    %84 = vector.load %arg9[%c0_149, %c576_150] : memref<128x1728xbf16, #tpu.memory_space<vmem>>, vector<128x192xbf16>
    tpu.vector_store %arg9[%c0_149, %c576_150], %83 {strides = array<i32>} : memref<128x1728xbf16, #tpu.memory_space<vmem>>, vector<128x192xbf16>,
    %c0_151 = arith.constant 0 : index
    %c1_152 = arith.constant 1 : index
    %c1_153 = arith.constant 1 : index
    %c0_154 = arith.constant 0 : index
    %85 = vector.load %arg8[%c0_151, %c1_152, %c1_153, %c0_154] : memref<2x10x10x192xbf16, #tpu.memory_space<vmem>>, vector<2x8x8x192xbf16>
    %86 = vector.shape_cast %85 : vector<2x8x8x192xbf16> to vector<128x192xbf16>
    %c0_155 = arith.constant 0 : index
    %c768_156 = arith.constant 768 : index
    %87 = vector.load %arg9[%c0_155, %c768_156] : memref<128x1728xbf16, #tpu.memory_space<vmem>>, vector<128x192xbf16>
    tpu.vector_store %arg9[%c0_155, %c768_156], %86 {strides = array<i32>} : memref<128x1728xbf16, #tpu.memory_space<vmem>>, vector<128x192xbf16>,
    %c0_157 = arith.constant 0 : index
    %c1_158 = arith.constant 1 : index
    %c2_159 = arith.constant 2 : index
    %c0_160 = arith.constant 0 : index
    %88 = vector.load %arg8[%c0_157, %c1_158, %c2_159, %c0_160] : memref<2x10x10x192xbf16, #tpu.memory_space<vmem>>, vector<2x8x8x192xbf16>
    %89 = vector.shape_cast %88 : vector<2x8x8x192xbf16> to vector<128x192xbf16>
    %c0_161 = arith.constant 0 : index
    %c960_162 = arith.constant 960 : index
    %90 = vector.load %arg9[%c0_161, %c960_162] : memref<128x1728xbf16, #tpu.memory_space<vmem>>, vector<128x192xbf16>
    tpu.vector_store %arg9[%c0_161, %c960_162], %89 {strides = array<i32>} : memref<128x1728xbf16, #tpu.memory_space<vmem>>, vector<128x192xbf16>,
    %c0_163 = arith.constant 0 : index
    %c2_164 = arith.constant 2 : index
    %c0_165 = arith.constant 0 : index
    %c0_166 = arith.constant 0 : index
    %91 = vector.load %arg8[%c0_163, %c2_164, %c0_165, %c0_166] : memref<2x10x10x192xbf16, #tpu.memory_space<vmem>>, vector<2x8x8x192xbf16>
    %92 = vector.shape_cast %91 : vector<2x8x8x192xbf16> to vector<128x192xbf16>
    %c0_167 = arith.constant 0 : index
    %c1152_168 = arith.constant 1152 : index
    %93 = vector.load %arg9[%c0_167, %c1152_168] : memref<128x1728xbf16, #tpu.memory_space<vmem>>, vector<128x192xbf16>
    tpu.vector_store %arg9[%c0_167, %c1152_168], %92 {strides = array<i32>} : memref<128x1728xbf16, #tpu.memory_space<vmem>>, vector<128x192xbf16>,
    %c0_169 = arith.constant 0 : index
    %c2_170 = arith.constant 2 : index
    %c1_171 = arith.constant 1 : index
    %c0_172 = arith.constant 0 : index
    %94 = vector.load %arg8[%c0_169, %c2_170, %c1_171, %c0_172] : memref<2x10x10x192xbf16, #tpu.memory_space<vmem>>, vector<2x8x8x192xbf16>
    %95 = vector.shape_cast %94 : vector<2x8x8x192xbf16> to vector<128x192xbf16>
    %c0_173 = arith.constant 0 : index
    %c1344_174 = arith.constant 1344 : index
    %96 = vector.load %arg9[%c0_173, %c1344_174] : memref<128x1728xbf16, #tpu.memory_space<vmem>>, vector<128x192xbf16>
    tpu.vector_store %arg9[%c0_173, %c1344_174], %95 {strides = array<i32>} : memref<128x1728xbf16, #tpu.memory_space<vmem>>, vector<128x192xbf16>,
    %c0_175 = arith.constant 0 : index
    %c2_176 = arith.constant 2 : index
    %c2_177 = arith.constant 2 : index
    %c0_178 = arith.constant 0 : index
    %97 = vector.load %arg8[%c0_175, %c2_176, %c2_177, %c0_178] : memref<2x10x10x192xbf16, #tpu.memory_space<vmem>>, vector<2x8x8x192xbf16>
    %98 = vector.shape_cast %97 : vector<2x8x8x192xbf16> to vector<128x192xbf16>
    %c0_179 = arith.constant 0 : index
    %c1536_180 = arith.constant 1536 : index
    %99 = vector.load %arg9[%c0_179, %c1536_180] : memref<128x1728xbf16, #tpu.memory_space<vmem>>, vector<128x192xbf16>
    tpu.vector_store %arg9[%c0_179, %c1536_180], %98 {strides = array<i32>} : memref<128x1728xbf16, #tpu.memory_space<vmem>>, vector<128x192xbf16>,
    %c0_181 = arith.constant 0 : index
    %c0_182 = arith.constant 0 : index
    %100 = vector.load %arg9[%c0_181, %c0_182] : memref<128x1728xbf16, #tpu.memory_space<vmem>>, vector<128x1728xbf16>
    %cst_183 = arith.constant dense<0.000000e+00> : vector<128x192xf32>
    %101 = tpu.matmul %100, %68, %cst_183 {dimension_numbers = #tpu.dot_dimension_numbers<[1], [0], [0], [1], [0, 0, 1, 1], [], []>} : vector<128x1728xbf16>, vector<1728x192xbf16>, vector<128x192xf32> -> vector<128x192xf32>
    %102 = vector.broadcast %70 : vector<1x192xf32> to vector<128x192xf32>
    %103 = arith.mulf %101, %102 : vector<128x192xf32>
    %104 = vector.broadcast %72 : vector<1x192xf32> to vector<128x192xf32>
    %105 = arith.addf %103, %104 : vector<128x192xf32>
    %106 = arith.addf %3, %105 : vector<128x192xf32>
    %c0_184 = arith.constant 0 : index
    %c0_185 = arith.constant 0 : index
    %107 = vector.load %arg6[%c0_184, %c0_185] : memref<128x192xf32, #tpu.memory_space<vmem>>, vector<128x192xf32>
    tpu.vector_store %arg6[%c0_184, %c0_185], %106 {strides = array<i32>} : memref<128x192xf32, #tpu.memory_space<vmem>>, vector<128x192xf32>,
    %c8_i32 = arith.constant 8 : i32
    %108 = arith.cmpi eq, %arg0, %c8_i32 : i32
    %109 = arith.extui %108 : i1 to i32
    %c0_i32_186 = arith.constant 0 : i32
    %110 = arith.cmpi ne, %109, %c0_i32_186 : i32
    scf.if %110 {
      %c0_187 = arith.constant 0 : index
      %c0_188 = arith.constant 0 : index
      %111 = vector.load %arg5[%c0_187, %c0_188] : memref<32x128xf32, #tpu.memory_space<vmem>>, vector<32x128xf32>
      %cst_189 = arith.constant dense<0.000000e+00> : vector<32x192xf32>
      %112 = tpu.matmul %111, %106, %cst_189 {dimension_numbers = #tpu.dot_dimension_numbers<[1], [0], [0], [1], [0, 0, 1, 1], [], []>} : vector<32x128xf32>, vector<128x192xf32>, vector<32x192xf32> -> vector<32x192xf32>
      %c0_190 = arith.constant 0 : index
      %c0_191 = arith.constant 0 : index
      %113 = vector.load %arg7[%c0_190, %c0_191] : memref<32x192xf32, #tpu.memory_space<vmem>>, vector<32x192xf32>
      tpu.vector_store %arg7[%c0_190, %c0_191], %112 {strides = array<i32>} : memref<32x192xf32, #tpu.memory_space<vmem>>, vector<32x192xf32>,
    } else {
    }
    return
  }
  func.func @transform_0(%arg0: i32) -> (i32, i32) {
    %c0_i32 = arith.constant 0 : i32
    %c0_i32_0 = arith.constant 0 : i32
    %c0_i32_1 = arith.constant 0 : i32
    return %c0_i32, %c0_i32_0 : i32, i32
  }
  func.func @transform_1(%arg0: i32) -> (i32, i32, i32, i32) {
    %c0_i32 = arith.constant 0 : i32
    %c0_i32_0 = arith.constant 0 : i32
    %c0_i32_1 = arith.constant 0 : i32
    %c0_i32_2 = arith.constant 0 : i32
    return %arg0, %c0_i32, %c0_i32_0, %c0_i32_1 : i32, i32, i32, i32
  }
  func.func @transform_2(%arg0: i32) -> (i32, i32, i32, i32) {
    %c0_i32 = arith.constant 0 : i32
    %c0_i32_0 = arith.constant 0 : i32
    %c0_i32_1 = arith.constant 0 : i32
    %c0_i32_2 = arith.constant 0 : i32
    return %arg0, %c0_i32, %c0_i32_0, %c0_i32_1 : i32, i32, i32, i32
  }
  func.func @transform_3(%arg0: i32) -> (i32, i32, i32, i32) {
    %c0_i32 = arith.constant 0 : i32
    %c0_i32_0 = arith.constant 0 : i32
    %c0_i32_1 = arith.constant 0 : i32
    %c0_i32_2 = arith.constant 0 : i32
    return %arg0, %c0_i32, %c0_i32_0, %c0_i32_1 : i32, i32, i32, i32
  }
  func.func @transform_4(%arg0: i32) -> (i32, i32) {
    %c0_i32 = arith.constant 0 : i32
    %c0_i32_0 = arith.constant 0 : i32
    %c0_i32_1 = arith.constant 0 : i32
    return %c0_i32, %c0_i32_0 : i32, i32
  }
  func.func @transform_5(%arg0: i32) -> (i32, i32) {
    %c0_i32 = arith.constant 0 : i32
    %c0_i32_0 = arith.constant 0 : i32
    %c0_i32_1 = arith.constant 0 : i32
    return %c0_i32, %c0_i32_0 : i32, i32
  }
  func.func @transform_6(%arg0: i32) -> (i32, i32) {
    %c0_i32 = arith.constant 0 : i32
    %c0_i32_0 = arith.constant 0 : i32
    %c0_i32_1 = arith.constant 0 : i32
    return %c0_i32, %c0_i32_0 : i32, i32
  }
}

</mosaic_0001>

<bundles_post_ra>
// kernel: forward.1
= control target key start
LH: loop header
LB: loop body
LE: loop exit
PB: predicated region body
PF: predicated region fallthrough
CT: control target
= control target key end

     0   :  { %12 = vsyncpa [#allocation5], 0  ;;  %s13566_s21 = smov 0   ;;  %s18019_s0 = inlined_call_operand.vmem [shape: f32[128,192], index: 0, kind: input, shape index: {}]   ;;  %s18020_s1 = inlined_call_operand.vmem [shape: bf16[9,2,1728,192], index: 1, kind: input, shape index: {}]   ;;  %s18021_s2 = inlined_call_operand.vmem [shape: f32[9,2,1,192], index: 2, kind: input, shape index: {}]   ;;  %s18022_s3 = inlined_call_operand.vmem [shape: f32[9,2,1,192], index: 3, kind: input, shape index: {}]   ;;  %s18023_s4 = inlined_call_operand.vmem [shape: f32[32,128], index: 4, kind: input, shape index: {}]   ;;  %s18024_s5 = inlined_call_operand.hbm [shape: f32[128,192], index: 5, kind: output, shape index: {0}]   ;;  %s18025_s6 = inlined_call_operand.vmem [shape: f32[32,192], index: 6, kind: output, shape index: {1}]  }
   0x1 LB: > { %s13572_s22 = sadd.s32 4294967295, %s13524_s21   ;;  %p11297_p0 = scmp.ge.s32.totalorder %s13524_s21, 1  ;;  %s13524_s21 = sphi %s13566_s21, %s18_s21  }
   0x2   : > { %p224_p1 = scmp.lt.s32.totalorder %s13524_s21, 10 }
   0x4   : > { %p225_p2 = pnand %p11297_p0, %p224_p1 }
   0x6   : > { %228 = sbr.rel (%p225_p2) target bundleno = 1577 (0x629), region = 40 }
   0xb   : > { %p257_p3 = scmp.lt.s32.totalorder %s13572_s22, 8  ;;  %p11301_p4 = scmp.ne.s32.totalorder %s13572_s22, 0 }
   0xd   : > { %s258_s23 = scalar_select %p257_p3, %s13572_s22, 8 }
   0xe   : > { %274 = sbr.rel (%p11301_p4) target bundleno = 36 (0x24), region = 44 }
   0xf   : > { %s12469_s24 = smul.u32 3456, %s258_s23  ;;  %s11299_s25 = sshll.u32 %s258_s23, 2 }
  0x10   : > { %s13581_s28 = scalar_lea.vmem %s18021_s2, %s11299_s25  ;;  %s13586_s7 = scalar_lea.vmem %s18022_s3, %s11299_s25 }
  0x11   : > { %s13591_s10 = scalar_lea.vmem %s18020_s1, %s12469_s24 }
  0x13   : > { %v275_v0 = vld [vmem:[%s18019_s0] sm:$0xff]  ;;  %v276_v1 = vld [vmem:[%s18019_s0 + $0x8] sm:$0xff]  ;;  %vm308_vm0 = vcmask 523264   ;;  %v277_v2 = vld [vmem:[%s18019_s0 + $0x10] sm:$0xff] }
  0x14   : > { %307 = vst [vmem:[#allocation4] sm:$0xff] %v275_v0  ;;  %309 = vst.msk [vmem:[#allocation4 + $0x8] sm:$0xff] %vm308_vm0, %v276_v1  ;;  %v278_v3 = vld [vmem:[%s18019_s0 + $0x18] sm:$0xff]  ;;  %v279_v4 = vld [vmem:[%s18019_s0 + $0x20] sm:$0xff] }
  0x15   : > { %310 = vst [vmem:[#allocation4 + $0x10] sm:$0xff] %v277_v2  ;;  %v280_v5 = vld [vmem:[%s18019_s0 + $0x28] sm:$0xff]  ;;  %311 = vst.msk [vmem:[#allocation4 + $0x18] sm:$0xff] %vm308_vm0, %v278_v3  ;;  %v281_v6 = vld [vmem:[%s18019_s0 + $0x30] sm:$0xff] }
  0x16   : > { %312 = vst [vmem:[#allocation4 + $0x20] sm:$0xff] %v279_v4  ;;  %313 = vst.msk [vmem:[#allocation4 + $0x28] sm:$0xff] %vm308_vm0, %v280_v5  ;;  %v282_v7 = vld [vmem:[%s18019_s0 + $0x38] sm:$0xff]  ;;  %v283_v8 = vld [vmem:[%s18019_s0 + $0x40] sm:$0xff] }
  0x17   : > { %314 = vst [vmem:[#allocation4 + $0x30] sm:$0xff] %v281_v6  ;;  %315 = vst.msk [vmem:[#allocation4 + $0x38] sm:$0xff] %vm308_vm0, %v282_v7  ;;  %v284_v9 = vld [vmem:[%s18019_s0 + $0x48] sm:$0xff]  ;;  %v285_v10 = vld [vmem:[%s18019_s0 + $0x50] sm:$0xff] }
  0x18   : > { %316 = vst [vmem:[#allocation4 + $0x40] sm:$0xff] %v283_v8  ;;  %v286_v11 = vld [vmem:[%s18019_s0 + $0x58] sm:$0xff]  ;;  %317 = vst.msk [vmem:[#allocation4 + $0x48] sm:$0xff] %vm308_vm0, %v284_v9  ;;  %v287_v12 = vld [vmem:[%s18019_s0 + $0x60] sm:$0xff] }
  0x19   : > { %318 = vst [vmem:[#allocation4 + $0x50] sm:$0xff] %v285_v10  ;;  %319 = vst.msk [vmem:[#allocation4 + $0x58] sm:$0xff] %vm308_vm0, %v286_v11  ;;  %v288_v13 = vld [vmem:[%s18019_s0 + $0x68] sm:$0xff]  ;;  %v289_v14 = vld [vmem:[%s18019_s0 + $0x70] sm:$0xff] }
  0x1a   : > { %320 = vst [vmem:[#allocation4 + $0x60] sm:$0xff] %v287_v12  ;;  %321 = vst.msk [vmem:[#allocation4 + $0x68] sm:$0xff] %vm308_vm0, %v288_v13  ;;  %v290_v15 = vld [vmem:[%s18019_s0 + $0x78] sm:$0xff]  ;;  %v291_v16 = vld [vmem:[%s18019_s0 + $0x80] sm:$0xff] }
  0x1b   : > { %322 = vst [vmem:[#allocation4 + $0x70] sm:$0xff] %v289_v14  ;;  %v292_v17 = vld [vmem:[%s18019_s0 + $0x88] sm:$0xff]  ;;  %323 = vst.msk [vmem:[#allocation4 + $0x78] sm:$0xff] %vm308_vm0, %v290_v15  ;;  %v293_v18 = vld [vmem:[%s18019_s0 + $0x90] sm:$0xff] }
  0x1c   : > { %324 = vst [vmem:[#allocation4 + $0x80] sm:$0xff] %v291_v16  ;;  %325 = vst.msk [vmem:[#allocation4 + $0x88] sm:$0xff] %vm308_vm0, %v292_v17  ;;  %v294_v19 = vld [vmem:[%s18019_s0 + $0x98] sm:$0xff]  ;;  %v295_v20 = vld [vmem:[%s18019_s0 + $0xa0] sm:$0xff] }
  0x1d   : > { %326 = vst [vmem:[#allocation4 + $0x90] sm:$0xff] %v293_v18  ;;  %327 = vst.msk [vmem:[#allocation4 + $0x98] sm:$0xff] %vm308_vm0, %v294_v19  ;;  %v296_v21 = vld [vmem:[%s18019_s0 + $0xa8] sm:$0xff]  ;;  %v297_v22 = vld [vmem:[%s18019_s0 + $0xb0] sm:$0xff] }
  0x1e   : > { %328 = vst [vmem:[#allocation4 + $0xa0] sm:$0xff] %v295_v20  ;;  %v298_v23 = vld [vmem:[%s18019_s0 + $0xb8] sm:$0xff]  ;;  %329 = vst.msk [vmem:[#allocation4 + $0xa8] sm:$0xff] %vm308_vm0, %v296_v21  ;;  %v299_v24 = vld [vmem:[%s18019_s0 + $0xc0] sm:$0xff] }
  0x1f   : > { %330 = vst [vmem:[#allocation4 + $0xb0] sm:$0xff] %v297_v22  ;;  %331 = vst.msk [vmem:[#allocation4 + $0xb8] sm:$0xff] %vm308_vm0, %v298_v23  ;;  %v300_v25 = vld [vmem:[%s18019_s0 + $0xc8] sm:$0xff]  ;;  %v301_v26 = vld [vmem:[%s18019_s0 + $0xd0] sm:$0xff] }
  0x20   : > { %332 = vst [vmem:[#allocation4 + $0xc0] sm:$0xff] %v299_v24  ;;  %333 = vst.msk [vmem:[#allocation4 + $0xc8] sm:$0xff] %vm308_vm0, %v300_v25  ;;  %v302_v27 = vld [vmem:[%s18019_s0 + $0xd8] sm:$0xff]  ;;  %v303_v28 = vld [vmem:[%s18019_s0 + $0xe0] sm:$0xff] }
  0x21   : > { %334 = vst [vmem:[#allocation4 + $0xd0] sm:$0xff] %v301_v26  ;;  %v304_v29 = vld [vmem:[%s18019_s0 + $0xe8] sm:$0xff]  ;;  %335 = vst.msk [vmem:[#allocation4 + $0xd8] sm:$0xff] %vm308_vm0, %v302_v27  ;;  %v305_v30 = vld [vmem:[%s18019_s0 + $0xf0] sm:$0xff] }
  0x22   : > { %336 = vst [vmem:[#allocation4 + $0xe0] sm:$0xff] %v303_v28  ;;  %337 = vst.msk [vmem:[#allocation4 + $0xe8] sm:$0xff] %vm308_vm0, %v304_v29  ;;  %v306_v31 = vld [vmem:[%s18019_s0 + $0xf8] sm:$0xff] }
  0x23   : > { %338 = vst [vmem:[#allocation4 + $0xf0] sm:$0xff] %v305_v30  ;;  %339 = vst.msk [vmem:[#allocation4 + $0xf8] sm:$0xff] %vm308_vm0, %v306_v31 }
  0x24 PF: > { %v342_v32 = vld [vmem:[#allocation4 + $0x10] sm:$0xff]  ;;  %v343_v33 = vld [vmem:[#allocation4 + $0x18] sm:$0xff]  ;;  %vm645_vm1 = vcmask 1043456   ;;  %vm646_vm2 = vsmask.f32 7938  ;;  %vm648_vm3 = vcmask 523268  }
  0x25   : > { %v12406_v34 = vpack.c.bf16 %v343_v33, %v342_v32  ;;  %vm647_vm4 = vmand %vm645_vm1, %vm646_vm2  ;;  %vm649_vm5 = vsmask.f32 7954  ;;  %vm655_vm6 = vcmask 1040384   ;;  %vm656_vm7 = vsmask.f32 256  ;;  %v755_v38 = vld [vmem:[#allocation2 + $0x68] sm:$0xff] }
  0x26   : > { %vm650_vm8 = vmand %vm648_vm3, %vm649_vm5  ;;  %vm658_vm9 = vcmask 520196   ;;  %vm659_vm10 = vsmask.f32 4352  ;;  %v18083_v37 = vmov 0  ;;  %v758_v39 = vld [vmem:[#allocation2 + $0x88] sm:$0x11] }
  0x27   : > { %v493_v35 = vshrl.u32 %v12406_v34, 16  ;;  %v496_v36 = vshll.u32 %v12406_v34, 16  ;;  %vm13710_vm11 = vmor %vm650_vm8, %vm647_vm4  ;;  %v340_v41 = vld [vmem:[#allocation4] sm:$0xff]  ;;  %v341_v42 = vld [vmem:[#allocation4 + $0x8] sm:$0xff]  ;;  %v18086_v43 = vmov 0  ;;  %v18089_v60 = vmov 0 }
  0x28   : > { %v18084_v37 = vsel %vm13710_vm11, 4294967295, %v18083_v37  ;;  %vm657_vm12 = vmand %vm655_vm6, %vm656_vm7  ;;  %v665_v44 = vld [vmem:[#allocation2 + $0x20] sm:$0xff]  ;;  %v668_v45 = vld [vmem:[#allocation2 + $0x58] sm:$0x11]  ;;  %v12405_v46 = vpack.c.bf16 %v341_v42, %v340_v41  ;;  %v18094_v21 = vmov 0  ;;  %s13526_s18 = smov 64  }
  0x29   : > { %18085 = vst [vmem:[#allocation7_spill] sm:$0xff] %v18084_v37  ;;  %v495_v40 = vrot.slane %v493_v35, 7  ;;  %vm660_vm13 = vmand %vm658_vm9, %vm659_vm10  ;;  %v344_v49 = vld [vmem:[#allocation4 + $0x20] sm:$0xff]  ;;  %v345_v50 = vld [vmem:[#allocation4 + $0x28] sm:$0xff]  ;;  %vm1389_vm4 = vsmask.f32 7440 }
  0x2a   : > { %vm13716_vm14 = vmor %vm660_vm13, %vm657_vm12  ;;  %v485_v51 = vshrl.u32 %v12405_v46, 16  ;;  %v488_v52 = vshll.u32 %v12405_v46, 16  ;;  %v12407_v53 = vpack.c.bf16 %v345_v50, %v344_v49  ;;  %v348_v58 = vld [vmem:[#allocation4 + $0x40] sm:$0xff]  ;;  %v349_v59 = vld [vmem:[#allocation4 + $0x48] sm:$0xff]  ;;  %vm1780_vm7 = vcmask 1046532   ;;  %p12400_p5 = scmp.ne.s32.totalorder %s13572_s22, 8 }
  0x2b   : > { %v18087_v43 = vsel %vm13716_vm14, 4294967295, %v18086_v43  ;;  %v498_v47 = vor.u32 %v496_v36, %v495_v40  ;;  %v499_v48 = vrot.slane %v495_v40, 4  ;;  %vm13730_vm15 = vmor %vm648_vm3, %vm645_vm1  ;;  %v652_v62 = vld [vmem:[#allocation2 + $0xe0] sm:$0xff]  ;;  %v12409_v1 = vpack.c.bf16 %v349_v59, %v348_v58  ;;  %v346_v3 = vld [vmem:[#allocation4 + $0x30] sm:$0xff] }
  0x2c   : > { %18088 = vst [vmem:[#allocation8_spill] sm:$0xff] %v18087_v43  ;;  %v18090_v60 = vsel %vm13730_vm15, 4294967295, %v18089_v60  ;;  %v487_v61 = vrot.slane %v485_v51, 7  ;;  %v501_v63 = vshrl.u32 %v12407_v53, 16  ;;  %v504_v0 = vshll.u32 %v12407_v53, 16  ;;  %v347_v4 = vld [vmem:[#allocation4 + $0x38] sm:$0xff]  ;;  %vm13736_vm0 = vmand %vm655_vm6, %vm646_vm2 }
  0x2d   : > { %v756_v54 = vsel %vm13710_vm11, %v498_v47, %v755_v38  ;;  %v759_v55 = vsel %vm13716_vm14, %v499_v48, %v758_v39  ;;  %v666_v56 = vsel %vm13710_vm11, %v498_v47, %v665_v44  ;;  %v669_v57 = vsel %vm13716_vm14, %v499_v48, %v668_v45  ;;  %18091 = vst [vmem:[#allocation9_spill] sm:$0xff] %v18090_v60  ;;  %v662_v2 = vld [vmem:[#allocation2 + $0x100] sm:$0x11]  ;;  %vm1041_vm1 = vmand %vm658_vm9, %vm649_vm5  ;;  %v671_v10 = vld [vmem:[#allocation2 + $0x90] sm:$0xff] }
  0x2e   : > { %757 = vst [vmem:[#allocation2 + $0x68] sm:$0xff] %v756_v54  ;;  %760 = vst [vmem:[#allocation2 + $0x88] sm:$0x11] %v759_v55  ;;  %v490_v6 = vor.u32 %v488_v52, %v487_v61  ;;  %v491_v7 = vrot.slane %v487_v61, 4  ;;  %v503_v8 = vrot.slane %v501_v63, 7  ;;  %v517_v9 = vshrl.u32 %v12409_v1, 16 }
  0x2f   : > { %667 = vst [vmem:[#allocation2 + $0x20] sm:$0xff] %v666_v56  ;;  %670 = vst [vmem:[#allocation2 + $0x58] sm:$0x11] %v669_v57  ;;  %v674_v11 = vld [vmem:[#allocation2 + $0x48] sm:$0x11]  ;;  %v520_v12 = vshll.u32 %v12409_v1, 16  ;;  %v12408_v13 = vpack.c.bf16 %v347_v4, %v346_v3 }
  0x30   : > { %v653_v14 = vsel %vm13710_vm11, %v490_v6, %v652_v62  ;;  %v663_v15 = vsel %vm13716_vm14, %v491_v7, %v662_v2  ;;  %v506_v16 = vor.u32 %v504_v0, %v503_v8  ;;  %v507_v17 = vrot.slane %v503_v8, 4  ;;  %v352_v18 = vld [vmem:[#allocation4 + $0x60] sm:$0xff]  ;;  %v353_v19 = vld [vmem:[#allocation4 + $0x68] sm:$0xff]  ;;  %vm13748_vm2 = vmor %vm1041_vm1, %vm13736_vm0 }
  0x31   : > { %654 = vst [vmem:[#allocation2 + $0xe0] sm:$0xff] %v653_v14  ;;  %664 = vst [vmem:[#allocation2 + $0x100] sm:$0x11] %v663_v15  ;;  %v519_v20 = vrot.slane %v517_v9, 7  ;;  %v18095_v21 = vsel %vm13748_vm2, 4294967295, %v18094_v21  ;;  %v683_v24 = vld [vmem:[#allocation2 + $0xb0] sm:$0xff]  ;;  %v12411_v32 = vpack.c.bf16 %v353_v19, %v352_v18 }
  0x32   : > { %18096 = vst [vmem:[#allocation10_spill] sm:$0xff] %v18095_v21  ;;  %v672_v22 = vsel %vm13710_vm11, %v506_v16, %v671_v10  ;;  %v675_v23 = vsel %vm13716_vm14, %v507_v17, %v674_v11  ;;  %v686_v25 = vld [vmem:[#allocation2 + $0x8] sm:$0x11]  ;;  %v509_v26 = vshrl.u32 %v12408_v13, 16  ;;  %v512_v27 = vshll.u32 %v12408_v13, 16  ;;  %v350_v33 = vld [vmem:[#allocation4 + $0x50] sm:$0xff] }
  0x33   : > { %673 = vst [vmem:[#allocation2 + $0x90] sm:$0xff] %v672_v22  ;;  %676 = vst [vmem:[#allocation2 + $0x48] sm:$0x11] %v675_v23  ;;  %v522_v31 = vor.u32 %v520_v12, %v519_v20  ;;  %v351_v34 = vld [vmem:[#allocation4 + $0x58] sm:$0xff]  ;;  %v523_v44 = vrot.slane %v519_v20, 4  ;;  %v677_v53 = vld [vmem:[#allocation2 + $0x128] sm:$0xff] }
  0x34   : > { %v511_v50 = vrot.slane %v509_v26, 7  ;;  %v680_v54 = vld [vmem:[#allocation2] sm:$0x11]  ;;  %v533_v55 = vshrl.u32 %v12411_v32, 16  ;;  %v536_v56 = vshll.u32 %v12411_v32, 16  ;;  %v13768_v63 = vpack.c.bf16 %v351_v34, %v350_v33  ;;  %v695_v5 = vld [vmem:[#allocation2 + $0x28] sm:$0xff] }
  0x35   : > { %v780_v28 = vld [vmem:[#allocation2 + $0x68] sm:$0x22]  ;;  %v880_v29 = vld [vmem:[#allocation2 + $0x68] sm:$0x11]  ;;  %v940_v30 = vld [vmem:[#allocation2 + $0x68] sm:$0x88]  ;;  %v684_v45 = vsel %vm13710_vm11, %v522_v31, %v683_v24  ;;  %v687_v52 = vsel %vm13716_vm14, %v523_v44, %v686_v25 }
  0x36   : > { %v11318_v35 = vrot.slane %v780_v28, 9  ;;  %v11338_v36 = vrot.slane %v940_v30, 11  ;;  %v1043_v38 = vld [vmem:[#allocation2 + $0x88] sm:$0x11]  ;;  %v782_v39 = vld [vmem:[#allocation2 + $0x20] sm:$0x22]  ;;  %v514_v62 = vor.u32 %v512_v27, %v511_v50 }
  0x37   : > { %v11320_v40 = vrot.slane %v782_v39, 9  ;;  %v886_v41 = vld [vmem:[#allocation2 + $0x20] sm:$0x11]  ;;  %v942_v42 = vld [vmem:[#allocation2 + $0x20] sm:$0x88]  ;;  %685 = vst [vmem:[#allocation2 + $0xb0] sm:$0xff] %v684_v45 }
  0x38   : > { %v881_v46 = vsel %vm13716_vm14, %v11318_v35, %v880_v29  ;;  %v1044_v47 = vsel %vm13748_vm2, %v11338_v36, %v1043_v38  ;;  %v11340_v48 = vrot.slane %v942_v42, 11  ;;  %v1049_v49 = vld [vmem:[#allocation2 + $0x58] sm:$0x11]  ;;  %v781_v58 = vld [vmem:[#allocation2 + $0xe0] sm:$0x22]  ;;  %v515_v3 = vrot.slane %v511_v50, 4 }
  0x39   : > { %882 = vst [vmem:[#allocation2 + $0x68] sm:$0x11] %v881_v46  ;;  %1045 = vst [vmem:[#allocation2 + $0x88] sm:$0x11] %v1044_v47  ;;  %v887_v51 = vsel %vm13716_vm14, %v11320_v40, %v886_v41  ;;  %v883_v59 = vld [vmem:[#allocation2 + $0xe0] sm:$0x11]  ;;  %v678_v9 = vsel %vm13710_vm11, %v514_v62, %v677_v53 }
  0x3a   : > { %888 = vst [vmem:[#allocation2 + $0x20] sm:$0x11] %v887_v51  ;;  %v1050_v57 = vsel %vm13748_vm2, %v11340_v48, %v1049_v49  ;;  %v941_v61 = vld [vmem:[#allocation2 + $0xe0] sm:$0x88]  ;;  %688 = vst [vmem:[#allocation2 + $0x8] sm:$0x11] %v687_v52  ;;  %v681_v16 = vsel %vm13716_vm14, %v515_v3, %v680_v54 }
  0x3b   : > { %vm1388_vm3 = vsmask.f32 3328  ;;  %1051 = vst [vmem:[#allocation2 + $0x58] sm:$0x11] %v1050_v57  ;;  %v11319_v0 = vrot.slane %v781_v58, 9  ;;  %v11339_v1 = vrot.slane %v941_v61, 11 }
  0x3c   : > { %v1046_v2 = vld [vmem:[#allocation2 + $0x100] sm:$0x11]  ;;  %v13770_v4 = vrot.slane %v533_v55, 7  ;;  %v783_v6 = vld [vmem:[#allocation2 + $0x90] sm:$0x22]  ;;  %679 = vst [vmem:[#allocation2 + $0x128] sm:$0xff] %v678_v9  ;;  %vm13814_vm5 = vmor %vm1388_vm3, %vm1389_vm4 }
  0x3d   : > { %v889_v7 = vld [vmem:[#allocation2 + $0x90] sm:$0x11]  ;;  %v943_v8 = vld [vmem:[#allocation2 + $0x90] sm:$0x88]  ;;  %v884_v10 = vsel %vm13716_vm14, %v11319_v0, %v883_v59  ;;  %v1047_v11 = vsel %vm13748_vm2, %v11339_v1, %v1046_v2  ;;  %v11321_v12 = vrot.slane %v783_v6, 9  ;;  %v525_v19 = vshrl.u32 %v13768_v63, 16 }
  0x3e   : > { %v11341_v13 = vrot.slane %v943_v8, 11  ;;  %v1052_v14 = vld [vmem:[#allocation2 + $0x48] sm:$0x11]  ;;  %v698_v15 = vld [vmem:[#allocation2 + $0xf8] sm:$0x11]  ;;  %v13781_v17 = vor.u32 %v536_v56, %v13770_v4  ;;  %v539_v18 = vrot.slane %v13770_v4, 4 }
  0x3f   : > { %885 = vst [vmem:[#allocation2 + $0xe0] sm:$0x11] %v884_v10  ;;  %1048 = vst [vmem:[#allocation2 + $0x100] sm:$0x11] %v1047_v11  ;;  %v356_v20 = vld [vmem:[#allocation4 + $0x80] sm:$0xff]  ;;  %v357_v22 = vld [vmem:[#allocation4 + $0x88] sm:$0xff]  ;;  %v890_v23 = vsel %vm13716_vm14, %v11321_v12, %v889_v7 }
  0x40   : > { %v1053_v24 = vsel %vm13748_vm2, %v11341_v13, %v1052_v14  ;;  %v785_v25 = vld [vmem:[#allocation2 + $0xb0] sm:$0x22]  ;;  %v895_v26 = vld [vmem:[#allocation2 + $0xb0] sm:$0x11]  ;;  %v945_v27 = vld [vmem:[#allocation2 + $0xb0] sm:$0x88]  ;;  %v696_v35 = vsel %vm13710_vm11, %v13781_v17, %v695_v5  ;;  %v699_v36 = vsel %vm13716_vm14, %v539_v18, %v698_v15  ;;  %v13798_v45 = vpack.c.bf16 %v357_v22, %v356_v20 }
  0x41   : > { %682 = vst [vmem:[#allocation2] sm:$0x11] %v681_v16  ;;  %v358_v28 = vld [vmem:[#allocation4 + $0x90] sm:$0xff]  ;;  %v359_v29 = vld [vmem:[#allocation4 + $0x98] sm:$0xff]  ;;  %v360_v30 = vld [vmem:[#allocation4 + $0xa0] sm:$0xff]  ;;  %v11323_v33 = vrot.slane %v785_v25, 9 }
  0x42   : > { %v1356_v31 = vld [vmem:[#allocation2 + $0x68] sm:$0xff]  ;;  %891 = vst [vmem:[#allocation2 + $0x90] sm:$0x11] %v890_v23  ;;  %1054 = vst [vmem:[#allocation2 + $0x48] sm:$0x11] %v1053_v24  ;;  %v11343_v34 = vrot.slane %v945_v27, 11  ;;  %v13806_v59 = vpack.c.bf16 %v359_v29, %v358_v28 }
  0x43   : > { %v1357_v32 = vld [vmem:[#allocation2 + $0x88] sm:$0x11]  ;;  %v1392_v39 = vshrl.u32 %v1356_v31, 16  ;;  %v1395_v40 = vshll.u32 %v1356_v31, 16  ;;  %v13796_v42 = vld [vmem:[#allocation2 + $0x20] sm:$0xff]  ;;  %697 = vst [vmem:[#allocation2 + $0x28] sm:$0xff] %v696_v35  ;;  %v896_v49 = vsel %vm13716_vm14, %v11323_v33, %v895_v26 }
  0x44   : > { %v361_v38 = vld [vmem:[#allocation4 + $0xa8] sm:$0xff]  ;;  %v1401_v41 = vshll.u32 %v1357_v32, 16  ;;  %700 = vst [vmem:[#allocation2 + $0xf8] sm:$0x11] %v699_v36  ;;  %v1361_v46 = vld [vmem:[#allocation2 + $0x58] sm:$0x11] }
  0x45   : > { %v1058_v44 = vld [vmem:[#allocation2 + $0x8] sm:$0x11]  ;;  %v1420_v47 = vshrl.u32 %v13796_v42, 16  ;;  %v1423_v48 = vshll.u32 %v13796_v42, 16  ;;  %v1394_v51 = vrot.slane %v1392_v39, 4  ;;  %v1397_v52 = vrot.slane %v1395_v40, 5 }
  0x46   : > { %v1059_v50 = vsel %vm13748_vm2, %v11343_v34, %v1058_v44  ;;  %v1403_v53 = vrot.slane %v1401_v41, 5  ;;  %v1429_v54 = vshll.u32 %v1361_v46, 16  ;;  %897 = vst [vmem:[#allocation2 + $0xb0] sm:$0x11] %v896_v49  ;;  %v784_v57 = vld [vmem:[#allocation2 + $0x128] sm:$0x22]  ;;  %v13808_v61 = vpack.c.bf16 %v361_v38, %v360_v30 }
  0x47   : > { %1060 = vst [vmem:[#allocation2 + $0x8] sm:$0x11] %v1059_v50  ;;  %v1422_v55 = vrot.slane %v1420_v47, 4  ;;  %v1425_v56 = vrot.slane %v1423_v48, 5  ;;  %v892_v58 = vld [vmem:[#allocation2 + $0x128] sm:$0x11]  ;;  %v1398_v62 = vor.u32 %v1397_v52, %v1394_v51 }
  0x48   : > { %v1431_v0 = vrot.slane %v1429_v54, 5  ;;  %v1358_v1 = vld [vmem:[#allocation2 + $0xe0] sm:$0xff]  ;;  %v11322_v3 = vrot.slane %v784_v57, 9  ;;  %v13810_v5 = vrot.slane %v525_v19, 7  ;;  %v18097_v6 = vmov 0  ;;  %v689_v51 = vld [vmem:[#allocation2 + $0x138] sm:$0xff] }
  0x49   : > { %v1359_v2 = vld [vmem:[#allocation2 + $0x100] sm:$0x11]  ;;  %v18098_v6 = vsel %vm13814_vm5, 4294967295, %v18097_v6  ;;  %v1426_v7 = vor.u32 %v1425_v56, %v1422_v55  ;;  %v1406_v8 = vshrl.u32 %v1358_v1, 16  ;;  %v1409_v9 = vshll.u32 %v1358_v1, 16  ;;  %v1362_v13 = vld [vmem:[#allocation2 + $0x90] sm:$0xff] }
  0x4a   : > { %18099 = vst [vmem:[#allocation11_spill] sm:$0xff] %v18098_v6  ;;  %v1415_v10 = vshll.u32 %v1359_v2, 16  ;;  %v944_v11 = vld [vmem:[#allocation2 + $0x128] sm:$0x88]  ;;  %v1399_v12 = vrot.slane %v1398_v62, 4  ;;  %v893_v15 = vsel %vm13716_vm14, %v11322_v3, %v892_v58  ;;  %v528_v19 = vshll.u32 %v13768_v63, 16 }
  0x4b   : > { %v1363_v14 = vld [vmem:[#allocation2 + $0x48] sm:$0x11]  ;;  %v11342_v16 = vrot.slane %v944_v11, 11  ;;  %v1427_v20 = vrot.slane %v1426_v7, 4  ;;  %v1408_v22 = vrot.slane %v1406_v8, 4  ;;  %v1411_v23 = vrot.slane %v1409_v9, 5 }
  0x4c   : > { %v1417_v24 = vrot.slane %v1415_v10, 5  ;;  %894 = vst [vmem:[#allocation2 + $0x128] sm:$0x11] %v893_v15  ;;  %v1055_v25 = vld [vmem:[#allocation2] sm:$0x11]  ;;  %v1404_v26 = vsel %vm13814_vm5, %v1399_v12, %v1403_v53  ;;  %v1434_v27 = vshrl.u32 %v1362_v13, 16  ;;  %v530_v55 = vor.u32 %v528_v19, %v13810_v5 }
  0x4d   : > { %v1437_v28 = vshll.u32 %v1362_v13, 16  ;;  %v1443_v29 = vshll.u32 %v1363_v14, 16  ;;  %v787_v30 = vld [vmem:[#allocation2 + $0x28] sm:$0x22]  ;;  %1615 = vrot.lane.b32.xlu0 %v1404_v26, %s13526_s18  ;;  %v1432_v31 = vsel %vm13814_vm5, %v1427_v20, %v1431_v0  ;;  %v1412_v63 = vor.u32 %v1411_v23, %v1408_v22  ;;  %v1366_v32 = vld [vmem:[#allocation2 + $0xb0] sm:$0xff]  ;;  %v707_v15 = vld [vmem:[#allocation2 + $0x98] sm:$0xff] }
  0x4e   : > { %v1367_v33 = vld [vmem:[#allocation2 + $0x8] sm:$0x11]  ;;  %v1056_v34 = vsel %vm13748_vm2, %v11342_v16, %v1055_v25  ;;  %v11325_v35 = vrot.slane %v787_v30, 9  ;;  %1619 = vrot.lane.b32.xlu1 %v1432_v31, %s13526_s18  ;;  %v1436_v38 = vrot.slane %v1434_v27, 4  ;;  %v1462_v41 = vshrl.u32 %v1366_v32, 16  ;;  %v761_v30 = vld [vmem:[#allocation2 + $0x40] sm:$0xff] }
  0x4f   : > { %v901_v36 = vld [vmem:[#allocation2 + $0x28] sm:$0x11]  ;;  %v1439_v39 = vrot.slane %v1437_v28, 5  ;;  %v1445_v40 = vrot.slane %v1443_v29, 5  ;;  %1057 = vst [vmem:[#allocation2] sm:$0x11] %v1056_v34  ;;  %v690_v7 = vsel %vm13710_vm11, %v530_v55, %v689_v51 }
  0x50   : > { %v947_v44 = vld [vmem:[#allocation2 + $0x28] sm:$0x88]  ;;  %v1413_v46 = vrot.slane %v1412_v63, 4  ;;  %v1465_v47 = vshll.u32 %v1366_v32, 16  ;;  %v1471_v48 = vshll.u32 %v1367_v33, 16  ;;  %v902_v49 = vsel %vm13716_vm14, %v11325_v35, %v901_v36  ;;  %691 = vst [vmem:[#allocation2 + $0x138] sm:$0xff] %v690_v7 }
  0x51   : > { %v1064_v50 = vld [vmem:[#allocation2 + $0xf8] sm:$0x11]  ;;  %v1440_v52 = vor.u32 %v1439_v39, %v1436_v38  ;;  %v1464_v53 = vrot.slane %v1462_v41, 4  ;;  %903 = vst [vmem:[#allocation2 + $0x28] sm:$0x11] %v902_v49  ;;  %v11345_v54 = vrot.slane %v947_v44, 11 }
  0x52   : > { %v692_v56 = vld [vmem:[#allocation2 + $0x120] sm:$0x11]  ;;  %v1418_v57 = vsel %vm13814_vm5, %v1413_v46, %v1417_v24  ;;  %v1467_v58 = vrot.slane %v1465_v47, 5  ;;  %v1473_v62 = vrot.slane %v1471_v48, 5  ;;  %v531_v0 = vrot.slane %v13810_v5, 4  ;;  %v365_v63 = vld [vmem:[#allocation4 + $0xc8] sm:$0xff] }
  0x53   : > { %1617 = vrot.lane.b32.xlu0 %v1418_v57, %s13526_s18  ;;  %v1441_v1 = vrot.slane %v1440_v52, 4  ;;  %v13836_v2 = vld [vmem:[#allocation2 + $0x128] sm:$0xff]  ;;  %v1065_v3 = vsel %vm13748_vm2, %v11345_v54, %v1064_v50  ;;  %v549_v8 = vshrl.u32 %v13798_v45, 16  ;;  %v552_v14 = vshll.u32 %v13798_v45, 16  ;;  %v710_v16 = vld [vmem:[#allocation2 + $0xa0] sm:$0x11] }
  0x54   : > { %v1468_v9 = vor.u32 %v1467_v58, %v1464_v53  ;;  %v1448_v10 = vshrl.u32 %v13836_v2, 16  ;;  %v1451_v11 = vshll.u32 %v13836_v2, 16  ;;  %1066 = vst [vmem:[#allocation2 + $0xf8] sm:$0x11] %v1065_v3  ;;  %v693_v5 = vsel %vm13716_vm14, %v531_v0, %v692_v56  ;;  %v364_v31 = vld [vmem:[#allocation4 + $0xc0] sm:$0xff]  ;;  %v363_v38 = vld [vmem:[#allocation4 + $0xb8] sm:$0xff] }
  0x55   : > { %v1446_v12 = vsel %vm13814_vm5, %v1441_v1, %v1445_v40  ;;  %694 = vst [vmem:[#allocation2 + $0x120] sm:$0x11] %v693_v5  ;;  %v551_v13 = vrot.slane %v549_v8, 7  ;;  %v557_v19 = vshrl.u32 %v13806_v59, 16  ;;  %v560_v25 = vshll.u32 %v13806_v59, 16  ;;  %v362_v59 = vld [vmem:[#allocation4 + $0xb0] sm:$0xff] }
  0x56   : > { %1621 = vrot.lane.b32.xlu1 %v1446_v12, %s13526_s18  ;;  %v1469_v20 = vrot.slane %v1468_v9, 4  ;;  %v1365_v22 = vld [vmem:[#allocation2] sm:$0x11]  ;;  %v1450_v23 = vrot.slane %v1448_v10, 4  ;;  %v1453_v24 = vrot.slane %v1451_v11, 5  ;;  %v565_v35 = vshrl.u32 %v13808_v61, 16 }
  0x57   : > { %v1457_v26 = vshll.u32 %v1365_v22, 16  ;;  %v554_v27 = vor.u32 %v552_v14, %v551_v13  ;;  %v555_v28 = vrot.slane %v551_v13, 4  ;;  %v559_v29 = vrot.slane %v557_v19, 7  ;;  %v764_v34 = vld [vmem:[#allocation2 + $0x50] sm:$0x11]  ;;  %v713_v46 = vld [vmem:[#allocation2 + $0x18] sm:$0xff] }
  0x58   : > { %v1474_v45 = vsel %vm13814_vm5, %v1469_v20, %v1473_v62  ;;  %v1454_v32 = vor.u32 %v1453_v24, %v1450_v23  ;;  %v13855_v33 = vld [vmem:[#allocation2 + $0x28] sm:$0xff]  ;;  %v568_v36 = vshll.u32 %v13808_v61, 16  ;;  %v12489_v51 = vld [vmem:[%s13591_s10 + $0x74] ss:$8 sps:$4 sm:$0xff]   ;;  %v13867_v56 = vpack.c.bf16 %v365_v63, %v364_v31  ;;  %v722_v9 = vld [vmem:[#allocation2 + $0xc0] sm:$0x11] }
  0x59   : > { %v1459_v39 = vrot.slane %v1457_v26, 5  ;;  %v1490_v40 = vshrl.u32 %v13855_v33, 16  ;;  %v1493_v41 = vshll.u32 %v13855_v33, 16  ;;  %v708_v44 = vsel %vm13710_vm11, %v554_v27, %v707_v15  ;;  %v716_v47 = vld [vmem:[#allocation2 + $0xc8] sm:$0x11]  ;;  %v719_v8 = vld [vmem:[#allocation2 + $0xd8] sm:$0xff]  ;;  %4832 = vmatprep.subr.bf16.mxu0 %v12489_v51 }
  0x5a   : > { %1625 = vrot.lane.b32.xlu1 %v1474_v45, %s13526_s18  ;;  %v1455_v48 = vrot.slane %v1454_v32, 4  ;;  %709 = vst [vmem:[#allocation2 + $0x98] sm:$0xff] %v708_v44  ;;  %v711_v49 = vsel %vm13716_vm14, %v555_v28, %v710_v16  ;;  %v562_v61 = vor.u32 %v560_v25, %v559_v29  ;;  %v563_v50 = vrot.slane %v559_v29, 4  ;;  %v786_v55 = vld [vmem:[#allocation2 + $0x138] sm:$0x22]  ;;  %v368_v10 = vld [vmem:[#allocation4 + $0xe0] sm:$0xff] }
  0x5b   : > { %v1371_v52 = vld [vmem:[#allocation2 + $0xf8] sm:$0x11]  ;;  %v1492_v53 = vrot.slane %v1490_v40, 4  ;;  %v1495_v54 = vrot.slane %v1493_v41, 5  ;;  %712 = vst [vmem:[#allocation2 + $0xa0] sm:$0x11] %v711_v49  ;;  %v13869_v57 = vpack.c.bf16 %v363_v38, %v362_v59 }
  0x5c   : > { %v1460_v58 = vsel %vm13814_vm5, %v1455_v48, %v1459_v39  ;;  %v1499_v62 = vshll.u32 %v1371_v52, 16  ;;  %v11324_v0 = vrot.slane %v786_v55, 9  ;;  %v898_v1 = vld [vmem:[#allocation2 + $0x138] sm:$0x11]  ;;  %v946_v3 = vld [vmem:[#allocation2 + $0x138] sm:$0x88]  ;;  %v762_v7 = vsel %vm13710_vm11, %v562_v61, %v761_v30 }
  0x5d   : > { %v369_v11 = vld [vmem:[#allocation4 + $0xe8] sm:$0xff]  ;;  %1623 = vrot.lane.b32.xlu0 %v1460_v58, %s13526_s18  ;;  %v1496_v5 = vor.u32 %v1495_v54, %v1492_v53  ;;  %v11344_v12 = vrot.slane %v946_v3, 11  ;;  %v1061_v13 = vld [vmem:[#allocation2 + $0x120] sm:$0x11]  ;;  %763 = vst [vmem:[#allocation2 + $0x40] sm:$0xff] %v762_v7  ;;  %v765_v14 = vsel %vm13716_vm14, %v563_v50, %v764_v34  ;;  %v567_v15 = vrot.slane %v565_v35, 7 }
  0x5e   : > { %v12491_v16 = vld [vmem:[%s13591_s10 + $0x70] ss:$8 sps:$4 sm:$0xff]   ;;  %v1501_v19 = vrot.slane %v1499_v62, 5  ;;  %v899_v20 = vsel %vm13716_vm14, %v11324_v0, %v898_v1  ;;  %766 = vst [vmem:[#allocation2 + $0x50] sm:$0x11] %v765_v14  ;;  %v714_v22 = vsel %vm13710_vm11, %v562_v61, %v713_v46  ;;  %v717_v23 = vsel %vm13716_vm14, %v563_v50, %v716_v47 }
  0x5f   : > { %v12492_v24 = vld [vmem:[%s13591_s10 + $0x174] ss:$8 sps:$4 sm:$0xff]   ;;  %v12494_v25 = vld [vmem:[%s13591_s10 + $0x170] ss:$8 sps:$4 sm:$0xff]   ;;  %v1497_v26 = vrot.slane %v1496_v5, 4  ;;  %v1062_v27 = vsel %vm13748_vm2, %v11344_v12, %v1061_v13  ;;  %v570_v28 = vor.u32 %v568_v36, %v567_v15  ;;  %v571_v29 = vrot.slane %v567_v15, 4  ;;  %4833 = vmatpush1.bf16.msra.mxu0 %v12491_v16 }
  0x60   : > { %900 = vst [vmem:[#allocation2 + $0x138] sm:$0x11] %v899_v20  ;;  %715 = vst [vmem:[#allocation2 + $0x18] sm:$0xff] %v714_v22  ;;  %v581_v30 = vshrl.u32 %v13867_v56, 16  ;;  %v584_v31 = vshll.u32 %v13867_v56, 16  ;;  %v573_v63 = vshrl.u32 %v13869_v57, 16  ;;  %4945 = vmatprep.subr.bf16.mxu1 %v12492_v24  ;;  %v12419_v46 = vpack.c.bf16 %v369_v11, %v368_v10 }
  0x61   : > { %718 = vst [vmem:[#allocation2 + $0xc8] sm:$0x11] %v717_v23  ;;  %1063 = vst [vmem:[#allocation2 + $0x120] sm:$0x11] %v1062_v27  ;;  %v576_v45 = vshll.u32 %v13869_v57, 16  ;;  %v366_v32 = vld [vmem:[#allocation4 + $0xd0] sm:$0xff]  ;;  %v1502_v35 = vsel %vm13814_vm5, %v1497_v26, %v1501_v19  ;;  %v720_v39 = vsel %vm13710_vm11, %v570_v28, %v719_v8  ;;  %v723_v40 = vsel %vm13716_vm14, %v571_v29, %v722_v9 }
  0x62   : > { %v367_v34 = vld [vmem:[#allocation4 + $0xd8] sm:$0xff]  ;;  %v731_v41 = vld [vmem:[#allocation2 + $0xf0] sm:$0xff]  ;;  %4946 = vmatpush1.bf16.msra.mxu1 %v12494_v25  ;;  %1629 = vrot.lane.b32.xlu1 %v1502_v35, %s13526_s18  ;;  %v1076_v61 = vld [vmem:[#allocation2 + $0xa0] sm:$0x11]  ;;  %721 = vst [vmem:[#allocation2 + $0xd8] sm:$0xff] %v720_v39  ;;  %v583_v50 = vrot.slane %v581_v30, 7 }
  0x63   : > { %v791_v36 = vld [vmem:[#allocation2 + $0x98] sm:$0x22]  ;;  %v913_v59 = vld [vmem:[#allocation2 + $0x98] sm:$0x11]  ;;  %v951_v38 = vld [vmem:[#allocation2 + $0x98] sm:$0x88]  ;;  %v13900_v55 = vpack.c.bf16 %v367_v34, %v366_v32 }
  0x64   : > { %v725_v44 = vld [vmem:[#allocation2 + $0x110] sm:$0xff]  ;;  %v11329_v48 = vrot.slane %v791_v36, 9  ;;  %v11349_v49 = vrot.slane %v951_v38, 11  ;;  %724 = vst [vmem:[#allocation2 + $0xc0] sm:$0x11] %v723_v40  ;;  %v575_v51 = vrot.slane %v573_v63, 7  ;;  %v586_v3 = vor.u32 %v584_v31, %v583_v50 }
  0x65   : > { %v354_v47 = vld [vmem:[#allocation4 + $0x70] sm:$0xff]  ;;  %v734_v52 = vld [vmem:[#allocation2 + $0xa8] sm:$0x11]  ;;  %v597_v53 = vshrl.u32 %v12419_v46, 16  ;;  %v600_v54 = vshll.u32 %v12419_v46, 16  ;;  %v355_v56 = vld [vmem:[#allocation4 + $0x78] sm:$0xff] }
  0x66   : > { %v914_v57 = vsel %vm13716_vm14, %v11329_v48, %v913_v59  ;;  %v1077_v58 = vsel %vm13748_vm2, %v11349_v49, %v1076_v61  ;;  %v790_v62 = vld [vmem:[#allocation2 + $0x40] sm:$0x22]  ;;  %v910_v0 = vld [vmem:[#allocation2 + $0x40] sm:$0x11]  ;;  %v950_v1 = vld [vmem:[#allocation2 + $0x40] sm:$0x88]  ;;  %v578_v7 = vor.u32 %v576_v45, %v575_v51  ;;  %v732_v16 = vsel %vm13710_vm11, %v586_v3, %v731_v41 }
  0x67   : > { %v728_v8 = vld [vmem:[#allocation2 + $0xb8] sm:$0x11]  ;;  %915 = vst [vmem:[#allocation2 + $0x98] sm:$0x11] %v914_v57  ;;  %1078 = vst [vmem:[#allocation2 + $0xa0] sm:$0x11] %v1077_v58  ;;  %v13914_v23 = vpack.c.bf16 %v355_v56, %v354_v47 }
  0x68   : > { %v11328_v9 = vrot.slane %v790_v62, 9  ;;  %v11348_v10 = vrot.slane %v950_v1, 11  ;;  %v1073_v11 = vld [vmem:[#allocation2 + $0x50] sm:$0x11]  ;;  %v587_v5 = vrot.slane %v583_v50, 4  ;;  %v579_v12 = vrot.slane %v575_v51, 4 }
  0x69   : > { %v13906_v13 = vld [vmem:[#allocation2 + $0x138] sm:$0xff]  ;;  %v726_v19 = vsel %vm13710_vm11, %v578_v7, %v725_v44  ;;  %v13912_v20 = vrot.slane %v597_v53, 7  ;;  %v1369_v24 = vld [vmem:[#allocation2 + $0x120] sm:$0x11]  ;;  %733 = vst [vmem:[#allocation2 + $0xf0] sm:$0xff] %v732_v16  ;;  %v589_v62 = vshrl.u32 %v13900_v55, 16 }
  0x6a   : > { %v792_v14 = vld [vmem:[#allocation2 + $0x18] sm:$0x22]  ;;  %v916_v15 = vld [vmem:[#allocation2 + $0x18] sm:$0x11]  ;;  %v1476_v25 = vshrl.u32 %v13906_v13, 16  ;;  %v1479_v26 = vshll.u32 %v13906_v13, 16  ;;  %v911_v27 = vsel %vm13716_vm14, %v11328_v9, %v910_v0  ;;  %v1074_v28 = vsel %vm13748_vm2, %v11348_v10, %v1073_v11 }
  0x6b   : > { %v743_v22 = vld [vmem:[#allocation2 + $0x78] sm:$0xff]  ;;  %727 = vst [vmem:[#allocation2 + $0x110] sm:$0xff] %v726_v19  ;;  %v1485_v30 = vshll.u32 %v1369_v24, 16  ;;  %912 = vst [vmem:[#allocation2 + $0x40] sm:$0x11] %v911_v27  ;;  %v11330_v31 = vrot.slane %v792_v14, 9  ;;  %v735_v32 = vsel %vm13716_vm14, %v587_v5, %v734_v52  ;;  %v729_v38 = vsel %vm13716_vm14, %v579_v12, %v728_v8 }
  0x6c   : > { %v952_v29 = vld [vmem:[#allocation2 + $0x18] sm:$0x88]  ;;  %1075 = vst [vmem:[#allocation2 + $0x50] sm:$0x11] %v1074_v28  ;;  %v1079_v45 = vld [vmem:[#allocation2 + $0xc8] sm:$0x11]  ;;  %v13927_v39 = vor.u32 %v600_v54, %v13912_v20 }
  0x6d   : > { %v11350_v63 = vrot.slane %v952_v29, 11  ;;  %v1478_v34 = vrot.slane %v1476_v25, 4  ;;  %v1481_v35 = vrot.slane %v1479_v26, 5  ;;  %v793_v36 = vld [vmem:[#allocation2 + $0xd8] sm:$0x22]  ;;  %v1487_v41 = vrot.slane %v1485_v30, 5 }
  0x6e   : > { %v919_v59 = vld [vmem:[#allocation2 + $0xd8] sm:$0x11]  ;;  %736 = vst [vmem:[#allocation2 + $0xa8] sm:$0x11] %v735_v32  ;;  %v746_v40 = vld [vmem:[#allocation2 + $0x130] sm:$0x11]  ;;  %v917_v48 = vsel %vm13716_vm14, %v11330_v31, %v916_v15  ;;  %v744_v52 = vsel %vm13710_vm11, %v13927_v39, %v743_v22 }
  0x6f   : > { %v11331_v44 = vrot.slane %v793_v36, 9  ;;  %v953_v46 = vld [vmem:[#allocation2 + $0xd8] sm:$0x88]  ;;  %v1082_v47 = vld [vmem:[#allocation2 + $0xc0] sm:$0x11]  ;;  %v1080_v49 = vsel %vm13748_vm2, %v11350_v63, %v1079_v45  ;;  %v1482_v61 = vor.u32 %v1481_v35, %v1478_v34  ;;  %v603_v51 = vrot.slane %v13912_v20, 4 }
  0x70   : > { %730 = vst [vmem:[#allocation2 + $0xb8] sm:$0x11] %v729_v38  ;;  %v11351_v50 = vrot.slane %v953_v46, 11  ;;  %918 = vst [vmem:[#allocation2 + $0x18] sm:$0x11] %v917_v48  ;;  %v13939_v56 = vld [vmem:[#allocation2 + $0x98] sm:$0xff] }
  0x71   : > { %1081 = vst [vmem:[#allocation2 + $0xc8] sm:$0x11] %v1080_v49  ;;  %v12495_v53 = vld [vmem:[%s13591_s10 + $0x64] ss:$8 sps:$4 sm:$0xff]   ;;  %v12497_v54 = vld [vmem:[%s13591_s10 + $0x60] ss:$8 sps:$4 sm:$0xff]   ;;  %v920_v58 = vsel %vm13716_vm14, %v11331_v44, %v919_v59  ;;  %v747_v16 = vsel %vm13716_vm14, %v603_v51, %v746_v40 }
  0x72   : > { %v1375_v57 = vld [vmem:[#allocation2 + $0xa0] sm:$0x11]  ;;  %745 = vst [vmem:[#allocation2 + $0x78] sm:$0xff] %v744_v52  ;;  %v592_v0 = vshll.u32 %v13900_v55, 16  ;;  %v541_v1 = vshrl.u32 %v13914_v23, 16  ;;  %v370_v3 = vld [vmem:[#allocation4 + $0xf0] sm:$0xff]  ;;  %4834 = vmatprep.subr.bf16.mxu0 %v12495_v53  ;;  %v1083_v5 = vsel %vm13748_vm2, %v11351_v50, %v1082_v47 }
  0x73   : > { %v371_v7 = vld [vmem:[#allocation4 + $0xf8] sm:$0xff]  ;;  %v1483_v8 = vrot.slane %v1482_v61, 4  ;;  %v1518_v9 = vshrl.u32 %v13939_v56, 16  ;;  %v1521_v10 = vshll.u32 %v13939_v56, 16  ;;  %v1527_v11 = vshll.u32 %v1375_v57, 16  ;;  %4835 = vmatpush1.bf16.msra.mxu0 %v12497_v54  ;;  %v1372_v26 = vld [vmem:[#allocation2 + $0x40] sm:$0xff] }
  0x74   : > { %921 = vst [vmem:[#allocation2 + $0xd8] sm:$0x11] %v920_v58  ;;  %v795_v12 = vld [vmem:[#allocation2 + $0xf0] sm:$0x22]  ;;  %v925_v14 = vld [vmem:[#allocation2 + $0xf0] sm:$0x11]  ;;  %v13959_v59 = vpack.c.bf16 %v371_v7, %v370_v3 }
  0x75   : > { %v955_v15 = vld [vmem:[#allocation2 + $0xf0] sm:$0x88]  ;;  %v1488_v19 = vsel %vm13814_vm5, %v1483_v8, %v1487_v41  ;;  %v1520_v22 = vrot.slane %v1518_v9, 4  ;;  %v1523_v24 = vrot.slane %v1521_v10, 5  ;;  %v1529_v25 = vrot.slane %v1527_v11, 5 }
  0x76   : > { %v1373_v27 = vld [vmem:[#allocation2 + $0x50] sm:$0x11]  ;;  %1084 = vst [vmem:[#allocation2 + $0xc0] sm:$0x11] %v1083_v5  ;;  %748 = vst [vmem:[#allocation2 + $0x130] sm:$0x11] %v747_v16  ;;  %1627 = vrot.lane.b32.xlu0 %v1488_v19, %s13526_s18 }
  0x77   : > { %v1504_v28 = vshrl.u32 %v1372_v26, 16  ;;  %v1507_v29 = vshll.u32 %v1372_v26, 16  ;;  %v1513_v30 = vshll.u32 %v1373_v27, 16  ;;  %v11333_v31 = vrot.slane %v795_v12, 9  ;;  %v1088_v63 = vld [vmem:[#allocation2 + $0xa8] sm:$0x11] }
  0x78   : > { %v1524_v45 = vor.u32 %v1523_v24, %v1520_v22  ;;  %v11353_v32 = vrot.slane %v955_v15, 11  ;;  %v794_v34 = vld [vmem:[#allocation2 + $0x110] sm:$0x22]  ;;  %v922_v35 = vld [vmem:[#allocation2 + $0x110] sm:$0x11]  ;;  %v13957_v36 = vrot.slane %v589_v62, 7 }
  0x79   : > { %v1506_v38 = vrot.slane %v1504_v28, 4  ;;  %v1509_v40 = vrot.slane %v1507_v29, 5  ;;  %v1515_v41 = vrot.slane %v1513_v30, 5  ;;  %v13961_v44 = vld [vmem:[#allocation2 + $0x18] sm:$0xff]  ;;  %v1377_v46 = vld [vmem:[#allocation2 + $0xc8] sm:$0x11]  ;;  %v926_v47 = vsel %vm13716_vm14, %v11333_v31, %v925_v14 }
  0x7a   : > { %v1525_v48 = vrot.slane %v1524_v45, 4  ;;  %v1532_v49 = vshrl.u32 %v13961_v44, 16  ;;  %v1535_v61 = vshll.u32 %v13961_v44, 16  ;;  %v1541_v50 = vshll.u32 %v1377_v46, 16  ;;  %927 = vst [vmem:[#allocation2 + $0xf0] sm:$0x11] %v926_v47 }
  0x7b   : > { %v954_v52 = vld [vmem:[#allocation2 + $0x110] sm:$0x88]  ;;  %v1510_v53 = vor.u32 %v1509_v40, %v1506_v38  ;;  %v13967_v54 = vld [vmem:[#allocation2 + $0xd8] sm:$0xff]  ;;  %v1089_v57 = vsel %vm13748_vm2, %v11353_v32, %v1088_v63  ;;  %v11332_v58 = vrot.slane %v794_v34, 9  ;;  %v737_v5 = vld [vmem:[#allocation2 + $0x108] sm:$0xff]  ;;  %v594_v32 = vor.u32 %v592_v0, %v13957_v36 }
  0x7c   : > { %v11352_v62 = vrot.slane %v954_v52, 11  ;;  %v1085_v3 = vld [vmem:[#allocation2 + $0xb8] sm:$0x11]  ;;  %v1530_v7 = vsel %vm13814_vm5, %v1525_v48, %v1529_v25  ;;  %v1546_v8 = vshrl.u32 %v13967_v54, 16  ;;  %v1549_v9 = vshll.u32 %v13967_v54, 16 }
  0x7d   : > { %v1534_v10 = vrot.slane %v1532_v49, 4  ;;  %1090 = vst [vmem:[#allocation2 + $0xa8] sm:$0x11] %v1089_v57  ;;  %v797_v11 = vld [vmem:[#allocation2 + $0x78] sm:$0x22]  ;;  %1633 = vrot.lane.b32.xlu1 %v1530_v7, %s13526_s18  ;;  %v1511_v12 = vrot.slane %v1510_v53, 4  ;;  %v923_v19 = vsel %vm13716_vm14, %v11332_v58, %v922_v35  ;;  %v738_v49 = vsel %vm13710_vm11, %v594_v32, %v737_v5 }
  0x7e   : > { %v1379_v14 = vld [vmem:[#allocation2 + $0xc0] sm:$0x11]  ;;  %v1537_v15 = vrot.slane %v1535_v61, 5  ;;  %v1543_v16 = vrot.slane %v1541_v50, 5  ;;  %v1548_v22 = vrot.slane %v1546_v8, 4  ;;  %v1551_v24 = vrot.slane %v1549_v9, 5 }
  0x7f   : > { %v1555_v25 = vshll.u32 %v1379_v14, 16  ;;  %924 = vst [vmem:[#allocation2 + $0x110] sm:$0x11] %v923_v19  ;;  %v1086_v26 = vsel %vm13748_vm2, %v11352_v62, %v1085_v3  ;;  %v931_v27 = vld [vmem:[#allocation2 + $0x78] sm:$0x11]  ;;  %v1516_v29 = vsel %vm13814_vm5, %v1511_v12, %v1515_v41  ;;  %v11335_v31 = vrot.slane %v797_v11, 9 }
  0x80   : > { %v740_v28 = vld [vmem:[#allocation2 + $0xd0] sm:$0x11]  ;;  %v1538_v30 = vor.u32 %v1537_v15, %v1534_v10  ;;  %1087 = vst [vmem:[#allocation2 + $0xb8] sm:$0x11] %v1086_v26  ;;  %v957_v63 = vld [vmem:[#allocation2 + $0x78] sm:$0x88]  ;;  %1631 = vrot.lane.b32.xlu0 %v1516_v29, %s13526_s18  ;;  %v1552_v34 = vor.u32 %v1551_v24, %v1548_v22 }
  0x81   : > { %v1094_v45 = vld [vmem:[#allocation2 + $0x130] sm:$0x11]  ;;  %v1557_v35 = vrot.slane %v1555_v25, 5  ;;  %v11355_v38 = vrot.slane %v957_v63, 11  ;;  %v595_v40 = vrot.slane %v13957_v36, 4  ;;  %v932_v48 = vsel %vm13716_vm14, %v11335_v31, %v931_v27  ;;  %739 = vst [vmem:[#allocation2 + $0x108] sm:$0xff] %v738_v49 }
  0x82   : > { %v12498_v46 = vld [vmem:[%s13591_s10 + $0x164] ss:$8 sps:$4 sm:$0xff]   ;;  %v1539_v41 = vrot.slane %v1538_v30, 4  ;;  %v13988_v47 = vld [vmem:[#allocation2 + $0xf0] sm:$0xff]  ;;  %v13996_v55 = vrot.slane %v541_v1, 7  ;;  %v1553_v61 = vrot.slane %v1552_v34, 4 }
  0x83   : > { %v12500_v0 = vld [vmem:[%s13591_s10 + $0x160] ss:$8 sps:$4 sm:$0xff]   ;;  %v1574_v50 = vshrl.u32 %v13988_v47, 16  ;;  %v1577_v36 = vshll.u32 %v13988_v47, 16  ;;  %933 = vst [vmem:[#allocation2 + $0x78] sm:$0x11] %v932_v48  ;;  %v1095_v52 = vsel %vm13748_vm2, %v11355_v38, %v1094_v45  ;;  %4947 = vmatprep.subr.bf16.mxu1 %v12498_v46  ;;  %v741_v58 = vsel %vm13716_vm14, %v595_v40, %v740_v28 }
  0x84   : > { %v12501_v53 = vld [vmem:[%s13591_s10 + $0x54] ss:$8 sps:$4 sm:$0xff]   ;;  %v1544_v57 = vsel %vm13814_vm5, %v1539_v41, %v1543_v16  ;;  %v1383_v1 = vld [vmem:[#allocation2 + $0xa8] sm:$0x11]  ;;  %1096 = vst [vmem:[#allocation2 + $0x130] sm:$0x11] %v1095_v52  ;;  %4948 = vmatpush1.bf16.msra.mxu1 %v12500_v0  ;;  %v1558_v8 = vsel %vm13814_vm5, %v1553_v61, %v1557_v35 }
  0x85   : > { %v544_v62 = vshll.u32 %v13914_v23, 16  ;;  %v701_v3 = vld [vmem:[#allocation2 + $0x80] sm:$0xff]  ;;  %v12503_v7 = vld [vmem:[%s13591_s10 + $0x50] ss:$8 sps:$4 sm:$0xff]   ;;  %1635 = vrot.lane.b32.xlu0 %v1544_v57, %s13526_s18  ;;  %v1576_v9 = vrot.slane %v1574_v50, 4  ;;  %v1579_v10 = vrot.slane %v1577_v36, 5  ;;  %4836 = vmatprep.subr.bf16.mxu0 %v12501_v53 }
  0x86   : > { %v1583_v11 = vshll.u32 %v1383_v1, 16  ;;  %742 = vst [vmem:[#allocation2 + $0xd0] sm:$0x11] %v741_v58  ;;  %v12504_v5 = vld [vmem:[%s13591_s10 + $0x154] ss:$8 sps:$4 sm:$0xff]   ;;  %1637 = vrot.lane.b32.xlu1 %v1558_v8, %s13526_s18  ;;  %v605_v14 = vshrl.u32 %v13959_v59, 16  ;;  %4837 = vmatpush1.bf16.msra.mxu0 %v12503_v7 }
  0x87   : > { %v14015_v12 = vld [vmem:[#allocation2 + $0x110] sm:$0xff]  ;;  %v546_v23 = vor.u32 %v544_v62, %v13996_v55  ;;  %v608_v15 = vshll.u32 %v13959_v59, 16  ;;  %v1580_v19 = vor.u32 %v1579_v10, %v1576_v9  ;;  %v1381_v24 = vld [vmem:[#allocation2 + $0xb8] sm:$0x11]  ;;  %4949 = vmatprep.subr.bf16.mxu1 %v12504_v5  ;;  %v749_v63 = vld [vmem:[#allocation2 + $0x60] sm:$0xff]  ;;  %vm1779_vm6 = vcmask 1042432  }
  0x88   : > { %v12506_v16 = vld [vmem:[%s13591_s10 + $0x150] ss:$8 sps:$4 sm:$0xff]   ;;  %v1585_v22 = vrot.slane %v1583_v11, 5  ;;  %v1560_v25 = vshrl.u32 %v14015_v12, 16  ;;  %v1563_v26 = vshll.u32 %v14015_v12, 16  ;;  %v1569_v27 = vshll.u32 %v1381_v24, 16  ;;  %vm14109_vm8 = vmor %vm1779_vm6, %vm1780_vm7 }
  0x89   : > { %v702_v28 = vsel %vm13710_vm11, %v546_v23, %v701_v3  ;;  %v14025_v29 = vrot.slane %v605_v14, 7  ;;  %4950 = vmatpush1.bf16.msra.mxu1 %v12506_v16  ;;  %v1581_v30 = vrot.slane %v1580_v19, 4  ;;  %v796_v34 = vld [vmem:[#allocation2 + $0x108] sm:$0x22]  ;;  %v928_v35 = vld [vmem:[#allocation2 + $0x108] sm:$0x11] }
  0x8a   : > { %v1562_v31 = vrot.slane %v1560_v25, 4  ;;  %v1565_v59 = vrot.slane %v1563_v26, 5  ;;  %703 = vst [vmem:[#allocation2 + $0x80] sm:$0xff] %v702_v28  ;;  %v1571_v45 = vrot.slane %v1569_v27, 5  ;;  %v14027_v32 = vld [vmem:[#allocation2 + $0x78] sm:$0xff]  ;;  %v11334_v50 = vrot.slane %v796_v34, 9 }
  0x8b   : > { %v610_v38 = vor.u32 %v608_v15, %v14025_v29  ;;  %v1586_v40 = vsel %vm13814_vm5, %v1581_v30, %v1585_v22  ;;  %v1387_v41 = vld [vmem:[#allocation2 + $0x130] sm:$0x11]  ;;  %v1602_v48 = vshrl.u32 %v14027_v32, 16  ;;  %v1605_v49 = vshll.u32 %v14027_v32, 16  ;;  %v956_v0 = vld [vmem:[#allocation2 + $0x108] sm:$0x88] }
  0x8c   : > { %v1566_v46 = vor.u32 %v1565_v59, %v1562_v31  ;;  %1641 = vrot.lane.b32.xlu1 %v1586_v40, %s13526_s18  ;;  %v1611_v61 = vshll.u32 %v1387_v41, 16  ;;  %v11354_v36 = vrot.slane %v956_v0, 11  ;;  %v929_v62 = vsel %vm13716_vm14, %v11334_v50, %v928_v35  ;;  %v12507_v7 = vld [vmem:[%s13591_s10 + $0x44] ss:$8 sps:$4 sm:$0xff]   ;;  %v12509_v11 = vld [vmem:[%s13591_s10 + $0x40] ss:$8 sps:$4 sm:$0xff]  }
  0x8d   : > { %v1091_v52 = vld [vmem:[#allocation2 + $0xd0] sm:$0x11]  ;;  %v1604_v57 = vrot.slane %v1602_v48, 4  ;;  %v1607_v1 = vrot.slane %v1605_v49, 5  ;;  %v750_v58 = vsel %vm13710_vm11, %v610_v38, %v749_v63  ;;  %930 = vst [vmem:[#allocation2 + $0x108] sm:$0x11] %v929_v62  ;;  %4838 = vmatprep.subr.bf16.mxu0 %v12507_v7 }
  0x8e   : > { %v1567_v53 = vrot.slane %v1566_v46, 4  ;;  %v1092_v3 = vsel %vm13748_vm2, %v11354_v36, %v1091_v52  ;;  %751 = vst [vmem:[#allocation2 + $0x60] sm:$0xff] %v750_v58  ;;  %v1613_v10 = vrot.slane %v1611_v61, 5  ;;  %v12510_v5 = vld [vmem:[%s13591_s10 + $0x144] ss:$8 sps:$4 sm:$0xff]   ;;  %4839 = vmatpush1.bf16.msra.mxu0 %v12509_v11  ;;  %v547_v46 = vrot.slane %v13996_v55, 4 }
  0x8f   : > { %v1608_v9 = vor.u32 %v1607_v1, %v1604_v57  ;;  %1093 = vst [vmem:[#allocation2 + $0xd0] sm:$0x11] %v1092_v3  ;;  %4951 = vmatprep.subr.bf16.mxu1 %v12510_v5  ;;  %v12512_v19 = vld [vmem:[%s13591_s10 + $0x140] ss:$8 sps:$4 sm:$0xff]   ;;  %v12513_v22 = vld [vmem:[%s13591_s10 + $0x34] ss:$8 sps:$4 sm:$0xff]  }
  0x90   : > { %v1572_v8 = vsel %vm13814_vm5, %v1567_v53, %v1571_v45  ;;  %v12515_v24 = vld [vmem:[%s13591_s10 + $0x30] ss:$8 sps:$4 sm:$0xff]   ;;  %4952 = vmatpush1.bf16.msra.mxu1 %v12512_v19  ;;  %v12516_v27 = vld [vmem:[%s13591_s10 + $0x134] ss:$8 sps:$4 sm:$0xff]   ;;  %4840 = vmatprep.subr.bf16.mxu0 %v12513_v22  ;;  %v12519_v40 = vld [vmem:[%s13591_s10 + $0x24] ss:$8 sps:$4 sm:$0xff]  }
  0x91   : > { %1639 = vrot.lane.b32.xlu0 %v1572_v8, %s13526_s18  ;;  %v788_v23 = vld [vmem:[#allocation2 + $0x80] sm:$0x22]  ;;  %v904_v14 = vld [vmem:[#allocation2 + $0x80] sm:$0x11]  ;;  %v1609_v15 = vrot.slane %v1608_v9, 4  ;;  %4953 = vmatprep.subr.bf16.mxu1 %v12516_v27  ;;  %v13455_v27 = vld [vmem:[#allocation2 + $0x90] sm:$0xff] }
  0x92   : > { %v11326_v16 = vrot.slane %v788_v23, 9  ;;  %v12518_v28 = vld [vmem:[%s13591_s10 + $0x130] ss:$8 sps:$4 sm:$0xff]   ;;  %4841 = vmatpush1.bf16.msra.mxu0 %v12515_v24  ;;  %v12521_v48 = vld [vmem:[%s13591_s10 + $0x20] ss:$8 sps:$4 sm:$0xff]   ;;  %vm1696_vm9 = vcmask 1043968  }
  0x93   : > { %v1614_v25 = vsel %vm13814_vm5, %v1609_v15, %v1613_v10  ;;  %v12522_v49 = vld [vmem:[%s13591_s10 + $0x124] ss:$8 sps:$4 sm:$0xff]   ;;  %4842 = vmatprep.subr.bf16.mxu0 %v12519_v40  ;;  %v12524_v50 = vld [vmem:[%s13591_s10 + $0x120] ss:$8 sps:$4 sm:$0xff]   ;;  %v12525_v36 = vld [vmem:[%s13591_s10 + $0x14] ss:$8 sps:$4 sm:$0xff]  }
  0x94   : > { %v905_v26 = vsel %vm13716_vm14, %v11326_v16, %v904_v14  ;;  %1645 = vrot.lane.b32.xlu1 %v1614_v25, %s13526_s18  ;;  %v14057_v59 = vld [vmem:[#allocation2 + $0x108] sm:$0xff]  ;;  %4954 = vmatpush1.bf16.msra.mxu1 %v12518_v28  ;;  %v12527_v52 = vld [vmem:[%s13591_s10 + $0x10] ss:$8 sps:$4 sm:$0xff]   ;;  %v12528_v53 = vld [vmem:[%s13591_s10 + $0x114] ss:$8 sps:$4 sm:$0xff]   ;;  %vm1697_vm10 = vcmask 1047556  }
  0x95   : > { %906 = vst [vmem:[#allocation2 + $0x80] sm:$0x11] %v905_v26  ;;  %v798_v30 = vld [vmem:[#allocation2 + $0x60] sm:$0x22]  ;;  %v934_v31 = vld [vmem:[#allocation2 + $0x60] sm:$0x11]  ;;  %4955 = vmatprep.subr.bf16.mxu1 %v12522_v49  ;;  %vm14288_vm13 = vmor %vm1697_vm10, %vm1696_vm9 }
  0x96   : > { %v1385_v63 = vld [vmem:[#allocation2 + $0xd0] sm:$0x11]  ;;  %v11336_v45 = vrot.slane %v798_v30, 9  ;;  %v1588_v34 = vshrl.u32 %v14057_v59, 16  ;;  %v1591_v35 = vshll.u32 %v14057_v59, 16  ;;  %4843 = vmatpush1.bf16.msra.mxu0 %v12521_v48  ;;  %v13454_v19 = vld [vmem:[#allocation2 + $0xe0] sm:$0xff] }
  0x97   : > { %v1597_v38 = vshll.u32 %v1385_v63, 16  ;;  %v12530_v57 = vld [vmem:[%s13591_s10 + $0x110] ss:$8 sps:$4 sm:$0xff]   ;;  %4844 = vmatprep.subr.bf16.mxu0 %v12525_v36  ;;  %v948_v3 = vld [vmem:[#allocation2 + $0x80] sm:$0x88]  ;;  %vm1663_vm12 = vcmask 523264  }
  0x98   : > { %1912 = vrot.lane.b32.xlu1 %v13796_v42, %s13526_s18  ;;  %v935_v41 = vsel %vm13716_vm14, %v11336_v45, %v934_v31  ;;  %v1590_v0 = vrot.slane %v1588_v34, 4  ;;  %v1593_v61 = vrot.slane %v1591_v35, 5  ;;  %4956 = vmatpush1.bf16.msra.mxu1 %v12524_v50  ;;  %v704_v1 = vld [vmem:[#allocation2 + $0x30] sm:$0x11]  ;;  %v12531_v7 = vld [vmem:[%s13591_s10 + $0x4] ss:$8 sps:$4 sm:$0xff]  }
  0x99   : > { %936 = vst [vmem:[#allocation2 + $0x60] sm:$0x11] %v935_v41  ;;  %v1599_v55 = vrot.slane %v1597_v38, 5  ;;  %v705_v58 = vsel %vm13716_vm14, %v547_v46, %v704_v1  ;;  %4957 = vmatprep.subr.bf16.mxu1 %v12528_v53  ;;  %v12534_v10 = vld [vmem:[%s13591_s10 + $0x104] ss:$8 sps:$4 sm:$0xff]   ;;  %v11346_v5 = vrot.slane %v948_v3, 11 }
  0x9a   : > { %v1594_v42 = vor.u32 %v1593_v61, %v1590_v0  ;;  %706 = vst [vmem:[#allocation2 + $0x30] sm:$0x11] %v705_v58  ;;  %4845 = vmatpush1.bf16.msra.mxu0 %v12527_v52  ;;  %v12536_v11 = vld [vmem:[%s13591_s10 + $0x100] ss:$8 sps:$4 sm:$0xff]   ;;  %v12537_v23 = vld [vmem:[%s13591_s10 + $0xf4] ss:$8 sps:$4 sm:$0xff]  }
  0x9b   : > { %4846 = vmatprep.subr.bf16.mxu0 %v12531_v7  ;;  %v12539_v14 = vld [vmem:[%s13591_s10 + $0xf0] ss:$8 sps:$4 sm:$0xff]   ;;  %v12540_v15 = vld [vmem:[%s13591_s10 + $0x1f4] ss:$8 sps:$4 sm:$0xff]   ;;  %v12543_v24 = vld [vmem:[%s13591_s10 + $0xe4] ss:$8 sps:$4 sm:$0xff]  }
  0x9c   : > { %1916 = vrot.lane.b32.xlu1 %v13836_v2, %s13526_s18  ;;  %v1595_v62 = vrot.slane %v1594_v42, 4  ;;  %4958 = vmatpush1.bf16.msra.mxu1 %v12530_v57  ;;  %v12533_v2 = vld [vmem:[%s13591_s10] ss:$8 sps:$4 sm:$0xff]   ;;  %v12542_v16 = vld [vmem:[%s13591_s10 + $0x1f0] ss:$8 sps:$4 sm:$0xff]   ;;  %v18100_v38 = vmov 0 }
  0x9d   : > { %v1885_v9 = vld [vmem:[#allocation2 + $0x80] sm:$0xff]  ;;  %4959 = vmatprep.subr.bf16.mxu1 %v12534_v10  ;;  %v12549_v30 = vld [vmem:[%s13591_s10 + $0xd4] ss:$8 sps:$4 sm:$0xff]   ;;  %v12551_v31 = vld [vmem:[%s13591_s10 + $0xd0] ss:$8 sps:$4 sm:$0xff]   ;;  %v18101_v38 = vsel %vm14109_vm8, 4294967295, %v18100_v38 }
  0x9e   : > { %v1600_v8 = vsel %vm13814_vm5, %v1595_v62, %v1599_v55  ;;  %4847 = vmatpush1.bf16.msra.mxu0 %v12533_v2  ;;  %v12545_v25 = vld [vmem:[%s13591_s10 + $0xe0] ss:$8 sps:$4 sm:$0xff]   ;;  %v12546_v26 = vld [vmem:[%s13591_s10 + $0x1e4] ss:$8 sps:$4 sm:$0xff]   ;;  %v12552_v63 = vld [vmem:[%s13591_s10 + $0x1d4] ss:$8 sps:$4 sm:$0xff]  }
  0x9f   : > { %1643 = vrot.lane.b32.xlu0 %v1600_v8, %s13526_s18  ;;  %4848 = vmatprep.subr.bf16.mxu0 %v12537_v23  ;;  %v12548_v28 = vld [vmem:[%s13591_s10 + $0x1e0] ss:$8 sps:$4 sm:$0xff]   ;;  %v12554_v34 = vld [vmem:[%s13591_s10 + $0x1d0] ss:$8 sps:$4 sm:$0xff]   ;;  %18102 = vst [vmem:[#allocation12_spill] sm:$0xff] %v18101_v38  ;;  %v611_v1 = vrot.slane %v14025_v29, 4 }
  0xa0   : > { %1920 = vrot.lane.b32.xlu1 %v13906_v13, %s13526_s18  ;;  %4960 = vmatpush1.bf16.msra.mxu1 %v12536_v11  ;;  %v2296_v45 = vld [vmem:[#allocation2 + $0x20] sm:$0xee]  ;;  %v13456_v35 = vld [vmem:[#allocation2 + $0xb0] sm:$0xff]  ;;  %v14118_v0 = vld [vmem:[#allocation2 + $0x100] sm:$0x11] }
  0xa1   : > { %v1067_v13 = vld [vmem:[#allocation2 + $0x30] sm:$0x11]  ;;  %4961 = vmatprep.subr.bf16.mxu1 %v12540_v15  ;;  %v12555_v40 = vld [vmem:[%s13591_s10 + $0xc4] ss:$8 sps:$4 sm:$0xff]   ;;  %v12557_v46 = vld [vmem:[%s13591_s10 + $0xc0] ss:$8 sps:$4 sm:$0xff]  }
  0xa2   : > { %v1068_v22 = vsel %vm13748_vm2, %v11346_v5, %v1067_v13  ;;  %4849 = vmatpush2.bf16.msra.mxu0 %v12539_v14  ;;  %v12558_v41 = vld [vmem:[%s13591_s10 + $0x1c4] ss:$8 sps:$4 sm:$0xff]   ;;  %v1125_v36 = vld [vmem:[%s13591_s10 + $0xb0] sm:$0xff]  ;;  %v11375_v52 = vrot.slane %v2296_v45, 9  ;;  %v1126_v42 = vld [vmem:[%s13591_s10 + $0xb8] sm:$0xff]  ;;  %v2360_v10 = vrot.slane %v14118_v0, 5 }
  0xa3   : > { %1910 = vrot.lane.b32.xlu0 %v13454_v19, %s13526_s18  ;;  %1069 = vst [vmem:[#allocation2 + $0x30] sm:$0x11] %v1068_v22  ;;  %4850 = vmatprep.subr.bf16.mxu0 %v12543_v24  ;;  %v1893_v48 = vld [vmem:[#allocation2 + $0x60] sm:$0xff]  ;;  %v14120_v61 = vld [vmem:[#allocation2 + $0x128] sm:$0xee]  ;;  %v11540_v7 = vcombine.low %v1125_v36, %v1126_v42  ;;  %v14166_v22 = vld [vmem:[#allocation2 + $0x90] sm:$0xff] }
  0xa4   : > { %1924 = vrot.lane.b32.xlu1 %v1885_v9, %s13526_s18  ;;  %4962 = vmatpush2.bf16.msra.mxu1 %v12542_v16  ;;  %v14116_v49 = vld [vmem:[#allocation2 + $0xe0] sm:$0xee]  ;;  %v1321_v50 = vld [vmem:[#allocation2 + $0x68] sm:$0xff]  ;;  %v2301_v53 = vld [vmem:[#allocation2] sm:$0x11]  ;;  %v11377_v11 = vrot.slane %v14120_v61, 9 }
  0xa5   : > { %4963 = vmatprep.subr.bf16.mxu1 %v12546_v26  ;;  %1340 = vst.msk [vmem:[#allocation3] sm:$0xff] %vm13730_vm15, %v1321_v50  ;;  %v12561_v55 = vld [vmem:[%s13591_s10 + $0xb4] ss:$8 sps:$4 sm:$0xff]   ;;  %v14132_v57 = vld [vmem:[#allocation2 + $0x20] sm:$0xff]  ;;  %v14141_v62 = vld [vmem:[#allocation2 + $0x48] sm:$0x11] }
  0xa6   : > { %4851 = vmatpush2.bf16.msra.mxu0 %v12545_v25  ;;  %1342 = vst.msk [vmem:[#allocation3 + $0x70] sm:$0xff] %vm13730_vm15, %v14132_v57  ;;  %v14143_v3 = vld [vmem:[#allocation2 + $0x138] sm:$0xee]  ;;  %v14145_v8 = vld [vmem:[#allocation2 + $0x120] sm:$0x11]  ;;  %v11374_v9 = vrot.slane %v14116_v49, 9 }
  0xa7   : > { %1914 = vrot.lane.b32.xlu0 %v13455_v27, %s13526_s18  ;;  %4852 = vmatprep.subr.bf16.mxu0 %v12549_v30  ;;  %v14147_v29 = vld [vmem:[#allocation2 + $0xb0] sm:$0xee]  ;;  %v14156_v5 = vld [vmem:[#allocation2 + $0x8] sm:$0x11]  ;;  %v1322_v23 = vld [vmem:[#allocation2 + $0xe0] sm:$0xff]  ;;  %v2372_v19 = vrot.slane %v2301_v53, 5 }
  0xa8   : > { %1928 = vrot.lane.b32.xlu1 %v13961_v44, %s13526_s18  ;;  %4964 = vmatpush2.bf16.msra.mxu1 %v12548_v28  ;;  %v2297_v44 = vld [vmem:[#allocation2 + $0x58] sm:$0x11]  ;;  %v1123_v14 = vld [vmem:[%s13591_s10 + $0xa0] sm:$0xff]  ;;  %v1124_v15 = vld [vmem:[%s13591_s10 + $0xa8] sm:$0xff]  ;;  %1341 = vst.msk [vmem:[#allocation3 + $0x38] sm:$0xff] %vm13730_vm15, %v1322_v23  ;;  %v2368_v24 = vrot.slane %v14141_v62, 5 }
  0xa9   : > { %4965 = vmatprep.subr.bf16.mxu1 %v12552_v63  ;;  %v2364_v58 = vrot.slane %v2297_v44, 5  ;;  %v12565_v2 = vld [vmem:[%s13591_s10 + $0x1b0] ss:$8 sps:$4 sm:$0xff]   ;;  %v12566_v13 = vld [vmem:[%s13591_s10 + $0xa4] ss:$8 sps:$4 sm:$0xff]   ;;  %1343 = vst.msk [vmem:[#allocation3 + $0xa8] sm:$0xff] %vm13730_vm15, %v14166_v22  ;;  %v11538_v26 = vcombine.low %v1123_v14, %v1124_v15 }
  0xaa   : > { %4853 = vmatpush2.bf16.msra.mxu0 %v12551_v31  ;;  %v14169_v25 = vld [vmem:[#allocation2 + $0x80] sm:$0xee]  ;;  %v11379_v30 = vrot.slane %v14143_v3, 9  ;;  %v2380_v31 = vrot.slane %v14145_v8, 5  ;;  %v14178_v63 = vld [vmem:[#allocation2 + $0x28] sm:$0xee] }
  0xab   : > { %1918 = vrot.lane.b32.xlu0 %v13456_v35, %s13526_s18  ;;  %4854 = vmatprep.subr.bf16.mxu0 %v12555_v40  ;;  %v2365_v16 = vsel %vm14109_vm8, %v11375_v52, %v2364_v58  ;;  %v12568_v27 = vld [vmem:[%s13591_s10 + $0x1a4] ss:$8 sps:$4 sm:$0xff]   ;;  %v12570_v28 = vld [vmem:[%s13591_s10 + $0x1a0] ss:$8 sps:$4 sm:$0xff]   ;;  %v12571_v45 = vld [vmem:[%s13591_s10 + $0x94] ss:$8 sps:$4 sm:$0xff]   ;;  %v2373_v40 = vsel %vm14109_vm8, %v11377_v11, %v2372_v19 }
  0xac   : > { %1932 = vrot.lane.b32.xlu1 %v14015_v12, %s13526_s18  ;;  %4966 = vmatpush2.bf16.msra.mxu1 %v12554_v34  ;;  %v12560_v12 = vld [vmem:[%s13591_s10 + $0x1c0] ss:$8 sps:$4 sm:$0xff]   ;;  %v11378_v34 = vrot.slane %v14147_v29, 9  ;;  %v14185_v35 = vld [vmem:[#allocation2 + $0xf8] sm:$0x11]  ;;  %v11381_v52 = vrot.slane %v14169_v25, 9  ;;  %v2381_v11 = vsel %vm14109_vm8, %v11379_v30, %v2380_v31 }
  0xad   : > { %4967 = vmatprep.subr.bf16.mxu1 %v12558_v41  ;;  %v752_v44 = vld [vmem:[#allocation2 + $0x118] sm:$0x11]  ;;  %v14190_v41 = vld [vmem:[#allocation2 + $0x18] sm:$0xee]  ;;  %v14201_v53 = vld [vmem:[#allocation2 + $0x110] sm:$0xee] }
  0xae   : > { %4855 = vmatpush2.bf16.msra.mxu0 %v12557_v46  ;;  %v2376_v46 = vrot.slane %v14156_v5, 5  ;;  %v753_v61 = vsel %vm13716_vm14, %v611_v1, %v752_v44  ;;  %v14197_v50 = vld [vmem:[#allocation2 + $0x98] sm:$0xee]  ;;  %v14203_v42 = vld [vmem:[#allocation2 + $0xb8] sm:$0x11]  ;;  %v11380_v1 = vrot.slane %v14178_v63, 9 }
  0xaf   : > { %1922 = vrot.lane.b32.xlu0 %v13855_v33, %s13526_s18  ;;  %v12563_v33 = vld [vmem:[%s13591_s10 + $0x1b4] ss:$8 sps:$4 sm:$0xff]   ;;  %4856 = vmatprep.subr.bf16.mxu0 %v12561_v55  ;;  %v12573_v36 = vld [vmem:[%s13591_s10 + $0x90] ss:$8 sps:$4 sm:$0xff]   ;;  %754 = vst [vmem:[#allocation2 + $0x118] sm:$0x11] %v753_v61 }
  0xb0   : > { %1936 = vrot.lane.b32.xlu1 %v14057_v59, %s13526_s18  ;;  %v14139_v59 = vld [vmem:[#allocation2 + $0x90] sm:$0xee]  ;;  %4968 = vmatpush2.bf16.msra.mxu1 %v12560_v12  ;;  %v2309_v12 = vld [vmem:[#allocation2 + $0x30] sm:$0x11]  ;;  %v958_v58 = vld [vmem:[#allocation2 + $0x60] sm:$0x88] }
  0xb1   : > { %4969 = vmatprep.subr.bf16.mxu1 %v12563_v33  ;;  %v12576_v55 = vld [vmem:[%s13591_s10 + $0x190] ss:$8 sps:$4 sm:$0xff]   ;;  %v1119_v33 = vld [vmem:[%s13591_s10 + $0x80] sm:$0xff]  ;;  %v2384_v3 = vrot.slane %v14185_v35, 5  ;;  %v2388_v23 = vrot.slane %v2309_v12, 5  ;;  %v11383_v14 = vrot.slane %v14190_v41, 9 }
  0xb2   : > { %4857 = vmatpush2.bf16.msra.mxu0 %v11540_v7  ;;  %v1120_v7 = vld [vmem:[%s13591_s10 + $0x88] sm:$0xff]  ;;  %v11382_v25 = vrot.slane %v14197_v50, 9  ;;  %v2404_v30 = vrot.slane %v14203_v42, 5  ;;  %v14249_v41 = vld [vmem:[#allocation2 + $0xa0] sm:$0x11] }
  0xb3   : > { %1926 = vrot.lane.b32.xlu0 %v13939_v56, %s13526_s18  ;;  %v11376_v56 = vrot.slane %v14139_v59, 9  ;;  %4858 = vmatprep.subr.bf16.mxu0 %v12566_v13  ;;  %v12577_v8 = vld [vmem:[%s13591_s10 + $0x84] ss:$8 sps:$4 sm:$0xff]   ;;  %v11534_v19 = vcombine.low %v1119_v33, %v1120_v7  ;;  %v2598_v7 = vshrl.u32 %v14166_v22, 16  ;;  %v1721_v62 = vld [vmem:[#allocation2 + $0x90] sm:$0xee] }
  0xb4   : > { %1940 = vrot.lane.b32.xlu1 %v1893_v48, %s13526_s18  ;;  %4970 = vmatpush2.bf16.msra.mxu1 %v12565_v2  ;;  %v14192_v48 = vld [vmem:[#allocation2 + $0xc8] sm:$0x11]  ;;  %v14214_v2 = vld [vmem:[#allocation2 + $0xb0] sm:$0xff]  ;;  %v1715_v44 = vld [vmem:[#allocation2 + $0x68] sm:$0xee] }
  0xb5   : > { %4971 = vmatprep.subr.bf16.mxu1 %v12568_v27  ;;  %1345 = vst.msk [vmem:[#allocation3 + $0x118] sm:$0xff] %vm13730_vm15, %v14214_v2  ;;  %v2396_v15 = vrot.slane %v14192_v48, 5  ;;  %v12579_v13 = vld [vmem:[%s13591_s10 + $0x184] ss:$8 sps:$4 sm:$0xff]   ;;  %v12584_v27 = vld [vmem:[%s13591_s10 + $0x274] ss:$8 sps:$4 sm:$0xff]  }
  0xb6   : > { %4859 = vmatpush2.bf16.msra.mxu0 %v11538_v26  ;;  %v12581_v26 = vld [vmem:[%s13591_s10 + $0x180] ss:$8 sps:$4 sm:$0xff]   ;;  %v1097_v48 = vld [vmem:[#allocation2 + $0x118] sm:$0x11] }
  0xb7   : > { %1930 = vrot.lane.b32.xlu0 %v13967_v54, %s13526_s18  ;;  %v12574_v54 = vld [vmem:[%s13591_s10 + $0x194] ss:$8 sps:$4 sm:$0xff]   ;;  %4860 = vmatprep.subr.bf16.mxu0 %v12571_v45  ;;  %v14237_v31 = vld [vmem:[#allocation2 + $0x28] sm:$0xff]  ;;  %v1717_v49 = vld [vmem:[#allocation2 + $0xe0] sm:$0xee] }
  0xb8   : > { %2424 = vrot.lane.b32.xlu1 %v2365_v16, %s13526_s18  ;;  %4972 = vmatpush2.bf16.msra.mxu1 %v12570_v28  ;;  %v11356_v16 = vrot.slane %v958_v58, 11  ;;  %v11385_v28 = vrot.slane %v14201_v53, 9  ;;  %v14239_v45 = vld [vmem:[#allocation2 + $0x138] sm:$0xff]  ;;  %1347 = vst.msk [vmem:[#allocation3 + $0x188] sm:$0xff] %vm13730_vm15, %v14237_v31  ;;  %v1716_v0 = vld [vmem:[#allocation2 + $0x88] sm:$0x11]  ;;  %v2369_v58 = vsel %vm14109_vm8, %v11376_v56, %v2368_v24  ;;  %v2385_v53 = vsel %vm14109_vm8, %v11380_v1, %v2384_v3 }
  0xb9   : > { %4973 = vmatprep.subr.bf16.mxu1 %v12574_v54  ;;  %1346 = vst.msk [vmem:[#allocation3 + $0x150] sm:$0xff] %vm13730_vm15, %v14239_v45  ;;  %v11358_v54 = vrot.slane %v1715_v44, 9  ;;  %v1784_v61 = vrot.slane %v1716_v0, 5  ;;  %v11359_v12 = vrot.slane %v1717_v49, 9  ;;  %v1722_v56 = vld [vmem:[#allocation2 + $0x48] sm:$0x11] }
  0xba   : > { %4861 = vmatpush2.bf16.msra.mxu0 %v12573_v36  ;;  %v14259_v36 = vld [vmem:[#allocation2 + $0x108] sm:$0xee]  ;;  %v1796_v44 = vrot.slane %v1722_v56, 5  ;;  %v12596_v49 = vld [vmem:[%s13591_s10 + $0x374] ss:$8 sps:$4 sm:$0xff]  }
  0xbb   : > { %1934 = vrot.lane.b32.xlu0 %v13988_v47, %s13526_s18  ;;  %v14221_v47 = vld [vmem:[#allocation2 + $0x128] sm:$0xff]  ;;  %4862 = vmatprep.subr.bf16.mxu0 %v12577_v8  ;;  %v1785_v33 = vsel %vm14109_vm8, %v11358_v54, %v1784_v61  ;;  %v2601_v8 = vshll.u32 %v14166_v22, 16  ;;  %v14284_v22 = vld [vmem:[#allocation2 + $0xc0] sm:$0x11]  ;;  %v14353_v1 = vld [vmem:[#allocation2 + $0x78] sm:$0xee] }
  0xbc   : > { %2428 = vrot.lane.b32.xlu1 %v2373_v40, %s13526_s18  ;;  %1344 = vst.msk [vmem:[#allocation3 + $0xe0] sm:$0xff] %vm13730_vm15, %v14221_v47  ;;  %4974 = vmatpush2.bf16.msra.mxu1 %v12576_v55  ;;  %v2361_v40 = vsel %vm14109_vm8, %v11374_v9, %v2360_v10  ;;  %v1098_v9 = vsel %vm13748_vm2, %v11356_v16, %v1097_v48  ;;  %v1718_v10 = vld [vmem:[#allocation2 + $0x100] sm:$0x11]  ;;  %1862 = vst.msk [vmem:[#allocation3 + $0xc] sm:$0xff] %vm13730_vm15, %v1785_v33  ;;  %v2587_v48 = vshll.u32 %v14132_v57, 16 }
  0xbd   : > { %4975 = vmatprep.subr.bf16.mxu1 %v12579_v13  ;;  %1099 = vst [vmem:[#allocation2 + $0x118] sm:$0x11] %v1098_v9  ;;  %v1788_v55 = vrot.slane %v1718_v10, 5  ;;  %v2397_v16 = vsel %vm14109_vm8, %v11383_v14, %v2396_v15  ;;  %v2392_v13 = vrot.slane %v14249_v41, 5  ;;  %v18103_v14 = vmov 0  ;;  %v1330_v9 = vld [vmem:[#allocation2 + $0x98] sm:$0xff] }
  0xbe   : > { %4863 = vmatpush2.bf16.msra.mxu0 %v11534_v19  ;;  %v18104_v14 = vsel %vm14288_vm13, 4294967295, %v18103_v14  ;;  %v2584_v15 = vshrl.u32 %v14132_v57, 16  ;;  %v1329_v10 = vld [vmem:[#allocation2 + $0x40] sm:$0xff]  ;;  %1349 = vst.msk [vmem:[#allocation3 + $0x1f8] sm:$0xff] %vm13730_vm15, %v1330_v9  ;;  %v14313_v57 = vld [vmem:[#allocation2 + $0xd8] sm:$0xff] }
  0xbf   : > { %1938 = vrot.lane.b32.xlu0 %v14027_v32, %s13526_s18  ;;  %v2389_v32 = vsel %vm14109_vm8, %v11381_v52, %v2388_v23  ;;  %v14261_v52 = vld [vmem:[#allocation2 + $0xd0] sm:$0x11]  ;;  %5058 = vmatprep.subr.bf16.mxu0 %v12584_v27  ;;  %v1720_v23 = vld [vmem:[#allocation2 + $0x58] sm:$0x11]  ;;  %v1789_v59 = vsel %vm14109_vm8, %v11359_v12, %v1788_v55  ;;  %18105 = vst [vmem:[#allocation13_spill] sm:$0xff] %v18104_v14  ;;  %v11361_v27 = vrot.slane %v1721_v62, 9  ;;  %v1616_v54 = vpop.permute.xlu0 %1615 }
  0xc0   : > { %2432 = vrot.lane.b32.xlu1 %v2381_v11, %s13526_s18  ;;  %4976 = vmatpush2.bf16.msra.mxu1 %v12581_v26  ;;  %v1719_v11 = vld [vmem:[#allocation2 + $0x20] sm:$0xee]  ;;  %v1792_v19 = vrot.slane %v1720_v23, 5  ;;  %v14282_v26 = vld [vmem:[#allocation2 + $0xd8] sm:$0xee]  ;;  %1863 = vst.msk [vmem:[#allocation3 + $0x44] sm:$0xff] %vm13730_vm15, %v1789_v59 }
  0xc1   : > { %v11360_v24 = vrot.slane %v1719_v11, 9  ;;  %v2412_v61 = vrot.slane %v14261_v52, 5  ;;  %v2600_v12 = vrot.slane %v2598_v7, 4  ;;  %v2603_v55 = vrot.slane %v2601_v8, 5  ;;  %1348 = vst.msk [vmem:[#allocation3 + $0x1c0] sm:$0xff] %vm13730_vm15, %v1329_v10  ;;  %v1620_v7 = vpop.permute.xlu1 %1619  ;;  %5171 = vmatprep.subr.bf16.mxu1 %v12596_v49  ;;  %1351 = vst.msk [vmem:[#allocation3 + $0x268] sm:$0xff] %vm13730_vm15, %v14313_v57 }
  0xc2   : > { %v2377_v52 = vsel %vm14109_vm8, %v11378_v34, %v2376_v46  ;;  %v1647_v33 = vrot.slane %v1616_v54, 4  ;;  %v2324_v8 = vld [vmem:[#allocation2 + $0x60] sm:$0xee]  ;;  %v2554_v11 = vld [vmem:[#allocation2 + $0x48] sm:$0x11]  ;;  %v1649_v29 = vrot.slane %v1620_v7, 4 }
  0xc3   : > { %2422 = vrot.lane.b32.xlu0 %v2361_v40, %s13526_s18  ;;  %v11387_v40 = vrot.slane %v14259_v36, 9  ;;  %v1793_v0 = vsel %vm14109_vm8, %v11360_v24, %v1792_v19  ;;  %v1797_v36 = vsel %vm14109_vm8, %v11361_v27, %v1796_v44  ;;  %v2626_v34 = vshrl.u32 %v14214_v2, 16  ;;  %v14343_v23 = vld [vmem:[#allocation2 + $0xa8] sm:$0x11]  ;;  %v14365_v9 = vld [vmem:[#allocation2 + $0x130] sm:$0x11] }
  0xc4   : > { %2436 = vrot.lane.b32.xlu1 %v2389_v32, %s13526_s18  ;;  %v14296_v32 = vld [vmem:[#allocation2 + $0xf0] sm:$0xee]  ;;  %1864 = vst.msk [vmem:[#allocation3 + $0x7c] sm:$0xff] %vm13730_vm15, %v1793_v0  ;;  %1865 = vst.msk [vmem:[#allocation3 + $0xb4] sm:$0xff] %vm13730_vm15, %v1797_v36  ;;  %v2325_v5 = vld [vmem:[#allocation2 + $0x118] sm:$0x11]  ;;  %v1666_v63 = vsel %vm1663_vm12, %v1649_v29, %v1620_v7  ;;  %v2604_v3 = vor.u32 %v2603_v55, %v2600_v12  ;;  %v2393_v36 = vsel %vm14109_vm8, %v11382_v25, %v2392_v13 }
  0xc5   : > { %v2629_v46 = vshll.u32 %v14214_v2, 16  ;;  %v11384_v42 = vrot.slane %v14282_v26, 9  ;;  %v11386_v35 = vrot.slane %v14296_v32, 9  ;;  %v2607_v2 = vshll.u32 %v2554_v11, 16  ;;  %1701 = vst.msk [vmem:[#allocation3 + $0x74] sm:$0xff] %vm14288_vm13, %v1666_v63  ;;  %v1618_v62 = vpop.permute.xlu0 %1617  ;;  %v14362_v0 = vld [vmem:[#allocation2 + $0xf0] sm:$0xff] }
  0xc6   : > { %v2413_v59 = vsel %vm14109_vm8, %v11387_v40, %v2412_v61  ;;  %v11389_v56 = vrot.slane %v2324_v8, 9  ;;  %v2420_v24 = vrot.slane %v2325_v5, 5  ;;  %v2586_v19 = vrot.slane %v2584_v15, 4  ;;  %1353 = vst.msk [vmem:[#allocation3 + $0x2d8] sm:$0xff] %vm13730_vm15, %v14362_v0  ;;  %v14371_v40 = vld [vmem:[#allocation2 + $0x110] sm:$0xff] }
  0xc7   : > { %2426 = vrot.lane.b32.xlu0 %v2369_v58, %s13526_s18  ;;  %v2405_v58 = vsel %vm14109_vm8, %v11385_v28, %v2404_v30  ;;  %v2400_v28 = vrot.slane %v14284_v22, 5  ;;  %v1664_v30 = vsel %vm1663_vm12, %v1647_v33, %v1616_v54  ;;  %v1648_v26 = vrot.slane %v1618_v62, 4  ;;  %1352 = vst.msk [vmem:[#allocation3 + $0x2a0] sm:$0xff] %vm13730_vm15, %v14371_v40  ;;  %v1723_v55 = vld [vmem:[#allocation2 + $0x128] sm:$0xee] }
  0xc8   : > { %2440 = vrot.lane.b32.xlu1 %v2397_v16, %s13526_s18  ;;  %v14345_v16 = vld [vmem:[#allocation2 + $0x18] sm:$0xff]  ;;  %1699 = vst.msk [vmem:[#allocation3 + $0x4] sm:$0xff] %vm14288_vm13, %v1664_v30  ;;  %v2589_v22 = vrot.slane %v2587_v48, 5  ;;  %v2628_v27 = vrot.slane %v2626_v34, 4  ;;  %v2631_v44 = vrot.slane %v2629_v46, 5  ;;  %v2408_v49 = vrot.slane %v14343_v23, 5  ;;  %v1622_v48 = vpop.permute.xlu1 %1621 }
  0xc9   : > { %1350 = vst.msk [vmem:[#allocation3 + $0x230] sm:$0xff] %vm13730_vm15, %v14345_v16  ;;  %v11388_v10 = vrot.slane %v14353_v1, 9  ;;  %v1665_v15 = vsel %vm1663_vm12, %v1648_v26, %v1618_v62  ;;  %v2605_v54 = vrot.slane %v2604_v3, 4  ;;  %v2609_v61 = vrot.slane %v2607_v2, 5  ;;  %v2558_v33 = vld [vmem:[#allocation2 + $0x8] sm:$0x11] }
  0xca   : > { %v2612_v12 = vshrl.u32 %v14221_v47, 16  ;;  %1700 = vst.msk [vmem:[#allocation3 + $0x3c] sm:$0xff] %vm14288_vm13, %v1665_v15  ;;  %v1724_v7 = vld [vmem:[#allocation2] sm:$0x11]  ;;  %v11362_v8 = vrot.slane %v1723_v55, 9  ;;  %v2401_v11 = vsel %vm14109_vm8, %v11384_v42, %v2400_v28  ;;  %v2590_v29 = vor.u32 %v2589_v22, %v2586_v19  ;;  %v14409_v62 = vld [vmem:[#allocation2 + $0x78] sm:$0xff] }
  0xcb   : > { %2430 = vrot.lane.b32.xlu0 %v2377_v52, %s13526_s18  ;;  %v1650_v52 = vrot.slane %v1622_v48, 4  ;;  %v2632_v41 = vor.u32 %v2631_v44, %v2628_v27  ;;  %v1725_v5 = vld [vmem:[#allocation2 + $0xb0] sm:$0xee]  ;;  %v1726_v50 = vld [vmem:[#allocation2 + $0x8] sm:$0x11]  ;;  %v1800_v34 = vrot.slane %v1724_v7, 5  ;;  %v2610_v30 = vsel %vm13814_vm5, %v2605_v54, %v2609_v61 }
  0xcc   : > { %2444 = vrot.lane.b32.xlu1 %v2405_v58, %s13526_s18  ;;  %v2421_v58 = vsel %vm14109_vm8, %v11389_v56, %v2420_v24  ;;  %v2615_v13 = vshll.u32 %v14221_v47, 16  ;;  %v11363_v46 = vrot.slane %v1725_v5, 9  ;;  %v2416_v42 = vrot.slane %v14365_v9, 5  ;;  %v1626_v28 = vpop.permute.xlu1 %1625  ;;  %v14401_v63 = vld [vmem:[#allocation2 + $0x58] sm:$0x11]  ;;  %v14411_v56 = vld [vmem:[#allocation2 + $0x108] sm:$0xff] }
  0xcd   : > { %v1667_v25 = vsel %vm1663_vm12, %v1650_v52, %v1622_v48  ;;  %v2635_v3 = vshll.u32 %v2558_v33, 16  ;;  %v1801_v47 = vsel %vm14109_vm8, %v11362_v8, %v1800_v34  ;;  %v1652_v2 = vrot.slane %v1626_v28, 4  ;;  %1355 = vst.msk [vmem:[#allocation3 + $0x348] sm:$0xff] %vm13730_vm15, %v14409_v62  ;;  %1354 = vst.msk [vmem:[#allocation3 + $0x310] sm:$0xff] %vm13730_vm15, %v14411_v56  ;;  %v12582_v48 = vld [vmem:[%s13591_s10 + $0x270] ss:$8 sps:$4 sm:$0xff]  }
  0xce   : > { %1702 = vst.msk [vmem:[#allocation3 + $0xac] sm:$0xff] %vm14288_vm13, %v1667_v25  ;;  %v2654_v24 = vshrl.u32 %v14237_v31, 16  ;;  %v2657_v19 = vshll.u32 %v14237_v31, 16  ;;  %v14415_v26 = vrot.slane %v2590_v29, 4  ;;  %v14417_v22 = vrot.slane %v2612_v12, 4 }
  0xcf   : > { %2434 = vrot.lane.b32.xlu0 %v2385_v53, %s13526_s18  ;;  %v1804_v53 = vrot.slane %v1726_v50, 5  ;;  %1866 = vst.msk [vmem:[#allocation3 + $0xec] sm:$0xff] %vm13730_vm15, %v1801_v47  ;;  %v2640_v27 = vshrl.u32 %v14239_v45, 16  ;;  %v2643_v31 = vshll.u32 %v14239_v45, 16  ;;  %v1669_v44 = vsel %vm1663_vm12, %v1652_v2, %v1626_v28  ;;  %v1624_v15 = vpop.permute.xlu0 %1623  ;;  %v3063_v54 = vld [vmem:[#allocation3] sm:$0xff]  ;;  %v3077_v28 = vld [vmem:[#allocation3 + $0x70] sm:$0xff] }
  0xd0   : > { %2448 = vrot.lane.b32.xlu1 %v2413_v59, %s13526_s18  ;;  %v2593_v61 = vshll.u32 %v14401_v63, 16  ;;  %v2633_v12 = vrot.slane %v2632_v41, 4  ;;  %v14432_v55 = vld [vmem:[#allocation2] sm:$0x11]  ;;  %1704 = vst.msk [vmem:[#allocation3 + $0x11c] sm:$0xff] %vm14288_vm13, %v1669_v44  ;;  %v1651_v52 = vrot.slane %v1624_v15, 4  ;;  %v2409_v8 = vsel %vm14109_vm8, %v11386_v35, %v2408_v49 }
  0xd1   : > { %v1805_v59 = vsel %vm14109_vm8, %v11363_v46, %v1804_v53  ;;  %v3070_v45 = vld [vmem:[#allocation3 + $0x38] sm:$0xff]  ;;  %v12599_v33 = vld [vmem:[%s13591_s10 + $0x264] ss:$8 sps:$4 sm:$0xff]   ;;  %v2637_v7 = vrot.slane %v2635_v3, 5  ;;  %v12589_v41 = vld [vmem:[#allocation3 + $0x8] ss:$56 sps:$4 sm:$0xff]  }
  0xd2   : > { %1867 = vst.msk [vmem:[#allocation3 + $0x124] sm:$0xff] %vm13730_vm15, %v1805_v59  ;;  %v12587_v29 = vld [vmem:[#allocation3 + $0xc] ss:$56 sps:$4 sm:$0xff]   ;;  %v12594_v5 = vld [vmem:[%s13591_s10 + $0x370] ss:$8 sps:$4 sm:$0xff]   ;;  %v14448_v50 = vrot.slane %v2654_v24, 4  ;;  %v1668_v25 = vsel %vm1663_vm12, %v1651_v52, %v1624_v15  ;;  %v2417_v24 = vsel %vm14109_vm8, %v11388_v10, %v2416_v42 }
  0xd3   : > { %2438 = vrot.lane.b32.xlu0 %v2393_v36, %s13526_s18  ;;  %v14434_v36 = vrot.slane %v2615_v13, 5  ;;  %v14450_v34 = vrot.slane %v2657_v19, 5  ;;  %v2562_v23 = vld [vmem:[#allocation2 + $0xf8] sm:$0x11]  ;;  %v14453_v13 = vrot.slane %v2640_v27, 4  ;;  %v14455_v32 = vrot.slane %v2643_v31, 5  ;;  %4977 = vmatprep.mubr.bf16.mxu1 %v12587_v29 }
  0xd4   : > { %2452 = vrot.lane.b32.xlu1 %v2421_v58, %s13526_s18  ;;  %v12585_v58 = vld [vmem:[#allocation3 + $0x4] ss:$56 sps:$4 sm:$0xff]   ;;  %1703 = vst.msk [vmem:[#allocation3 + $0xe4] sm:$0xff] %vm14288_vm13, %v1668_v25  ;;  %v12597_v49 = vld [vmem:[%s13591_s10 + $0x260] ss:$8 sps:$4 sm:$0xff]   ;;  %v1630_v53 = vpop.permute.xlu1 %1629  ;;  %4978 = vmatmul.mubr.bf16.vlgmr.msra.gmra.mxu1 %v12589_v41  ;;  %v2638_v3 = vsel %vm13814_vm5, %v2633_v12, %v2637_v7  ;;  %v2621_v2 = vshll.u32 %v14432_v55, 16 }
  0xd5   : > { %4864 = vmatprep.mubr.bf16.mxu0 %v12585_v58  ;;  %v12590_v35 = vld [vmem:[#allocation3 + $0x74] ss:$56 sps:$4 sm:$0xff]   ;;  %v2618_v47 = vor.u32 %v14434_v36, %v14417_v22  ;;  %v2560_v59 = vld [vmem:[#allocation2 + $0x120] sm:$0x11]  ;;  %v1654_v19 = vrot.slane %v1630_v53, 4  ;;  %v2595_v27 = vrot.slane %v2593_v61, 5  ;;  %v2660_v22 = vor.u32 %v14450_v34, %v14448_v50  ;;  %5172 = vmatpush1.bf16.msra.mxu1 %v12594_v5 }
  0xd6   : > { %v12602_v46 = vld [vmem:[%s13591_s10 + $0x364] ss:$8 sps:$4 sm:$0xff]   ;;  %v12605_v63 = vld [vmem:[%s13591_s10 + $0x254] ss:$8 sps:$4 sm:$0xff]   ;;  %v12600_v15 = vld [vmem:[%s13591_s10 + $0x360] ss:$8 sps:$4 sm:$0xff]   ;;  %v2646_v1 = vor.u32 %v14455_v32, %v14453_v13 }
  0xd7   : > { %2442 = vrot.lane.b32.xlu0 %v2401_v11, %s13526_s18  ;;  %v11406_v11 = vcombine.low %v3063_v54, %v3070_v45  ;;  %v3084_v31 = vld [vmem:[#allocation3 + $0xa8] sm:$0xff]  ;;  %v3078_v44 = vld [vmem:[#allocation3 + $0x78] sm:$0xff]  ;;  %v2663_v54 = vshll.u32 %v2562_v23, 16  ;;  %v1728_v12 = vld [vmem:[#allocation2 + $0x120] sm:$0x11]  ;;  %v1671_v42 = vsel %vm1663_vm12, %v1654_v19, %v1630_v53  ;;  %v2649_v55 = vshll.u32 %v2560_v59, 16  ;;  %5173 = vmatprep.subr.bf16.mxu1 %v12602_v46 }
  0xd8   : > { %2809 = vrot.lane.b32.xlu1 %v2610_v30, %s13526_s18  ;;  %v12592_v30 = vld [vmem:[#allocation3 + $0x7c] ss:$56 sps:$4 sm:$0xff]   ;;  %v1729_v10 = vld [vmem:[#allocation2 + $0x28] sm:$0xee]  ;;  %v12603_v61 = vld [vmem:[%s13591_s10 + $0x250] ss:$8 sps:$4 sm:$0xff]   ;;  %v2596_v29 = vsel %vm13814_vm5, %v14415_v26, %v2595_v27 }
  0xd9   : > { %4865 = vmatmul.mubr.bf16.vlgmr.msra.gmra.mxu0 %v11406_v11  ;;  %4987 = vmatprep.mubr.bf16.mxu1 %v12592_v30  ;;  %v1727_v9 = vld [vmem:[#allocation2 + $0x138] sm:$0xee]  ;;  %v1730_v36 = vld [vmem:[#allocation2 + $0xf8] sm:$0x11]  ;;  %v1808_v45 = vrot.slane %v1728_v12, 5  ;;  %1706 = vst.msk [vmem:[#allocation3 + $0x18c] sm:$0xff] %vm14288_vm13, %v1671_v42  ;;  %v11420_v11 = vcombine.low %v3077_v28, %v3084_v31 }
  0xda   : > { %5059 = vmatpush1.bf16.msra.mxu0 %v12582_v48  ;;  %4874 = vmatprep.mubr.bf16.mxu0 %v12590_v35  ;;  %v3085_v48 = vld [vmem:[#allocation3 + $0xb0] sm:$0xff]  ;;  %v11364_v52 = vrot.slane %v1727_v9, 9  ;;  %v2619_v58 = vrot.slane %v2618_v47, 4  ;;  %v11365_v7 = vrot.slane %v1729_v10, 9  ;;  %v12611_v25 = vld [vmem:[%s13591_s10 + $0x244] ss:$8 sps:$4 sm:$0xff]  }
  0xdb   : > { %2446 = vrot.lane.b32.xlu0 %v2409_v8, %s13526_s18  ;;  %5060 = vmatprep.subr.bf16.mxu0 %v12599_v33  ;;  %v2623_v33 = vrot.slane %v2621_v2, 5  ;;  %v1812_v8 = vrot.slane %v1730_v36, 5  ;;  %v12606_v41 = vld [vmem:[%s13591_s10 + $0x350] ss:$8 sps:$4 sm:$0xff]   ;;  %v12608_v5 = vld [vmem:[%s13591_s10 + $0x354] ss:$8 sps:$4 sm:$0xff]   ;;  %v11422_v34 = vcombine.low %v3078_v44, %v3085_v48 }
  0xdc   : > { %2813 = vrot.lane.b32.xlu1 %v2638_v3, %s13526_s18  ;;  %v1809_v50 = vsel %vm14109_vm8, %v11364_v52, %v1808_v45  ;;  %v12612_v23 = vld [vmem:[#allocation3 + $0xe4] ss:$56 sps:$4 sm:$0xff]   ;;  %v2661_v13 = vrot.slane %v2660_v22, 4  ;;  %v2665_v32 = vrot.slane %v2663_v54, 5  ;;  %5174 = vmatpush1.bf16.msra.mxu1 %v12600_v15  ;;  %v12609_v26 = vld [vmem:[%s13591_s10 + $0x240] ss:$8 sps:$4 sm:$0xff]  }
  0xdd   : > { %v1813_v35 = vsel %vm14109_vm8, %v11365_v7, %v1812_v8  ;;  %1868 = vst.msk [vmem:[#allocation3 + $0x15c] sm:$0xff] %vm13730_vm15, %v1809_v50  ;;  %v12618_v46 = vld [vmem:[%s13591_s10 + $0x344] ss:$8 sps:$4 sm:$0xff]   ;;  %v14499_v53 = vrot.slane %v2646_v1, 4  ;;  %v14501_v28 = vrot.slane %v2649_v55, 5  ;;  %4988 = vmatmul.mubr.bf16.gmra.mxu1 %v11422_v34  ;;  %v2624_v30 = vsel %vm13814_vm5, %v2619_v58, %v2623_v33  ;;  %v768_v2 = vld [vmem:[#allocation2 + $0x38] sm:$0xff]  ;;  %5175 = vmatprep.subr.bf16.mxu1 %v12608_v5 }
  0xde   : > { %5061 = vmatpush1.bf16.msra.mxu0 %v12597_v49  ;;  %v12614_v49 = vld [vmem:[#allocation3 + $0xec] ss:$56 sps:$4 sm:$0xff]   ;;  %1869 = vst.msk [vmem:[#allocation3 + $0x194] sm:$0xff] %vm13730_vm15, %v1813_v35  ;;  %v12621_v47 = vld [vmem:[%s13591_s10 + $0x234] ss:$8 sps:$4 sm:$0xff]   ;;  %v2696_v19 = vshrl.u32 %v14345_v16, 16  ;;  %v769_v44 = vsel %vm13710_vm11, %v13781_v17, %v768_v2  ;;  %v2666_v12 = vsel %vm13814_vm5, %v2661_v13, %v2665_v32 }
  0xdf   : > { %2450 = vrot.lane.b32.xlu0 %v2417_v24, %s13526_s18  ;;  %5062 = vmatprep.subr.bf16.mxu0 %v12605_v63  ;;  %v3098_v63 = vld [vmem:[#allocation3 + $0x118] sm:$0xff]  ;;  %v3099_v3 = vld [vmem:[#allocation3 + $0x120] sm:$0xff]  ;;  %v771_v59 = vld [vmem:[#allocation2 + $0x10] sm:$0x11]  ;;  %v2699_v27 = vshll.u32 %v14345_v16, 16  ;;  %770 = vst [vmem:[#allocation2 + $0x38] sm:$0xff] %v769_v44 }
  0xe0   : > { %v2563_v24 = vld [vmem:[#allocation2 + $0x80] sm:$0xff]  ;;  %v772_v15 = vsel %vm13716_vm14, %v539_v18, %v771_v59  ;;  %v2564_v54 = vld [vmem:[#allocation2 + $0x30] sm:$0x11]  ;;  %v3092_v16 = vld [vmem:[#allocation3 + $0xe8] sm:$0xff]  ;;  %5176 = vmatpush1.bf16.msra.mxu1 %v12606_v41  ;;  %4997 = vmatprep.mubr.bf16.mxu1 %v12614_v49  ;;  %v2710_v48 = vshrl.u32 %v14313_v57, 16  ;;  %v2698_v45 = vrot.slane %v2696_v19, 4 }
  0xe1   : > { %4875 = vmatmul.mubr.bf16.gmra.mxu0 %v11420_v11  ;;  %v12616_v31 = vld [vmem:[%s13591_s10 + $0x340] ss:$8 sps:$4 sm:$0xff]   ;;  %v2668_v22 = vshrl.u32 %v2563_v24, 16  ;;  %v2671_v1 = vshll.u32 %v2563_v24, 16  ;;  %773 = vst [vmem:[#allocation2 + $0x10] sm:$0x11] %v772_v15  ;;  %5177 = vmatprep.subr.bf16.mxu1 %v12618_v46  ;;  %v11436_v7 = vcombine.low %v3092_v16, %v3099_v3 }
  0xe2   : > { %5063 = vmatpush1.bf16.msra.mxu0 %v12603_v61  ;;  %v3091_v9 = vld [vmem:[#allocation3 + $0xe0] sm:$0xff]  ;;  %4884 = vmatprep.mubr.bf16.mxu0 %v12612_v23  ;;  %v2677_v17 = vshll.u32 %v2564_v54, 16  ;;  %v12619_v4 = vld [vmem:[%s13591_s10 + $0x230] ss:$8 sps:$4 sm:$0xff]   ;;  %v12624_v10 = vld [vmem:[%s13591_s10 + $0x334] ss:$8 sps:$4 sm:$0xff]   ;;  %v2652_v61 = vsel %vm13814_vm5, %v14499_v53, %v14501_v28 }
  0xe3   : > { %2807 = vrot.lane.b32.xlu0 %v2596_v29, %s13526_s18  ;;  %5064 = vmatprep.subr.bf16.mxu0 %v12611_v25  ;;  %v2670_v18 = vrot.slane %v2668_v22, 4  ;;  %v2673_v42 = vrot.slane %v2671_v1, 5  ;;  %v12627_v55 = vld [vmem:[%s13591_s10 + $0x224] ss:$8 sps:$4 sm:$0xff]   ;;  %v2701_v58 = vrot.slane %v2699_v27, 5  ;;  %v11434_v33 = vcombine.low %v3091_v9, %v3098_v63 }
  0xe4   : > { %v2679_v36 = vrot.slane %v2677_v17, 5  ;;  %v1731_v52 = vld [vmem:[#allocation2 + $0x40] sm:$0xee]  ;;  %2817 = vrot.lane.b32.xlu1 %v2666_v12, %s13526_s18  ;;  %v12622_v8 = vld [vmem:[%s13591_s10 + $0x330] ss:$8 sps:$4 sm:$0xff]   ;;  %5178 = vmatpush1.bf16.msra.mxu1 %v12616_v31  ;;  %v2713_v49 = vshll.u32 %v14313_v57, 16 }
  0xe5   : > { %v2674_v29 = vor.u32 %v2673_v42, %v2670_v18  ;;  %v1732_v11 = vld [vmem:[#allocation2 + $0x50] sm:$0x11]  ;;  %v1733_v41 = vld [vmem:[#allocation2 + $0x98] sm:$0xee]  ;;  %v1734_v5 = vld [vmem:[#allocation2 + $0xa0] sm:$0x11]  ;;  %4998 = vmatmul.mubr.bf16.gmra.mxu1 %v11436_v7  ;;  %v2702_v63 = vor.u32 %v2701_v58, %v2698_v45  ;;  %5179 = vmatprep.subr.bf16.mxu1 %v12624_v10 }
  0xe6   : > { %5065 = vmatpush1.bf16.msra.mxu0 %v12609_v26  ;;  %v11366_v34 = vrot.slane %v1731_v52, 9  ;;  %v1816_v25 = vrot.slane %v1732_v11, 5  ;;  %v11367_v23 = vrot.slane %v1733_v41, 9  ;;  %v1820_v13 = vrot.slane %v1734_v5, 5  ;;  %v12625_v35 = vld [vmem:[%s13591_s10 + $0x220] ss:$8 sps:$4 sm:$0xff]  }
  0xe7   : > { %2811 = vrot.lane.b32.xlu0 %v2624_v30, %s13526_s18  ;;  %5066 = vmatprep.subr.bf16.mxu0 %v12621_v47  ;;  %v2675_v26 = vrot.slane %v2674_v29, 4  ;;  %v12634_v46 = vld [vmem:[%s13591_s10 + $0x324] ss:$8 sps:$4 sm:$0xff]   ;;  %v14540_v30 = vrot.slane %v2710_v48, 4  ;;  %v12632_v57 = vld [vmem:[%s13591_s10 + $0x320] ss:$8 sps:$4 sm:$0xff]  }
  0xe8   : > { %v1628_v50 = vpop.permute.xlu0 %1627  ;;  %v1817_v53 = vsel %vm14109_vm8, %v11366_v34, %v1816_v25  ;;  %v1821_v28 = vsel %vm14109_vm8, %v11367_v23, %v1820_v13  ;;  %v789_v47 = vld [vmem:[#allocation2 + $0x38] sm:$0x22]  ;;  %v907_v2 = vld [vmem:[#allocation2 + $0x38] sm:$0x11]  ;;  %v949_v59 = vld [vmem:[#allocation2 + $0x38] sm:$0x88]  ;;  %5180 = vmatpush1.bf16.msra.mxu1 %v12622_v8 }
  0xe9   : > { %v1653_v32 = vrot.slane %v1628_v50, 4  ;;  %4885 = vmatmul.mubr.bf16.gmra.mxu0 %v11434_v33  ;;  %v2680_v24 = vsel %vm13814_vm5, %v2675_v26, %v2679_v36  ;;  %1870 = vst.msk [vmem:[#allocation3 + $0x1cc] sm:$0xff] %vm13730_vm15, %v1817_v53  ;;  %1871 = vst.msk [vmem:[#allocation3 + $0x204] sm:$0xff] %vm13730_vm15, %v1821_v28  ;;  %v12637_v19 = vld [vmem:[%s13591_s10 + $0x214] ss:$8 sps:$4 sm:$0xff]   ;;  %v11327_v27 = vrot.slane %v789_v47, 9  ;;  %5181 = vmatprep.subr.bf16.mxu1 %v12634_v46 }
  0xea   : > { %5067 = vmatpush1.bf16.msra.mxu0 %v12619_v4  ;;  %v11347_v31 = vrot.slane %v949_v59, 11  ;;  %v1070_v44 = vld [vmem:[#allocation2 + $0x10] sm:$0x11]  ;;  %v2715_v54 = vrot.slane %v2713_v49, 5  ;;  %v2568_v22 = vld [vmem:[#allocation2 + $0xc8] sm:$0x11] }
  0xeb   : > { %2815 = vrot.lane.b32.xlu0 %v2652_v61, %s13526_s18  ;;  %v1670_v3 = vsel %vm1663_vm12, %v1653_v32, %v1628_v50  ;;  %5068 = vmatprep.subr.bf16.mxu0 %v12627_v55  ;;  %v12635_v15 = vld [vmem:[%s13591_s10 + $0x210] ss:$8 sps:$4 sm:$0xff]   ;;  %v908_v9 = vsel %vm13716_vm14, %v11327_v27, %v907_v2  ;;  %v12640_v12 = vld [vmem:[%s13591_s10 + $0x314] ss:$8 sps:$4 sm:$0xff]   ;;  %v2703_v17 = vrot.slane %v2702_v63, 4  ;;  %v2705_v4 = vshll.u32 %v2568_v22, 16 }
  0xec   : > { %1705 = vst.msk [vmem:[#allocation3 + $0x154] sm:$0xff] %vm14288_vm13, %v1670_v3  ;;  %v1071_v16 = vsel %vm13748_vm2, %v11347_v31, %v1070_v44  ;;  %v3112_v18 = vld [vmem:[#allocation3 + $0x188] sm:$0xff]  ;;  %909 = vst [vmem:[#allocation2 + $0x38] sm:$0x11] %v908_v9  ;;  %v12638_v42 = vld [vmem:[%s13591_s10 + $0x310] ss:$8 sps:$4 sm:$0xff]   ;;  %5182 = vmatpush1.bf16.msra.mxu1 %v12632_v57  ;;  %v2716_v33 = vor.u32 %v2715_v54, %v14540_v30 }
  0xed   : > { %1072 = vst [vmem:[#allocation2 + $0x10] sm:$0x11] %v1071_v16  ;;  %v3113_v48 = vld [vmem:[#allocation3 + $0x190] sm:$0xff]  ;;  %v12643_v61 = vld [vmem:[%s13591_s10 + $0x204] ss:$8 sps:$4 sm:$0xff]   ;;  %v2707_v55 = vrot.slane %v2705_v4, 5  ;;  %5183 = vmatprep.subr.bf16.mxu1 %v12640_v12 }
  0xee   : > { %5069 = vmatpush1.bf16.msra.mxu0 %v12625_v35  ;;  %v1735_v36 = vld [vmem:[#allocation2 + $0x18] sm:$0xee]  ;;  %v12641_v58 = vld [vmem:[%s13591_s10 + $0x200] ss:$8 sps:$4 sm:$0xff]   ;;  %v12650_v41 = vld [vmem:[%s13591_s10 + $0x304] ss:$8 sps:$4 sm:$0xff]  }
  0xef   : > { %v1634_v1 = vpop.permute.xlu1 %1633  ;;  %2819 = vrot.lane.b32.xlu0 %v2680_v24, %s13526_s18  ;;  %5070 = vmatprep.subr.bf16.mxu0 %v12637_v19  ;;  %v1736_v7 = vld [vmem:[#allocation2 + $0xc8] sm:$0x11]  ;;  %v1737_v8 = vld [vmem:[#allocation2 + $0xd8] sm:$0xee]  ;;  %v1738_v29 = vld [vmem:[#allocation2 + $0xc0] sm:$0x11]  ;;  %v2708_v34 = vsel %vm13814_vm5, %v2703_v17, %v2707_v55 }
  0xf0   : > { %v1656_v10 = vrot.slane %v1634_v1, 4  ;;  %v12653_v5 = vld [vmem:[%s13591_s10 + $0x2f4] ss:$8 sps:$4 sm:$0xff]   ;;  %v2570_v50 = vld [vmem:[#allocation2 + $0xc0] sm:$0x11]  ;;  %v11368_v25 = vrot.slane %v1735_v36, 9  ;;  %5184 = vmatpush1.bf16.msra.mxu1 %v12638_v42 }
  0xf1   : > { %v12648_v35 = vld [vmem:[%s13591_s10 + $0x300] ss:$8 sps:$4 sm:$0xff]   ;;  %v1824_v26 = vrot.slane %v1736_v7, 5  ;;  %v11369_v49 = vrot.slane %v1737_v8, 9  ;;  %v12630_v53 = vld [vmem:[#allocation3 + $0x15c] ss:$56 sps:$4 sm:$0xff]   ;;  %5185 = vmatprep.subr.bf16.mxu1 %v12650_v41 }
  0xf2   : > { %v1673_v52 = vsel %vm1663_vm12, %v1656_v10, %v1634_v1  ;;  %v1632_v45 = vpop.permute.xlu0 %1631  ;;  %5071 = vmatpush1.bf16.msra.mxu0 %v12635_v15  ;;  %v1828_v30 = vrot.slane %v1738_v29, 5  ;;  %v2738_v63 = vshrl.u32 %v14362_v0, 16  ;;  %v12651_v47 = vld [vmem:[%s13591_s10 + $0x2f0] ss:$8 sps:$4 sm:$0xff]   ;;  %v14578_v2 = vrot.slane %v2716_v33, 4  ;;  %5007 = vmatprep.mubr.bf16.mxu1 %v12630_v53 }
  0xf3   : > { %1708 = vst.msk [vmem:[#allocation3 + $0x1fc] sm:$0xff] %vm14288_vm13, %v1673_v52  ;;  %v1655_v11 = vrot.slane %v1632_v45, 4  ;;  %v3105_v23 = vld [vmem:[#allocation3 + $0x150] sm:$0xff]  ;;  %v3106_v32 = vld [vmem:[#allocation3 + $0x158] sm:$0xff]  ;;  %2823 = vrot.lane.b32.xlu0 %v2708_v34, %s13526_s18  ;;  %5072 = vmatprep.subr.bf16.mxu0 %v12643_v61  ;;  %v2719_v59 = vshll.u32 %v2570_v50, 16  ;;  %v1825_v19 = vsel %vm14109_vm8, %v11368_v25, %v1824_v26  ;;  %v2724_v61 = vshrl.u32 %v14371_v40, 16 }
  0xf4   : > { %v12628_v13 = vld [vmem:[#allocation3 + $0x154] ss:$56 sps:$4 sm:$0xff]   ;;  %v11448_v28 = vcombine.low %v3105_v23, %v3112_v18  ;;  %v11450_v57 = vcombine.low %v3106_v32, %v3113_v48  ;;  %v2565_v44 = vld [vmem:[#allocation2 + $0x38] sm:$0xff]  ;;  %v1829_v22 = vsel %vm14109_vm8, %v11369_v49, %v1828_v30  ;;  %1872 = vst.msk [vmem:[#allocation3 + $0x23c] sm:$0xff] %vm13730_vm15, %v1825_v19  ;;  %v2740_v42 = vrot.slane %v2738_v63, 4  ;;  %5186 = vmatpush1.bf16.msra.mxu1 %v12648_v35 }
  0xf5   : > { %v1672_v46 = vsel %vm1663_vm12, %v1655_v11, %v1632_v45  ;;  %4894 = vmatprep.mubr.bf16.mxu0 %v12628_v13  ;;  %v12656_v24 = vld [vmem:[%s13591_s10 + $0x3f4] ss:$8 sps:$4 sm:$0xff]   ;;  %v12659_v54 = vld [vmem:[%s13591_s10 + $0x2e4] ss:$8 sps:$4 sm:$0xff]   ;;  %v2682_v16 = vshrl.u32 %v2565_v44, 16  ;;  %v2685_v12 = vshll.u32 %v2565_v44, 16 }
  0xf6   : > { %1707 = vst.msk [vmem:[#allocation3 + $0x1c4] sm:$0xff] %vm14288_vm13, %v1672_v46  ;;  %4895 = vmatmul.mubr.bf16.gmra.mxu0 %v11448_v28  ;;  %v2566_v15 = vld [vmem:[#allocation2 + $0x10] sm:$0x11]  ;;  %v14588_v1 = vld [vmem:[#allocation2 + $0xa8] sm:$0x11]  ;;  %5008 = vmatmul.mubr.bf16.gmra.mxu1 %v11450_v57  ;;  %v2741_v48 = vshll.u32 %v14362_v0, 16 }
  0xf7   : > { %v1636_v3 = vpop.permute.xlu0 %1635  ;;  %v2691_v17 = vshll.u32 %v2566_v15, 16  ;;  %5073 = vmatpush1.bf16.msra.mxu0 %v12641_v58  ;;  %v12654_v4 = vld [vmem:[%s13591_s10 + $0x3f0] ss:$8 sps:$4 sm:$0xff]   ;;  %1873 = vst.msk [vmem:[#allocation3 + $0x274] sm:$0xff] %vm13730_vm15, %v1829_v22  ;;  %v2684_v36 = vrot.slane %v2682_v16, 4  ;;  %v2687_v52 = vrot.slane %v2685_v12, 5  ;;  %5187 = vmatprep.subr.bf16.mxu1 %v12656_v24 }
  0xf8   : > { %v1638_v27 = vpop.permute.xlu1 %1637  ;;  %v1657_v31 = vrot.slane %v1636_v3, 4  ;;  %v2572_v10 = vld [vmem:[#allocation2 + $0xb8] sm:$0x11]  ;;  %5074 = vmatprep.subr.bf16.mxu0 %v12653_v5  ;;  %v14599_v45 = vrot.slane %v2719_v59, 5  ;;  %v12666_v58 = vld [vmem:[%s13591_s10 + $0x3e4] ss:$8 sps:$4 sm:$0xff]   ;;  %5188 = vmatpush2.bf16.msra.mxu1 %v12654_v4 }
  0xf9   : > { %v1658_v9 = vrot.slane %v1638_v27, 4  ;;  %v2743_v0 = vrot.slane %v2741_v48, 5  ;;  %v2747_v7 = vshll.u32 %v14588_v1, 16  ;;  %v2726_v8 = vrot.slane %v2724_v61, 4  ;;  %v12657_v50 = vld [vmem:[%s13591_s10 + $0x2e0] ss:$8 sps:$4 sm:$0xff]   ;;  %5189 = vmatprep.subr.bf16.mxu1 %v12666_v58 }
  0xfa   : > { %v1674_v18 = vsel %vm1663_vm12, %v1657_v31, %v1636_v3  ;;  %v3126_v33 = vld [vmem:[#allocation3 + $0x1f8] sm:$0xff]  ;;  %v2727_v29 = vshll.u32 %v14371_v40, 16  ;;  %v2688_v11 = vor.u32 %v2687_v52, %v2684_v36  ;;  %v2693_v41 = vrot.slane %v2691_v17, 5  ;;  %v3127_v5 = vld [vmem:[#allocation3 + $0x200] sm:$0xff]  ;;  %v1741_v23 = vld [vmem:[#allocation2 + $0xf0] sm:$0xee] }
  0xfb   : > { %v1675_v55 = vsel %vm1663_vm12, %v1658_v9, %v1638_v27  ;;  %1709 = vst.msk [vmem:[#allocation3 + $0x234] sm:$0xff] %vm14288_vm13, %v1674_v18  ;;  %5075 = vmatpush2.bf16.msra.mxu0 %v12651_v47  ;;  %v12664_v34 = vld [vmem:[%s13591_s10 + $0x3e0] ss:$8 sps:$4 sm:$0xff]   ;;  %v2733_v25 = vshll.u32 %v2572_v10, 16  ;;  %v12669_v49 = vld [vmem:[%s13591_s10 + $0x2d4] ss:$8 sps:$4 sm:$0xff]   ;;  %v2744_v46 = vor.u32 %v2743_v0, %v2740_v42  ;;  %v2722_v61 = vsel %vm13814_vm5, %v14578_v2, %v14599_v45 }
  0xfc   : > { %1710 = vst.msk [vmem:[#allocation3 + $0x26c] sm:$0xff] %vm14288_vm13, %v1675_v55  ;;  %5076 = vmatprep.subr.bf16.mxu0 %v12659_v54  ;;  %v2729_v53 = vrot.slane %v2727_v29, 5  ;;  %v12672_v28 = vld [vmem:[%s13591_s10 + $0x3d4] ss:$8 sps:$4 sm:$0xff]   ;;  %v11371_v30 = vrot.slane %v1741_v23, 9  ;;  %v2689_v63 = vrot.slane %v2688_v11, 4  ;;  %5190 = vmatpush2.bf16.msra.mxu1 %v12664_v34 }
  0xfd   : > { %v3119_v32 = vld [vmem:[#allocation3 + $0x1c0] sm:$0xff]  ;;  %v3120_v26 = vld [vmem:[#allocation3 + $0x1c8] sm:$0xff]  ;;  %v2735_v19 = vrot.slane %v2733_v25, 5  ;;  %v1739_v31 = vld [vmem:[#allocation2 + $0x110] sm:$0xee]  ;;  %v14614_v22 = vrot.slane %v2747_v7, 5  ;;  %5191 = vmatprep.subr.bf16.mxu1 %v12672_v28 }
  0xfe   : > { %v1642_v13 = vpop.permute.xlu1 %1641  ;;  %v12644_v35 = vld [vmem:[#allocation3 + $0x1c4] ss:$56 sps:$4 sm:$0xff]   ;;  %v11462_v57 = vcombine.low %v3119_v32, %v3126_v33  ;;  %v1742_v47 = vld [vmem:[#allocation2 + $0xa8] sm:$0x11]  ;;  %v11464_v59 = vcombine.low %v3120_v26, %v3127_v5  ;;  %v2730_v24 = vor.u32 %v2729_v53, %v2726_v8  ;;  %v2694_v15 = vsel %vm13814_vm5, %v2689_v63, %v2693_v41  ;;  %v12667_v54 = vld [vmem:[%s13591_s10 + $0x2d0] ss:$8 sps:$4 sm:$0xff]  }
  0xff   : > { %v1660_v40 = vrot.slane %v1642_v13, 4  ;;  %v12646_v3 = vld [vmem:[#allocation3 + $0x1cc] ss:$56 sps:$4 sm:$0xff]   ;;  %4904 = vmatprep.mubr.bf16.mxu0 %v12644_v35  ;;  %v1836_v27 = vrot.slane %v1742_v47, 5  ;;  %v1740_v1 = vld [vmem:[#allocation2 + $0xb8] sm:$0x11]  ;;  %2821 = vrot.lane.b32.xlu1 %v2694_v15, %s13526_s18 }
 0x100   : > { %5017 = vmatprep.mubr.bf16.mxu1 %v12646_v3  ;;  %4905 = vmatmul.mubr.bf16.gmra.mxu0 %v11462_v57  ;;  %v11370_v9 = vrot.slane %v1739_v31, 9  ;;  %v14619_v17 = vrot.slane %v2744_v46, 4  ;;  %v2731_v4 = vrot.slane %v2730_v24, 4  ;;  %v12670_v10 = vld [vmem:[%s13591_s10 + $0x3d0] ss:$8 sps:$4 sm:$0xff]   ;;  %v1832_v42 = vrot.slane %v1740_v1, 5 }
 0x101   : > { %v1677_v44 = vsel %vm1663_vm12, %v1660_v40, %v1642_v13  ;;  %5018 = vmatmul.mubr.bf16.gmra.mxu1 %v11464_v59  ;;  %v1837_v18 = vsel %vm14109_vm8, %v11371_v30, %v1836_v27  ;;  %5077 = vmatpush2.bf16.msra.mxu0 %v12657_v50  ;;  %v12675_v58 = vld [vmem:[%s13591_s10 + $0x2c4] ss:$8 sps:$4 sm:$0xff]   ;;  %v12662_v0 = vld [vmem:[#allocation3 + $0x23c] ss:$56 sps:$4 sm:$0xff]   ;;  %v2766_v2 = vshrl.u32 %v14409_v62, 16  ;;  %v2769_v57 = vshll.u32 %v14409_v62, 16 }
 0x102   : > { %1712 = vst.msk [vmem:[#allocation3 + $0x2dc] sm:$0xff] %vm14288_vm13, %v1677_v44  ;;  %v3133_v12 = vld [vmem:[#allocation3 + $0x230] sm:$0xff]  ;;  %v3134_v52 = vld [vmem:[#allocation3 + $0x238] sm:$0xff]  ;;  %5078 = vmatprep.subr.bf16.mxu0 %v12669_v49  ;;  %v2736_v7 = vsel %vm13814_vm5, %v2731_v4, %v2735_v19  ;;  %v12682_v8 = vld [vmem:[%s13591_s10 + $0x3c4] ss:$8 sps:$4 sm:$0xff]   ;;  %v1833_v29 = vsel %vm14109_vm8, %v11370_v9, %v1832_v42  ;;  %5027 = vmatprep.mubr.bf16.mxu1 %v12662_v0  ;;  %v2752_v44 = vshrl.u32 %v14411_v56, 16 }
 0x103   : > { %v1640_v16 = vpop.permute.xlu0 %1639  ;;  %v3140_v55 = vld [vmem:[#allocation3 + $0x268] sm:$0xff]  ;;  %1875 = vst.msk [vmem:[#allocation3 + $0x2e4] sm:$0xff] %vm13730_vm15, %v1837_v18  ;;  %v3141_v33 = vld [vmem:[#allocation3 + $0x270] sm:$0xff]  ;;  %2827 = vrot.lane.b32.xlu0 %v2736_v7, %s13526_s18  ;;  %v1745_v41 = vld [vmem:[#allocation2 + $0x78] sm:$0xee]  ;;  %2825 = vrot.lane.b32.xlu1 %v2722_v61, %s13526_s18  ;;  %v2750_v49 = vsel %vm13814_vm5, %v14619_v17, %v14614_v22  ;;  %v2768_v3 = vrot.slane %v2766_v2, 4 }
 0x104   : > { %v1659_v48 = vrot.slane %v1640_v16, 4  ;;  %v12660_v36 = vld [vmem:[#allocation3 + $0x234] ss:$56 sps:$4 sm:$0xff]   ;;  %v12673_v11 = vld [vmem:[%s13591_s10 + $0x2c0] ss:$8 sps:$4 sm:$0xff]   ;;  %1874 = vst.msk [vmem:[#allocation3 + $0x2ac] sm:$0xff] %vm13730_vm15, %v1833_v29  ;;  %v11476_v26 = vcombine.low %v3133_v12, %v3140_v55  ;;  %5192 = vmatpush2.bf16.msra.mxu1 %v12670_v10  ;;  %v11478_v30 = vcombine.low %v3134_v52, %v3141_v33 }
 0x105   : > { %4914 = vmatprep.mubr.bf16.mxu0 %v12660_v36  ;;  %v1746_v5 = vld [vmem:[#allocation2 + $0x130] sm:$0x11]  ;;  %v1743_v50 = vld [vmem:[#allocation2 + $0x108] sm:$0xee]  ;;  %v11373_v25 = vrot.slane %v1745_v41, 9  ;;  %5079 = vmatpush2.bf16.msra.mxu0 %v12667_v54  ;;  %v2771_v54 = vrot.slane %v2769_v57, 5 }
 0x106   : > { %v1676_v45 = vsel %vm1663_vm12, %v1659_v48, %v1640_v16  ;;  %v1646_v34 = vpop.permute.xlu1 %1645  ;;  %v1844_v23 = vrot.slane %v1746_v5, 5  ;;  %v1744_v13 = vld [vmem:[#allocation2 + $0xd0] sm:$0x11]  ;;  %v11372_v32 = vrot.slane %v1743_v50, 9  ;;  %v12680_v46 = vld [vmem:[%s13591_s10 + $0x3c0] ss:$8 sps:$4 sm:$0xff]   ;;  %5080 = vmatprep.subr.bf16.mxu0 %v12675_v58  ;;  %5193 = vmatprep.subr.bf16.mxu1 %v12682_v8 }
 0x107   : > { %1711 = vst.msk [vmem:[#allocation3 + $0x2a4] sm:$0xff] %vm14288_vm13, %v1676_v45  ;;  %v1662_v35 = vrot.slane %v1646_v34, 4  ;;  %v1840_v53 = vrot.slane %v1744_v13, 5  ;;  %v12685_v28 = vld [vmem:[%s13591_s10 + $0x2b4] ss:$8 sps:$4 sm:$0xff]   ;;  %2829 = vrot.lane.b32.xlu1 %v2750_v49, %s13526_s18  ;;  %v2755_v22 = vshll.u32 %v14411_v56, 16  ;;  %v2772_v18 = vor.u32 %v2771_v54, %v2768_v3 }
 0x108   : > { %v1845_v40 = vsel %vm14109_vm8, %v11373_v25, %v1844_v23  ;;  %v2578_v63 = vld [vmem:[#allocation2 + $0x130] sm:$0x11]  ;;  %4915 = vmatmul.mubr.bf16.gmra.mxu0 %v11476_v26  ;;  %5194 = vmatpush2.bf16.msra.mxu1 %v12680_v46  ;;  %v2754_v17 = vrot.slane %v2752_v44, 4  ;;  %v2008_v10 = vld [vmem:[#allocation2 + $0x20] sm:$0xff]  ;;  %v2009_v61 = vld [vmem:[#allocation2 + $0x58] sm:$0x11] }
 0x109   : > { %v2576_v47 = vld [vmem:[#allocation2 + $0xd0] sm:$0x11]  ;;  %v1679_v59 = vsel %vm1663_vm12, %v1662_v35, %v1646_v34  ;;  %v3154_v24 = vld [vmem:[#allocation3 + $0x2d8] sm:$0xff]  ;;  %1877 = vst.msk [vmem:[#allocation3 + $0x354] sm:$0xff] %vm13730_vm15, %v1845_v40  ;;  %v1841_v19 = vsel %vm14109_vm8, %v11372_v32, %v1840_v53  ;;  %v2775_v31 = vshll.u32 %v2578_v63, 16  ;;  %5028 = vmatmul.mubr.bf16.gmra.mxu1 %v11478_v30  ;;  %5081 = vmatpush2.bf16.msra.mxu0 %v12673_v11  ;;  %v2757_v42 = vrot.slane %v2755_v22, 5 }
 0x10a   : > { %v12683_v27 = vld [vmem:[%s13591_s10 + $0x2b0] ss:$8 sps:$4 sm:$0xff]   ;;  %1714 = vst.msk [vmem:[#allocation3 + $0x34c] sm:$0xff] %vm14288_vm13, %v1679_v59  ;;  %v1913_v62 = vpop.permute.xlu1 %1912  ;;  %v3155_v15 = vld [vmem:[#allocation3 + $0x2e0] sm:$0xff]  ;;  %v2761_v1 = vshll.u32 %v2576_v47, 16  ;;  %5082 = vmatprep.subr.bf16.mxu0 %v12685_v28  ;;  %v2053_v55 = vshrl.u32 %v2008_v10, 16 }
 0x10b   : > { %1876 = vst.msk [vmem:[#allocation3 + $0x31c] sm:$0xff] %vm13730_vm15, %v1841_v19  ;;  %v12686_v9 = vld [vmem:[%s13591_s10 + $0x3b0] ss:$8 sps:$4 sm:$0xff]   ;;  %v1943_v16 = vrot.slane %v1913_v62, 4  ;;  %v2777_v12 = vrot.slane %v2775_v31, 5  ;;  %v2006_v36 = vld [vmem:[#allocation2 + $0xe0] sm:$0xff]  ;;  %v2758_v11 = vor.u32 %v2757_v42, %v2754_v17 }
 0x10c   : > { %v12688_v4 = vld [vmem:[%s13591_s10 + $0x3b4] ss:$8 sps:$4 sm:$0xff]   ;;  %v2763_v48 = vrot.slane %v2761_v1, 5  ;;  %v2056_v0 = vshll.u32 %v2008_v10, 16  ;;  %v2062_v7 = vshll.u32 %v2009_v61, 16  ;;  %v2773_v29 = vrot.slane %v2772_v18, 4 }
 0x10d   : > { %v1959_v52 = vsel %vm1663_vm12, %v1943_v16, %v1913_v62  ;;  %5195 = vmatprep.subr.bf16.mxu1 %v12688_v4  ;;  %v12678_v2 = vld [vmem:[#allocation3 + $0x2ac] ss:$56 sps:$4 sm:$0xff]   ;;  %5083 = vmatpush2.bf16.msra.mxu0 %v12683_v27  ;;  %v2055_v34 = vrot.slane %v2053_v55, 4  ;;  %v2759_v13 = vrot.slane %v2758_v11, 4  ;;  %v2039_v32 = vshrl.u32 %v2006_v36, 16 }
 0x10e   : > { %v3147_v58 = vld [vmem:[#allocation3 + $0x2a0] sm:$0xff]  ;;  %v3148_v33 = vld [vmem:[#allocation3 + $0x2a8] sm:$0xff]  ;;  %1991 = vst.msk [vmem:[#allocation3 + $0x48] sm:$0xff] %vm14288_vm13, %v1959_v52  ;;  %v1917_v8 = vpop.permute.xlu1 %1916  ;;  %v2058_v25 = vrot.slane %v2056_v0, 5  ;;  %5037 = vmatprep.mubr.bf16.mxu1 %v12678_v2  ;;  %v2778_v23 = vsel %vm13814_vm5, %v2773_v29, %v2777_v12  ;;  %v2042_v35 = vshll.u32 %v2006_v36, 16  ;;  %5196 = vmatpush2.bf16.msra.mxu1 %v12686_v9  ;;  %v2064_v53 = vrot.slane %v2062_v7, 5 }
 0x10f   : > { %v12676_v56 = vld [vmem:[#allocation3 + $0x2a4] ss:$56 sps:$4 sm:$0xff]   ;;  %v11490_v45 = vcombine.low %v3147_v58, %v3154_v24  ;;  %v1945_v5 = vrot.slane %v1917_v8, 4  ;;  %v11492_v50 = vcombine.low %v3148_v33, %v3155_v15  ;;  %v12689_v26 = vld [vmem:[%s13591_s10 + $0x2a0] ss:$8 sps:$4 sm:$0xff]   ;;  %2833 = vrot.lane.b32.xlu1 %v2778_v23, %s13526_s18  ;;  %v2764_v3 = vsel %vm13814_vm5, %v2759_v13, %v2763_v48 }
 0x110   : > { %v2007_v41 = vld [vmem:[#allocation2 + $0x100] sm:$0x11]  ;;  %4924 = vmatprep.mubr.bf16.mxu0 %v12676_v56  ;;  %v2059_v46 = vor.u32 %v2058_v25, %v2055_v34  ;;  %v2041_v57 = vrot.slane %v2039_v32, 4  ;;  %v2044_v47 = vrot.slane %v2042_v35, 5  ;;  %2831 = vrot.lane.b32.xlu0 %v2764_v3, %s13526_s18  ;;  %v12699_v15 = vld [vmem:[%s13591_s10 + $0x290] ss:$8 sps:$4 sm:$0xff]  }
 0x111   : > { %v1961_v49 = vsel %vm1663_vm12, %v1945_v5, %v1917_v8  ;;  %4925 = vmatmul.mubr.bf16.gmra.mxu0 %v11490_v45  ;;  %v2048_v28 = vshll.u32 %v2007_v41, 16  ;;  %v12691_v30 = vld [vmem:[%s13591_s10 + $0x2a4] ss:$8 sps:$4 sm:$0xff]   ;;  %v1644_v40 = vpop.permute.xlu0 %1643  ;;  %5038 = vmatmul.mubr.bf16.gmra.mxu1 %v11492_v50  ;;  %v12696_v59 = vld [vmem:[%s13591_s10 + $0x3a0] ss:$8 sps:$4 sm:$0xff]   ;;  %v2010_v5 = vld [vmem:[#allocation2 + $0x90] sm:$0xff] }
 0x112   : > { %1993 = vst.msk [vmem:[#allocation3 + $0xb8] sm:$0xff] %vm14288_vm13, %v1961_v49  ;;  %v1921_v63 = vpop.permute.xlu1 %1920  ;;  %v12698_v24 = vld [vmem:[%s13591_s10 + $0x3a4] ss:$8 sps:$4 sm:$0xff]   ;;  %v1661_v19 = vrot.slane %v1644_v40, 4  ;;  %v2060_v31 = vrot.slane %v2059_v46, 4  ;;  %5084 = vmatprep.subr.bf16.mxu0 %v12691_v30  ;;  %v2045_v44 = vor.u32 %v2044_v47, %v2041_v57  ;;  %v2067_v35 = vshrl.u32 %v2010_v5, 16 }
 0x113   : > { %v1947_v27 = vrot.slane %v1921_v63, 4  ;;  %v2050_v62 = vrot.slane %v2048_v28, 5  ;;  %5085 = vmatpush2.bf16.msra.mxu0 %v12689_v26  ;;  %5197 = vmatprep.subr.bf16.mxu1 %v12698_v24  ;;  %v12701_v54 = vld [vmem:[%s13591_s10 + $0x294] ss:$8 sps:$4 sm:$0xff]   ;;  %v774_v22 = vld [vmem:[#allocation2 + $0xe8] sm:$0xff]  ;;  %v2579_v4 = vld [vmem:[#allocation2 + $0x60] sm:$0xff] }
 0x114   : > { %v1678_v1 = vsel %vm1663_vm12, %v1661_v19, %v1644_v40  ;;  %v2065_v16 = vsel %vm13814_vm5, %v2060_v31, %v2064_v53  ;;  %5198 = vmatpush2.bf16.msra.mxu1 %v12696_v59  ;;  %v775_v12 = vsel %vm13710_vm11, %v13927_v39, %v774_v22  ;;  %v777_v17 = vld [vmem:[#allocation2 + $0x70] sm:$0x11]  ;;  %v2580_v10 = vld [vmem:[#allocation2 + $0x118] sm:$0x11]  ;;  %v2046_v48 = vrot.slane %v2045_v44, 4  ;;  %5086 = vmatprep.subr.bf16.mxu0 %v12701_v54  ;;  %v2012_v36 = vld [vmem:[#allocation2 + $0x128] sm:$0xff] }
 0x115   : > { %v1963_v9 = vsel %vm1663_vm12, %v1947_v27, %v1921_v63  ;;  %1713 = vst.msk [vmem:[#allocation3 + $0x314] sm:$0xff] %vm14288_vm13, %v1678_v1  ;;  %v1911_v18 = vpop.permute.xlu0 %1910  ;;  %776 = vst [vmem:[#allocation2 + $0xe8] sm:$0xff] %v775_v12  ;;  %v778_v39 = vsel %vm13716_vm14, %v603_v51, %v777_v17  ;;  %v2780_v61 = vshrl.u32 %v2579_v4, 16  ;;  %v2783_v55 = vshll.u32 %v2579_v4, 16  ;;  %v12704_v33 = vld [vmem:[%s13591_s10 + $0x390] ss:$8 sps:$4 sm:$0xff]  }
 0x116   : > { %1995 = vst.msk [vmem:[#allocation3 + $0x128] sm:$0xff] %vm14288_vm13, %v1963_v9  ;;  %v1925_v42 = vpop.permute.xlu1 %1924  ;;  %v1942_v52 = vrot.slane %v1911_v18, 4  ;;  %779 = vst [vmem:[#allocation2 + $0x70] sm:$0x11] %v778_v39  ;;  %v2789_v56 = vshll.u32 %v2580_v10, 16  ;;  %v2081_v0 = vshrl.u32 %v2012_v36, 16  ;;  %v2051_v7 = vsel %vm13814_vm5, %v2046_v48, %v2050_v62 }
 0x117   : > { %2279 = vst.msk [vmem:[#allocation3 + $0x50] sm:$0xff] %vm13730_vm15, %v2065_v16  ;;  %v1949_v58 = vrot.slane %v1925_v42, 4  ;;  %5087 = vmatpush2.bf16.msra.mxu0 %v12699_v15  ;;  %v2782_v8 = vrot.slane %v2780_v61, 4  ;;  %v2785_v2 = vrot.slane %v2783_v55, 5  ;;  %v12706_v45 = vld [vmem:[%s13591_s10 + $0x394] ss:$8 sps:$4 sm:$0xff]  }
 0x118   : > { %v2013_v20 = vld [vmem:[#allocation2] sm:$0x11]  ;;  %v1958_v29 = vsel %vm1663_vm12, %v1942_v52, %v1911_v18  ;;  %2278 = vst.msk [vmem:[#allocation3 + $0x18] sm:$0xff] %vm13730_vm15, %v2051_v7  ;;  %v2791_v11 = vrot.slane %v2789_v56, 5  ;;  %v2083_v41 = vrot.slane %v2081_v0, 4  ;;  %5199 = vmatprep.subr.bf16.mxu1 %v12706_v45  ;;  %v2084_v13 = vshll.u32 %v2012_v36, 16 }
 0x119   : > { %v1965_v51 = vsel %vm1663_vm12, %v1949_v58, %v1925_v42  ;;  %v2011_v50 = vld [vmem:[#allocation2 + $0x48] sm:$0x11]  ;;  %1990 = vst.msk [vmem:[#allocation3 + $0x10] sm:$0xff] %vm14288_vm13, %v1958_v29  ;;  %v1915_v34 = vpop.permute.xlu0 %1914  ;;  %v2786_v23 = vor.u32 %v2785_v2, %v2782_v8  ;;  %v2090_v32 = vshll.u32 %v2013_v20, 16  ;;  %v2070_v53 = vshll.u32 %v2010_v5, 16  ;;  %5200 = vmatpush2.bf16.msra.mxu1 %v12704_v33 }
 0x11a   : > { %1997 = vst.msk [vmem:[#allocation3 + $0x198] sm:$0xff] %vm14288_vm13, %v1965_v51  ;;  %v1929_v25 = vpop.permute.xlu1 %1928  ;;  %v12707_v26 = vld [vmem:[%s13591_s10 + $0x280] ss:$8 sps:$4 sm:$0xff]   ;;  %v1944_v49 = vrot.slane %v1915_v34, 4  ;;  %v2076_v28 = vshll.u32 %v2011_v50, 16  ;;  %v2086_v63 = vrot.slane %v2084_v13, 5 }
 0x11b   : > { %2536 = vst.msk [vmem:[#allocation3 + $0x5c] sm:$0xff] %vm13730_vm15, %v2010_v5  ;;  %v1951_v46 = vrot.slane %v1929_v25, 4  ;;  %v12709_v30 = vld [vmem:[%s13591_s10 + $0x284] ss:$8 sps:$4 sm:$0xff]   ;;  %v14720_v40 = vrot.slane %v2786_v23, 4  ;;  %v2092_v3 = vrot.slane %v2090_v32, 5 }
 0x11c   : > { %v2069_v57 = vrot.slane %v2067_v35, 4  ;;  %v1960_v47 = vsel %vm1663_vm12, %v1944_v49, %v1915_v34  ;;  %v12692_v24 = vld [vmem:[#allocation3 + $0x314] ss:$56 sps:$4 sm:$0xff]   ;;  %v2072_v19 = vrot.slane %v2070_v53, 5  ;;  %v2078_v27 = vrot.slane %v2076_v28, 5  ;;  %5088 = vmatprep.subr.bf16.mxu0 %v12709_v30 }
 0x11d   : > { %v1967_v59 = vsel %vm1663_vm12, %v1951_v46, %v1929_v25  ;;  %1992 = vst.msk [vmem:[#allocation3 + $0x80] sm:$0xff] %vm14288_vm13, %v1960_v47  ;;  %v1919_v31 = vpop.permute.xlu0 %1918  ;;  %v12694_v62 = vld [vmem:[#allocation3 + $0x31c] ss:$56 sps:$4 sm:$0xff]   ;;  %v12702_v15 = vld [vmem:[#allocation3 + $0x310] ss:$56 sps:$4 sm:$0xff]   ;;  %v2792_v22 = vsel %vm13814_vm5, %v14720_v40, %v2791_v11  ;;  %v2087_v1 = vor.u32 %v2086_v63, %v2083_v41  ;;  %5089 = vmatpush2.bf16.msra.mxu0 %v12707_v26 }
 0x11e   : > { %1999 = vst.msk [vmem:[#allocation3 + $0x208] sm:$0xff] %vm14288_vm13, %v1967_v59  ;;  %v1933_v44 = vpop.permute.xlu1 %1932  ;;  %v12703_v54 = vld [vmem:[#allocation3 + $0x318] ss:$56 sps:$4 sm:$0xff]   ;;  %v1946_v9 = vrot.slane %v1919_v31, 4  ;;  %4934 = vmatprep.mubr.bf16.mxu0 %v12692_v24  ;;  %v799_v12 = vld [vmem:[#allocation2 + $0xe8] sm:$0x22]  ;;  %2835 = vrot.lane.b32.xlu0 %v2792_v22, %s13526_s18  ;;  %v2073_v4 = vor.u32 %v2072_v19, %v2069_v57 }
 0x11f   : > { %v1953_v16 = vrot.slane %v1933_v44, 4  ;;  %v937_v17 = vld [vmem:[#allocation2 + $0xe8] sm:$0x11]  ;;  %5047 = vmatprep.mubr.bf16.mxu1 %v12694_v62  ;;  %4935 = vmatmul.mubr.bf16.gmra.mxu0 %v12702_v15  ;;  %v11337_v10 = vrot.slane %v799_v12, 9  ;;  %v959_v18 = vld [vmem:[#allocation2 + $0xe8] sm:$0x88] }
 0x120   : > { %v1100_v42 = vld [vmem:[#allocation2 + $0x70] sm:$0x11]  ;;  %v2088_v48 = vrot.slane %v2087_v1, 4  ;;  %v1962_v39 = vsel %vm1663_vm12, %v1946_v9, %v1919_v31  ;;  %5048 = vmatmul.mubr.bf16.gmra.mxu1 %v12703_v54  ;;  %v11357_v55 = vrot.slane %v959_v18, 11  ;;  %v2074_v36 = vrot.slane %v2073_v4, 4  ;;  %v2016_v25 = vld [vmem:[#allocation2 + $0x138] sm:$0xff] }
 0x121   : > { %v1969_v61 = vsel %vm1663_vm12, %v1953_v16, %v1933_v44  ;;  %v12710_v52 = vld [vmem:[#allocation3 + $0x14] ss:$56 sps:$4 sm:$0xff]   ;;  %1994 = vst.msk [vmem:[#allocation3 + $0xf0] sm:$0xff] %vm14288_vm13, %v1962_v39  ;;  %v1923_v58 = vpop.permute.xlu0 %1922  ;;  %v938_v33 = vsel %vm13716_vm14, %v11337_v10, %v937_v17  ;;  %v12712_v7 = vld [vmem:[%s13591_s10 + $0x380] ss:$8 sps:$4 sm:$0xff]   ;;  %v2109_v35 = vshrl.u32 %v2016_v25, 16 }
 0x122   : > { %2001 = vst.msk [vmem:[#allocation3 + $0x278] sm:$0xff] %vm14288_vm13, %v1969_v61  ;;  %v1937_v56 = vpop.permute.xlu1 %1936  ;;  %v2093_v0 = vsel %vm13814_vm5, %v2088_v48, %v2092_v3  ;;  %v12714_v8 = vld [vmem:[%s13591_s10 + $0x384] ss:$8 sps:$4 sm:$0xff]   ;;  %v1948_v2 = vrot.slane %v1923_v58, 4  ;;  %939 = vst [vmem:[#allocation2 + $0xe8] sm:$0x11] %v938_v33  ;;  %v1101_v20 = vsel %vm13748_vm2, %v11357_v55, %v1100_v42  ;;  %v2079_v29 = vsel %vm13814_vm5, %v2074_v36, %v2078_v27 }
 0x123   : > { %v1955_v45 = vrot.slane %v1937_v56, 4  ;;  %2281 = vst.msk [vmem:[#allocation3 + $0xc0] sm:$0xff] %vm13730_vm15, %v2093_v0  ;;  %5090 = vmatprep.mubr.bf16.mxu0 %v12710_v52  ;;  %1102 = vst [vmem:[#allocation2 + $0x70] sm:$0x11] %v1101_v20  ;;  %5201 = vmatprep.subr.bf16.mxu1 %v12714_v8  ;;  %v12715_v51 = vld [vmem:[%s13591_s10 + $0x470] ss:$8 sps:$4 sm:$0xff]  }
 0x124   : > { %2280 = vst.msk [vmem:[#allocation3 + $0x88] sm:$0xff] %vm13730_vm15, %v2079_v29  ;;  %v12717_v11 = vld [vmem:[%s13591_s10 + $0x474] ss:$8 sps:$4 sm:$0xff]   ;;  %v1964_v41 = vsel %vm1663_vm12, %v1948_v2, %v1923_v58  ;;  %5202 = vmatpush2.bf16.msra.mxu1 %v12712_v7  ;;  %v12718_v50 = vld [vmem:[#allocation3 + $0x10] ss:$56 sps:$4 sm:$0xff]   ;;  %v2112_v26 = vshll.u32 %v2016_v25, 16 }
 0x125   : > { %v1971_v5 = vsel %vm1663_vm12, %v1955_v45, %v1937_v56  ;;  %v12724_v34 = vld [vmem:[%s13591_s10 + $0x574] ss:$8 sps:$4 sm:$0xff]   ;;  %1996 = vst.msk [vmem:[#allocation3 + $0x160] sm:$0xff] %vm14288_vm13, %v1964_v41  ;;  %v1927_v23 = vpop.permute.xlu0 %1926  ;;  %5284 = vmatprep.subr.bf16.mxu0 %v12717_v11  ;;  %v2017_v32 = vld [vmem:[#allocation2 + $0x120] sm:$0x11]  ;;  %v2111_v3 = vrot.slane %v2109_v35, 4 }
 0x126   : > { %2003 = vst.msk [vmem:[#allocation3 + $0x2e8] sm:$0xff] %vm14288_vm13, %v1971_v5  ;;  %v1941_v13 = vpop.permute.xlu1 %1940  ;;  %v2014_v49 = vld [vmem:[#allocation2 + $0xb0] sm:$0xff]  ;;  %v1950_v46 = vrot.slane %v1927_v23, 4  ;;  %5397 = vmatprep.subr.bf16.mxu1 %v12724_v34  ;;  %v2118_v28 = vshll.u32 %v2017_v32, 16  ;;  %v2015_v30 = vld [vmem:[#allocation2 + $0x8] sm:$0x11] }
 0x127   : > { %2539 = vst.msk [vmem:[#allocation3 + $0x104] sm:$0xff] %vm13730_vm15, %v2016_v25  ;;  %v1957_v53 = vrot.slane %v1941_v13, 4  ;;  %v2095_v63 = vshrl.u32 %v2014_v49, 16  ;;  %2538 = vst.msk [vmem:[#allocation3 + $0xcc] sm:$0xff] %vm13730_vm15, %v2014_v49  ;;  %5091 = vmatmul.mubr.bf16.vlgmr.msra.gmra.mxu0 %v12718_v50  ;;  %v2114_v57 = vrot.slane %v2112_v26, 5  ;;  %v2098_v47 = vshll.u32 %v2014_v49, 16 }
 0x128   : > { %v2104_v59 = vshll.u32 %v2015_v30, 16  ;;  %v1966_v24 = vsel %vm1663_vm12, %v1950_v46, %v1927_v23  ;;  %5285 = vmatpush1.bf16.msra.mxu0 %v12715_v51  ;;  %v12725_v31 = vld [vmem:[%s13591_s10 + $0x460] ss:$8 sps:$4 sm:$0xff]   ;;  %v12727_v44 = vld [vmem:[%s13591_s10 + $0x464] ss:$8 sps:$4 sm:$0xff]   ;;  %v2120_v1 = vrot.slane %v2118_v28, 5 }
 0x129   : > { %v1973_v19 = vsel %vm1663_vm12, %v1957_v53, %v1941_v13  ;;  %v2097_v27 = vrot.slane %v2095_v63, 4  ;;  %1998 = vst.msk [vmem:[#allocation3 + $0x1d0] sm:$0xff] %vm14288_vm13, %v1966_v24  ;;  %v1931_v62 = vpop.permute.xlu0 %1930  ;;  %v2581_v54 = vld [vmem:[#allocation2 + $0xe8] sm:$0xff]  ;;  %v2115_v22 = vor.u32 %v2114_v57, %v2111_v3  ;;  %v2100_v9 = vrot.slane %v2098_v47, 5  ;;  %v12728_v16 = vld [vmem:[#allocation3 + $0x84] ss:$56 sps:$4 sm:$0xff]   ;;  %5286 = vmatprep.subr.bf16.mxu0 %v12727_v44 }
 0x12a   : > { %2005 = vst.msk [vmem:[#allocation3 + $0x358] sm:$0xff] %vm14288_vm13, %v1973_v19  ;;  %v2425_v15 = vpop.permute.xlu1 %2424  ;;  %v1952_v12 = vrot.slane %v1931_v62, 4  ;;  %v2582_v4 = vld [vmem:[#allocation2 + $0x70] sm:$0x11]  ;;  %v2794_v10 = vshrl.u32 %v2581_v54, 16  ;;  %v2797_v18 = vshll.u32 %v2581_v54, 16  ;;  %5100 = vmatprep.mubr.bf16.mxu0 %v12728_v16 }
 0x12b   : > { %v2455_v17 = vrot.slane %v2425_v15, 4  ;;  %v2803_v42 = vshll.u32 %v2582_v4, 16  ;;  %v2116_v48 = vrot.slane %v2115_v22, 4  ;;  %v2101_v39 = vor.u32 %v2100_v9, %v2097_v27  ;;  %v12733_v2 = vld [vmem:[%s13591_s10 + $0x450] ss:$8 sps:$4 sm:$0xff]   ;;  %v2020_v5 = vld [vmem:[#allocation2 + $0x80] sm:$0xff] }
 0x12c   : > { %v2106_v61 = vrot.slane %v2104_v59, 5  ;;  %v1968_v55 = vsel %vm1663_vm12, %v1952_v12, %v1931_v62  ;;  %v2796_v52 = vrot.slane %v2794_v10, 4  ;;  %v2799_v58 = vrot.slane %v2797_v18, 5  ;;  %5287 = vmatpush1.bf16.msra.mxu0 %v12725_v31  ;;  %v12735_v45 = vld [vmem:[%s13591_s10 + $0x454] ss:$8 sps:$4 sm:$0xff]   ;;  %v2018_v32 = vld [vmem:[#allocation2 + $0x28] sm:$0xff] }
 0x12d   : > { %v2471_v36 = vsel %vm1663_vm12, %v2455_v17, %v2425_v15  ;;  %2000 = vst.msk [vmem:[#allocation3 + $0x240] sm:$0xff] %vm14288_vm13, %v1968_v55  ;;  %v1935_v56 = vpop.permute.xlu0 %1934  ;;  %v2805_v33 = vrot.slane %v2803_v42, 5  ;;  %v2121_v7 = vsel %vm13814_vm5, %v2116_v48, %v2120_v1  ;;  %v2102_v8 = vrot.slane %v2101_v39, 4  ;;  %v12736_v11 = vld [vmem:[#allocation3 + $0x80] ss:$56 sps:$4 sm:$0xff]   ;;  %5288 = vmatprep.subr.bf16.mxu0 %v12735_v45 }
 0x12e   : > { %2503 = vst.msk [vmem:[#allocation3 + $0x54] sm:$0xff] %vm14288_vm13, %v2471_v36  ;;  %v2429_v0 = vpop.permute.xlu1 %2428  ;;  %v1954_v20 = vrot.slane %v1935_v56, 4  ;;  %v2800_v29 = vor.u32 %v2799_v58, %v2796_v52  ;;  %v2021_v23 = vld [vmem:[#allocation2 + $0x30] sm:$0x11]  ;;  %v2137_v13 = vshrl.u32 %v2020_v5, 16  ;;  %v2140_v49 = vshll.u32 %v2020_v5, 16 }
 0x12f   : > { %v2457_v51 = vrot.slane %v2429_v0, 4  ;;  %2283 = vst.msk [vmem:[#allocation3 + $0x130] sm:$0xff] %vm13730_vm15, %v2121_v7  ;;  %v2107_v41 = vsel %vm13814_vm5, %v2102_v8, %v2106_v61  ;;  %5101 = vmatmul.mubr.bf16.gmra.mxu0 %v12736_v11  ;;  %2541 = vst.msk [vmem:[#allocation3 + $0x174] sm:$0xff] %vm13730_vm15, %v2020_v5  ;;  %v2146_v46 = vshll.u32 %v2021_v23, 16  ;;  %v2019_v53 = vld [vmem:[#allocation2 + $0xf8] sm:$0x11] }
 0x130   : > { %v1970_v50 = vsel %vm1663_vm12, %v1954_v20, %v1935_v56  ;;  %v2801_v34 = vrot.slane %v2800_v29, 4  ;;  %2282 = vst.msk [vmem:[#allocation3 + $0xf8] sm:$0xff] %vm13730_vm15, %v2107_v41  ;;  %5289 = vmatpush1.bf16.msra.mxu0 %v12733_v2  ;;  %v2123_v28 = vshrl.u32 %v2018_v32, 16  ;;  %v2126_v30 = vshll.u32 %v2018_v32, 16  ;;  %2540 = vst.msk [vmem:[#allocation3 + $0x13c] sm:$0xff] %vm13730_vm15, %v2018_v32  ;;  %v2022_v29 = vld [vmem:[#allocation2 + $0x98] sm:$0xff] }
 0x131   : > { %v2473_v25 = vsel %vm1663_vm12, %v2457_v51, %v2429_v0  ;;  %2002 = vst.msk [vmem:[#allocation3 + $0x2b0] sm:$0xff] %vm14288_vm13, %v1970_v50  ;;  %v1939_v35 = vpop.permute.xlu0 %1938  ;;  %v2139_v47 = vrot.slane %v2137_v13, 4  ;;  %v12743_v59 = vld [vmem:[%s13591_s10 + $0x440] ss:$8 sps:$4 sm:$0xff]   ;;  %v2142_v24 = vrot.slane %v2140_v49, 5  ;;  %v2132_v15 = vshll.u32 %v2019_v53, 16 }
 0x132   : > { %2505 = vst.msk [vmem:[#allocation3 + $0xc4] sm:$0xff] %vm14288_vm13, %v2473_v25  ;;  %v2433_v26 = vpop.permute.xlu1 %2432  ;;  %v1956_v63 = vrot.slane %v1939_v35, 4  ;;  %v2806_v3 = vsel %vm13814_vm5, %v2801_v34, %v2805_v33  ;;  %v2125_v19 = vrot.slane %v2123_v28, 4  ;;  %v2128_v27 = vrot.slane %v2126_v30, 5  ;;  %v12745_v31 = vld [vmem:[%s13591_s10 + $0x444] ss:$8 sps:$4 sm:$0xff]  }
 0x133   : > { %v2459_v57 = vrot.slane %v2433_v26, 4  ;;  %2837 = vrot.lane.b32.xlu1 %v2806_v3, %s13526_s18  ;;  %v2143_v22 = vor.u32 %v2142_v24, %v2139_v47  ;;  %v2148_v1 = vrot.slane %v2146_v46, 5  ;;  %5290 = vmatprep.subr.bf16.mxu0 %v12745_v31  ;;  %v12746_v12 = vld [vmem:[#allocation3 + $0xf4] ss:$56 sps:$4 sm:$0xff]   ;;  %v2134_v10 = vrot.slane %v2132_v15, 5  ;;  %v2024_v0 = vld [vmem:[#allocation2 + $0x18] sm:$0xff] }
 0x134   : > { %v1972_v44 = vsel %vm1663_vm12, %v1956_v63, %v1939_v35  ;;  %v2129_v16 = vor.u32 %v2128_v27, %v2125_v19  ;;  %5291 = vmatpush1.bf16.msra.mxu0 %v12743_v59  ;;  %5110 = vmatprep.mubr.bf16.mxu0 %v12746_v12  ;;  %v12751_v61 = vld [vmem:[%s13591_s10 + $0x430] ss:$8 sps:$4 sm:$0xff]   ;;  %v12753_v55 = vld [vmem:[%s13591_s10 + $0x434] ss:$8 sps:$4 sm:$0xff]   ;;  %v2025_v7 = vld [vmem:[#allocation2 + $0xc8] sm:$0x11] }
 0x135   : > { %v2475_v62 = vsel %vm1663_vm12, %v2459_v57, %v2433_v26  ;;  %2004 = vst.msk [vmem:[#allocation3 + $0x320] sm:$0xff] %vm14288_vm13, %v1972_v44  ;;  %v2423_v54 = vpop.permute.xlu0 %2422  ;;  %v2144_v18 = vrot.slane %v2143_v22, 4  ;;  %v12754_v56 = vld [vmem:[#allocation3 + $0xf0] ss:$56 sps:$4 sm:$0xff]   ;;  %5292 = vmatprep.subr.bf16.mxu0 %v12753_v55  ;;  %v2165_v2 = vshrl.u32 %v2024_v0, 16  ;;  %v2168_v45 = vshll.u32 %v2024_v0, 16 }
 0x136   : > { %2507 = vst.msk [vmem:[#allocation3 + $0x134] sm:$0xff] %vm14288_vm13, %v2475_v62  ;;  %v2437_v9 = vpop.permute.xlu1 %2436  ;;  %v2454_v17 = vrot.slane %v2423_v54, 4  ;;  %v2130_v42 = vrot.slane %v2129_v16, 4  ;;  %v2174_v20 = vshll.u32 %v2025_v7, 16  ;;  %v2023_v11 = vld [vmem:[#allocation2 + $0xa0] sm:$0x11] }
 0x137   : > { %v2461_v4 = vrot.slane %v2437_v9, 4  ;;  %v2149_v52 = vsel %vm13814_vm5, %v2144_v18, %v2148_v1  ;;  %5111 = vmatmul.mubr.bf16.gmra.mxu0 %v12754_v56  ;;  %2543 = vst.msk [vmem:[#allocation3 + $0x1e4] sm:$0xff] %vm13730_vm15, %v2024_v0  ;;  %v2151_v41 = vshrl.u32 %v2022_v29, 16  ;;  %v2154_v5 = vshll.u32 %v2022_v29, 16  ;;  %v12761_v13 = vld [vmem:[%s13591_s10 + $0x420] ss:$8 sps:$4 sm:$0xff]  }
 0x138   : > { %v2470_v48 = vsel %vm1663_vm12, %v2454_v17, %v2423_v54  ;;  %v2135_v58 = vsel %vm13814_vm5, %v2130_v42, %v2134_v10  ;;  %2285 = vst.msk [vmem:[#allocation3 + $0x1a0] sm:$0xff] %vm13730_vm15, %v2149_v52  ;;  %5293 = vmatpush1.bf16.msra.mxu0 %v12751_v61  ;;  %v2167_v34 = vrot.slane %v2165_v2, 4  ;;  %v2170_v25 = vrot.slane %v2168_v45, 5  ;;  %v12722_v32 = vld [vmem:[%s13591_s10 + $0x570] ss:$8 sps:$4 sm:$0xff]  }
 0x139   : > { %v2477_v39 = vsel %vm1663_vm12, %v2461_v4, %v2437_v9  ;;  %2502 = vst.msk [vmem:[#allocation3 + $0x1c] sm:$0xff] %vm14288_vm13, %v2470_v48  ;;  %v2427_v36 = vpop.permute.xlu0 %2426  ;;  %v2153_v26 = vrot.slane %v2151_v41, 4  ;;  %v2156_v49 = vrot.slane %v2154_v5, 5  ;;  %v2160_v46 = vshll.u32 %v2023_v11, 16  ;;  %v12763_v53 = vld [vmem:[%s13591_s10 + $0x424] ss:$8 sps:$4 sm:$0xff]  }
 0x13a   : > { %v2456_v33 = vrot.slane %v2427_v36, 4  ;;  %2284 = vst.msk [vmem:[#allocation3 + $0x168] sm:$0xff] %vm13730_vm15, %v2135_v58  ;;  %v2441_v8 = vpop.permute.xlu1 %2440  ;;  %v2171_v28 = vor.u32 %v2170_v25, %v2167_v34  ;;  %v2176_v30 = vrot.slane %v2174_v20, 5  ;;  %v12764_v63 = vld [vmem:[#allocation3 + $0x164] ss:$56 sps:$4 sm:$0xff]   ;;  %5294 = vmatprep.subr.bf16.mxu0 %v12763_v53 }
 0x13b   : > { %2509 = vst.msk [vmem:[#allocation3 + $0x1a4] sm:$0xff] %vm14288_vm13, %v2477_v39  ;;  %v2463_v23 = vrot.slane %v2441_v8, 4  ;;  %v12719_v57 = vld [vmem:[#allocation3 + $0x18] ss:$56 sps:$4 sm:$0xff]   ;;  %v2157_v24 = vor.u32 %v2156_v49, %v2153_v26  ;;  %v2162_v19 = vrot.slane %v2160_v46, 5  ;;  %5120 = vmatprep.mubr.bf16.mxu0 %v12764_v63 }
 0x13c   : > { %v2472_v51 = vsel %vm1663_vm12, %v2456_v33, %v2427_v36  ;;  %v12732_v27 = vld [vmem:[%s13591_s10 + $0x564] ss:$8 sps:$4 sm:$0xff]   ;;  %v2172_v44 = vrot.slane %v2171_v28, 4  ;;  %5295 = vmatpush1.bf16.msra.mxu0 %v12761_v13  ;;  %v12730_v62 = vld [vmem:[%s13591_s10 + $0x560] ss:$8 sps:$4 sm:$0xff]   ;;  %v2028_v36 = vld [vmem:[#allocation2 + $0x110] sm:$0xff] }
 0x13d   : > { %2504 = vst.msk [vmem:[#allocation3 + $0x8c] sm:$0xff] %vm14288_vm13, %v2472_v51  ;;  %v2431_v50 = vpop.permute.xlu0 %2430  ;;  %v2479_v54 = vsel %vm1663_vm12, %v2463_v23, %v2441_v8  ;;  %v2158_v22 = vrot.slane %v2157_v24, 4  ;;  %v12769_v9 = vld [vmem:[%s13591_s10 + $0x410] ss:$8 sps:$4 sm:$0xff]   ;;  %v12771_v16 = vld [vmem:[%s13591_s10 + $0x414] ss:$8 sps:$4 sm:$0xff]  }
 0x13e   : > { %v2458_v35 = vrot.slane %v2431_v50, 4  ;;  %v14834_v3 = vpop.permute.xlu1 %2444  ;;  %v2177_v1 = vsel %vm13814_vm5, %v2172_v44, %v2176_v30  ;;  %v12772_v18 = vld [vmem:[#allocation3 + $0x160] ss:$56 sps:$4 sm:$0xff]   ;;  %v12742_v42 = vld [vmem:[%s13591_s10 + $0x554] ss:$8 sps:$4 sm:$0xff]   ;;  %5296 = vmatprep.subr.bf16.mxu0 %v12771_v16  ;;  %v2193_v58 = vshrl.u32 %v2028_v36, 16 }
 0x13f   : > { %2287 = vst.msk [vmem:[#allocation3 + $0x210] sm:$0xff] %vm13730_vm15, %v2177_v1  ;;  %v2163_v10 = vsel %vm13814_vm5, %v2158_v22, %v2162_v19  ;;  %v12739_v39 = vld [vmem:[#allocation3 + $0x88] ss:$56 sps:$4 sm:$0xff]   ;;  %v12740_v61 = vld [vmem:[%s13591_s10 + $0x550] ss:$8 sps:$4 sm:$0xff]   ;;  %5121 = vmatmul.mubr.bf16.gmra.mxu0 %v12772_v18  ;;  %v2196_v56 = vshll.u32 %v2028_v36, 16 }
 0x140   : > { %v12721_v47 = vld [vmem:[#allocation3 + $0x1c] ss:$56 sps:$4 sm:$0xff]   ;;  %v2474_v59 = vsel %vm1663_vm12, %v2458_v35, %v2431_v50  ;;  %2511 = vst.msk [vmem:[#allocation3 + $0x214] sm:$0xff] %vm14288_vm13, %v2479_v54  ;;  %5297 = vmatpush1.bf16.msra.mxu0 %v12769_v9  ;;  %v2027_v7 = vld [vmem:[#allocation2 + $0xc0] sm:$0x11]  ;;  %v2195_v51 = vrot.slane %v2193_v58, 4 }
 0x141   : > { %2506 = vst.msk [vmem:[#allocation3 + $0xfc] sm:$0xff] %vm14288_vm13, %v2474_v59  ;;  %v2435_v31 = vpop.permute.xlu0 %2434  ;;  %5203 = vmatprep.mubr.bf16.mxu1 %v12721_v47  ;;  %v2029_v52 = vld [vmem:[#allocation2 + $0xb8] sm:$0x11]  ;;  %v12750_v2 = vld [vmem:[%s13591_s10 + $0x544] ss:$8 sps:$4 sm:$0xff]   ;;  %v2198_v11 = vrot.slane %v2196_v56, 5 }
 0x142   : > { %v2460_v15 = vrot.slane %v2435_v31, 4  ;;  %5204 = vmatmul.mubr.bf16.vlgmr.msra.gmra.mxu1 %v12719_v57  ;;  %v14846_v12 = vpop.permute.xlu1 %2448  ;;  %2286 = vst.msk [vmem:[#allocation3 + $0x1d8] sm:$0xff] %vm13730_vm15, %v2163_v10  ;;  %v2202_v33 = vshll.u32 %v2029_v52, 16  ;;  %v2026_v0 = vld [vmem:[#allocation2 + $0xd8] sm:$0xff]  ;;  %2545 = vst.msk [vmem:[#allocation3 + $0x254] sm:$0xff] %vm13730_vm15, %v2028_v36  ;;  %v2465_v41 = vrot.slane %v14834_v3, 4 }
 0x143   : > { %5398 = vmatpush1.bf16.msra.mxu1 %v12722_v32  ;;  %v2179_v29 = vshrl.u32 %v2026_v0, 16  ;;  %2544 = vst.msk [vmem:[#allocation3 + $0x21c] sm:$0xff] %vm13730_vm15, %v2026_v0  ;;  %v2182_v5 = vshll.u32 %v2026_v0, 16  ;;  %v2188_v23 = vshll.u32 %v2027_v7, 16  ;;  %v12779_v13 = vld [vmem:[%s13591_s10 + $0x400] ss:$8 sps:$4 sm:$0xff]   ;;  %v2199_v32 = vor.u32 %v2198_v11, %v2195_v51 }
 0x144   : > { %v12737_v17 = vld [vmem:[#allocation3 + $0x8c] ss:$56 sps:$4 sm:$0xff]   ;;  %v2476_v4 = vsel %vm1663_vm12, %v2460_v15, %v2435_v31  ;;  %5399 = vmatprep.subr.bf16.mxu1 %v12732_v27  ;;  %v2204_v34 = vrot.slane %v2202_v33, 5  ;;  %v12748_v53 = vld [vmem:[%s13591_s10 + $0x540] ss:$8 sps:$4 sm:$0xff]   ;;  %v2481_v27 = vsel %vm1663_vm12, %v2465_v41, %v14834_v3  ;;  %v2030_v52 = vld [vmem:[#allocation2 + $0xf0] sm:$0xff] }
 0x145   : > { %2508 = vst.msk [vmem:[#allocation3 + $0x16c] sm:$0xff] %vm14288_vm13, %v2476_v4  ;;  %v2439_v48 = vpop.permute.xlu0 %2438  ;;  %5213 = vmatprep.mubr.bf16.mxu1 %v12737_v17  ;;  %v2181_v25 = vrot.slane %v2179_v29, 4  ;;  %v2184_v35 = vrot.slane %v2182_v5, 5  ;;  %v12781_v26 = vld [vmem:[%s13591_s10 + $0x404] ss:$8 sps:$4 sm:$0xff]   ;;  %v2200_v63 = vrot.slane %v2199_v32, 4 }
 0x146   : > { %v2462_v55 = vrot.slane %v2439_v48, 4  ;;  %v14861_v8 = vpop.permute.xlu1 %2452  ;;  %v12782_v49 = vld [vmem:[#allocation3 + $0x1d4] ss:$56 sps:$4 sm:$0xff]   ;;  %v2190_v47 = vrot.slane %v2188_v23, 5  ;;  %5298 = vmatprep.subr.bf16.mxu0 %v12781_v26  ;;  %v12757_v24 = vld [vmem:[#allocation3 + $0xf8] ss:$56 sps:$4 sm:$0xff]  }
 0x147   : > { %5400 = vmatpush1.bf16.msra.mxu1 %v12730_v62  ;;  %v12760_v30 = vld [vmem:[%s13591_s10 + $0x534] ss:$8 sps:$4 sm:$0xff]   ;;  %v2185_v57 = vor.u32 %v2184_v35, %v2181_v25  ;;  %v12758_v19 = vld [vmem:[%s13591_s10 + $0x530] ss:$8 sps:$4 sm:$0xff]   ;;  %5299 = vmatpush1.bf16.msra.mxu0 %v12779_v13  ;;  %v2205_v44 = vsel %vm13814_vm5, %v2200_v63, %v2204_v34  ;;  %v12768_v17 = vld [vmem:[%s13591_s10 + $0x524] ss:$8 sps:$4 sm:$0xff]  }
 0x148   : > { %v12755_v45 = vld [vmem:[#allocation3 + $0xfc] ss:$56 sps:$4 sm:$0xff]   ;;  %v2478_v20 = vsel %vm1663_vm12, %v2462_v55, %v2439_v48  ;;  %5401 = vmatprep.subr.bf16.mxu1 %v12742_v42  ;;  %5130 = vmatprep.mubr.bf16.mxu0 %v12782_v49  ;;  %v12787_v15 = vld [vmem:[%s13591_s10 + $0x4f0] ss:$8 sps:$4 sm:$0xff]   ;;  %2289 = vst.msk [vmem:[#allocation3 + $0x280] sm:$0xff] %vm13730_vm15, %v2205_v44  ;;  %v2032_v48 = vld [vmem:[#allocation2 + $0x108] sm:$0xff] }
 0x149   : > { %2510 = vst.msk [vmem:[#allocation3 + $0x1dc] sm:$0xff] %vm14288_vm13, %v2478_v20  ;;  %v2443_v50 = vpop.permute.xlu0 %2442  ;;  %v2186_v62 = vrot.slane %v2185_v57, 4  ;;  %v12789_v54 = vld [vmem:[%s13591_s10 + $0x4f4] ss:$8 sps:$4 sm:$0xff]   ;;  %v12790_v9 = vld [vmem:[#allocation3 + $0x1d0] ss:$56 sps:$4 sm:$0xff]  }
 0x14a   : > { %5214 = vmatmul.mubr.bf16.gmra.mxu1 %v12739_v39  ;;  %v2810_v46 = vpop.permute.xlu1 %2809  ;;  %v2464_v28 = vrot.slane %v2443_v50, 4  ;;  %2513 = vst.msk [vmem:[#allocation3 + $0x284] sm:$0xff] %vm14288_vm13, %v2481_v27  ;;  %5300 = vmatprep.subr.bf16.mxu0 %v12789_v54  ;;  %v12766_v42 = vld [vmem:[%s13591_s10 + $0x520] ss:$8 sps:$4 sm:$0xff]   ;;  %v12778_v39 = vld [vmem:[%s13591_s10 + $0x514] ss:$8 sps:$4 sm:$0xff]  }
 0x14b   : > { %5402 = vmatpush1.bf16.msra.mxu1 %v12740_v61  ;;  %5223 = vmatprep.mubr.bf16.mxu1 %v12755_v45  ;;  %v2840_v31 = vrot.slane %v2810_v46, 4  ;;  %v2191_v4 = vsel %vm13814_vm5, %v2186_v62, %v2190_v47  ;;  %v2033_v61 = vld [vmem:[#allocation2 + $0xd0] sm:$0x11]  ;;  %v2221_v55 = vshrl.u32 %v2032_v48, 16  ;;  %v2224_v36 = vshll.u32 %v2032_v48, 16  ;;  %2547 = vst.msk [vmem:[#allocation3 + $0x2c4] sm:$0xff] %vm13730_vm15, %v2032_v48 }
 0x14c   : > { %5403 = vmatprep.subr.bf16.mxu1 %v12750_v2  ;;  %v12773_v22 = vld [vmem:[#allocation3 + $0x16c] ss:$56 sps:$4 sm:$0xff]   ;;  %v2480_v1 = vsel %vm1663_vm12, %v2464_v28, %v2443_v50  ;;  %2288 = vst.msk [vmem:[#allocation3 + $0x248] sm:$0xff] %vm13730_vm15, %v2191_v4  ;;  %5131 = vmatmul.mubr.bf16.gmra.mxu0 %v12790_v9  ;;  %v2230_v56 = vshll.u32 %v2033_v61, 16  ;;  %v2207_v0 = vshrl.u32 %v2030_v52, 16  ;;  %v2210_v7 = vshll.u32 %v2030_v52, 16 }
 0x14d   : > { %v14876_v59 = vpop.permute.xlu0 %2446  ;;  %v2856_v3 = vsel %vm1663_vm12, %v2840_v31, %v2810_v46  ;;  %2512 = vst.msk [vmem:[#allocation3 + $0x24c] sm:$0xff] %vm14288_vm13, %v2480_v1  ;;  %5301 = vmatpush2.bf16.msra.mxu0 %v12787_v15  ;;  %v2031_v33 = vld [vmem:[#allocation2 + $0xa8] sm:$0x11]  ;;  %v2223_v45 = vrot.slane %v2221_v55, 4  ;;  %v2226_v20 = vrot.slane %v2224_v36, 5  ;;  %v2467_v41 = vrot.slane %v14846_v12, 4 }
 0x14e   : > { %v2814_v16 = vpop.permute.xlu1 %2813  ;;  %2888 = vst.msk [vmem:[#allocation3 + $0x60] sm:$0xff] %vm14288_vm13, %v2856_v3  ;;  %v12775_v2 = vld [vmem:[#allocation3 + $0x168] ss:$56 sps:$4 sm:$0xff]   ;;  %v2216_v29 = vshll.u32 %v2031_v33, 16  ;;  %v2209_v5 = vrot.slane %v2207_v0, 4  ;;  %v2212_v50 = vrot.slane %v2210_v7, 5 }
 0x14f   : > { %5404 = vmatpush1.bf16.msra.mxu1 %v12748_v53  ;;  %v2842_v18 = vrot.slane %v2814_v16, 4  ;;  %2546 = vst.msk [vmem:[#allocation3 + $0x28c] sm:$0xff] %vm13730_vm15, %v2030_v52  ;;  %v12797_v51 = vld [vmem:[%s13591_s10 + $0x4e0] ss:$8 sps:$4 sm:$0xff]   ;;  %v12799_v34 = vld [vmem:[%s13591_s10 + $0x4e4] ss:$8 sps:$4 sm:$0xff]   ;;  %v2227_v25 = vor.u32 %v2226_v20, %v2223_v45  ;;  %v2483_v57 = vsel %vm1663_vm12, %v2467_v41, %v14846_v12 }
 0x150   : > { %5405 = vmatprep.subr.bf16.mxu1 %v12760_v30  ;;  %v2232_v23 = vrot.slane %v2230_v56, 5  ;;  %v2466_v13 = vrot.slane %v14876_v59, 4  ;;  %v12800_v32 = vld [vmem:[#allocation3 + $0x244] ss:$56 sps:$4 sm:$0xff]   ;;  %v12776_v35 = vld [vmem:[%s13591_s10 + $0x510] ss:$8 sps:$4 sm:$0xff]   ;;  %v2213_v49 = vor.u32 %v2212_v50, %v2209_v5  ;;  %5302 = vmatprep.subr.bf16.mxu0 %v12799_v34 }
 0x151   : > { %v14894_v10 = vpop.permute.xlu0 %2450  ;;  %v2858_v58 = vsel %vm1663_vm12, %v2842_v18, %v2814_v16  ;;  %v12791_v26 = vld [vmem:[#allocation3 + $0x1dc] ss:$56 sps:$4 sm:$0xff]   ;;  %v2218_v46 = vrot.slane %v2216_v29, 5  ;;  %v12786_v53 = vld [vmem:[%s13591_s10 + $0x504] ss:$8 sps:$4 sm:$0xff]   ;;  %v2228_v28 = vrot.slane %v2227_v25, 4  ;;  %5303 = vmatpush2.bf16.msra.mxu0 %v12797_v51  ;;  %5140 = vmatprep.mubr.bf16.mxu0 %v12800_v32 }
 0x152   : > { %5224 = vmatmul.mubr.bf16.gmra.mxu1 %v12757_v24  ;;  %2890 = vst.msk [vmem:[#allocation3 + $0xd0] sm:$0xff] %vm14288_vm13, %v2858_v58  ;;  %v12807_v30 = vld [vmem:[%s13591_s10 + $0x4d4] ss:$8 sps:$4 sm:$0xff]   ;;  %v2214_v47 = vrot.slane %v2213_v49, 4  ;;  %v12805_v24 = vld [vmem:[%s13591_s10 + $0x4d0] ss:$8 sps:$4 sm:$0xff]   ;;  %v2482_v31 = vsel %vm1663_vm12, %v2466_v13, %v14876_v59 }
 0x153   : > { %5406 = vmatpush1.bf16.msra.mxu1 %v12758_v19  ;;  %5233 = vmatprep.mubr.bf16.mxu1 %v12773_v22  ;;  %v2233_v27 = vsel %vm13814_vm5, %v2228_v28, %v2232_v23  ;;  %v12808_v44 = vld [vmem:[#allocation3 + $0x240] ss:$56 sps:$4 sm:$0xff]   ;;  %v12796_v54 = vld [vmem:[%s13591_s10 + $0x5f4] ss:$8 sps:$4 sm:$0xff]   ;;  %v2469_v1 = vrot.slane %v14861_v8, 4  ;;  %v2468_v0 = vrot.slane %v14894_v10, 4 }
 0x154   : > { %5407 = vmatprep.subr.bf16.mxu1 %v12768_v17  ;;  %5304 = vmatprep.subr.bf16.mxu0 %v12807_v30  ;;  %v12784_v15 = vld [vmem:[%s13591_s10 + $0x500] ss:$8 sps:$4 sm:$0xff]   ;;  %2291 = vst.msk [vmem:[#allocation3 + $0x2f0] sm:$0xff] %vm13730_vm15, %v2233_v27  ;;  %v2219_v12 = vsel %vm13814_vm5, %v2214_v47, %v2218_v46  ;;  %v12793_v22 = vld [vmem:[#allocation3 + $0x1d8] ss:$56 sps:$4 sm:$0xff]  }
 0x155   : > { %v14912_v11 = vpop.permute.xlu0 %2807  ;;  %2515 = vst.msk [vmem:[#allocation3 + $0x2f4] sm:$0xff] %vm14288_vm13, %v2483_v57  ;;  %5141 = vmatmul.mubr.bf16.gmra.mxu0 %v12808_v44  ;;  %v2037_v59 = vld [vmem:[#allocation2 + $0x118] sm:$0x11]  ;;  %v2035_v3 = vld [vmem:[#allocation2 + $0x130] sm:$0x11]  ;;  %v2484_v49 = vsel %vm1663_vm12, %v2468_v0, %v14894_v10  ;;  %v2519_v57 = vld [vmem:[#allocation2 + $0x20] sm:$0xff] }
 0x156   : > { %v2818_v19 = vpop.permute.xlu1 %2817  ;;  %2290 = vst.msk [vmem:[#allocation3 + $0x2b8] sm:$0xff] %vm13730_vm15, %v2219_v12  ;;  %v2034_v9 = vld [vmem:[#allocation2 + $0x78] sm:$0xff]  ;;  %5305 = vmatpush2.bf16.msra.mxu0 %v12805_v24  ;;  %v12809_v18 = vld [vmem:[#allocation3 + $0x24c] ss:$56 sps:$4 sm:$0xff]   ;;  %v2244_v61 = vshll.u32 %v2035_v3, 16  ;;  %v2839_v20 = vrot.slane %v14912_v11, 4 }
 0x157   : > { %5408 = vmatpush1.bf16.msra.mxu1 %v12766_v42  ;;  %v2844_v62 = vrot.slane %v2818_v19, 4  ;;  %v12794_v4 = vld [vmem:[%s13591_s10 + $0x5f0] ss:$8 sps:$4 sm:$0xff]   ;;  %2514 = vst.msk [vmem:[#allocation3 + $0x2bc] sm:$0xff] %vm14288_vm13, %v2482_v31  ;;  %v2258_v42 = vshll.u32 %v2037_v59, 16  ;;  %v2235_v48 = vshrl.u32 %v2034_v9, 16 }
 0x158   : > { %5409 = vmatprep.subr.bf16.mxu1 %v12778_v39  ;;  %v2238_v39 = vshll.u32 %v2034_v9, 16  ;;  %2548 = vst.msk [vmem:[#allocation3 + $0x2fc] sm:$0xff] %vm13730_vm15, %v2034_v9  ;;  %v12815_v55 = vld [vmem:[%s13591_s10 + $0x4c0] ss:$8 sps:$4 sm:$0xff]   ;;  %v12817_v36 = vld [vmem:[%s13591_s10 + $0x4c4] ss:$8 sps:$4 sm:$0xff]   ;;  %v2855_v46 = vsel %vm1663_vm12, %v2839_v20, %v14912_v11 }
 0x159   : > { %v14920_v63 = vpop.permute.xlu0 %2811  ;;  %v2860_v16 = vsel %vm1663_vm12, %v2844_v62, %v2818_v19  ;;  %v2260_v58 = vrot.slane %v2258_v42, 5  ;;  %v2237_v56 = vrot.slane %v2235_v48, 4  ;;  %v12804_v7 = vld [vmem:[%s13591_s10 + $0x5e4] ss:$8 sps:$4 sm:$0xff]   ;;  %5306 = vmatprep.subr.bf16.mxu0 %v12817_v36  ;;  %v12802_v41 = vld [vmem:[%s13591_s10 + $0x5e0] ss:$8 sps:$4 sm:$0xff]  }
 0x15a   : > { %5234 = vmatmul.mubr.bf16.gmra.mxu1 %v12775_v2  ;;  %2892 = vst.msk [vmem:[#allocation3 + $0x140] sm:$0xff] %vm14288_vm13, %v2860_v16  ;;  %v2240_v33 = vrot.slane %v2238_v39, 5  ;;  %v2485_v2 = vsel %vm1663_vm12, %v2469_v1, %v14861_v8  ;;  %v12818_v45 = vld [vmem:[#allocation3 + $0x2b4] ss:$56 sps:$4 sm:$0xff]   ;;  %v2246_v34 = vrot.slane %v2244_v61, 5  ;;  %5307 = vmatpush2.bf16.msra.mxu0 %v12815_v55  ;;  %v2841_v31 = vrot.slane %v14920_v63, 4 }
 0x15b   : > { %5410 = vmatpush1.bf16.msra.mxu1 %v12776_v35  ;;  %5243 = vmatprep.mubr.bf16.mxu1 %v12791_v26  ;;  %v2261_v5 = vsel %vm13814_vm5, %v14720_v40, %v2260_v58  ;;  %v12823_v25 = vld [vmem:[%s13591_s10 + $0x4b0] ss:$8 sps:$4 sm:$0xff]   ;;  %v12825_v23 = vld [vmem:[%s13591_s10 + $0x4b4] ss:$8 sps:$4 sm:$0xff]   ;;  %v12811_v35 = vld [vmem:[#allocation3 + $0x248] ss:$56 sps:$4 sm:$0xff]  }
 0x15c   : > { %5411 = vmatprep.subr.bf16.mxu1 %v12786_v53  ;;  %v2241_v50 = vor.u32 %v2240_v33, %v2237_v56  ;;  %2293 = vst.msk [vmem:[#allocation3 + $0x360] sm:$0xff] %vm13730_vm15, %v2261_v5  ;;  %5150 = vmatprep.mubr.bf16.mxu0 %v12818_v45  ;;  %v12826_v13 = vld [vmem:[#allocation3 + $0x2b0] ss:$56 sps:$4 sm:$0xff]   ;;  %v12814_v26 = vld [vmem:[%s13591_s10 + $0x5d4] ss:$8 sps:$4 sm:$0xff]   ;;  %2535 = vst.msk [vmem:[#allocation3 + $0x24] sm:$0xff] %vm13730_vm15, %v2519_v57  ;;  %v2857_v1 = vsel %vm1663_vm12, %v2841_v31, %v14920_v63 }
 0x15d   : > { %v2816_v17 = vpop.permute.xlu0 %2815  ;;  %2517 = vst.msk [vmem:[#allocation3 + $0x364] sm:$0xff] %vm14288_vm13, %v2485_v2  ;;  %5308 = vmatprep.subr.bf16.mxu0 %v12825_v23  ;;  %v12812_v53 = vld [vmem:[%s13591_s10 + $0x5d0] ss:$8 sps:$4 sm:$0xff]   ;;  %5151 = vmatmul.mubr.bf16.gmra.mxu0 %v12826_v13  ;;  %v12822_v10 = vld [vmem:[%s13591_s10 + $0x5c4] ss:$8 sps:$4 sm:$0xff]   ;;  %2887 = vst.msk [vmem:[#allocation3 + $0x28] sm:$0xff] %vm14288_vm13, %v2855_v46 }
 0x15e   : > { %v2843_v52 = vrot.slane %v2816_v17, 4  ;;  %v2242_v40 = vrot.slane %v2241_v50, 4  ;;  %v12827_v30 = vld [vmem:[#allocation3 + $0x2bc] ss:$56 sps:$4 sm:$0xff]   ;;  %5309 = vmatpush2.bf16.msra.mxu0 %v12823_v25  ;;  %v12833_v11 = vld [vmem:[%s13591_s10 + $0x4a0] ss:$8 sps:$4 sm:$0xff]  }
 0x15f   : > { %5412 = vmatpush1.bf16.msra.mxu1 %v12784_v15  ;;  %v12835_v19 = vld [vmem:[%s13591_s10 + $0x4a4] ss:$8 sps:$4 sm:$0xff]   ;;  %v12820_v62 = vld [vmem:[%s13591_s10 + $0x5c0] ss:$8 sps:$4 sm:$0xff]   ;;  %v12841_v15 = vld [vmem:[%s13591_s10 + $0x490] ss:$8 sps:$4 sm:$0xff]  }
 0x160   : > { %5413 = vmatprep.subr.bf16.mxu1 %v12796_v54  ;;  %v2859_v29 = vsel %vm1663_vm12, %v2843_v52, %v2816_v17  ;;  %v2247_v28 = vsel %vm13814_vm5, %v2242_v40, %v2246_v34  ;;  %v12836_v27 = vld [vmem:[#allocation3 + $0x324] ss:$56 sps:$4 sm:$0xff]   ;;  %5310 = vmatprep.subr.bf16.mxu0 %v12835_v19  ;;  %v12844_v12 = vld [vmem:[#allocation3 + $0x320] ss:$56 sps:$4 sm:$0xff]   ;;  %v2521_v3 = vld [vmem:[#allocation2 + $0x128] sm:$0xff] }
 0x161   : > { %v2820_v51 = vpop.permute.xlu0 %2819  ;;  %2891 = vst.msk [vmem:[#allocation3 + $0x108] sm:$0xff] %vm14288_vm13, %v2859_v29  ;;  %v12843_v54 = vld [vmem:[%s13591_s10 + $0x494] ss:$8 sps:$4 sm:$0xff]   ;;  %5160 = vmatprep.mubr.bf16.mxu0 %v12836_v27  ;;  %v12830_v9 = vld [vmem:[%s13591_s10 + $0x5b0] ss:$8 sps:$4 sm:$0xff]  }
 0x162   : > { %v2845_v8 = vrot.slane %v2820_v51, 4  ;;  %5244 = vmatmul.mubr.bf16.gmra.mxu1 %v12793_v22  ;;  %2292 = vst.msk [vmem:[#allocation3 + $0x328] sm:$0xff] %vm13730_vm15, %v2247_v28  ;;  %5311 = vmatpush2.bf16.msra.mxu0 %v12833_v11  ;;  %v12829_v22 = vld [vmem:[#allocation3 + $0x2b8] ss:$56 sps:$4 sm:$0xff]   ;;  %v12832_v59 = vld [vmem:[%s13591_s10 + $0x5b4] ss:$8 sps:$4 sm:$0xff]  }
 0x163   : > { %5414 = vmatpush2.bf16.msra.mxu1 %v12794_v4  ;;  %5253 = vmatprep.mubr.bf16.mxu1 %v12809_v18  ;;  %2516 = vst.msk [vmem:[#allocation3 + $0x32c] sm:$0xff] %vm14288_vm13, %v2484_v49  ;;  %v12840_v16 = vld [vmem:[%s13591_s10 + $0x5a4] ss:$8 sps:$4 sm:$0xff]   ;;  %v12851_v4 = vld [vmem:[%s13591_s10 + $0x480] ss:$8 sps:$4 sm:$0xff]   ;;  %v2526_v23 = vld [vmem:[#allocation2 + $0x38] sm:$0xff] }
 0x164   : > { %v2861_v32 = vsel %vm1663_vm12, %v2845_v8, %v2820_v51  ;;  %5415 = vmatprep.subr.bf16.mxu1 %v12804_v7  ;;  %5312 = vmatprep.subr.bf16.mxu0 %v12843_v54  ;;  %2537 = vst.msk [vmem:[#allocation3 + $0x94] sm:$0xff] %vm13730_vm15, %v2521_v3  ;;  %v12853_v63 = vld [vmem:[%s13591_s10 + $0x484] ss:$8 sps:$4 sm:$0xff]   ;;  %v12838_v42 = vld [vmem:[%s13591_s10 + $0x5a0] ss:$8 sps:$4 sm:$0xff]   ;;  %2542 = vst.msk [vmem:[#allocation3 + $0x1ac] sm:$0xff] %vm13730_vm15, %v2526_v23 }
 0x165   : > { %2893 = vst.msk [vmem:[#allocation3 + $0x178] sm:$0xff] %vm14288_vm13, %v2861_v32  ;;  %v2824_v47 = vpop.permute.xlu0 %2823  ;;  %5161 = vmatmul.mubr.bf16.gmra.mxu0 %v12844_v12  ;;  %2889 = vst.msk [vmem:[#allocation3 + $0x98] sm:$0xff] %vm14288_vm13, %v2857_v1  ;;  %v12854_v18 = vld [vmem:[#allocation3 + $0x24] ss:$56 sps:$4 sm:$0xff]   ;;  %v12859_v55 = vld [vmem:[%s13591_s10 + $0x670] ss:$8 sps:$4 sm:$0xff]  }
 0x166   : > { %v2847_v24 = vrot.slane %v2824_v47, 4  ;;  %5313 = vmatpush2.bf16.msra.mxu0 %v12841_v15  ;;  %5316 = vmatprep.mubr.bf16.mxu0 %v12854_v18  ;;  %v12850_v39 = vld [vmem:[%s13591_s10 + $0x594] ss:$8 sps:$4 sm:$0xff]   ;;  %v12862_v36 = vld [vmem:[#allocation3 + $0x20] ss:$56 sps:$4 sm:$0xff]  }
 0x167   : > { %5416 = vmatpush2.bf16.msra.mxu1 %v12802_v41  ;;  %5314 = vmatprep.subr.bf16.mxu0 %v12853_v63  ;;  %v12861_v61 = vld [vmem:[%s13591_s10 + $0x674] ss:$8 sps:$4 sm:$0xff]   ;;  %v12848_v52 = vld [vmem:[%s13591_s10 + $0x590] ss:$8 sps:$4 sm:$0xff]   ;;  %v12863_v45 = vld [vmem:[#allocation3 + $0x2c] ss:$56 sps:$4 sm:$0xff]  }
 0x168   : > { %5417 = vmatprep.subr.bf16.mxu1 %v12814_v26  ;;  %v2863_v44 = vsel %vm1663_vm12, %v2847_v24, %v2824_v47  ;;  %v12870_v20 = vld [vmem:[%s13591_s10 + $0x664] ss:$8 sps:$4 sm:$0xff]   ;;  %v12868_v41 = vld [vmem:[%s13591_s10 + $0x660] ss:$8 sps:$4 sm:$0xff]   ;;  %v12877_v25 = vld [vmem:[%s13591_s10 + $0x654] ss:$8 sps:$4 sm:$0xff]  }
 0x169   : > { %2895 = vst.msk [vmem:[#allocation3 + $0x1e8] sm:$0xff] %vm14288_vm13, %v2863_v44  ;;  %v12847_v0 = vld [vmem:[#allocation3 + $0x328] ss:$56 sps:$4 sm:$0xff]   ;;  %v12858_v51 = vld [vmem:[%s13591_s10 + $0x584] ss:$8 sps:$4 sm:$0xff]  }
 0x16a   : > { %5254 = vmatmul.mubr.bf16.gmra.mxu1 %v12811_v35  ;;  %v12845_v17 = vld [vmem:[#allocation3 + $0x32c] ss:$56 sps:$4 sm:$0xff]   ;;  %5315 = vmatpush2.bf16.msra.mxu0 %v12851_v4  ;;  %v12856_v50 = vld [vmem:[%s13591_s10 + $0x580] ss:$8 sps:$4 sm:$0xff]   ;;  %v12875_v35 = vld [vmem:[%s13591_s10 + $0x650] ss:$8 sps:$4 sm:$0xff]  }
 0x16b   : > { %5418 = vmatpush2.bf16.msra.mxu1 %v12812_v53  ;;  %5263 = vmatprep.mubr.bf16.mxu1 %v12827_v30  ;;  %v12866_v58 = vld [vmem:[#allocation3 + $0x94] ss:$56 sps:$4 sm:$0xff]   ;;  %v12871_v40 = vld [vmem:[#allocation3 + $0x90] ss:$56 sps:$4 sm:$0xff]   ;;  %v12878_v26 = vld [vmem:[#allocation3 + $0x104] ss:$56 sps:$4 sm:$0xff]  }
 0x16c   : > { %5419 = vmatprep.subr.bf16.mxu1 %v12822_v10  ;;  %5510 = vmatprep.subr.bf16.mxu0 %v12861_v61  ;;  %v12882_v49 = vld [vmem:[%s13591_s10 + $0x644] ss:$8 sps:$4 sm:$0xff]   ;;  %v12865_v53 = vld [vmem:[#allocation3 + $0x28] ss:$56 sps:$4 sm:$0xff]   ;;  %v12872_v28 = vld [vmem:[#allocation3 + $0x9c] ss:$56 sps:$4 sm:$0xff]  }
 0x16d   : > { %5317 = vmatmul.mubr.bf16.vlgmr.msra.gmra.mxu0 %v12862_v36  ;;  %v12880_v30 = vld [vmem:[%s13591_s10 + $0x640] ss:$8 sps:$4 sm:$0xff]   ;;  %v12891_v57 = vld [vmem:[%s13591_s10 + $0x634] ss:$8 sps:$4 sm:$0xff]   ;;  %v12889_v24 = vld [vmem:[%s13591_s10 + $0x630] ss:$8 sps:$4 sm:$0xff]  }
 0x16e   : > { %5511 = vmatpush1.bf16.msra.mxu0 %v12859_v55  ;;  %5326 = vmatprep.mubr.bf16.mxu0 %v12866_v58  ;;  %v12883_v11 = vld [vmem:[#allocation3 + $0x100] ss:$56 sps:$4 sm:$0xff]   ;;  %v12887_v27 = vld [vmem:[#allocation3 + $0x174] ss:$56 sps:$4 sm:$0xff]   ;;  %v12892_v1 = vld [vmem:[#allocation3 + $0x170] ss:$56 sps:$4 sm:$0xff]  }
 0x16f   : > { %5420 = vmatpush2.bf16.msra.mxu1 %v12820_v62  ;;  %5512 = vmatprep.subr.bf16.mxu0 %v12870_v20  ;;  %v12898_v62 = vld [vmem:[%s13591_s10 + $0x624] ss:$8 sps:$4 sm:$0xff]   ;;  %v12874_v15 = vld [vmem:[#allocation3 + $0x98] ss:$56 sps:$4 sm:$0xff]   ;;  %v12886_v63 = vld [vmem:[#allocation3 + $0x108] ss:$56 sps:$4 sm:$0xff]  }
 0x170   : > { %5421 = vmatprep.subr.bf16.mxu1 %v12832_v59  ;;  %v12884_v12 = vld [vmem:[#allocation3 + $0x10c] ss:$56 sps:$4 sm:$0xff]   ;;  %v12903_v59 = vld [vmem:[%s13591_s10 + $0x614] ss:$8 sps:$4 sm:$0xff]   ;;  %v12901_v3 = vld [vmem:[%s13591_s10 + $0x610] ss:$8 sps:$4 sm:$0xff]  }
 0x171   : > { %v2822_v48 = vpop.permute.xlu1 %2821  ;;  %v2533_v4 = vld [vmem:[#allocation2 + $0x60] sm:$0xff]  ;;  %v12919_v61 = vld [vmem:[%s13591_s10 + $0x6b4] ss:$8 sps:$4 sm:$0xff]  }
 0x172   : > { %5264 = vmatmul.mubr.bf16.gmra.mxu1 %v12829_v22  ;;  %v2846_v56 = vrot.slane %v2822_v48, 4  ;;  %5513 = vmatpush1.bf16.msra.mxu0 %v12868_v41  ;;  %v12896_v22 = vld [vmem:[%s13591_s10 + $0x620] ss:$8 sps:$4 sm:$0xff]   ;;  %2549 = vst.msk [vmem:[#allocation3 + $0x334] sm:$0xff] %vm13730_vm15, %v2533_v4  ;;  %v12908_v58 = vld [vmem:[#allocation3 + $0x254] ss:$56 sps:$4 sm:$0xff]  }
 0x173   : > { %5422 = vmatpush2.bf16.msra.mxu1 %v12830_v9  ;;  %5273 = vmatprep.mubr.bf16.mxu1 %v12845_v17  ;;  %v12899_v9 = vld [vmem:[#allocation3 + $0x1e4] ss:$56 sps:$4 sm:$0xff]   ;;  %v2534_v17 = vld [vmem:[#allocation2 + $0xe8] sm:$0xff]  ;;  %v12904_v36 = vld [vmem:[#allocation3 + $0x1e0] ss:$56 sps:$4 sm:$0xff]  }
 0x174   : > { %5423 = vmatprep.subr.bf16.mxu1 %v12840_v16  ;;  %v2862_v34 = vsel %vm1663_vm12, %v2846_v56, %v2822_v48  ;;  %5514 = vmatprep.subr.bf16.mxu0 %v12877_v25  ;;  %v12912_v16 = vld [vmem:[%s13591_s10 + $0x604] ss:$8 sps:$4 sm:$0xff]   ;;  %2550 = vst.msk [vmem:[#allocation3 + $0x36c] sm:$0xff] %vm13730_vm15, %v2534_v17  ;;  %v12910_v48 = vld [vmem:[%s13591_s10 + $0x600] ss:$8 sps:$4 sm:$0xff]  }
 0x175   : > { %v2828_v33 = vpop.permute.xlu0 %2827  ;;  %v2826_v7 = vpop.permute.xlu1 %2825  ;;  %2894 = vst.msk [vmem:[#allocation3 + $0x1b0] sm:$0xff] %vm14288_vm13, %v2862_v34  ;;  %5327 = vmatmul.mubr.bf16.gmra.mxu0 %v12871_v40  ;;  %v12917_v56 = vld [vmem:[%s13591_s10 + $0x6b0] ss:$8 sps:$4 sm:$0xff]   ;;  %v2906_v41 = vld [vmem:[#allocation2 + $0x48] sm:$0x11] }
 0x176   : > { %v2849_v2 = vrot.slane %v2828_v33, 4  ;;  %v2848_v29 = vrot.slane %v2826_v7, 4  ;;  %5336 = vmatprep.mubr.bf16.mxu0 %v12878_v26  ;;  %5515 = vmatpush1.bf16.msra.mxu0 %v12875_v35  ;;  %v2904_v20 = vld [vmem:[#allocation2 + $0x58] sm:$0x11]  ;;  %v2907_v34 = vld [vmem:[#allocation2 + $0x128] sm:$0xee] }
 0x177   : > { %5424 = vmatpush2.bf16.msra.mxu1 %v12838_v42  ;;  %5516 = vmatprep.subr.bf16.mxu0 %v12882_v49  ;;  %v2908_v25 = vld [vmem:[#allocation2] sm:$0x11]  ;;  %v2909_v23 = vld [vmem:[#allocation2 + $0xb0] sm:$0xee]  ;;  %v2910_v35 = vld [vmem:[#allocation2 + $0x8] sm:$0x11] }
 0x178   : > { %5425 = vmatprep.subr.bf16.mxu1 %v12850_v39  ;;  %v2865_v5 = vsel %vm1663_vm12, %v2849_v2, %v2828_v33  ;;  %v2864_v8 = vsel %vm1663_vm12, %v2848_v29, %v2826_v7  ;;  %v2903_v33 = vld [vmem:[#allocation2 + $0x20] sm:$0xee]  ;;  %v2905_v29 = vld [vmem:[#allocation2 + $0x90] sm:$0xee]  ;;  %v2977_v26 = vrot.slane %v2908_v25, 5  ;;  %v11393_v49 = vrot.slane %v2909_v23, 9 }
 0x179   : > { %2897 = vst.msk [vmem:[#allocation3 + $0x258] sm:$0xff] %vm14288_vm13, %v2865_v5  ;;  %2896 = vst.msk [vmem:[#allocation3 + $0x220] sm:$0xff] %vm14288_vm13, %v2864_v8  ;;  %v2830_v13 = vpop.permute.xlu1 %2829  ;;  %v12924_v7 = vld [vmem:[%s13591_s10 + $0x6a4] ss:$8 sps:$4 sm:$0xff]   ;;  %v11390_v2 = vrot.slane %v2903_v33, 9  ;;  %v2969_v5 = vrot.slane %v2904_v20, 5 }
 0x17a   : > { %5274 = vmatmul.mubr.bf16.gmra.mxu1 %v12847_v0  ;;  %v2850_v32 = vrot.slane %v2830_v13, 4  ;;  %5517 = vmatpush1.bf16.msra.mxu0 %v12880_v30  ;;  %v2973_v8 = vrot.slane %v2906_v41, 5  ;;  %v2917_v17 = vld [vmem:[#allocation2 + $0x38] sm:$0xee]  ;;  %v2924_v23 = vld [vmem:[#allocation2 + $0xb8] sm:$0x11] }
 0x17b   : > { %5426 = vmatpush2.bf16.msra.mxu1 %v12848_v52  ;;  %5429 = vmatprep.mubr.bf16.mxu1 %v12863_v45  ;;  %v12922_v45 = vld [vmem:[%s13591_s10 + $0x6a0] ss:$8 sps:$4 sm:$0xff]   ;;  %v2970_v40 = vsel %vm14109_vm8, %v11390_v2, %v2969_v5  ;;  %v2923_v5 = vld [vmem:[#allocation2 + $0x110] sm:$0xee] }
 0x17c   : > { %5427 = vmatprep.subr.bf16.mxu1 %v12858_v51  ;;  %v2866_v46 = vsel %vm1663_vm12, %v2850_v32, %v2830_v13  ;;  %5518 = vmatprep.subr.bf16.mxu0 %v12891_v57  ;;  %v12893_v18 = vld [vmem:[#allocation3 + $0x17c] ss:$56 sps:$4 sm:$0xff]   ;;  %v12895_v52 = vld [vmem:[#allocation3 + $0x178] ss:$56 sps:$4 sm:$0xff]   ;;  %v11392_v13 = vrot.slane %v2907_v34, 9  ;;  %3047 = vst.msk [vmem:[#allocation3 + $0x30] sm:$0xff] %vm13730_vm15, %v2970_v40 }
 0x17d   : > { %2898 = vst.msk [vmem:[#allocation3 + $0x290] sm:$0xff] %vm14288_vm13, %v2866_v46  ;;  %5337 = vmatmul.mubr.bf16.gmra.mxu0 %v12883_v11  ;;  %v12933_v51 = vld [vmem:[%s13591_s10 + $0x694] ss:$8 sps:$4 sm:$0xff]   ;;  %v2913_v11 = vld [vmem:[#allocation2 + $0x28] sm:$0xee] }
 0x17e   : > { %5346 = vmatprep.mubr.bf16.mxu0 %v12887_v27  ;;  %5519 = vmatpush1.bf16.msra.mxu0 %v12889_v24  ;;  %v2911_v46 = vld [vmem:[#allocation2 + $0x138] sm:$0xee]  ;;  %v12913_v24 = vld [vmem:[#allocation3 + $0x250] ss:$56 sps:$4 sm:$0xff]  }
 0x17f   : > { %5428 = vmatpush2.bf16.msra.mxu1 %v12856_v50  ;;  %5520 = vmatprep.subr.bf16.mxu0 %v12898_v62  ;;  %v11391_v50 = vrot.slane %v2905_v29, 9  ;;  %v2914_v62 = vld [vmem:[#allocation2 + $0xf8] sm:$0x11]  ;;  %v2922_v29 = vld [vmem:[#allocation2 + $0xc0] sm:$0x11] }
 0x180   : > { %v12905_v0 = vld [vmem:[#allocation3 + $0x1ec] ss:$56 sps:$4 sm:$0xff]   ;;  %v3005_v25 = vrot.slane %v2922_v29, 5 }
 0x181   : > { %v2834_v47 = vpop.permute.xlu1 %2833  ;;  %v2974_v30 = vsel %vm14109_vm8, %v11391_v50, %v2973_v8 }
 0x182   : > { %5430 = vmatmul.mubr.bf16.vlgmr.msra.gmra.mxu1 %v12865_v53  ;;  %v2852_v10 = vrot.slane %v2834_v47, 4  ;;  %v2832_v19 = vpop.permute.xlu0 %2831  ;;  %5521 = vmatpush1.bf16.msra.mxu0 %v12896_v22  ;;  %v12920_v53 = vld [vmem:[#allocation3 + $0x2c4] ss:$56 sps:$4 sm:$0xff]   ;;  %3048 = vst.msk [vmem:[#allocation3 + $0x68] sm:$0xff] %vm13730_vm15, %v2974_v30  ;;  %v12907_v22 = vld [vmem:[#allocation3 + $0x1e8] ss:$56 sps:$4 sm:$0xff]  }
 0x183   : > { %5439 = vmatprep.mubr.bf16.mxu1 %v12872_v28  ;;  %v2851_v44 = vrot.slane %v2832_v19, 4  ;;  %5522 = vmatprep.subr.bf16.mxu0 %v12903_v59  ;;  %v12931_v28 = vld [vmem:[%s13591_s10 + $0x690] ss:$8 sps:$4 sm:$0xff]  }
 0x184   : > { %v2868_v31 = vsel %vm1663_vm12, %v2852_v10, %v2834_v47  ;;  %v2981_v47 = vrot.slane %v2910_v35, 5  ;;  %v2912_v10 = vld [vmem:[#allocation2 + $0x120] sm:$0x11]  ;;  %v12914_v4 = vld [vmem:[#allocation3 + $0x25c] ss:$56 sps:$4 sm:$0xff]  }
 0x185   : > { %2900 = vst.msk [vmem:[#allocation3 + $0x300] sm:$0xff] %vm14288_vm13, %v2868_v31  ;;  %v2867_v54 = vsel %vm1663_vm12, %v2851_v44, %v2832_v19  ;;  %5347 = vmatmul.mubr.bf16.gmra.mxu0 %v12892_v1  ;;  %v12940_v19 = vld [vmem:[%s13591_s10 + $0x684] ss:$8 sps:$4 sm:$0xff]   ;;  %v2978_v44 = vsel %vm14109_vm8, %v11392_v13, %v2977_v26  ;;  %v2925_v13 = vld [vmem:[#allocation2 + $0xf0] sm:$0xee]  ;;  %v11400_v26 = vrot.slane %v2923_v5, 9 }
 0x186   : > { %2899 = vst.msk [vmem:[#allocation3 + $0x2c8] sm:$0xff] %vm14288_vm13, %v2867_v54  ;;  %5356 = vmatprep.mubr.bf16.mxu0 %v12899_v9  ;;  %5523 = vmatpush1.bf16.msra.mxu0 %v12901_v3  ;;  %v2985_v54 = vrot.slane %v2912_v10, 5  ;;  %v2982_v1 = vsel %vm14109_vm8, %v11393_v49, %v2981_v47  ;;  %v11395_v9 = vrot.slane %v2913_v11, 9  ;;  %v2989_v3 = vrot.slane %v2914_v62, 5  ;;  %v2926_v35 = vld [vmem:[#allocation2 + $0xa8] sm:$0x11] }
 0x187   : > { %5524 = vmatprep.subr.bf16.mxu0 %v12912_v16  ;;  %3049 = vst.msk [vmem:[#allocation3 + $0xa0] sm:$0xff] %vm13730_vm15, %v2978_v44  ;;  %v2916_v16 = vld [vmem:[#allocation2 + $0x30] sm:$0x11]  ;;  %3050 = vst.msk [vmem:[#allocation3 + $0xd8] sm:$0xff] %vm13730_vm15, %v2982_v1  ;;  %v3009_v49 = vrot.slane %v2924_v23, 5  ;;  %v3013_v10 = vrot.slane %v2926_v35, 5 }
 0x188   : > { %v2927_v11 = vld [vmem:[#allocation2 + $0x108] sm:$0xee]  ;;  %v2929_v1 = vld [vmem:[#allocation2 + $0x78] sm:$0xee] }
 0x189   : > { %v3010_v47 = vsel %vm14109_vm8, %v11400_v26, %v3009_v49  ;;  %v12929_v44 = vld [vmem:[#allocation3 + $0x334] ss:$56 sps:$4 sm:$0xff]  }
 0x18a   : > { %5440 = vmatmul.mubr.bf16.gmra.mxu1 %v12874_v15  ;;  %5525 = vmatpush1.bf16.msra.mxu0 %v12910_v48  ;;  %v11394_v15 = vrot.slane %v2911_v46, 9  ;;  %v2918_v48 = vld [vmem:[#allocation2 + $0x10] sm:$0x11]  ;;  %3057 = vst.msk [vmem:[#allocation3 + $0x260] sm:$0xff] %vm13730_vm15, %v3010_v47 }
 0x18b   : > { %5449 = vmatprep.mubr.bf16.mxu1 %v12884_v12  ;;  %5534 = vmatprep.subr.bf16.mxu0 %v12919_v61  ;;  %v2915_v12 = vld [vmem:[#allocation2 + $0x80] sm:$0xee]  ;;  %v2993_v61 = vrot.slane %v2916_v16, 5  ;;  %v2997_v33 = vrot.slane %v2918_v48, 5 }
 0x18d   : > { %5357 = vmatmul.mubr.bf16.gmra.mxu0 %v12904_v36  ;;  %v12938_v36 = vld [vmem:[%s13591_s10 + $0x680] ss:$8 sps:$4 sm:$0xff]   ;;  %v12926_v16 = vld [vmem:[#allocation3 + $0x2cc] ss:$56 sps:$4 sm:$0xff]  }
 0x18e   : > { %5366 = vmatprep.mubr.bf16.mxu0 %v12908_v58  ;;  %5535 = vmatpush2.bf16.msra.mxu0 %v12917_v56  ;;  %v2990_v58 = vsel %vm14109_vm8, %v11395_v9, %v2989_v3  ;;  %v11397_v56 = vrot.slane %v2917_v17, 9  ;;  %v2930_v9 = vld [vmem:[#allocation2 + $0x130] sm:$0x11]  ;;  %v12944_v47 = vld [vmem:[#allocation3 + $0xa4] ss:$56 sps:$4 sm:$0xff]  }
 0x18f   : > { %5536 = vmatprep.subr.bf16.mxu0 %v12924_v7  ;;  %v2921_v7 = vld [vmem:[#allocation2 + $0xd8] sm:$0xee]  ;;  %3052 = vst.msk [vmem:[#allocation3 + $0x148] sm:$0xff] %vm13730_vm15, %v2990_v58 }
 0x190   : > { %v2836_v42 = vpop.permute.xlu0 %2835  ;;  %v2998_v34 = vsel %vm14109_vm8, %v11397_v56, %v2997_v33  ;;  %v11399_v8 = vrot.slane %v2921_v7, 9  ;;  %v12916_v3 = vld [vmem:[#allocation3 + $0x258] ss:$56 sps:$4 sm:$0xff]   ;;  %v2933_v7 = vld [vmem:[#allocation2 + $0xe8] sm:$0xee] }
 0x191   : > { %v2853_v39 = vrot.slane %v2836_v42, 4  ;;  %3054 = vst.msk [vmem:[#allocation3 + $0x1b8] sm:$0xff] %vm13730_vm15, %v2998_v34  ;;  %v2934_v34 = vld [vmem:[#allocation2 + $0x70] sm:$0x11] }
 0x192   : > { %5450 = vmatmul.mubr.bf16.gmra.mxu1 %v12886_v63  ;;  %5537 = vmatpush2.bf16.msra.mxu0 %v12922_v45 }
 0x193   : > { %v2869_v55 = vsel %vm1663_vm12, %v2853_v39, %v2836_v42  ;;  %5459 = vmatprep.mubr.bf16.mxu1 %v12893_v18  ;;  %5538 = vmatprep.subr.bf16.mxu0 %v12933_v51  ;;  %v2986_v42 = vsel %vm14109_vm8, %v11394_v15, %v2985_v54  ;;  %v11396_v39 = vrot.slane %v2915_v12, 9  ;;  %v11402_v15 = vrot.slane %v2927_v11, 9 }
 0x194   : > { %2901 = vst.msk [vmem:[#allocation3 + $0x338] sm:$0xff] %vm14288_vm13, %v2869_v55  ;;  %v4979_v57 = vpop.f32.mrf.mxu1  ;;  %v2919_v55 = vld [vmem:[#allocation2 + $0x18] sm:$0xee] }
 0x195   : > { %3051 = vst.msk [vmem:[#allocation3 + $0x110] sm:$0xff] %vm13730_vm15, %v2986_v42  ;;  %5367 = vmatmul.mubr.bf16.gmra.mxu0 %v12913_v24  ;;  %v2994_v20 = vsel %vm14109_vm8, %v11396_v39, %v2993_v61  ;;  %v11398_v51 = vrot.slane %v2919_v55, 9  ;;  %v2928_v24 = vld [vmem:[#allocation2 + $0xd0] sm:$0x11]  ;;  %v11403_v39 = vrot.slane %v2929_v1, 9  ;;  %v3021_v61 = vrot.slane %v2930_v9, 5 }
 0x196   : > { %v4981_v59 = vpop.f32.mrf.mxu1  ;;  %5376 = vmatprep.mubr.bf16.mxu0 %v12920_v53  ;;  %5539 = vmatpush2.bf16.msra.mxu0 %v12931_v28  ;;  %3053 = vst.msk [vmem:[#allocation3 + $0x180] sm:$0xff] %vm13730_vm15, %v2994_v20  ;;  %v3006_v53 = vsel %vm14109_vm8, %v11399_v8, %v3005_v25  ;;  %v11401_v28 = vrot.slane %v2925_v13, 9  ;;  %v2931_v55 = vld [vmem:[#allocation2 + $0x60] sm:$0xee]  ;;  %v12941_v20 = vld [vmem:[#allocation3 + $0x34] ss:$56 sps:$4 sm:$0xff]  }
 0x197   : > { %5540 = vmatprep.subr.bf16.mxu0 %v12940_v19  ;;  %3056 = vst.msk [vmem:[#allocation3 + $0x228] sm:$0xff] %vm13730_vm15, %v3006_v53  ;;  %v11404_v58 = vrot.slane %v2931_v55, 9  ;;  %v3022_v33 = vsel %vm14109_vm8, %v11403_v39, %v3021_v61  ;;  %v11405_v8 = vrot.slane %v2933_v7, 9  ;;  %v3029_v13 = vrot.slane %v2934_v34, 5 }
 0x198   : > { %3060 = vst.msk [vmem:[#allocation3 + $0x308] sm:$0xff] %vm13730_vm15, %v3022_v33 }
 0x199   : > { %v4866_v32 = vpop.f32.mrf.mxu0 }
 0x19a   : > { %5460 = vmatmul.mubr.bf16.gmra.mxu1 %v12895_v52  ;;  %v15071_v27 = vadd.f32 %v4979_v57, %v4866_v32  ;;  %v4983_v52 = vpop.f32.mrf.mxu1  ;;  %5541 = vmatpush2.bf16.msra.mxu0 %v12938_v36 }
 0x19b   : > { %5469 = vmatprep.mubr.bf16.mxu1 %v12905_v0  ;;  %v4868_v31 = vpop.f32.mrf.mxu0  ;;  %v2920_v0 = vld [vmem:[#allocation2 + $0xc8] sm:$0x11] }
 0x19c   : > { %v15079_v63 = vadd.f32 %v4981_v59, %v4868_v31  ;;  %v3001_v41 = vrot.slane %v2920_v0, 5  ;;  %v15098_v50 = vpop.f32.mrf.mxu1  ;;  %v12925_v31 = vld [vmem:[#allocation3 + $0x2c0] ss:$56 sps:$4 sm:$0xff]   ;;  %v3014_v59 = vsel %vm14109_vm8, %v11401_v28, %v3013_v10  ;;  %v12949_v39 = vld [vmem:[#allocation3 + $0x110] ss:$56 sps:$4 sm:$0xff]  }
 0x19d   : > { %v4870_v18 = vpop.f32.mrf.mxu0  ;;  %3058 = vst.msk [vmem:[#allocation3 + $0x298] sm:$0xff] %vm13730_vm15, %v3014_v59  ;;  %5377 = vmatmul.mubr.bf16.gmra.mxu0 %v12925_v31  ;;  %v2932_v0 = vld [vmem:[#allocation2 + $0x118] sm:$0x11] }
 0x19e   : > { %v15090_v2 = vadd.f32 %v4983_v52, %v4870_v18  ;;  %v3002_v32 = vsel %vm14109_vm8, %v11398_v51, %v3001_v41  ;;  %v4989_v46 = vpop.f32.mrf.mxu1  ;;  %5386 = vmatprep.mubr.bf16.mxu0 %v12929_v44  ;;  %v3025_v51 = vrot.slane %v2932_v0, 5  ;;  %v12952_v34 = vld [vmem:[#allocation3 + $0x180] ss:$56 sps:$4 sm:$0xff]  }
 0x19f   : > { %v15092_v45 = vpop.f32.mrf.mxu0  ;;  %3055 = vst.msk [vmem:[#allocation3 + $0x1f0] sm:$0xff] %vm13730_vm15, %v3002_v32  ;;  %v12934_v32 = vld [vmem:[#allocation3 + $0x330] ss:$56 sps:$4 sm:$0xff]  }
 0x1a0   : > { %v4991_v62 = vpop.f32.mrf.mxu1  ;;  %v3026_v23 = vsel %vm14109_vm8, %v11404_v58, %v3025_v51 }
 0x1a1   : > { %v4876_v40 = vpop.f32.mrf.mxu0  ;;  %3061 = vst.msk [vmem:[#allocation3 + $0x340] sm:$0xff] %vm13730_vm15, %v3026_v23 }
 0x1a2   : > { %5470 = vmatmul.mubr.bf16.gmra.mxu1 %v12907_v22  ;;  %v15112_v30 = vadd.f32 %v4989_v46, %v4876_v40  ;;  %v4993_v17 = vpop.f32.mrf.mxu1  ;;  %v12928_v40 = vld [vmem:[#allocation3 + $0x2c8] ss:$56 sps:$4 sm:$0xff]   ;;  %v3030_v46 = vsel %vm14109_vm8, %v11405_v8, %v3029_v13 }
 0x1a3   : > { %5479 = vmatprep.mubr.bf16.mxu1 %v12914_v4  ;;  %v4878_v57 = vpop.f32.mrf.mxu0  ;;  %v3017_v4 = vrot.slane %v2928_v24, 5  ;;  %3062 = vst.msk [vmem:[#allocation3 + $0x378] sm:$0xff] %vm13730_vm15, %v3030_v46 }
 0x1a4   : > { %v15120_v12 = vadd.f32 %v4991_v62, %v4878_v57  ;;  %v15133_v36 = vpop.f32.mrf.mxu1  ;;  %v12943_v57 = vld [vmem:[#allocation3 + $0x30] ss:$56 sps:$4 sm:$0xff]  }
 0x1a5   : > { %v2838_v19 = vpop.permute.xlu1 %2837  ;;  %v4880_v22 = vpop.f32.mrf.mxu0  ;;  %v3018_v52 = vsel %vm14109_vm8, %v11402_v15, %v3017_v4  ;;  %5387 = vmatmul.mubr.bf16.gmra.mxu0 %v12934_v32  ;;  %v12946_v15 = vld [vmem:[#allocation3 + $0xa0] ss:$56 sps:$4 sm:$0xff]  }
 0x1a6   : > { %v2854_v54 = vrot.slane %v2838_v19, 4  ;;  %v15127_v42 = vadd.f32 %v4993_v17, %v4880_v22  ;;  %3059 = vst.msk [vmem:[#allocation3 + $0x2d0] sm:$0xff] %vm13730_vm15, %v3018_v52  ;;  %v4999_v29 = vpop.f32.mrf.mxu1  ;;  %11734 = vmatprep.mubr.msk.bf16.mxu0 %vm1663_vm12, %v12941_v20  ;;  %v12947_v22 = vld [vmem:[#allocation3 + $0x114] ss:$56 sps:$4 sm:$0xff]   ;;  %v12950_v52 = vld [vmem:[#allocation3 + $0x184] ss:$56 sps:$4 sm:$0xff]  }
 0x1a7   : > { %v15129_v48 = vpop.f32.mrf.mxu0  ;;  %v12953_v23 = vld [vmem:[#allocation3 + $0x1f4] ss:$56 sps:$4 sm:$0xff]  }
 0x1a8   : > { %v2870_v18 = vsel %vm1663_vm12, %v2854_v54, %v2838_v19  ;;  %v5001_v25 = vpop.f32.mrf.mxu1 }
 0x1a9   : > { %2902 = vst.msk [vmem:[#allocation3 + $0x370] sm:$0xff] %vm14288_vm13, %v2870_v18  ;;  %v4886_v56 = vpop.f32.mrf.mxu0 }
 0x1aa   : > { %5480 = vmatmul.mubr.bf16.gmra.mxu1 %v12916_v3  ;;  %v15143_v41 = vadd.f32 %v4999_v29, %v4886_v56  ;;  %v5003_v49 = vpop.f32.mrf.mxu1 }
 0x1ab   : > { %5489 = vmatprep.mubr.bf16.mxu1 %v12926_v16  ;;  %v4888_v5 = vpop.f32.mrf.mxu0 }
 0x1ac   : > { %v15147_v35 = vadd.f32 %v5001_v25, %v4888_v5  ;;  %v15160_v11 = vpop.f32.mrf.mxu1 }
 0x1ad   : > { %v4890_v26 = vpop.f32.mrf.mxu0  ;;  %5543 = vmatmul.mubr.bf16.vlgmr.msra.gmra.mxu0 %v12943_v57 }
 0x1ae   : > { %v15153_v28 = vadd.f32 %v5003_v49, %v4890_v26  ;;  %11735 = vmatprep.mubr.msk.bf16.mxu0 %vm1663_vm12, %v12944_v47 }
 0x1af   : > { %v15158_v10 = vpop.f32.mrf.mxu0 }
 0x1b0   : > { %v12935_v53 = vld [vmem:[#allocation3 + $0x33c] ss:$56 sps:$4 sm:$0xff]   ;;  %v12937_v24 = vld [vmem:[#allocation3 + $0x338] ss:$56 sps:$4 sm:$0xff]  }
 0x1b2   : > { %5490 = vmatmul.mubr.bf16.gmra.mxu1 %v12928_v40 }
 0x1b3   : > { %5499 = vmatprep.mubr.bf16.mxu1 %v12935_v53 }
 0x1b5   : > { %5553 = vmatmul.mubr.bf16.gmra.mxu0 %v12946_v15 }
 0x1b6   : > { %v4896_v19 = vpop.f32.mrf.mxu0  ;;  %v5009_v31 = vpop.f32.mrf.mxu1  ;;  %11736 = vmatprep.mubr.msk.bf16.mxu0 %vm1663_vm12, %v12947_v22 }
 0x1b7   : > { %v15163_v44 = vadd.f32 %v5009_v31, %v4896_v19 }
 0x1b8   : > { %v4898_v62 = vpop.f32.mrf.mxu0  ;;  %v5011_v54 = vpop.f32.mrf.mxu1 }
 0x1b9   : > { %v15165_v59 = vadd.f32 %v5011_v54, %v4898_v62  ;;  %v12956_v62 = vld [vmem:[#allocation3 + $0x264] ss:$56 sps:$4 sm:$0xff]  }
 0x1ba   : > { %5500 = vmatmul.mubr.bf16.gmra.mxu1 %v12937_v24  ;;  %v4900_v1 = vpop.f32.mrf.mxu0  ;;  %v5013_v9 = vpop.f32.mrf.mxu1  ;;  %v12955_v24 = vld [vmem:[#allocation3 + $0x1f0] ss:$56 sps:$4 sm:$0xff]  }
 0x1bb   : > { %v15167_v3 = vadd.f32 %v5013_v9, %v4900_v1 }
 0x1bc   : > { %v15169_v16 = vpop.f32.mrf.mxu0  ;;  %v15171_v17 = vpop.f32.mrf.mxu1 }
 0x1bd   : > { %5563 = vmatmul.mubr.bf16.gmra.mxu0 %v12949_v39 }
 0x1be   : > { %11737 = vmatprep.mubr.msk.bf16.mxu0 %vm1663_vm12, %v12950_v52 }
 0x1c0   : > { %v4906_v4 = vpop.f32.mrf.mxu0 }
 0x1c1   : > { %v5019_v18 = vpop.f32.mrf.mxu1 }
 0x1c2   : > { %v15174_v61 = vadd.f32 %v5019_v18, %v4906_v4  ;;  %v4908_v55 = vpop.f32.mrf.mxu0  ;;  %v12958_v4 = vld [vmem:[#allocation3 + $0x260] ss:$56 sps:$4 sm:$0xff]   ;;  %v12959_v18 = vld [vmem:[#allocation3 + $0x2d4] ss:$56 sps:$4 sm:$0xff]  }
 0x1c3   : > { %v5021_v58 = vpop.f32.mrf.mxu1 }
 0x1c4   : > { %v15176_v56 = vadd.f32 %v5021_v58, %v4908_v55  ;;  %v4910_v33 = vpop.f32.mrf.mxu0 }
 0x1c5   : > { %v5023_v0 = vpop.f32.mrf.mxu1  ;;  %5573 = vmatmul.mubr.bf16.gmra.mxu0 %v12952_v34  ;;  %v12962_v34 = vld [vmem:[#allocation3 + $0x344] ss:$56 sps:$4 sm:$0xff]  }
 0x1c6   : > { %v15178_v7 = vadd.f32 %v5023_v0, %v4910_v33  ;;  %v15180_v20 = vpop.f32.mrf.mxu0  ;;  %11738 = vmatprep.mubr.msk.bf16.mxu0 %vm1663_vm12, %v12953_v23 }
 0x1c7   : > { %v15182_v29 = vpop.f32.mrf.mxu1 }
 0x1c8   : > { %v4916_v51 = vpop.f32.mrf.mxu0 }
 0x1c9   : > { %v5029_v5 = vpop.f32.mrf.mxu1 }
 0x1ca   : > { %v15185_v8 = vadd.f32 %v5029_v5, %v4916_v51  ;;  %v4918_v25 = vpop.f32.mrf.mxu0  ;;  %v12961_v51 = vld [vmem:[#allocation3 + $0x2d0] ss:$56 sps:$4 sm:$0xff]  }
 0x1cb   : > { %v5031_v13 = vpop.f32.mrf.mxu1 }
 0x1cc   : > { %v15187_v40 = vadd.f32 %v5031_v13, %v4918_v25  ;;  %v4920_v32 = vpop.f32.mrf.mxu0 }
 0x1cd   : > { %v5033_v26 = vpop.f32.mrf.mxu1  ;;  %5583 = vmatmul.mubr.bf16.gmra.mxu0 %v12955_v24 }
 0x1ce   : > { %v15189_v49 = vadd.f32 %v5033_v26, %v4920_v32  ;;  %v15191_v46 = vpop.f32.mrf.mxu0  ;;  %11739 = vmatprep.mubr.msk.bf16.mxu0 %vm1663_vm12, %v12956_v62 }
 0x1cf   : > { %v15193_v53 = vpop.f32.mrf.mxu1 }
 0x1d1   : > { %v4926_v57 = vpop.f32.mrf.mxu0  ;;  %v5039_v47 = vpop.f32.mrf.mxu1 }
 0x1d2   : > { %v15196_v19 = vadd.f32 %v5039_v47, %v4926_v57 }
 0x1d3   : > { %v4928_v31 = vpop.f32.mrf.mxu0  ;;  %v5041_v15 = vpop.f32.mrf.mxu1 }
 0x1d4   : > { %v15198_v54 = vadd.f32 %v5041_v15, %v4928_v31  ;;  %v12964_v31 = vld [vmem:[#allocation3 + $0x340] ss:$56 sps:$4 sm:$0xff]  }
 0x1d5   : > { %v4930_v22 = vpop.f32.mrf.mxu0  ;;  %v5043_v1 = vpop.f32.mrf.mxu1  ;;  %5593 = vmatmul.mubr.bf16.gmra.mxu0 %v12958_v4 }
 0x1d6   : > { %v15200_v9 = vadd.f32 %v5043_v1, %v4930_v22  ;;  %11740 = vmatprep.mubr.msk.bf16.mxu0 %vm1663_vm12, %v12959_v18 }
 0x1d7   : > { %v15203_v39 = vpop.f32.mrf.mxu0  ;;  %v15205_v55 = vpop.f32.mrf.mxu1 }
 0x1dd   : > { %5603 = vmatmul.mubr.bf16.gmra.mxu0 %v12961_v51 }
 0x1de   : > { %11741 = vmatprep.mubr.msk.bf16.mxu0 %vm1663_vm12, %v12962_v34 }
 0x1df   : > { %v4936_v52 = vpop.f32.mrf.mxu0 }
 0x1e0   : > { %v5049_v58 = vpop.f32.mrf.mxu1 }
 0x1e1   : > { %v15208_v33 = vadd.f32 %v5049_v58, %v4936_v52  ;;  %v4938_v0 = vpop.f32.mrf.mxu0 }
 0x1e2   : > { %v5051_v5 = vpop.f32.mrf.mxu1 }
 0x1e3   : > { %v15210_v25 = vadd.f32 %v5051_v5, %v4938_v0  ;;  %v4940_v23 = vpop.f32.mrf.mxu0 }
 0x1e4   : > { %v5053_v13 = vpop.f32.mrf.mxu1 }
 0x1e5   : > { %v15212_v32 = vadd.f32 %v5053_v13, %v4940_v23  ;;  %v15214_v26 = vpop.f32.mrf.mxu0  ;;  %5613 = vmatmul.mubr.bf16.gmra.mxu0 %v12964_v31 }
 0x1e6   : > { %v15244_v13 = vpop.f32.mrf.mxu1 }
 0x1e7   : > { %v5092_v57 = vpop.f32.mrf.mxu0 }
 0x1e8   : > { %v15217_v47 = vadd.f32 %v5092_v57, %v15071_v27 }
 0x1e9   : > { %v5094_v24 = vpop.f32.mrf.mxu0 }
 0x1ea   : > { %v15221_v62 = vadd.f32 %v5094_v24, %v15079_v63 }
 0x1eb   : > { %v5096_v15 = vpop.f32.mrf.mxu0 }
 0x1ec   : > { %v15224_v22 = vadd.f32 %v5096_v15, %v15090_v2 }
 0x1ed   : > { %v15226_v1 = vpop.f32.mrf.mxu0 }
 0x1ef   : > { %v5102_v4 = vpop.f32.mrf.mxu0 }
 0x1f0   : > { %v15229_v18 = vadd.f32 %v5102_v4, %v15112_v30 }
 0x1f1   : > { %v5104_v27 = vpop.f32.mrf.mxu0 }
 0x1f2   : > { %v15232_v52 = vadd.f32 %v5104_v27, %v15120_v12 }
 0x1f3   : > { %v5106_v58 = vpop.f32.mrf.mxu0 }
 0x1f4   : > { %v15235_v0 = vadd.f32 %v5106_v58, %v15127_v42 }
 0x1f5   : > { %v15237_v63 = vpop.f32.mrf.mxu0 }
 0x1f7   : > { %v5112_v51 = vpop.f32.mrf.mxu0 }
 0x1f8   : > { %v5113_v2 = vadd.f32 %v5112_v51, %v15143_v41 }
 0x1f9   : > { %v5114_v5 = vpop.f32.mrf.mxu0 }
 0x1fa   : > { %v15241_v34 = vadd.f32 %v5114_v5, %v15147_v35 }
 0x1fb   : > { %v5116_v23 = vpop.f32.mrf.mxu0 }
 0x1fc   : > { %18106 = vst [vmem:[#allocation14_spill] sm:$0xff] %v15241_v34  ;;  %v5117_v30 = vadd.f32 %v5116_v23, %v15153_v28 }
 0x1fd   : > { %v15246_v12 = vpop.f32.mrf.mxu0 }
 0x1ff   : > { %v5122_v24 = vpop.f32.mrf.mxu0 }
 0x200   : > { %v5123_v41 = vadd.f32 %v5122_v24, %v15163_v44 }
 0x201   : > { %v5124_v15 = vpop.f32.mrf.mxu0 }
 0x202   : > { %v15248_v57 = vpop.f32.mrf.mxu1  ;;  %v15258_v35 = vadd.f32 %v5124_v15, %v15165_v59 }
 0x203   : > { %v5126_v28 = vpop.f32.mrf.mxu0 }
 0x204   : > { %v15250_v42 = vpop.f32.mrf.mxu1  ;;  %18107 = vst [vmem:[#allocation15_spill] sm:$0xff] %v15258_v35  ;;  %v15263_v58 = vadd.f32 %v5126_v28, %v15167_v3 }
 0x205   : > { %v15267_v5 = vpop.f32.mrf.mxu0 }
 0x206   : > { %v15252_v31 = vpop.f32.mrf.mxu1  ;;  %18108 = vst [vmem:[#allocation16_spill] sm:$0xff] %v15263_v58 }
 0x208   : > { %v15255_v4 = vpop.f32.mrf.mxu1 }
 0x20a   : > { %v15260_v27 = vpop.f32.mrf.mxu1 }
 0x20c   : > { %v15265_v51 = vpop.f32.mrf.mxu1  ;;  %v5132_v44 = vpop.f32.mrf.mxu0 }
 0x20d   : > { %v5133_v38 = vadd.f32 %v5132_v44, %v15174_v61 }
 0x20e   : > { %v15269_v23 = vpop.f32.mrf.mxu1  ;;  %v5134_v15 = vpop.f32.mrf.mxu0 }
 0x20f   : > { %v5135_v3 = vadd.f32 %v5134_v15, %v15176_v56 }
 0x210   : > { %v15271_v14 = vpop.f32.mrf.mxu1  ;;  %v5136_v28 = vpop.f32.mrf.mxu0 }
 0x211   : > { %v5137_v21 = vadd.f32 %v5136_v28, %v15178_v7 }
 0x212   : > { %v5225_v24 = vpop.f32.mrf.mxu1  ;;  %v15284_v58 = vpop.f32.mrf.mxu0 }
 0x213   : > { %v15274_v59 = vadd.f32 %v5225_v24, %v5113_v2 }
 0x214   : > { %v15276_v6 = vpop.f32.mrf.mxu1 }
 0x215   : > { %18109 = vst [vmem:[#allocation17_spill] sm:$0xff] %v15276_v6  ;;  %v5142_v2 = vpop.f32.mrf.mxu0 }
 0x216   : > { %v5229_v60 = vpop.f32.mrf.mxu1  ;;  %v5143_v44 = vadd.f32 %v5142_v2, %v15185_v8 }
 0x217   : > { %v15280_v43 = vadd.f32 %v5229_v60, %v5117_v30  ;;  %v5144_v56 = vpop.f32.mrf.mxu0 }
 0x218   : > { %v15282_v37 = vpop.f32.mrf.mxu1  ;;  %v15294_v15 = vadd.f32 %v5144_v56, %v15187_v40 }
 0x219   : > { %18110 = vst [vmem:[#allocation18_spill] sm:$0xff] %v15282_v37  ;;  %v5146_v7 = vpop.f32.mrf.mxu0 }
 0x21a   : > { %v5235_v35 = vpop.f32.mrf.mxu1  ;;  %18113 = vst [vmem:[#allocation21_spill] sm:$0xff] %v15294_v15  ;;  %v5147_v30 = vadd.f32 %v5146_v7, %v15189_v49 }
 0x21b   : > { %v15286_v34 = vadd.f32 %v5235_v35, %v5123_v41  ;;  %v15299_v37 = vpop.f32.mrf.mxu0 }
 0x21c   : > { %v15288_v61 = vpop.f32.mrf.mxu1  ;;  %18115 = vst [vmem:[#allocation23_spill] sm:$0xff] %v15299_v37 }
 0x21d   : > { %18111 = vst [vmem:[#allocation19_spill] sm:$0xff] %v15288_v61  ;;  %v5152_v8 = vpop.f32.mrf.mxu0 }
 0x21e   : > { %v15291_v24 = vpop.f32.mrf.mxu1 }
 0x21f   : > { %18112 = vst [vmem:[#allocation20_spill] sm:$0xff] %v15291_v24  ;;  %v5153_v24 = vadd.f32 %v5152_v8, %v15196_v19  ;;  %v5154_v40 = vpop.f32.mrf.mxu0 }
 0x220   : > { %v15296_v60 = vpop.f32.mrf.mxu1  ;;  %v5155_v15 = vadd.f32 %v5154_v40, %v15198_v54 }
 0x221   : > { %18114 = vst [vmem:[#allocation22_spill] sm:$0xff] %v15296_v60  ;;  %v5156_v49 = vpop.f32.mrf.mxu0 }
 0x222   : > { %v5245_v28 = vpop.f32.mrf.mxu1  ;;  %v5157_v60 = vadd.f32 %v5156_v49, %v15200_v9 }
 0x223   : > { %v15301_v41 = vadd.f32 %v5245_v28, %v5133_v38  ;;  %v15314_v28 = vpop.f32.mrf.mxu0 }
 0x224   : > { %v5247_v35 = vpop.f32.mrf.mxu1  ;;  %18117 = vst [vmem:[#allocation25_spill] sm:$0xff] %v15314_v28 }
 0x225   : > { %v15303_v61 = vadd.f32 %v5247_v35, %v5135_v3  ;;  %v5162_v35 = vpop.f32.mrf.mxu0 }
 0x226   : > { %v5249_v2 = vpop.f32.mrf.mxu1 }
 0x227   : > { %v15306_v6 = vadd.f32 %v5249_v2, %v5137_v21  ;;  %v5163_v21 = vadd.f32 %v5162_v35, %v15208_v33  ;;  %v5164_v8 = vpop.f32.mrf.mxu0 }
 0x228   : > { %v15308_v56 = vpop.f32.mrf.mxu1  ;;  %v5165_v54 = vadd.f32 %v5164_v8, %v15210_v25 }
 0x229   : > { %18116 = vst [vmem:[#allocation24_spill] sm:$0xff] %v15308_v56  ;;  %v5166_v40 = vpop.f32.mrf.mxu0 }
 0x22a   : > { %v5255_v7 = vpop.f32.mrf.mxu1  ;;  %v5167_v9 = vadd.f32 %v5166_v40, %v15212_v32 }
 0x22b   : > { %v15312_v38 = vadd.f32 %v5255_v7, %v5143_v44  ;;  %v15327_v49 = vpop.f32.mrf.mxu0 }
 0x22c   : > { %v15316_v3 = vpop.f32.mrf.mxu1 }
 0x22d   : > { %18118 = vst [vmem:[#allocation26_spill] sm:$0xff] %v15316_v3 }
 0x22e   : > { %v5259_v37 = vpop.f32.mrf.mxu1 }
 0x22f   : > { %v15319_v19 = vadd.f32 %v5259_v37, %v5147_v30  ;;  %v15333_v37 = vpop.f32.mrf.mxu0 }
 0x230   : > { %v15321_v2 = vpop.f32.mrf.mxu1 }
 0x231   : > { %18119 = vst [vmem:[#allocation27_spill] sm:$0xff] %v15321_v2  ;;  %v15337_v35 = vpop.f32.mrf.mxu0 }
 0x232   : > { %v5265_v56 = vpop.f32.mrf.mxu1 }
 0x233   : > { %v15325_v44 = vadd.f32 %v5265_v56, %v5153_v24  ;;  %v15341_v32 = vpop.f32.mrf.mxu0 }
 0x234   : > { %v5267_v7 = vpop.f32.mrf.mxu1  ;;  %18121 = vst [vmem:[#allocation29_spill] sm:$0xff] %v15341_v32 }
 0x235   : > { %v15329_v3 = vadd.f32 %v5267_v7, %v5155_v15  ;;  %v15345_v40 = vpop.f32.mrf.mxu0 }
 0x236   : > { %v5269_v28 = vpop.f32.mrf.mxu1  ;;  %18122 = vst [vmem:[#allocation30_spill] sm:$0xff] %v15345_v40 }
 0x237   : > { %v15331_v33 = vadd.f32 %v5269_v28, %v5157_v60  ;;  %v15349_v60 = vpop.f32.mrf.mxu0 }
 0x238   : > { %v15335_v30 = vpop.f32.mrf.mxu1 }
 0x239   : > { %18120 = vst [vmem:[#allocation28_spill] sm:$0xff] %v15335_v30  ;;  %v15353_v30 = vpop.f32.mrf.mxu0 }
 0x23a   : > { %v5275_v25 = vpop.f32.mrf.mxu1  ;;  %18125 = vst [vmem:[#allocation33_spill] sm:$0xff] %v15353_v30 }
 0x23b   : > { %v15339_v8 = vadd.f32 %v5275_v25, %v5163_v21  ;;  %v15357_v21 = vpop.f32.mrf.mxu0 }
 0x23c   : > { %v5277_v24 = vpop.f32.mrf.mxu1  ;;  %18127 = vst [vmem:[#allocation35_spill] sm:$0xff] %v15357_v21 }
 0x23d   : > { %v15343_v56 = vadd.f32 %v5277_v24, %v5165_v54  ;;  %v15361_v32 = vpop.f32.mrf.mxu0 }
 0x23e   : > { %v5279_v15 = vpop.f32.mrf.mxu1  ;;  %18129 = vst [vmem:[#allocation37_spill] sm:$0xff] %v15361_v32 }
 0x23f   : > { %v15347_v7 = vadd.f32 %v5279_v15, %v5167_v9  ;;  %v5338_v24 = vpop.f32.mrf.mxu0 }
 0x240   : > { %v15351_v28 = vpop.f32.mrf.mxu1  ;;  %v15368_v9 = vadd.f32 %v5338_v24, %v15274_v59 }
 0x241   : > { %18123 = vst [vmem:[#allocation31_spill] sm:$0xff] %v15347_v7  ;;  %18124 = vst [vmem:[#allocation32_spill] sm:$0xff] %v15351_v28  ;;  %v15370_v15 = vpop.f32.mrf.mxu0 }
 0x242   : > { %v15355_v2 = vpop.f32.mrf.mxu1  ;;  %18131 = vst [vmem:[#allocation39_spill] sm:$0xff] %v15368_v9 }
 0x243   : > { %18126 = vst [vmem:[#allocation34_spill] sm:$0xff] %v15355_v2  ;;  %v5342_v7 = vpop.f32.mrf.mxu0 }
 0x244   : > { %v15359_v25 = vpop.f32.mrf.mxu1  ;;  %v15377_v21 = vadd.f32 %v5342_v7, %v15280_v43 }
 0x245   : > { %18128 = vst [vmem:[#allocation36_spill] sm:$0xff] %v15359_v25  ;;  %v15379_v25 = vpop.f32.mrf.mxu0 }
 0x246   : > { %v15363_v54 = vpop.f32.mrf.mxu1  ;;  %18134 = vst [vmem:[#allocation42_spill] sm:$0xff] %v15377_v21 }
 0x247   : > { %18130 = vst [vmem:[#allocation38_spill] sm:$0xff] %v15363_v54  ;;  %v5348_v54 = vpop.f32.mrf.mxu0 }
 0x248   : > { %v15365_v40 = vpop.f32.mrf.mxu1  ;;  %v15386_v59 = vadd.f32 %v5348_v54, %v15286_v34 }
 0x249   : > { %v15388_v24 = vpop.f32.mrf.mxu0 }
 0x24a   : > { %v15372_v28 = vpop.f32.mrf.mxu1  ;;  %18137 = vst [vmem:[#allocation45_spill] sm:$0xff] %v15386_v59  ;;  %18138 = vst [vmem:[#allocation46_spill] sm:$0xff] %v15388_v24 }
 0x24b   : > { %18132 = vst [vmem:[#allocation40_spill] sm:$0xff] %v15372_v28  ;;  %v15392_v28 = vpop.f32.mrf.mxu0 }
 0x24c   : > { %v15374_v2 = vpop.f32.mrf.mxu1  ;;  %18140 = vst [vmem:[#allocation48_spill] sm:$0xff] %v15392_v28 }
 0x24d   : > { %18133 = vst [vmem:[#allocation41_spill] sm:$0xff] %v15374_v2  ;;  %v15396_v43 = vpop.f32.mrf.mxu0 }
 0x24e   : > { %v15381_v32 = vpop.f32.mrf.mxu1  ;;  %18142 = vst [vmem:[#allocation50_spill] sm:$0xff] %v15396_v43 }
 0x24f   : > { %18135 = vst [vmem:[#allocation43_spill] sm:$0xff] %v15381_v32  ;;  %v5358_v21 = vpop.f32.mrf.mxu0 }
 0x250   : > { %v15383_v30 = vpop.f32.mrf.mxu1 }
 0x251   : > { %18136 = vst [vmem:[#allocation44_spill] sm:$0xff] %v15383_v30  ;;  %v15403_v30 = vadd.f32 %v5358_v21, %v15301_v41  ;;  %v5360_v34 = vpop.f32.mrf.mxu0  ;;  %v5624_v21 = vlaneseq }
 0x252   : > { %v15390_v9 = vpop.f32.mrf.mxu1  ;;  %v15408_v59 = vadd.f32 %v5360_v34, %v15303_v61 }
 0x253   : > { %18139 = vst [vmem:[#allocation47_spill] sm:$0xff] %v15390_v9  ;;  %18145 = vst [vmem:[#allocation53_spill] sm:$0xff] %v15403_v30  ;;  %v5362_v9 = vpop.f32.mrf.mxu0 }
 0x254   : > { %v15394_v2 = vpop.f32.mrf.mxu1  ;;  %18146 = vst [vmem:[#allocation54_spill] sm:$0xff] %v15408_v59 }
 0x255   : > { %18141 = vst [vmem:[#allocation49_spill] sm:$0xff] %v15394_v2  ;;  %v15413_v2 = vadd.f32 %v5362_v9, %v15306_v6  ;;  %v15415_v43 = vpop.f32.mrf.mxu0  ;;  %v5625_v9 = vshrl.u32 %v5624_v21, 7  ;;  %v1319_v21 = vld [vmem:[%s13581_s28] sm:$0x3] }
 0x256   : > { %v15398_v7 = vpop.f32.mrf.mxu1 }
 0x257   : > { %18143 = vst [vmem:[#allocation51_spill] sm:$0xff] %v15398_v7  ;;  %18147 = vst [vmem:[#allocation55_spill] sm:$0xff] %v15413_v2 }
 0x258   : > { %v15400_v32 = vpop.f32.mrf.mxu1 }
 0x259   : > { %18144 = vst [vmem:[#allocation52_spill] sm:$0xff] %v15400_v32  ;;  %v5368_v32 = vpop.f32.mrf.mxu0 }
 0x25a   : > { %v15405_v54 = vpop.f32.mrf.mxu1  ;;  %v15422_v41 = vadd.f32 %v5368_v32, %v15312_v38  ;;  %v4986_v32 = vadd.f32 %v15098_v50, %v15092_v45  ;;  %v5016_v45 = vadd.f32 %v15171_v17, %v15169_v16 }
 0x25b   : > { %v15424_v61 = vpop.f32.mrf.mxu0 }
 0x25c   : > { %v15410_v28 = vpop.f32.mrf.mxu1  ;;  %18149 = vst [vmem:[#allocation57_spill] sm:$0xff] %v15422_v41  ;;  %18150 = vst [vmem:[#allocation58_spill] sm:$0xff] %v15424_v61  ;;  %v5099_v50 = vadd.f32 %v15226_v1, %v4986_v32 }
 0x25d   : > { %v5372_v59 = vpop.f32.mrf.mxu0 }
 0x25e   : > { %v15417_v7 = vpop.f32.mrf.mxu1  ;;  %v15431_v6 = vadd.f32 %v5372_v59, %v15319_v19  ;;  %v4996_v19 = vadd.f32 %v15133_v36, %v15129_v48  ;;  %v5026_v48 = vadd.f32 %v15182_v29, %v15180_v20  ;;  %v5036_v36 = vadd.f32 %v15193_v53, %v15191_v46 }
 0x25f   : > { %v15433_v2 = vpop.f32.mrf.mxu0  ;;  %v5206_v29 = vadd.f32 %v15248_v57, %v15217_v47  ;;  %v5216_v47 = vadd.f32 %v15260_v27, %v15229_v18  ;;  %v5218_v57 = vadd.f32 %v15265_v51, %v15232_v52  ;;  %v18160_v52 = vld [vmem:[#allocation15_spill] sm:$0xff] }
 0x260   : > { %v15419_v24 = vpop.f32.mrf.mxu1  ;;  %18152 = vst [vmem:[#allocation60_spill] sm:$0xff] %v15431_v6  ;;  %v15449_v6 = vsub.s32 1, %v5625_v9  ;;  %v5109_v17 = vadd.f32 %v15237_v63, %v4996_v19  ;;  %v5210_v63 = vadd.f32 %v15252_v31, %v15224_v22  ;;  %v18157_v31 = vld [vmem:[#allocation14_spill] sm:$0xff]  ;;  %v18161_v51 = vld [vmem:[#allocation19_spill] sm:$0xff] }
 0x261   : > { %18148 = vst [vmem:[#allocation56_spill] sm:$0xff] %v15419_v24  ;;  %v5378_v38 = vpop.f32.mrf.mxu0  ;;  %v18159_v19 = vld [vmem:[#allocation18_spill] sm:$0xff] }
 0x262   : > { %v15426_v34 = vpop.f32.mrf.mxu1  ;;  %v15442_v61 = vadd.f32 %v5378_v38, %v15325_v44  ;;  %18156 = vst [vmem:[#allocation64_spill] sm:$0xff] %v15449_v6  ;;  %v1320_v38 = vld [vmem:[%s13586_s7] sm:$0x3]  ;;  %v5222_v22 = vadd.f32 %v15271_v14, %v5109_v17 }
 0x263   : > { %18151 = vst [vmem:[#allocation59_spill] sm:$0xff] %v15426_v34  ;;  %v15444_v34 = vsub.s32 0, %v5625_v9  ;;  %v5380_v59 = vpop.f32.mrf.mxu0 }
 0x264   : > { %v15428_v30 = vpop.f32.mrf.mxu1  ;;  %v15459_v44 = vadd.f32 %v5380_v59, %v15329_v3 }
 0x265   : > { %18155 = vst [vmem:[#allocation63_spill] sm:$0xff] %v15444_v34  ;;  %v5382_v16 = vpop.f32.mrf.mxu0  ;;  %v15478_v20 = vrot.slane %v1319_v21, %v15444_v34  ;;  %v15485_v53 = vrot.slane %v1320_v38, %v15444_v34 }
 0x266   : > { %v15435_v24 = vpop.f32.mrf.mxu1  ;;  %v15475_v9 = vadd.f32 %v5382_v16, %v15331_v33  ;;  %v5220_v33 = vadd.f32 %v15269_v23, %v15235_v0  ;;  %v5238_v0 = vadd.f32 %v18161_v51, %v18160_v52  ;;  %v18162_v23 = vld [vmem:[#allocation16_spill] sm:$0xff]  ;;  %v5319_v16 = vadd.f32 %v15333_v37, %v5206_v29  ;;  %v18168_v52 = vld [vmem:[#allocation29_spill] sm:$0xff]  ;;  %v18169_v51 = vld [vmem:[#allocation30_spill] sm:$0xff] }
 0x267   : > { %18153 = vst [vmem:[#allocation61_spill] sm:$0xff] %v15435_v24  ;;  %v5006_v24 = vadd.f32 %v15160_v11, %v15158_v10  ;;  %v5046_v10 = vadd.f32 %v15205_v55, %v15203_v39  ;;  %v5056_v11 = vadd.f32 %v15244_v13, %v15214_v26  ;;  %v15482_v46 = vpop.f32.mrf.mxu0  ;;  %v15488_v39 = vrot.slane %v1319_v21, %v15449_v6 }
 0x268   : > { %v15439_v41 = vpop.f32.mrf.mxu1  ;;  %v15491_v55 = vrot.slane %v1320_v38, %v15449_v6  ;;  %v5208_v26 = vadd.f32 %v15250_v42, %v15221_v62  ;;  %v5212_v13 = vadd.f32 %v15255_v4, %v5099_v50  ;;  %v5139_v62 = vadd.f32 %v15284_v58, %v5026_v48  ;;  %v18158_v4 = vld [vmem:[#allocation17_spill] sm:$0xff]  ;;  %v18164_v58 = vld [vmem:[#allocation23_spill] sm:$0xff] }
 0x269   : > { %18154 = vst [vmem:[#allocation62_spill] sm:$0xff] %v15439_v41  ;;  %v5119_v1 = vadd.f32 %v15246_v12, %v5006_v24  ;;  %v5129_v24 = vadd.f32 %v15267_v5, %v5016_v45  ;;  %v5388_v42 = vpop.f32.mrf.mxu0  ;;  %v5228_v32 = vadd.f32 %v18158_v4, %v18157_v31  ;;  %v18163_v5 = vld [vmem:[#allocation20_spill] sm:$0xff]  ;;  %v5149_v45 = vadd.f32 %v18164_v58, %v5036_v36  ;;  %v18165_v50 = vld [vmem:[#allocation25_spill] sm:$0xff] }
 0x26a   : > { %v15456_v41 = vpop.f32.mrf.mxu1  ;;  %v15515_v59 = vadd.f32 %v5388_v42, %v15339_v8  ;;  %v5240_v21 = vadd.f32 %v18163_v5, %v18162_v23  ;;  %v5159_v14 = vadd.f32 %v18165_v50, %v5046_v10  ;;  %v5169_v48 = vadd.f32 %v15327_v49, %v5056_v11  ;;  %v18166_v42 = vld [vmem:[#allocation22_spill] sm:$0xff]  ;;  %v18167_v4 = vld [vmem:[#allocation24_spill] sm:$0xff]  ;;  %v18170_v5 = vld [vmem:[#allocation21_spill] sm:$0xff] }
 0x26b   : > { %v5232_v18 = vadd.f32 %v18159_v19, %v5119_v1  ;;  %v5390_v38 = vpop.f32.mrf.mxu0  ;;  %v5321_v17 = vadd.f32 %v15337_v35, %v5208_v26  ;;  %v5242_v31 = vadd.f32 %v18166_v42, %v5129_v24  ;;  %v5252_v19 = vadd.f32 %v18167_v4, %v5139_v62  ;;  %v18171_v49 = vld [vmem:[#allocation26_spill] sm:$0xff]  ;;  %v18172_v35 = vld [vmem:[#allocation33_spill] sm:$0xff]  ;;  %v18174_v24 = vld [vmem:[#allocation27_spill] sm:$0xff] }
 0x26c   : > { %v15472_v3 = vpop.f32.mrf.mxu1  ;;  %v15529_v8 = vadd.f32 %v5390_v38, %v15343_v56  ;;  %v5323_v36 = vadd.f32 %v18168_v52, %v5210_v63  ;;  %v5325_v10 = vadd.f32 %v18169_v51, %v5212_v13  ;;  %v5258_v11 = vadd.f32 %v18171_v49, %v18170_v5  ;;  %v18173_v56 = vld [vmem:[#allocation31_spill] sm:$0xff]  ;;  %v18175_v62 = vld [vmem:[#allocation28_spill] sm:$0xff]  ;;  %v18177_v13 = vld [vmem:[#allocation37_spill] sm:$0xff] }
 0x26d   : > { %v5392_v23 = vpop.f32.mrf.mxu0  ;;  %v5329_v37 = vadd.f32 %v15349_v60, %v5216_v47  ;;  %v5331_v29 = vadd.f32 %v18172_v35, %v5218_v57  ;;  %v5262_v50 = vadd.f32 %v18174_v24, %v5149_v45  ;;  %v5272_v38 = vadd.f32 %v18175_v62, %v5159_v14  ;;  %v18176_v63 = vld [vmem:[#allocation35_spill] sm:$0xff]  ;;  %v18178_v51 = vld [vmem:[#allocation32_spill] sm:$0xff]  ;;  %v18179_v60 = vld [vmem:[#allocation34_spill] sm:$0xff] }
 0x26e   : > { %v15500_v12 = vpop.f32.mrf.mxu1  ;;  %v15542_v58 = vadd.f32 %v5392_v23, %v18173_v56  ;;  %v5333_v42 = vadd.f32 %v18176_v63, %v5220_v33  ;;  %v5335_v4 = vadd.f32 %v18177_v13, %v5222_v22  ;;  %v15551_v5 = vadd.f32 %v18178_v51, %v5169_v48  ;;  %v18180_v57 = vld [vmem:[#allocation36_spill] sm:$0xff]  ;;  %v18181_v35 = vld [vmem:[#allocation38_spill] sm:$0xff]  ;;  %v18184_v13 = vld [vmem:[#allocation41_spill] sm:$0xff] }
 0x26f   : > { %v15548_v52 = vpop.f32.mrf.mxu0  ;;  %v5432_v47 = vadd.f32 %v18179_v60, %v5319_v16  ;;  %v5434_v49 = vadd.f32 %v18180_v57, %v5321_v17  ;;  %v5341_v23 = vadd.f32 %v15370_v15, %v5228_v32  ;;  %v5436_v56 = vadd.f32 %v18181_v35, %v5323_v36  ;;  %v18182_v33 = vld [vmem:[#allocation46_spill] sm:$0xff]  ;;  %v18183_v62 = vld [vmem:[#allocation40_spill] sm:$0xff]  ;;  %v18186_v17 = vld [vmem:[#allocation43_spill] sm:$0xff] }
 0x270   : > { %v15512_v27 = vpop.f32.mrf.mxu1  ;;  %v5438_v45 = vadd.f32 %v15365_v40, %v5325_v10  ;;  %v5345_v14 = vadd.f32 %v15379_v25, %v5232_v18  ;;  %v5351_v24 = vadd.f32 %v18182_v33, %v5238_v0  ;;  %v5442_v63 = vadd.f32 %v18183_v62, %v5329_v37  ;;  %v18185_v51 = vld [vmem:[#allocation48_spill] sm:$0xff]  ;;  %v18188_v36 = vld [vmem:[#allocation39_spill] sm:$0xff]  ;;  %v18190_v25 = vld [vmem:[#allocation50_spill] sm:$0xff] }
 0x271   : > { %v5544_v22 = vpop.f32.mrf.mxu0  ;;  %v5444_v48 = vadd.f32 %v18184_v13, %v5331_v29  ;;  %v5353_v6 = vadd.f32 %v18185_v51, %v5240_v21  ;;  %v5446_v57 = vadd.f32 %v18186_v17, %v5333_v42  ;;  %v18187_v15 = vld [vmem:[#allocation44_spill] sm:$0xff]  ;;  %v18189_v40 = vld [vmem:[#allocation47_spill] sm:$0xff]  ;;  %v5355_v18 = vadd.f32 %v18190_v25, %v5242_v31  ;;  %v18191_v35 = vld [vmem:[#allocation49_spill] sm:$0xff] }
 0x272   : > { %v15526_v1 = vpop.f32.mrf.mxu1  ;;  %v5545_v60 = vadd.f32 %v5544_v22, %v5432_v47  ;;  %v15565_v32 = vadd.f32 %v18187_v15, %v5335_v4  ;;  %v15569_v10 = vadd.f32 %v18189_v40, %v18188_v36  ;;  %v15573_v37 = vadd.f32 %v18191_v35, %v5341_v23  ;;  %v18192_v29 = vld [vmem:[#allocation42_spill] sm:$0xff]  ;;  %v18193_v33 = vld [vmem:[#allocation51_spill] sm:$0xff]  ;;  %v18194_v22 = vld [vmem:[#allocation52_spill] sm:$0xff] }
 0x273   : > { %v5546_v0 = vpop.f32.mrf.mxu0  ;;  %v15577_v21 = vadd.f32 %v18193_v33, %v18192_v29  ;;  %v15581_v4 = vadd.f32 %v18194_v22, %v5345_v14  ;;  %v18195_v62 = vld [vmem:[#allocation45_spill] sm:$0xff]  ;;  %v15588_v31 = vadd.f32 %v15410_v28, %v5351_v24  ;;  %v5365_v23 = vadd.f32 %v15415_v43, %v5252_v19  ;;  %v18196_v36 = vld [vmem:[#allocation56_spill] sm:$0xff]  ;;  %v18198_v25 = vld [vmem:[#allocation59_spill] sm:$0xff] }
 0x274   : > { %v15539_v26 = vpop.f32.mrf.mxu1  ;;  %v5634_v47 = vmul.f32 %v15478_v20, %v5545_v60  ;;  %v5547_v42 = vadd.f32 %v5546_v0, %v5434_v49  ;;  %v15585_v13 = vadd.f32 %v15405_v54, %v18195_v62  ;;  %v15592_v17 = vadd.f32 %v15417_v7, %v5353_v6  ;;  %v18197_v54 = vld [vmem:[#allocation53_spill] sm:$0xff]  ;;  %v18199_v28 = vld [vmem:[#allocation58_spill] sm:$0xff] }
 0x275   : > { %v5548_v51 = vpop.f32.mrf.mxu0  ;;  %v15597_v40 = vadd.f32 %v18196_v36, %v5355_v18  ;;  %v15601_v0 = vadd.f32 %v18198_v25, %v18197_v54  ;;  %v5371_v24 = vadd.f32 %v18199_v28, %v5258_v11  ;;  %v5375_v43 = vadd.f32 %v15433_v2, %v5262_v50  ;;  %v18200_v7 = vld [vmem:[#allocation54_spill] sm:$0xff]  ;;  %v18201_v18 = vld [vmem:[#allocation55_spill] sm:$0xff]  ;;  %v18202_v33 = vld [vmem:[#allocation61_spill] sm:$0xff] }
 0x276   : > { %v5495_v16 = vpop.f32.mrf.mxu1  ;;  %v5677_v60 = vadd.f32 %v15485_v53, %v5634_v47  ;;  %v5635_v49 = vmul.f32 %v15488_v39, %v5547_v42  ;;  %v5549_v14 = vadd.f32 %v5548_v51, %v5436_v56  ;;  %v15607_v6 = vadd.f32 %v15428_v30, %v18200_v7  ;;  %v18203_v42 = vld [vmem:[#allocation62_spill] sm:$0xff]  ;;  %v18204_v11 = vld [vmem:[#allocation57_spill] sm:$0xff]  ;;  %v18205_v54 = vld [vmem:[#allocation60_spill] sm:$0xff] }
 0x277   : > { %v5550_v19 = vpop.f32.mrf.mxu0  ;;  %v15613_v47 = vadd.f32 %v18202_v33, %v18201_v18  ;;  %v15616_v22 = vadd.f32 %v18203_v42, %v5365_v23  ;;  %v15620_v2 = vadd.f32 %v15456_v41, %v18204_v11  ;;  %v15625_v36 = vadd.f32 %v15472_v3, %v5371_v24  ;;  %v6013_v33 = vld [vmem:[#allocation2 + $0xe0] sm:$0xff] }
 0x278   : > { %v5497_v15 = vpop.f32.mrf.mxu1  ;;  %v5678_v35 = vadd.f32 %v15491_v55, %v5635_v49  ;;  %v5636_v56 = vmul.f32 %v15478_v20, %v5549_v14  ;;  %v5551_v29 = vadd.f32 %v5550_v19, %v5438_v45  ;;  %v5709_v50 = vmax.f32 %v5677_v60, 0.0  ;;  %v6016_v42 = vld [vmem:[#allocation2 + $0x100] sm:$0x11] }
 0x279   : > { %v5554_v62 = vpop.f32.mrf.mxu0  ;;  %v15629_v23 = vadd.f32 %v15500_v12, %v18205_v54  ;;  %v15632_v25 = vadd.f32 %v15512_v27, %v5375_v43  ;;  %v5385_v41 = vadd.f32 %v15482_v46, %v5272_v38  ;;  %v15637_v28 = vadd.f32 %v15526_v1, %v15442_v61 }
 0x27a   : > { %v5501_v30 = vpop.f32.mrf.mxu1  ;;  %v5710_v51 = vmax.f32 %v5678_v35, 0.0  ;;  %v5679_v49 = vadd.f32 %v15485_v53, %v5636_v56  ;;  %v5637_v14 = vmul.f32 %v15488_v39, %v5551_v29  ;;  %v5555_v45 = vadd.f32 %v5554_v62, %v5442_v63 }
 0x27b   : > { %v5556_v60 = vpop.f32.mrf.mxu0  ;;  %v15643_v24 = vadd.f32 %v15539_v26, %v15459_v44  ;;  %v15646_v12 = vadd.f32 %v5495_v16, %v15475_v9  ;;  %v15650_v46 = vadd.f32 %v15548_v52, %v15551_v5  ;;  %v15653_v56 = vadd.f32 %v5497_v15, %v5385_v41  ;;  %v12965_v41 = vld [vmem:[%s13591_s10 + $0x730] ss:$8 sps:$4 sm:$0xff]  }
 0x27c   : > { %v12421_v19 = vpack.c.bf16 %v5710_v51, %v5709_v50  ;;  %v5680_v63 = vadd.f32 %v15491_v55, %v5637_v14  ;;  %v5638_v3 = vmul.f32 %v15478_v20, %v5555_v45  ;;  %v5557_v27 = vadd.f32 %v5556_v60, %v5444_v48  ;;  %v5503_v61 = vpop.f32.mrf.mxu1  ;;  %v12967_v60 = vld [vmem:[%s13591_s10 + $0x734] ss:$8 sps:$4 sm:$0xff]  }
 0x27d   : > { %v5558_v38 = vpop.f32.mrf.mxu0  ;;  %v5711_v43 = vmax.f32 %v5679_v49, 0.0  ;;  %v15656_v44 = vadd.f32 %v5501_v30, %v15515_v59  ;;  %v15661_v18 = vadd.f32 %v5503_v61, %v15529_v8  ;;  %v6019_v61 = vld [vmem:[#allocation2 + $0x20] sm:$0xff]  ;;  %10170 = vmatprep.subr.bf16.mxu1 %v12967_v60  ;;  %v6028_v60 = vld [vmem:[#allocation2 + $0x48] sm:$0x11] }
 0x27e   : > { %v5854_v1 = vshrl.u32 %v12421_v19, 16  ;;  %v5712_v7 = vmax.f32 %v5680_v63, 0.0  ;;  %v5681_v35 = vadd.f32 %v15485_v53, %v5638_v3  ;;  %v5639_v9 = vmul.f32 %v15488_v39, %v5557_v27  ;;  %10171 = vmatpush1.bf16.msra.mxu1 %v12965_v41  ;;  %v6025_v41 = vld [vmem:[#allocation2 + $0x90] sm:$0xff] }
 0x27f   : > { %v5559_v26 = vadd.f32 %v5558_v38, %v5446_v57  ;;  %v5560_v16 = vpop.f32.mrf.mxu0  ;;  %v5857_v52 = vshll.u32 %v12421_v19, 16  ;;  %v5505_v57 = vpop.f32.mrf.mxu1 }
 0x280   : > { %v5856_v29 = vrot.slane %v5854_v1, 7  ;;  %v12422_v5 = vpack.c.bf16 %v5712_v7, %v5711_v43  ;;  %v5561_v48 = vadd.f32 %v5560_v16, %v15565_v32  ;;  %v5713_v15 = vmax.f32 %v5681_v35, 0.0  ;;  %v6022_v7 = vld [vmem:[#allocation2 + $0x58] sm:$0x11]  ;;  %v6112_v35 = vld [vmem:[#allocation2 + $0x88] sm:$0x11] }
 0x281   : > { %v5682_v59 = vadd.f32 %v15491_v55, %v5639_v9  ;;  %v5640_v11 = vmul.f32 %v15478_v20, %v5559_v26  ;;  %v5564_v50 = vpop.f32.mrf.mxu0  ;;  %v15676_v43 = vadd.f32 %v5505_v57, %v15542_v58 }
 0x282   : > { %v5859_v62 = vor.u32 %v5857_v52, %v5856_v29  ;;  %v5860_v30 = vrot.slane %v5856_v29, 4  ;;  %v5862_v51 = vshrl.u32 %v12422_v5, 16  ;;  %v5865_v49 = vshll.u32 %v12422_v5, 16 }
 0x283   : > { %v5714_v14 = vmax.f32 %v5682_v59, 0.0  ;;  %v5683_v32 = vadd.f32 %v15485_v53, %v5640_v11  ;;  %v5641_v8 = vmul.f32 %v15488_v39, %v5561_v48  ;;  %v5565_v45 = vadd.f32 %v5564_v50, %v15569_v10  ;;  %v5566_v54 = vpop.f32.mrf.mxu0  ;;  %v6109_v10 = vld [vmem:[#allocation2 + $0x68] sm:$0xff]  ;;  %v12968_v11 = vld [vmem:[%s13591_s10 + $0x830] ss:$8 sps:$4 sm:$0xff]  }
 0x284   : > { %v6014_v63 = vsel %vm13710_vm11, %v5859_v62, %v6013_v33  ;;  %v6017_v27 = vsel %vm13716_vm14, %v5860_v30, %v6016_v42  ;;  %v5864_v38 = vrot.slane %v5862_v51, 7  ;;  %v5567_v1 = vadd.f32 %v5566_v54, %v15573_v37  ;;  %v12970_v30 = vld [vmem:[%s13591_s10 + $0x834] ss:$8 sps:$4 sm:$0xff]   ;;  %v12971_v51 = vld [vmem:[%s13591_s10 + $0x720] ss:$8 sps:$4 sm:$0xff]  }
 0x285   : > { %6018 = vst [vmem:[#allocation2 + $0x100] sm:$0x11] %v6017_v27  ;;  %6015 = vst [vmem:[#allocation2 + $0xe0] sm:$0xff] %v6014_v63  ;;  %v12423_v9 = vpack.c.bf16 %v5714_v14, %v5713_v15  ;;  %v5684_v26 = vadd.f32 %v15491_v55, %v5641_v8  ;;  %v5642_v16 = vmul.f32 %v15478_v20, %v5565_v45  ;;  %v5568_v29 = vpop.f32.mrf.mxu0  ;;  %v5715_v33 = vmax.f32 %v5683_v32, 0.0 }
 0x286   : > { %v5867_v52 = vor.u32 %v5865_v49, %v5864_v38  ;;  %v5868_v37 = vrot.slane %v5864_v38, 4  ;;  %v5643_v58 = vmul.f32 %v15488_v39, %v5567_v1  ;;  %v5569_v5 = vadd.f32 %v5568_v29, %v15577_v21  ;;  %v12973_v49 = vld [vmem:[%s13591_s10 + $0x724] ss:$8 sps:$4 sm:$0xff]   ;;  %10283 = vmatprep.subr.bf16.mxu0 %v12970_v30  ;;  %v5507_v1 = vpop.f32.mrf.mxu1 }
 0x287   : > { %v5870_v48 = vshrl.u32 %v12423_v9, 16  ;;  %v5716_v42 = vmax.f32 %v5684_v26, 0.0  ;;  %v5685_v15 = vadd.f32 %v15485_v53, %v5642_v16  ;;  %v5570_v59 = vpop.f32.mrf.mxu0  ;;  %v5873_v32 = vshll.u32 %v12423_v9, 16  ;;  %10172 = vmatprep.subr.bf16.mxu1 %v12973_v49  ;;  %10284 = vmatpush1.bf16.msra.mxu0 %v12968_v11 }
 0x288   : > { %v6020_v50 = vsel %vm13710_vm11, %v5867_v52, %v6019_v61  ;;  %v6023_v57 = vsel %vm13716_vm14, %v5868_v37, %v6022_v7  ;;  %v6110_v62 = vsel %vm13710_vm11, %v5867_v52, %v6109_v10  ;;  %v6113_v21 = vsel %vm13716_vm14, %v5868_v37, %v6112_v35  ;;  %10173 = vmatpush1.bf16.msra.mxu1 %v12971_v51 }
 0x289   : > { %6024 = vst [vmem:[#allocation2 + $0x58] sm:$0x11] %v6023_v57  ;;  %6111 = vst [vmem:[#allocation2 + $0x68] sm:$0xff] %v6110_v62  ;;  %v5872_v14 = vrot.slane %v5870_v48, 7  ;;  %v12424_v8 = vpack.c.bf16 %v5716_v42, %v5715_v33  ;;  %v5686_v45 = vadd.f32 %v15491_v55, %v5643_v58  ;;  %v5574_v54 = vpop.f32.mrf.mxu0  ;;  %v5717_v63 = vmax.f32 %v5685_v15, 0.0 }
 0x28a   : > { %6114 = vst [vmem:[#allocation2 + $0x88] sm:$0x11] %v6113_v21  ;;  %6021 = vst [vmem:[#allocation2 + $0x20] sm:$0xff] %v6020_v50  ;;  %v5644_v27 = vmul.f32 %v15478_v20, %v5569_v5  ;;  %v5571_v38 = vadd.f32 %v5570_v59, %v15581_v4  ;;  %v5575_v61 = vadd.f32 %v5574_v54, %v15585_v13  ;;  %v6031_v5 = vld [vmem:[#allocation2 + $0x128] sm:$0xff]  ;;  %v6034_v59 = vld [vmem:[#allocation2] sm:$0x11] }
 0x28b   : > { %v5875_v7 = vor.u32 %v5873_v32, %v5872_v14  ;;  %v5876_v10 = vrot.slane %v5872_v14, 4  ;;  %v5878_v35 = vshrl.u32 %v12424_v8, 16  ;;  %v5881_v9 = vshll.u32 %v12424_v8, 16  ;;  %v5576_v26 = vpop.f32.mrf.mxu0  ;;  %v12974_v42 = vld [vmem:[%s13591_s10 + $0x820] ss:$8 sps:$4 sm:$0xff]  }
 0x28c   : > { %v5718_v16 = vmax.f32 %v5686_v45, 0.0  ;;  %v5687_v29 = vadd.f32 %v15485_v53, %v5644_v27  ;;  %v5645_v52 = vmul.f32 %v15488_v39, %v5571_v38  ;;  %v5646_v4 = vmul.f32 %v15478_v20, %v5575_v61  ;;  %v12976_v62 = vld [vmem:[%s13591_s10 + $0x824] ss:$8 sps:$4 sm:$0xff]   ;;  %v12977_v21 = vld [vmem:[%s13591_s10 + $0x710] ss:$8 sps:$4 sm:$0xff]  }
 0x28d   : > { %v6026_v13 = vsel %vm13710_vm11, %v5875_v7, %v6025_v41  ;;  %v6029_v37 = vsel %vm13716_vm14, %v5876_v10, %v6028_v60  ;;  %v5880_v58 = vrot.slane %v5878_v35, 7  ;;  %v5577_v48 = vadd.f32 %v5576_v26, %v15588_v31  ;;  %v5578_v33 = vpop.f32.mrf.mxu0  ;;  %v12979_v32 = vld [vmem:[%s13591_s10 + $0x714] ss:$8 sps:$4 sm:$0xff]   ;;  %10285 = vmatprep.subr.bf16.mxu0 %v12976_v62  ;;  %v12980_v35 = vld [vmem:[%s13591_s10 + $0x810] ss:$8 sps:$4 sm:$0xff]  }
 0x28e   : > { %v15709_v15 = vadd.f32 %v5507_v1, %v15650_v46  ;;  %6030 = vst [vmem:[#allocation2 + $0x48] sm:$0x11] %v6029_v37  ;;  %6027 = vst [vmem:[#allocation2 + $0x90] sm:$0xff] %v6026_v13  ;;  %v12425_v11 = vpack.c.bf16 %v5718_v16, %v5717_v63  ;;  %v5688_v50 = vadd.f32 %v15491_v55, %v5645_v52  ;;  %v5719_v54 = vmax.f32 %v5687_v29, 0.0  ;;  %v6037_v16 = vld [vmem:[#allocation2 + $0xb0] sm:$0xff] }
 0x28f   : > { %v5689_v57 = vadd.f32 %v15485_v53, %v5646_v4  ;;  %v5883_v30 = vor.u32 %v5881_v9, %v5880_v58  ;;  %v5884_v51 = vrot.slane %v5880_v58, 4  ;;  %v5647_v31 = vmul.f32 %v15488_v39, %v5577_v48  ;;  %v5580_v14 = vpop.f32.mrf.mxu0  ;;  %10286 = vmatpush1.bf16.msra.mxu0 %v12974_v42  ;;  %10174 = vmatprep.subr.bf16.mxu1 %v12979_v32  ;;  %v6040_v29 = vld [vmem:[#allocation2 + $0x8] sm:$0x11]  ;;  %v12982_v58 = vld [vmem:[%s13591_s10 + $0x814] ss:$8 sps:$4 sm:$0xff]  }
 0x290   : > { %v5579_v49 = vadd.f32 %v5578_v33, %v15592_v17  ;;  %v6293_v46 = vld [vmem:[#allocation2 + $0x68] sm:$0x88]  ;;  %v5886_v8 = vshrl.u32 %v12425_v11, 16  ;;  %v5889_v45 = vshll.u32 %v12425_v11, 16  ;;  %v5581_v41 = vadd.f32 %v5580_v14, %v15597_v40  ;;  %10175 = vmatpush1.bf16.msra.mxu1 %v12977_v21  ;;  %10287 = vmatprep.subr.bf16.mxu0 %v12982_v58 }
 0x291   : > { %v11778_v60 = vrot.slane %v6293_v46, 11  ;;  %v6032_v63 = vsel %vm13710_vm11, %v5883_v30, %v6031_v5  ;;  %v6035_v27 = vsel %vm13716_vm14, %v5884_v51, %v6034_v59  ;;  %v5720_v38 = vmax.f32 %v5688_v50, 0.0  ;;  %v5584_v61 = vpop.f32.mrf.mxu0  ;;  %v6393_v17 = vld [vmem:[#allocation2 + $0x88] sm:$0x11] }
 0x292   : > { %6036 = vst [vmem:[#allocation2] sm:$0x11] %v6035_v27  ;;  %6033 = vst [vmem:[#allocation2 + $0x128] sm:$0xff] %v6032_v63  ;;  %v5888_v1 = vrot.slane %v5886_v8, 7  ;;  %v5721_v7 = vmax.f32 %v5689_v57, 0.0  ;;  %v5690_v40 = vadd.f32 %v15491_v55, %v5647_v31  ;;  %v5648_v10 = vmul.f32 %v15478_v20, %v5579_v49  ;;  %v6043_v31 = vld [vmem:[#allocation2 + $0x138] sm:$0xff] }
 0x293   : > { %v6394_v26 = vsel %vm13748_vm2, %v11778_v60, %v6393_v17  ;;  %v12426_v52 = vpack.c.bf16 %v5720_v38, %v5719_v54  ;;  %v5649_v4 = vmul.f32 %v15488_v39, %v5581_v41  ;;  %v5585_v13 = vadd.f32 %v5584_v61, %v15601_v0  ;;  %v5586_v37 = vpop.f32.mrf.mxu0  ;;  %v12983_v59 = vld [vmem:[%s13591_s10 + $0x700] ss:$8 sps:$4 sm:$0xff]   ;;  %v12985_v11 = vld [vmem:[%s13591_s10 + $0x704] ss:$8 sps:$4 sm:$0xff]   ;;  %10288 = vmatpush1.bf16.msra.mxu0 %v12980_v35 }
 0x294   : > { %6395 = vst [vmem:[#allocation2 + $0x88] sm:$0x11] %v6394_v26  ;;  %v5891_v5 = vor.u32 %v5889_v45, %v5888_v1  ;;  %v5892_v48 = vrot.slane %v5888_v1, 4  ;;  %v5722_v33 = vmax.f32 %v5690_v40, 0.0  ;;  %v5691_v42 = vadd.f32 %v15485_v53, %v5648_v10  ;;  %v6046_v49 = vld [vmem:[#allocation2 + $0x120] sm:$0x11]  ;;  %10176 = vmatprep.subr.bf16.mxu1 %v12985_v11 }
 0x295   : > { %v5894_v50 = vshrl.u32 %v12426_v52, 16  ;;  %v5897_v57 = vshll.u32 %v12426_v52, 16  ;;  %v5692_v62 = vadd.f32 %v15491_v55, %v5649_v4  ;;  %v5650_v21 = vmul.f32 %v15478_v20, %v5585_v13  ;;  %v5588_v30 = vpop.f32.mrf.mxu0  ;;  %10177 = vmatpush1.bf16.msra.mxu1 %v12983_v59  ;;  %v12986_v60 = vld [vmem:[%s13591_s10 + $0x800] ss:$8 sps:$4 sm:$0xff]   ;;  %v12988_v63 = vld [vmem:[%s13591_s10 + $0x804] ss:$8 sps:$4 sm:$0xff]  }
 0x296   : > { %v6038_v0 = vsel %vm13710_vm11, %v5891_v5, %v6037_v16  ;;  %v6041_v51 = vsel %vm13716_vm14, %v5892_v48, %v6040_v29  ;;  %v12427_v14 = vpack.c.bf16 %v5722_v33, %v5721_v7  ;;  %v5723_v32 = vmax.f32 %v5691_v42, 0.0  ;;  %v12989_v1 = vld [vmem:[%s13591_s10 + $0x6f0] ss:$8 sps:$4 sm:$0xff]   ;;  %v12991_v7 = vld [vmem:[%s13591_s10 + $0x6f4] ss:$8 sps:$4 sm:$0xff]   ;;  %10289 = vmatprep.subr.bf16.mxu0 %v12988_v63  ;;  %v6049_v29 = vld [vmem:[#allocation2 + $0x28] sm:$0xff] }
 0x297   : > { %6042 = vst [vmem:[#allocation2 + $0x8] sm:$0x11] %v6041_v51  ;;  %6039 = vst [vmem:[#allocation2 + $0xb0] sm:$0xff] %v6038_v0  ;;  %v5896_v46 = vrot.slane %v5894_v50, 7  ;;  %v5724_v8 = vmax.f32 %v5692_v62, 0.0  ;;  %v15741_v45 = vadd.f32 %v15485_v53, %v5650_v21  ;;  %v5587_v54 = vadd.f32 %v5586_v37, %v15607_v6  ;;  %v5590_v41 = vpop.f32.mrf.mxu0  ;;  %v6121_v4 = vld [vmem:[#allocation2 + $0x38] sm:$0xff]  ;;  %10290 = vmatpush1.bf16.msra.mxu0 %v12986_v60 }
 0x298   : > { %v5902_v27 = vshrl.u32 %v12427_v14, 16  ;;  %v5905_v38 = vshll.u32 %v12427_v14, 16  ;;  %v5589_v61 = vadd.f32 %v5588_v30, %v15613_v47  ;;  %v5591_v17 = vadd.f32 %v5590_v41, %v15616_v22  ;;  %v6052_v52 = vld [vmem:[#allocation2 + $0xf8] sm:$0x11]  ;;  %10178 = vmatprep.subr.bf16.mxu1 %v12991_v7  ;;  %v6124_v5 = vld [vmem:[#allocation2 + $0x10] sm:$0x11] }
 0x299   : > { %v5899_v40 = vor.u32 %v5897_v57, %v5896_v46  ;;  %v5900_v10 = vrot.slane %v5896_v46, 4  ;;  %v12428_v35 = vpack.c.bf16 %v5724_v8, %v5723_v32  ;;  %v5725_v26 = vmax.f32 %v15741_v45, 0.0  ;;  %v5594_v16 = vpop.f32.mrf.mxu0  ;;  %10179 = vmatpush1.bf16.msra.mxu1 %v12989_v1  ;;  %v12992_v59 = vld [vmem:[%s13591_s10 + $0x7f0] ss:$8 sps:$4 sm:$0xff]   ;;  %v12994_v21 = vld [vmem:[%s13591_s10 + $0x7f4] ss:$8 sps:$4 sm:$0xff]  }
 0x29a   : > { %v5904_v6 = vrot.slane %v5902_v27, 7  ;;  %v5651_v13 = vmul.f32 %v15488_v39, %v5587_v54  ;;  %v5652_v47 = vmul.f32 %v15478_v20, %v5589_v61  ;;  %v5653_v22 = vmul.f32 %v15488_v39, %v5591_v17  ;;  %v12995_v30 = vld [vmem:[%s13591_s10 + $0x6e0] ss:$8 sps:$4 sm:$0xff]   ;;  %v12997_v32 = vld [vmem:[%s13591_s10 + $0x6e4] ss:$8 sps:$4 sm:$0xff]   ;;  %10291 = vmatprep.subr.bf16.mxu0 %v12994_v21 }
 0x29b   : > { %v6044_v37 = vsel %vm13710_vm11, %v5899_v40, %v6043_v31  ;;  %v6047_v58 = vsel %vm13716_vm14, %v5900_v10, %v6046_v49  ;;  %v5910_v48 = vshrl.u32 %v12428_v35, 16  ;;  %v5913_v33 = vshll.u32 %v12428_v35, 16  ;;  %v5596_v42 = vpop.f32.mrf.mxu0  ;;  %v6055_v41 = vld [vmem:[#allocation2 + $0x80] sm:$0xff]  ;;  %v6058_v60 = vld [vmem:[#allocation2 + $0x30] sm:$0x11]  ;;  %10292 = vmatpush1.bf16.msra.mxu0 %v12992_v59  ;;  %10180 = vmatprep.subr.bf16.mxu1 %v12997_v32 }
 0x29c   : > { %6048 = vst [vmem:[#allocation2 + $0x120] sm:$0x11] %v6047_v58  ;;  %6045 = vst [vmem:[#allocation2 + $0x138] sm:$0xff] %v6044_v37  ;;  %v5907_v11 = vor.u32 %v5905_v38, %v5904_v6  ;;  %v5908_v50 = vrot.slane %v5904_v6, 4  ;;  %v5694_v57 = vadd.f32 %v15491_v55, %v5651_v13  ;;  %v5695_v62 = vadd.f32 %v15485_v53, %v5652_v47  ;;  %v12998_v40 = vld [vmem:[%s13591_s10 + $0x7e0] ss:$8 sps:$4 sm:$0xff]  }
 0x29d   : > { %v5912_v0 = vrot.slane %v5910_v48, 7  ;;  %v5696_v51 = vadd.f32 %v15491_v55, %v5653_v22  ;;  %v5595_v31 = vadd.f32 %v5594_v16, %v15620_v2  ;;  %v5597_v49 = vadd.f32 %v5596_v42, %v15625_v36  ;;  %v5598_v14 = vpop.f32.mrf.mxu0  ;;  %10181 = vmatpush1.bf16.msra.mxu1 %v12995_v30  ;;  %v13000_v10 = vld [vmem:[%s13591_s10 + $0x7e4] ss:$8 sps:$4 sm:$0xff]   ;;  %v13003_v13 = vld [vmem:[%s13591_s10 + $0x6d4] ss:$8 sps:$4 sm:$0xff]  }
 0x29e   : > { %v6050_v46 = vsel %vm13710_vm11, %v5907_v11, %v6049_v29  ;;  %v6053_v8 = vsel %vm13716_vm14, %v5908_v50, %v6052_v52  ;;  %v6122_v45 = vsel %vm13710_vm11, %v5907_v11, %v6121_v4  ;;  %v6125_v54 = vsel %vm13716_vm14, %v5908_v50, %v6124_v5  ;;  %v13001_v4 = vld [vmem:[%s13591_s10 + $0x6d0] ss:$8 sps:$4 sm:$0xff]   ;;  %10293 = vmatprep.subr.bf16.mxu0 %v13000_v10  ;;  %v13006_v58 = vld [vmem:[%s13591_s10 + $0x7d4] ss:$8 sps:$4 sm:$0xff]  }
 0x29f   : > { %6054 = vst [vmem:[#allocation2 + $0xf8] sm:$0x11] %v6053_v8  ;;  %6123 = vst [vmem:[#allocation2 + $0x38] sm:$0xff] %v6122_v45  ;;  %v5915_v2 = vor.u32 %v5913_v33, %v5912_v0  ;;  %v5916_v36 = vrot.slane %v5912_v0, 4  ;;  %v5726_v63 = vmax.f32 %v5694_v57, 0.0  ;;  %v5727_v27 = vmax.f32 %v5695_v62, 0.0  ;;  %v5600_v38 = vpop.f32.mrf.mxu0  ;;  %10294 = vmatpush1.bf16.msra.mxu0 %v12998_v40  ;;  %10182 = vmatprep.subr.bf16.mxu1 %v13003_v13 }
 0x2a0   : > { %6126 = vst [vmem:[#allocation2 + $0x10] sm:$0x11] %v6125_v54  ;;  %6051 = vst [vmem:[#allocation2 + $0x28] sm:$0xff] %v6050_v46  ;;  %v5728_v61 = vmax.f32 %v5696_v51, 0.0  ;;  %v5654_v17 = vmul.f32 %v15478_v20, %v5595_v31  ;;  %v5655_v1 = vmul.f32 %v15488_v39, %v5597_v49  ;;  %v5599_v7 = vadd.f32 %v5598_v14, %v15629_v23  ;;  %v15793_v33 = vld [vmem:[#allocation2 + $0xe0] sm:$0x22] }
 0x2a1   : > { %v6056_v35 = vsel %vm13710_vm11, %v5915_v2, %v6055_v41  ;;  %v6059_v16 = vsel %vm13716_vm14, %v5916_v36, %v6058_v60  ;;  %v12429_v6 = vpack.c.bf16 %v5726_v63, %v5725_v26  ;;  %v5601_v29 = vadd.f32 %v5600_v38, %v15632_v25  ;;  %v5604_v52 = vpop.f32.mrf.mxu0  ;;  %v13004_v59 = vld [vmem:[%s13591_s10 + $0x7d0] ss:$8 sps:$4 sm:$0xff]   ;;  %10183 = vmatpush1.bf16.msra.mxu1 %v13001_v4  ;;  %v6064_v0 = vld [vmem:[#allocation2 + $0xa0] sm:$0x11]  ;;  %v6070_v46 = vld [vmem:[#allocation2 + $0xc8] sm:$0x11] }
 0x2a2   : > { %6060 = vst [vmem:[#allocation2 + $0x30] sm:$0x11] %v6059_v16  ;;  %6057 = vst [vmem:[#allocation2 + $0x80] sm:$0xff] %v6056_v35  ;;  %v12430_v23 = vpack.c.bf16 %v5728_v61, %v5727_v27  ;;  %v5697_v47 = vadd.f32 %v15485_v53, %v5654_v17  ;;  %v5698_v22 = vadd.f32 %v15491_v55, %v5655_v1  ;;  %10295 = vmatprep.subr.bf16.mxu0 %v13006_v58  ;;  %v6061_v30 = vld [vmem:[#allocation2 + $0x98] sm:$0xff]  ;;  %v6115_v63 = vld [vmem:[#allocation2 + $0x40] sm:$0xff] }
 0x2a3   : > { %v5656_v37 = vmul.f32 %v15478_v20, %v5599_v7  ;;  %v5918_v5 = vshrl.u32 %v12429_v6, 16  ;;  %v5921_v48 = vshll.u32 %v12429_v6, 16  ;;  %v5657_v26 = vmul.f32 %v15488_v39, %v5601_v29  ;;  %v5606_v42 = vpop.f32.mrf.mxu0  ;;  %v6067_v51 = vld [vmem:[#allocation2 + $0x18] sm:$0xff]  ;;  %v6118_v27 = vld [vmem:[#allocation2 + $0x50] sm:$0x11]  ;;  %10296 = vmatpush1.bf16.msra.mxu0 %v13004_v59 }
 0x2a4   : > { %v5605_v25 = vadd.f32 %v5604_v52, %v15637_v28  ;;  %v5926_v11 = vshrl.u32 %v12430_v23, 16  ;;  %v5929_v50 = vshll.u32 %v12430_v23, 16  ;;  %v5729_v57 = vmax.f32 %v5697_v47, 0.0  ;;  %v6294_v6 = vld [vmem:[#allocation2 + $0xe0] sm:$0x88] }
 0x2a5   : > { %v5730_v62 = vmax.f32 %v5698_v22, 0.0  ;;  %v5920_v21 = vrot.slane %v5918_v5, 7  ;;  %v5699_v31 = vadd.f32 %v15485_v53, %v5656_v37  ;;  %v5700_v28 = vadd.f32 %v15491_v55, %v5657_v26  ;;  %v5608_v41 = vpop.f32.mrf.mxu0  ;;  %v6133_v29 = vld [vmem:[#allocation2 + $0x68] sm:$0x22]  ;;  %v6076_v47 = vld [vmem:[#allocation2 + $0xc0] sm:$0x11] }
 0x2a6   : > { %v5658_v49 = vmul.f32 %v15478_v20, %v5605_v25  ;;  %v6302_v14 = vld [vmem:[#allocation2 + $0x38] sm:$0x88]  ;;  %v5928_v32 = vrot.slane %v5926_v11, 7  ;;  %v11759_v45 = vrot.slane %v15793_v33, 9  ;;  %v5607_v54 = vadd.f32 %v5606_v42, %v15643_v24  ;;  %v6236_v22 = vld [vmem:[#allocation2 + $0xe0] sm:$0x11] }
 0x2a7   : > { %v12431_v8 = vpack.c.bf16 %v5730_v62, %v5729_v57  ;;  %v11787_v60 = vrot.slane %v6302_v14, 11  ;;  %v5923_v2 = vor.u32 %v5921_v48, %v5920_v21  ;;  %v5924_v36 = vrot.slane %v5920_v21, 4  ;;  %v6420_v61 = vld [vmem:[#allocation2 + $0x10] sm:$0x11]  ;;  %v5610_v37 = vpop.f32.mrf.mxu0  ;;  %v13007_v58 = vld [vmem:[%s13591_s10 + $0x6c0] ss:$8 sps:$4 sm:$0xff]  }
 0x2a8   : > { %v5731_v38 = vmax.f32 %v5699_v31, 0.0  ;;  %v5931_v17 = vor.u32 %v5929_v50, %v5928_v32  ;;  %v5932_v1 = vrot.slane %v5928_v32, 4  ;;  %v5732_v16 = vmax.f32 %v5700_v28, 0.0  ;;  %v6073_v48 = vld [vmem:[#allocation2 + $0xd8] sm:$0xff]  ;;  %v6396_v42 = vld [vmem:[#allocation2 + $0x100] sm:$0x11] }
 0x2a9   : > { %v5934_v7 = vshrl.u32 %v12431_v8, 16  ;;  %v5937_v40 = vshll.u32 %v12431_v8, 16  ;;  %v6421_v10 = vsel %vm13748_vm2, %v11787_v60, %v6420_v61  ;;  %v6062_v24 = vsel %vm13710_vm11, %v5923_v2, %v6061_v30  ;;  %v13009_v59 = vld [vmem:[%s13591_s10 + $0x6c4] ss:$8 sps:$4 sm:$0xff]   ;;  %v13015_v60 = vld [vmem:[%s13591_s10 + $0x7b4] ss:$8 sps:$4 sm:$0xff]  }
 0x2aa   : > { %v6065_v35 = vsel %vm13716_vm14, %v5924_v36, %v6064_v0  ;;  %6422 = vst [vmem:[#allocation2 + $0x10] sm:$0x11] %v6421_v10  ;;  %6063 = vst [vmem:[#allocation2 + $0x98] sm:$0xff] %v6062_v24  ;;  %v6068_v52 = vsel %vm13710_vm11, %v5931_v17, %v6067_v51  ;;  %v6071_v4 = vsel %vm13716_vm14, %v5932_v1, %v6070_v46  ;;  %v11779_v11 = vrot.slane %v6294_v6, 11  ;;  %v6233_v21 = vld [vmem:[#allocation2 + $0x68] sm:$0x11] }
 0x2ab   : > { %6066 = vst [vmem:[#allocation2 + $0xa0] sm:$0x11] %v6065_v35  ;;  %v6116_v13 = vsel %vm13710_vm11, %v5931_v17, %v6115_v63  ;;  %v6119_v23 = vsel %vm13716_vm14, %v5932_v1, %v6118_v27  ;;  %6072 = vst [vmem:[#allocation2 + $0xc8] sm:$0x11] %v6071_v4  ;;  %v5936_v5 = vrot.slane %v5934_v7, 7  ;;  %v12432_v26 = vpack.c.bf16 %v5732_v16, %v5731_v38  ;;  %v6079_v27 = vld [vmem:[#allocation2 + $0x110] sm:$0xff] }
 0x2ac   : > { %6117 = vst [vmem:[#allocation2 + $0x40] sm:$0xff] %v6116_v13  ;;  %6120 = vst [vmem:[#allocation2 + $0x50] sm:$0x11] %v6119_v23  ;;  %v5701_v25 = vadd.f32 %v15485_v53, %v5658_v49  ;;  %v6237_v33 = vsel %vm13716_vm14, %v11759_v45, %v6236_v22  ;;  %v5659_v50 = vmul.f32 %v15488_v39, %v5607_v54  ;;  %v11758_v62 = vrot.slane %v6133_v29, 9  ;;  %v6707_v30 = vld [vmem:[#allocation2 + $0x88] sm:$0x11]  ;;  %v5614_v54 = vpop.f32.mrf.mxu0 }
 0x2ad   : > { %6069 = vst [vmem:[#allocation2 + $0x18] sm:$0xff] %v6068_v52  ;;  %6238 = vst [vmem:[#allocation2 + $0xe0] sm:$0x11] %v6237_v33  ;;  %v5609_v57 = vadd.f32 %v5608_v41, %v15646_v12  ;;  %v15822_v0 = vld [vmem:[#allocation2 + $0x20] sm:$0x22]  ;;  %v5939_v31 = vor.u32 %v5937_v40, %v5936_v5  ;;  %v5940_v28 = vrot.slane %v5936_v5, 4  ;;  %10184 = vmatprep.subr.bf16.mxu1 %v13009_v59 }
 0x2ae   : > { %v13010_v51 = vld [vmem:[%s13591_s10 + $0x7c0] ss:$8 sps:$4 sm:$0xff]   ;;  %v5942_v49 = vshrl.u32 %v12432_v26, 16  ;;  %v5945_v14 = vshll.u32 %v12432_v26, 16  ;;  %v13012_v32 = vld [vmem:[%s13591_s10 + $0x7c4] ss:$8 sps:$4 sm:$0xff]   ;;  %v6397_v8 = vsel %vm13748_vm2, %v11779_v11, %v6396_v42  ;;  %v5702_v12 = vadd.f32 %v15491_v55, %v5659_v50  ;;  %10185 = vmatpush1.bf16.msra.mxu1 %v13007_v58 }
 0x2af   : > { %v5733_v46 = vmax.f32 %v5701_v25, 0.0  ;;  %v5660_v45 = vmul.f32 %v15478_v20, %v5609_v57  ;;  %v13013_v41 = vld [vmem:[%s13591_s10 + $0x7b0] ss:$8 sps:$4 sm:$0xff]   ;;  %v6074_v2 = vsel %vm13710_vm11, %v5939_v31, %v6073_v48  ;;  %v6077_v36 = vsel %vm13716_vm14, %v5940_v28, %v6076_v47  ;;  %6398 = vst [vmem:[#allocation2 + $0x100] sm:$0x11] %v6397_v8  ;;  %10297 = vmatprep.subr.bf16.mxu0 %v13012_v32 }
 0x2b0   : > { %v5944_v63 = vrot.slane %v5942_v49, 7  ;;  %v6082_v38 = vld [vmem:[#allocation2 + $0xb8] sm:$0x11]  ;;  %v6234_v61 = vsel %vm13716_vm14, %v11758_v62, %v6233_v21  ;;  %6078 = vst [vmem:[#allocation2 + $0xc0] sm:$0x11] %v6077_v36  ;;  %6075 = vst [vmem:[#allocation2 + $0xd8] sm:$0xff] %v6074_v2  ;;  %v5611_v40 = vadd.f32 %v5610_v37, %v15653_v56  ;;  %10298 = vmatpush1.bf16.msra.mxu0 %v13010_v51  ;;  %10186 = vmatprep.subr.bf16.mxu1 %v13015_v60  ;;  %v5616_v51 = vpop.f32.mrf.mxu0 }
 0x2b1   : > { %v5734_v17 = vmax.f32 %v5702_v12, 0.0  ;;  %v15839_v1 = vadd.f32 %v15485_v53, %v5660_v45  ;;  %6235 = vst [vmem:[#allocation2 + $0x68] sm:$0x11] %v6234_v61  ;;  %v6748_v7 = vshll.u32 %v6707_v30, 16  ;;  %v13016_v10 = vld [vmem:[%s13591_s10 + $0x8b0] ss:$8 sps:$4 sm:$0xff]   ;;  %v5615_v6 = vadd.f32 %v5614_v54, %v15656_v44 }
 0x2b2   : > { %v13018_v24 = vld [vmem:[%s13591_s10 + $0x8b4] ss:$8 sps:$4 sm:$0xff]   ;;  %v5947_v35 = vor.u32 %v5945_v14, %v5944_v63  ;;  %v5948_v16 = vrot.slane %v5944_v63, 4  ;;  %v11760_v29 = vrot.slane %v15822_v0, 9  ;;  %v5661_v47 = vmul.f32 %v15488_v39, %v5611_v40  ;;  %v6239_v22 = vld [vmem:[#allocation2 + $0x20] sm:$0x11]  ;;  %10187 = vmatpush2.bf16.msra.mxu1 %v13013_v41 }
 0x2b3   : > { %v6303_v52 = vld [vmem:[#allocation2 + $0x40] sm:$0x88]  ;;  %v12433_v4 = vpack.c.bf16 %v5734_v17, %v5733_v46  ;;  %v5735_v13 = vmax.f32 %v15839_v1, 0.0  ;;  %v15847_v23 = vrot.slane %v6748_v7, 5  ;;  %10299 = vmatprep.subr.bf16.mxu0 %v13018_v24  ;;  %v5662_v5 = vmul.f32 %v15478_v20, %v5615_v6  ;;  %v6136_v26 = vld [vmem:[#allocation2 + $0x90] sm:$0x22]  ;;  %v5618_v24 = vpop.f32.mrf.mxu0 }
 0x2b4   : > { %v11788_v56 = vrot.slane %v6303_v52, 11  ;;  %v6080_v37 = vsel %vm13710_vm11, %v5947_v35, %v6079_v27  ;;  %v6083_v44 = vsel %vm13716_vm14, %v5948_v16, %v6082_v38  ;;  %v6708_v58 = vld [vmem:[#allocation2 + $0xe0] sm:$0xff]  ;;  %v6423_v25 = vld [vmem:[#allocation2 + $0x50] sm:$0x11]  ;;  %10300 = vmatpush2.bf16.msra.mxu0 %v13016_v10  ;;  %v6088_v62 = vld [vmem:[#allocation2 + $0xa8] sm:$0x11]  ;;  %v5704_v21 = vadd.f32 %v15491_v55, %v5661_v47 }
 0x2b5   : > { %v6295_v48 = vld [vmem:[#allocation2 + $0x20] sm:$0x88]  ;;  %6084 = vst [vmem:[#allocation2 + $0xb8] sm:$0x11] %v6083_v44  ;;  %6081 = vst [vmem:[#allocation2 + $0x110] sm:$0xff] %v6080_v37  ;;  %v6753_v33 = vshrl.u32 %v6708_v58, 16  ;;  %v15859_v30 = vadd.f32 %v15485_v53, %v5662_v5  ;;  %v6240_v0 = vsel %vm13716_vm14, %v11760_v29, %v6239_v22 }
 0x2b6   : > { %v6756_v42 = vshll.u32 %v6708_v58, 16  ;;  %v5950_v59 = vshrl.u32 %v12433_v4, 16  ;;  %v5953_v11 = vshll.u32 %v12433_v4, 16  ;;  %v6424_v50 = vsel %vm13748_vm2, %v11788_v56, %v6423_v25  ;;  %v6085_v57 = vld [vmem:[#allocation2 + $0xf0] sm:$0xff]  ;;  %v6709_v31 = vld [vmem:[#allocation2 + $0x100] sm:$0x11] }
 0x2b7   : > { %6425 = vst [vmem:[#allocation2 + $0x50] sm:$0x11] %v6424_v50  ;;  %v6755_v28 = vrot.slane %v6753_v33, 4  ;;  %6241 = vst [vmem:[#allocation2 + $0x20] sm:$0x11] %v6240_v0  ;;  %v11780_v32 = vrot.slane %v6295_v48, 11  ;;  %v5619_v25 = vadd.f32 %v5618_v24, %v15676_v43 }
 0x2b8   : > { %v6758_v49 = vrot.slane %v6756_v42, 5  ;;  %v5952_v14 = vrot.slane %v5950_v59, 7  ;;  %v6762_v46 = vshll.u32 %v6709_v31, 16  ;;  %v6706_v8 = vld [vmem:[#allocation2 + $0x68] sm:$0xff]  ;;  %v5736_v12 = vmax.f32 %v5704_v21, 0.0  ;;  %v6675_v41 = vld [vmem:[#allocation2 + $0xe0] sm:$0xff] }
 0x2b9   : > { %v5737_v45 = vmax.f32 %v15859_v30, 0.0  ;;  %v11761_v54 = vrot.slane %v6136_v26, 9  ;;  %v6739_v63 = vshrl.u32 %v6706_v8, 16  ;;  %v6399_v27 = vld [vmem:[#allocation2 + $0x58] sm:$0x11]  ;;  %6691 = vst.msk [vmem:[#allocation3 + $0x38] sm:$0xff] %vm13730_vm15, %v6675_v41  ;;  %v5617_v26 = vadd.f32 %v5616_v51, %v15661_v18 }
 0x2ba   : > { %v6759_v60 = vor.u32 %v6758_v49, %v6755_v28  ;;  %v5955_v2 = vor.u32 %v5953_v11, %v5952_v14  ;;  %v5956_v36 = vrot.slane %v5952_v14, 4  ;;  %v6764_v61 = vrot.slane %v6762_v46, 5  ;;  %v6242_v40 = vld [vmem:[#allocation2 + $0x90] sm:$0x11]  ;;  %v6296_v10 = vld [vmem:[#allocation2 + $0x90] sm:$0x88] }
 0x2bb   : > { %v6742_v17 = vshll.u32 %v6706_v8, 16  ;;  %v12434_v1 = vpack.c.bf16 %v5736_v12, %v5735_v13  ;;  %v6400_v7 = vsel %vm13748_vm2, %v11780_v32, %v6399_v27  ;;  %v6741_v29 = vrot.slane %v6739_v63, 4  ;;  %v6137_v52 = vld [vmem:[#allocation2 + $0x128] sm:$0x22]  ;;  %v6297_v4 = vld [vmem:[#allocation2 + $0x128] sm:$0x88] }
 0x2bc   : > { %v6760_v35 = vrot.slane %v6759_v60, 4  ;;  %v6086_v16 = vsel %vm13710_vm11, %v5955_v2, %v6085_v57  ;;  %v6089_v6 = vsel %vm13716_vm14, %v5956_v36, %v6088_v62  ;;  %6401 = vst [vmem:[#allocation2 + $0x58] sm:$0x11] %v6400_v7  ;;  %v6243_v56 = vsel %vm13716_vm14, %v11761_v54, %v6242_v40  ;;  %v6674_v37 = vld [vmem:[#allocation2 + $0x68] sm:$0xff]  ;;  %v6094_v62 = vld [vmem:[#allocation2 + $0xd0] sm:$0x11]  ;;  %v5620_v60 = vpop.f32.mrf.mxu0 }
 0x2bd   : > { %6090 = vst [vmem:[#allocation2 + $0xa8] sm:$0x11] %v6089_v6  ;;  %6087 = vst [vmem:[#allocation2 + $0xf0] sm:$0xff] %v6086_v16  ;;  %v6744_v13 = vrot.slane %v6742_v17, 5  ;;  %v5958_v47 = vshrl.u32 %v12434_v1, 16  ;;  %v5961_v22 = vshll.u32 %v12434_v1, 16  ;;  %v5663_v0 = vmul.f32 %v15488_v39, %v5617_v26 }
 0x2be   : > { %v6765_v58 = vsel %vm13814_vm5, %v6760_v35, %v6764_v61  ;;  %v6091_v5 = vld [vmem:[#allocation2 + $0x108] sm:$0xff]  ;;  %6244 = vst [vmem:[#allocation2 + $0x90] sm:$0x11] %v6243_v56  ;;  %v11781_v48 = vrot.slane %v6296_v10, 11  ;;  %6690 = vst.msk [vmem:[#allocation3] sm:$0xff] %vm13730_vm15, %v6674_v37  ;;  %v15881_v59 = vld [vmem:[#allocation2 + $0x20] sm:$0xff]  ;;  %v5664_v14 = vmul.f32 %v15478_v20, %v5619_v25  ;;  %v5621_v6 = vadd.f32 %v5620_v60, %v15709_v15 }
 0x2bf   : > { %6964 = vrot.lane.b32.xlu1 %v6765_v58, %s13526_s18  ;;  %v6745_v33 = vor.u32 %v6744_v13, %v6741_v29  ;;  %v5960_v42 = vrot.slane %v5958_v47, 7  ;;  %v6402_v11 = vld [vmem:[#allocation2 + $0x48] sm:$0x11]  ;;  %v11762_v50 = vrot.slane %v6137_v52, 9  ;;  %v11782_v57 = vrot.slane %v6297_v4, 11 }
 0x2c0   : > { %v6767_v21 = vshrl.u32 %v15881_v59, 16  ;;  %v6770_v18 = vshll.u32 %v15881_v59, 16  ;;  %v6403_v43 = vsel %vm13748_vm2, %v11781_v48, %v6402_v11  ;;  %v6245_v51 = vld [vmem:[#allocation2 + $0x128] sm:$0x11]  ;;  %v5706_v54 = vadd.f32 %v15491_v55, %v5663_v0  ;;  %v6138_v2 = vld [vmem:[#allocation2 + $0xb0] sm:$0x22] }
 0x2c1   : > { %v6746_v31 = vrot.slane %v6745_v33, 4  ;;  %v5963_v28 = vor.u32 %v5961_v22, %v5960_v42  ;;  %v5964_v49 = vrot.slane %v5960_v42, 4  ;;  %6404 = vst [vmem:[#allocation2 + $0x48] sm:$0x11] %v6403_v43  ;;  %v13019_v32 = vld [vmem:[%s13591_s10 + $0x7a0] ss:$8 sps:$4 sm:$0xff]   ;;  %v6246_v41 = vsel %vm13716_vm14, %v11762_v50, %v6245_v51 }
 0x2c2   : > { %v13021_v46 = vld [vmem:[%s13591_s10 + $0x7a4] ss:$8 sps:$4 sm:$0xff]   ;;  %v6769_v8 = vrot.slane %v6767_v21, 4  ;;  %v6772_v12 = vrot.slane %v6770_v18, 5  ;;  %v6298_v36 = vld [vmem:[#allocation2 + $0xb0] sm:$0x88]  ;;  %v15902_v17 = vadd.f32 %v15485_v53, %v5664_v14 }
 0x2c3   : > { %v6751_v63 = vsel %vm13814_vm5, %v6746_v31, %v15847_v23  ;;  %v6092_v27 = vsel %vm13710_vm11, %v5963_v28, %v6091_v5  ;;  %v6095_v20 = vsel %vm13716_vm14, %v5964_v49, %v6094_v62  ;;  %v6711_v61 = vld [vmem:[#allocation2 + $0x58] sm:$0x11]  ;;  %6247 = vst [vmem:[#allocation2 + $0x128] sm:$0x11] %v6246_v41  ;;  %v6405_v1 = vld [vmem:[#allocation2] sm:$0x11]  ;;  %10188 = vmatprep.subr.bf16.mxu1 %v13021_v46 }
 0x2c4   : > { %6962 = vrot.lane.b32.xlu0 %v6751_v63, %s13526_s18  ;;  %6096 = vst [vmem:[#allocation2 + $0xd0] sm:$0x11] %v6095_v20  ;;  %6093 = vst [vmem:[#allocation2 + $0x108] sm:$0xff] %v6092_v27  ;;  %v6773_v7 = vor.u32 %v6772_v12, %v6769_v8  ;;  %v6776_v40 = vshll.u32 %v6711_v61, 16  ;;  %v5738_v23 = vmax.f32 %v5706_v54, 0.0  ;;  %v6406_v10 = vsel %vm13748_vm2, %v11782_v57, %v6405_v1  ;;  %v6097_v14 = vld [vmem:[#allocation2 + $0x78] sm:$0xff] }
 0x2c5   : > { %v6248_v24 = vld [vmem:[#allocation2 + $0xb0] sm:$0x11]  ;;  %v6408_v35 = vld [vmem:[#allocation2 + $0x8] sm:$0x11]  ;;  %10189 = vmatpush2.bf16.msra.mxu1 %v13019_v32  ;;  %v5739_v53 = vmax.f32 %v15902_v17, 0.0  ;;  %v11763_v29 = vrot.slane %v6138_v2, 9  ;;  %v5665_v5 = vmul.f32 %v15488_v39, %v5621_v6 }
 0x2c6   : > { %v15907_v16 = vld [vmem:[#allocation2 + $0x90] sm:$0xff]  ;;  %6407 = vst [vmem:[#allocation2] sm:$0x11] %v6406_v10  ;;  %v11783_v52 = vrot.slane %v6298_v36, 11  ;;  %v6139_v4 = vld [vmem:[#allocation2 + $0x138] sm:$0x22]  ;;  %v12435_v58 = vpack.c.bf16 %v5738_v23, %v5737_v45 }
 0x2c7   : > { %v6774_v13 = vrot.slane %v6773_v7, 4  ;;  %v6778_v47 = vrot.slane %v6776_v40, 5  ;;  %v6781_v22 = vshrl.u32 %v15907_v16, 16  ;;  %v6784_v56 = vshll.u32 %v15907_v16, 16  ;;  %v6299_v37 = vld [vmem:[#allocation2 + $0x138] sm:$0x88] }
 0x2c8   : > { %v6249_v48 = vsel %vm13716_vm14, %v11763_v29, %v6248_v24  ;;  %v6409_v15 = vsel %vm13748_vm2, %v11783_v52, %v6408_v35  ;;  %v6251_v26 = vld [vmem:[#allocation2 + $0x138] sm:$0x11]  ;;  %v6140_v25 = vld [vmem:[#allocation2 + $0x28] sm:$0x22]  ;;  %v6713_v50 = vld [vmem:[#allocation2 + $0x48] sm:$0x11]  ;;  %v5708_v43 = vadd.f32 %v15491_v55, %v5665_v5 }
 0x2c9   : > { %v13022_v33 = vld [vmem:[%s13591_s10 + $0x8a0] ss:$8 sps:$4 sm:$0xff]   ;;  %v13024_v42 = vld [vmem:[%s13591_s10 + $0x8a4] ss:$8 sps:$4 sm:$0xff]   ;;  %v6779_v11 = vsel %vm13814_vm5, %v6774_v13, %v6778_v47  ;;  %v6783_v57 = vrot.slane %v6781_v22, 4  ;;  %v6786_v30 = vrot.slane %v6784_v56, 5 }
 0x2ca   : > { %6250 = vst [vmem:[#allocation2 + $0xb0] sm:$0x11] %v6249_v48  ;;  %6410 = vst [vmem:[#allocation2 + $0x8] sm:$0x11] %v6409_v15  ;;  %v11764_v39 = vrot.slane %v6139_v4, 9  ;;  %v15924_v45 = vld [vmem:[#allocation2 + $0x20] sm:$0xff]  ;;  %6966 = vrot.lane.b32.xlu0 %v6779_v11, %s13526_s18  ;;  %10301 = vmatprep.subr.bf16.mxu0 %v13024_v42 }
 0x2cb   : > { %v6790_v62 = vshll.u32 %v6713_v50, 16  ;;  %v5966_v21 = vshrl.u32 %v12435_v58, 16  ;;  %v5969_v18 = vshll.u32 %v12435_v58, 16  ;;  %v6411_v0 = vld [vmem:[#allocation2 + $0x120] sm:$0x11]  ;;  %6692 = vst.msk [vmem:[#allocation3 + $0x70] sm:$0xff] %vm13730_vm15, %v15924_v45  ;;  %v6787_v49 = vor.u32 %v6786_v30, %v6783_v57  ;;  %10302 = vmatpush2.bf16.msra.mxu0 %v13022_v33 }
 0x2cc   : > { %v6254_v51 = vld [vmem:[#allocation2 + $0x28] sm:$0x11]  ;;  %v13025_v31 = vld [vmem:[%s13591_s10 + $0x790] ss:$8 sps:$4 sm:$0xff]   ;;  %v6252_v55 = vsel %vm13716_vm14, %v11764_v39, %v6251_v26  ;;  %v11784_v12 = vrot.slane %v6299_v37, 11  ;;  %v11765_v54 = vrot.slane %v6140_v25, 9 }
 0x2cd   : > { %v15932_v28 = vld [vmem:[#allocation2 + $0x90] sm:$0xff]  ;;  %v6127_v46 = vld [vmem:[#allocation2 + $0xe8] sm:$0xff]  ;;  %v6792_v2 = vrot.slane %v6790_v62, 5  ;;  %v5968_v36 = vrot.slane %v5966_v21, 7  ;;  %6253 = vst [vmem:[#allocation2 + $0x138] sm:$0x11] %v6252_v55 }
 0x2ce   : > { %v6100_v32 = vld [vmem:[#allocation2 + $0x130] sm:$0x11]  ;;  %v15934_v8 = vld [vmem:[#allocation2 + $0x128] sm:$0xff]  ;;  %6693 = vst.msk [vmem:[#allocation3 + $0xa8] sm:$0xff] %vm13730_vm15, %v15932_v28  ;;  %v6788_v61 = vrot.slane %v6787_v49, 4  ;;  %v5740_v40 = vmax.f32 %v5708_v43, 0.0  ;;  %v6412_v23 = vsel %vm13748_vm2, %v11784_v12, %v6411_v0  ;;  %v6255_v10 = vsel %vm13716_vm14, %v11765_v54, %v6254_v51 }
 0x2cf   : > { %v13027_v41 = vld [vmem:[%s13591_s10 + $0x794] ss:$8 sps:$4 sm:$0xff]   ;;  %v15942_v60 = vld [vmem:[#allocation2 + $0x128] sm:$0xff]  ;;  %v6795_v63 = vshrl.u32 %v15934_v8, 16  ;;  %v6798_v27 = vshll.u32 %v15934_v8, 16  ;;  %v5971_v24 = vor.u32 %v5969_v18, %v5968_v36  ;;  %v5972_v35 = vrot.slane %v5968_v36, 4 }
 0x2d0   : > { %v6300_v20 = vld [vmem:[#allocation2 + $0x28] sm:$0x88]  ;;  %6694 = vst.msk [vmem:[#allocation3 + $0xe0] sm:$0xff] %vm13730_vm15, %v15942_v60  ;;  %v6130_v1 = vld [vmem:[#allocation2 + $0x70] sm:$0x11]  ;;  %10190 = vmatprep.subr.bf16.mxu1 %v13027_v41  ;;  %v15953_v52 = vld [vmem:[#allocation2 + $0x20] sm:$0xff]  ;;  %v6793_v4 = vsel %vm13814_vm5, %v6788_v61, %v6792_v2  ;;  %v12436_v47 = vpack.c.bf16 %v5740_v40, %v5739_v53 }
 0x2d1   : > { %v6715_v7 = vld [vmem:[#allocation2] sm:$0x11]  ;;  %v6797_v6 = vrot.slane %v6795_v63, 4  ;;  %v6800_v29 = vrot.slane %v6798_v27, 5  ;;  %6413 = vst [vmem:[#allocation2 + $0x120] sm:$0x11] %v6412_v23  ;;  %10191 = vmatpush2.bf16.msra.mxu1 %v13025_v31  ;;  %6968 = vrot.lane.b32.xlu1 %v6793_v4, %s13526_s18  ;;  %v6098_v37 = vsel %vm13710_vm11, %v5971_v24, %v6097_v14  ;;  %v6101_v58 = vsel %vm13716_vm14, %v5972_v35, %v6100_v32 }
 0x2d2   : > { %6256 = vst [vmem:[#allocation2 + $0x28] sm:$0x11] %v6255_v10  ;;  %18211 = vst [vmem:[#allocation14_spill] sm:$0xff] %v15953_v52  ;;  %v6804_v13 = vshll.u32 %v6715_v7, 16  ;;  %v11785_v22 = vrot.slane %v6300_v20, 11  ;;  %v6128_v5 = vsel %vm13710_vm11, %v5971_v24, %v6127_v46  ;;  %v6131_v17 = vsel %vm13716_vm14, %v5972_v35, %v6130_v1  ;;  %v15971_v53 = vld [vmem:[#allocation2 + $0xb0] sm:$0xff] }
 0x2d3   : > { %v6414_v56 = vld [vmem:[#allocation2 + $0xf8] sm:$0x11]  ;;  %7874 = vst.msk [vmem:[#allocation3 + $0x24] sm:$0xff] %vm13730_vm15, %v15953_v52  ;;  %v6717_v48 = vld [vmem:[#allocation2 + $0x8] sm:$0x11]  ;;  %6129 = vst [vmem:[#allocation2 + $0xe8] sm:$0xff] %v6128_v5  ;;  %v6801_v26 = vor.u32 %v6800_v29, %v6797_v6 }
 0x2d4   : > { %v15973_v15 = vld [vmem:[#allocation2 + $0x98] sm:$0x22]  ;;  %6102 = vst [vmem:[#allocation2 + $0x130] sm:$0x11] %v6101_v58  ;;  %6132 = vst [vmem:[#allocation2 + $0x70] sm:$0x11] %v6131_v17  ;;  %v6415_v62 = vsel %vm13748_vm2, %v11785_v22, %v6414_v56 }
 0x2d5   : > { %6099 = vst [vmem:[#allocation2 + $0x78] sm:$0xff] %v6098_v37  ;;  %v6806_v25 = vrot.slane %v6804_v13, 5  ;;  %v5974_v33 = vshrl.u32 %v12436_v47, 16  ;;  %v6304_v42 = vld [vmem:[#allocation2 + $0x98] sm:$0x88]  ;;  %v15975_v11 = vld [vmem:[#allocation2 + $0xb0] sm:$0xff] }
 0x2d6   : > { %v5977_v50 = vshll.u32 %v12436_v47, 16  ;;  %v6103_v57 = vld [vmem:[#allocation2 + $0x60] sm:$0xff]  ;;  %v6809_v30 = vshrl.u32 %v15971_v53, 16  ;;  %v6812_v39 = vshll.u32 %v15971_v53, 16  ;;  %6695 = vst.msk [vmem:[#allocation3 + $0x118] sm:$0xff] %vm13730_vm15, %v15975_v11  ;;  %v15984_v21 = vld [vmem:[#allocation2 + $0x90] sm:$0xff] }
 0x2d7   : > { %18212 = vst [vmem:[#allocation17_spill] sm:$0xff] %v15984_v21  ;;  %v6802_v18 = vrot.slane %v6801_v26, 4  ;;  %v5976_v43 = vrot.slane %v5974_v33, 7  ;;  %v6818_v0 = vshll.u32 %v6717_v48, 16  ;;  %v15986_v51 = vld [vmem:[#allocation2 + $0x138] sm:$0xff]  ;;  %v11769_v31 = vrot.slane %v15973_v15, 9 }
 0x2d8   : > { %6416 = vst [vmem:[#allocation2 + $0xf8] sm:$0x11] %v6415_v62  ;;  %v15989_v49 = vld [vmem:[#allocation2 + $0x138] sm:$0xff]  ;;  %7875 = vst.msk [vmem:[#allocation3 + $0x5c] sm:$0xff] %vm13730_vm15, %v15984_v21  ;;  %v6811_v32 = vrot.slane %v6809_v30, 4  ;;  %v6814_v46 = vrot.slane %v6812_v39, 5 }
 0x2d9   : > { %v6106_v14 = vld [vmem:[#allocation2 + $0x118] sm:$0x11]  ;;  %v6823_v55 = vshrl.u32 %v15986_v51, 16  ;;  %v11789_v12 = vrot.slane %v6304_v42, 11  ;;  %6696 = vst.msk [vmem:[#allocation3 + $0x150] sm:$0xff] %vm13730_vm15, %v15989_v49  ;;  %v6807_v54 = vsel %vm13814_vm5, %v6802_v18, %v6806_v25  ;;  %v5979_v41 = vor.u32 %v5977_v50, %v5976_v43  ;;  %v16001_v27 = vld [vmem:[#allocation2 + $0x28] sm:$0xff] }
 0x2da   : > { %v5980_v2 = vrot.slane %v5976_v43, 4  ;;  %v6719_v36 = vld [vmem:[#allocation2 + $0x120] sm:$0x11]  ;;  %v6826_v63 = vshll.u32 %v15986_v51, 16  ;;  %v6266_v20 = vld [vmem:[#allocation2 + $0x98] sm:$0x11]  ;;  %6970 = vrot.lane.b32.xlu0 %v6807_v54, %s13526_s18  ;;  %v6815_v23 = vor.u32 %v6814_v46, %v6811_v32 }
 0x2db   : > { %v6426_v61 = vld [vmem:[#allocation2 + $0xa0] sm:$0x11]  ;;  %v6143_v1 = vld [vmem:[#allocation2 + $0x40] sm:$0x22]  ;;  %v6145_v7 = vld [vmem:[#allocation2 + $0x18] sm:$0x22]  ;;  %v6104_v4 = vsel %vm13710_vm11, %v5979_v41, %v6103_v57  ;;  %v6267_v19 = vsel %vm13716_vm14, %v11769_v31, %v6266_v20 }
 0x2dc   : > { %v16003_v40 = vld [vmem:[#allocation2 + $0x28] sm:$0xff]  ;;  %v6825_v10 = vrot.slane %v6823_v55, 4  ;;  %v6832_v24 = vshll.u32 %v6719_v36, 16  ;;  %v6837_v35 = vshrl.u32 %v16001_v27, 16  ;;  %v13028_v6 = vld [vmem:[%s13591_s10 + $0x890] ss:$8 sps:$4 sm:$0xff]   ;;  %v6107_v13 = vsel %vm13716_vm14, %v5980_v2, %v6106_v14 }
 0x2dd   : > { %6697 = vst.msk [vmem:[#allocation3 + $0x188] sm:$0xff] %vm13730_vm15, %v16003_v40  ;;  %v16011_v29 = vld [vmem:[#allocation2 + $0x128] sm:$0xff]  ;;  %v6828_v47 = vrot.slane %v6826_v63, 5  ;;  %v6840_v22 = vshll.u32 %v16001_v27, 16  ;;  %v6305_v56 = vld [vmem:[#allocation2 + $0x18] sm:$0x88]  ;;  %v6427_v48 = vsel %vm13748_vm2, %v11789_v12, %v6426_v61 }
 0x2de   : > { %18213 = vst [vmem:[#allocation18_spill] sm:$0xff] %v16011_v29  ;;  %v13030_v37 = vld [vmem:[%s13591_s10 + $0x894] ss:$8 sps:$4 sm:$0xff]   ;;  %7876 = vst.msk [vmem:[#allocation3 + $0x94] sm:$0xff] %vm13730_vm15, %v16011_v29  ;;  %v6312_v58 = vld [vmem:[#allocation2 + $0xe8] sm:$0x88] }
 0x2df   : > { %6108 = vst [vmem:[#allocation2 + $0x118] sm:$0x11] %v6107_v13  ;;  %6105 = vst [vmem:[#allocation2 + $0x60] sm:$0xff] %v6104_v4  ;;  %v6816_v5 = vrot.slane %v6815_v23, 4  ;;  %v6820_v17 = vrot.slane %v6818_v0, 5  ;;  %v11797_v26 = vrot.slane %v6312_v58, 11  ;;  %v6829_v33 = vor.u32 %v6828_v47, %v6825_v10  ;;  %10303 = vmatprep.subr.bf16.mxu0 %v13030_v37 }
 0x2e0   : > { %v6146_v15 = vld [vmem:[#allocation2 + $0xd8] sm:$0x22]  ;;  %v6450_v25 = vld [vmem:[#allocation2 + $0x70] sm:$0x11]  ;;  %v6839_v42 = vrot.slane %v6837_v35, 4  ;;  %v6842_v50 = vrot.slane %v6840_v22, 5  ;;  %10304 = vmatpush2.bf16.msra.mxu0 %v13028_v6 }
 0x2e1   : > { %6268 = vst [vmem:[#allocation2 + $0x98] sm:$0x11] %v6267_v19  ;;  %6428 = vst [vmem:[#allocation2 + $0xa0] sm:$0x11] %v6427_v48  ;;  %v6263_v57 = vld [vmem:[#allocation2 + $0x40] sm:$0x11]  ;;  %v6821_v0 = vsel %vm13814_vm5, %v6816_v5, %v6820_v17  ;;  %v6451_v55 = vsel %vm13748_vm2, %v11797_v26, %v6450_v25 }
 0x2e2   : > { %v6269_v30 = vld [vmem:[#allocation2 + $0x18] sm:$0x11]  ;;  %v16026_v39 = vld [vmem:[#allocation2 + $0xd8] sm:$0x88]  ;;  %v16028_v62 = vld [vmem:[#allocation2 + $0x110] sm:$0x22]  ;;  %6972 = vrot.lane.b32.xlu1 %v6821_v0, %s13526_s18  ;;  %v6843_v54 = vor.u32 %v6842_v50, %v6839_v42 }
 0x2e3   : > { %v16030_v18 = vld [vmem:[#allocation2 + $0x110] sm:$0x88]  ;;  %v6834_v31 = vrot.slane %v6832_v24, 5  ;;  %v6721_v14 = vld [vmem:[#allocation2 + $0xf8] sm:$0x11]  ;;  %v11768_v32 = vrot.slane %v6143_v1, 9 }
 0x2e4   : > { %v16032_v43 = vld [vmem:[#allocation2 + $0xb0] sm:$0xff]  ;;  %v11770_v46 = vrot.slane %v6145_v7, 9  ;;  %v6830_v12 = vrot.slane %v6829_v33, 4  ;;  %v6846_v41 = vshll.u32 %v6721_v14, 16  ;;  %v6429_v2 = vld [vmem:[#allocation2 + $0xc8] sm:$0x11] }
 0x2e5   : > { %18214 = vst [vmem:[#allocation15_spill] sm:$0xff] %v16032_v43  ;;  %7877 = vst.msk [vmem:[#allocation3 + $0xcc] sm:$0xff] %vm13730_vm15, %v16032_v43  ;;  %v6148_v36 = vld [vmem:[#allocation2 + $0xf0] sm:$0x22]  ;;  %v6308_v63 = vld [vmem:[#allocation2 + $0xf0] sm:$0x88]  ;;  %v6264_v20 = vsel %vm13716_vm14, %v11768_v32, %v6263_v57 }
 0x2e6   : > { %6452 = vst [vmem:[#allocation2 + $0x70] sm:$0x11] %v6451_v55  ;;  %v6270_v61 = vsel %vm13716_vm14, %v11770_v46, %v6269_v30  ;;  %v11790_v1 = vrot.slane %v6305_v56, 11  ;;  %v6272_v7 = vld [vmem:[#allocation2 + $0xd8] sm:$0x11]  ;;  %v6835_v24 = vsel %vm13814_vm5, %v6830_v12, %v6834_v31  ;;  %v6844_v35 = vrot.slane %v6843_v54, 4 }
 0x2e7   : > { %v6149_v23 = vld [vmem:[#allocation2 + $0x108] sm:$0x22]  ;;  %v6848_v6 = vrot.slane %v6846_v41, 5  ;;  %6265 = vst [vmem:[#allocation2 + $0x40] sm:$0x11] %v6264_v20  ;;  %v11771_v4 = vrot.slane %v6146_v15, 9  ;;  %6974 = vrot.lane.b32.xlu0 %v6835_v24, %s13526_s18 }
 0x2e8   : > { %v13031_v10 = vld [vmem:[%s13591_s10 + $0x780] ss:$8 sps:$4 sm:$0xff]   ;;  %6271 = vst [vmem:[#allocation2 + $0x18] sm:$0x11] %v6270_v61  ;;  %v6275_v47 = vld [vmem:[#allocation2 + $0x110] sm:$0x11]  ;;  %v6430_v56 = vsel %vm13748_vm2, %v11790_v1, %v6429_v2 }
 0x2e9   : > { %v6432_v13 = vld [vmem:[#allocation2 + $0xc0] sm:$0x11]  ;;  %v6435_v22 = vld [vmem:[#allocation2 + $0xb8] sm:$0x11]  ;;  %v11791_v5 = vrot.slane %v16026_v39, 11  ;;  %v11772_v17 = vrot.slane %v16028_v62, 9  ;;  %v6849_v15 = vsel %vm13814_vm5, %v6844_v35, %v6848_v6  ;;  %v6273_v25 = vsel %vm13716_vm14, %v11771_v4, %v6272_v7 }
 0x2ea   : > { %v13033_v37 = vld [vmem:[%s13591_s10 + $0x784] ss:$8 sps:$4 sm:$0xff]   ;;  %v16050_v58 = vld [vmem:[#allocation2 + $0x138] sm:$0xff]  ;;  %v11792_v19 = vrot.slane %v16030_v18, 11  ;;  %v6278_v48 = vld [vmem:[#allocation2 + $0xf0] sm:$0x11]  ;;  %6976 = vrot.lane.b32.xlu1 %v6849_v15, %s13526_s18 }
 0x2eb   : > { %18215 = vst [vmem:[#allocation19_spill] sm:$0xff] %v16050_v58  ;;  %7878 = vst.msk [vmem:[#allocation3 + $0x104] sm:$0xff] %vm13730_vm15, %v16050_v58  ;;  %v16063_v26 = vld [vmem:[#allocation2 + $0x50] sm:$0x11]  ;;  %v11773_v33 = vrot.slane %v6148_v36, 9  ;;  %v11793_v42 = vrot.slane %v6308_v63, 11  ;;  %10192 = vmatprep.subr.bf16.mxu1 %v13033_v37  ;;  %v6433_v31 = vsel %vm13748_vm2, %v11791_v5, %v6432_v13  ;;  %v6276_v14 = vsel %vm13716_vm14, %v11772_v17, %v6275_v47 }
 0x2ec   : > { %6431 = vst [vmem:[#allocation2 + $0xc8] sm:$0x11] %v6430_v56  ;;  %v6438_v50 = vld [vmem:[#allocation2 + $0xa8] sm:$0x11]  ;;  %v6309_v30 = vld [vmem:[#allocation2 + $0x108] sm:$0x88]  ;;  %v6436_v32 = vsel %vm13748_vm2, %v11792_v19, %v6435_v22  ;;  %10193 = vmatpush2.bf16.msra.mxu1 %v13031_v10 }
 0x2ed   : > { %v6281_v57 = vld [vmem:[#allocation2 + $0x108] sm:$0x11]  ;;  %v6150_v39 = vld [vmem:[#allocation2 + $0x78] sm:$0x22]  ;;  %v6141_v62 = vld [vmem:[#allocation2 + $0x80] sm:$0x22]  ;;  %v6279_v2 = vsel %vm13716_vm14, %v11773_v33, %v6278_v48  ;;  %v6439_v20 = vsel %vm13748_vm2, %v11793_v42, %v6438_v50 }
 0x2ee   : > { %v16068_v18 = vld [vmem:[#allocation2 + $0x98] sm:$0xff]  ;;  %v6725_v0 = vld [vmem:[#allocation2 + $0xa0] sm:$0x11]  ;;  %6274 = vst [vmem:[#allocation2 + $0xd8] sm:$0x11] %v6273_v25  ;;  %v11774_v46 = vrot.slane %v6149_v23, 9 }
 0x2ef   : > { %v6310_v55 = vld [vmem:[#allocation2 + $0x78] sm:$0x88]  ;;  %v6865_v12 = vshrl.u32 %v16068_v18, 16  ;;  %v6868_v54 = vshll.u32 %v16068_v18, 16  ;;  %v6874_v41 = vshll.u32 %v6725_v0, 16  ;;  %v11794_v1 = vrot.slane %v6309_v30, 11 }
 0x2f0   : > { %6434 = vst [vmem:[#allocation2 + $0xc0] sm:$0x11] %v6433_v31  ;;  %6277 = vst [vmem:[#allocation2 + $0x110] sm:$0x11] %v6276_v14  ;;  %v6441_v36 = vld [vmem:[#allocation2 + $0xd0] sm:$0x11]  ;;  %v6282_v61 = vsel %vm13716_vm14, %v11774_v46, %v6281_v57 }
 0x2f1   : > { %6437 = vst [vmem:[#allocation2 + $0xb8] sm:$0x11] %v6436_v32  ;;  %v6683_v63 = vld [vmem:[#allocation2 + $0x98] sm:$0xff]  ;;  %6280 = vst [vmem:[#allocation2 + $0xf0] sm:$0x11] %v6279_v2  ;;  %v11775_v7 = vrot.slane %v6150_v39, 9  ;;  %v6442_v5 = vsel %vm13748_vm2, %v11794_v1, %v6441_v36 }
 0x2f2   : > { %v6284_v23 = vld [vmem:[#allocation2 + $0x78] sm:$0x11]  ;;  %v13034_v10 = vld [vmem:[%s13591_s10 + $0x880] ss:$8 sps:$4 sm:$0xff]   ;;  %6699 = vst.msk [vmem:[#allocation3 + $0x1f8] sm:$0xff] %vm13730_vm15, %v6683_v63  ;;  %v6867_v24 = vrot.slane %v6865_v12, 4 }
 0x2f3   : > { %v6870_v35 = vrot.slane %v6868_v54, 5  ;;  %6440 = vst [vmem:[#allocation2 + $0xa8] sm:$0x11] %v6439_v20  ;;  %6283 = vst [vmem:[#allocation2 + $0x108] sm:$0x11] %v6282_v61  ;;  %v11795_v6 = vrot.slane %v6310_v55, 11  ;;  %v6285_v17 = vsel %vm13716_vm14, %v11775_v7, %v6284_v23 }
 0x2f4   : > { %v6444_v4 = vld [vmem:[#allocation2 + $0x130] sm:$0x11]  ;;  %v6257_v13 = vld [vmem:[#allocation2 + $0x80] sm:$0x11]  ;;  %v6860_v37 = vshll.u32 %v16063_v26, 16  ;;  %v16089_v56 = vld [vmem:[#allocation2 + $0x18] sm:$0xff] }
 0x2f5   : > { %v13036_v47 = vld [vmem:[%s13591_s10 + $0x884] ss:$8 sps:$4 sm:$0xff]   ;;  %v11766_v19 = vrot.slane %v6141_v62, 9  ;;  %v13037_v48 = vld [vmem:[%s13591_s10 + $0x770] ss:$8 sps:$4 sm:$0xff]   ;;  %v6871_v15 = vor.u32 %v6870_v35, %v6867_v24  ;;  %v6879_v42 = vshrl.u32 %v16089_v56, 16  ;;  %v6445_v0 = vsel %vm13748_vm2, %v11795_v6, %v6444_v4 }
 0x2f6   : > { %v6722_v22 = vld [vmem:[#allocation2 + $0x40] sm:$0xff]  ;;  %6443 = vst [vmem:[#allocation2 + $0xd0] sm:$0x11] %v6442_v5  ;;  %6286 = vst [vmem:[#allocation2 + $0x78] sm:$0x11] %v6285_v17  ;;  %10305 = vmatprep.subr.bf16.mxu0 %v13036_v47  ;;  %v16098_v26 = vld [vmem:[#allocation2 + $0x18] sm:$0xff] }
 0x2f7   : > { %v6851_v25 = vshrl.u32 %v6722_v22, 16  ;;  %v6854_v33 = vshll.u32 %v6722_v22, 16  ;;  %v13039_v50 = vld [vmem:[%s13591_s10 + $0x774] ss:$8 sps:$4 sm:$0xff]   ;;  %v6876_v57 = vrot.slane %v6874_v41, 5  ;;  %v6882_v39 = vshll.u32 %v16089_v56, 16  ;;  %10306 = vmatpush2.bf16.msra.mxu0 %v13034_v10 }
 0x2f8   : > { %v6727_v30 = vld [vmem:[#allocation2 + $0xc8] sm:$0x11]  ;;  %v6258_v62 = vsel %vm13716_vm14, %v11766_v19, %v6257_v13  ;;  %6700 = vst.msk [vmem:[#allocation3 + $0x230] sm:$0xff] %vm13730_vm15, %v16098_v26  ;;  %v6872_v31 = vrot.slane %v6871_v15, 4  ;;  %v6881_v46 = vrot.slane %v6879_v42, 4  ;;  %v16108_v55 = vld [vmem:[#allocation2 + $0xd8] sm:$0xff]  ;;  %10194 = vmatprep.subr.bf16.mxu1 %v13039_v50 }
 0x2f9   : > { %v6853_v14 = vrot.slane %v6851_v25, 4  ;;  %v6856_v32 = vrot.slane %v6854_v33, 5  ;;  %6446 = vst [vmem:[#allocation2 + $0x130] sm:$0x11] %v6445_v0  ;;  %6259 = vst [vmem:[#allocation2 + $0x80] sm:$0x11] %v6258_v62  ;;  %10195 = vmatpush2.bf16.msra.mxu1 %v13037_v48 }
 0x2fa   : > { %v16110_v12 = vld [vmem:[#allocation2 + $0xd8] sm:$0xff]  ;;  %v6884_v54 = vrot.slane %v6882_v39, 5  ;;  %v6729_v41 = vld [vmem:[#allocation2 + $0xc0] sm:$0x11]  ;;  %v6893_v2 = vshrl.u32 %v16108_v55, 16  ;;  %v6896_v36 = vshll.u32 %v16108_v55, 16  ;;  %v6877_v63 = vsel %vm13814_vm5, %v6872_v31, %v6876_v57 }
 0x2fb   : > { %6701 = vst.msk [vmem:[#allocation3 + $0x268] sm:$0xff] %vm13730_vm15, %v16110_v12  ;;  %v6857_v20 = vor.u32 %v6856_v32, %v6853_v14  ;;  %v6888_v61 = vshll.u32 %v6727_v30, 16  ;;  %v16119_v1 = vld [vmem:[#allocation2 + $0x110] sm:$0xff]  ;;  %v6731_v7 = vld [vmem:[#allocation2 + $0xb8] sm:$0x11]  ;;  %6980 = vrot.lane.b32.xlu1 %v6877_v63, %s13526_s18  ;;  %v6902_v6 = vshll.u32 %v6729_v41, 16 }
 0x2fc   : > { %v16121_v23 = vld [vmem:[#allocation2 + $0xf0] sm:$0xff]  ;;  %v6885_v10 = vor.u32 %v6884_v54, %v6881_v46  ;;  %v6895_v24 = vrot.slane %v6893_v2, 4  ;;  %v6898_v35 = vrot.slane %v6896_v36, 5  ;;  %v6862_v13 = vrot.slane %v6860_v37, 5  ;;  %v6733_v48 = vld [vmem:[#allocation2 + $0xa8] sm:$0x11] }
 0x2fd   : > { %v6858_v4 = vrot.slane %v6857_v20, 4  ;;  %v6907_v47 = vshrl.u32 %v16119_v1, 16  ;;  %v6910_v22 = vshll.u32 %v16119_v1, 16  ;;  %v6916_v19 = vshll.u32 %v6731_v7, 16  ;;  %v16127_v25 = vld [vmem:[#allocation2 + $0x108] sm:$0xff]  ;;  %v16132_v37 = vld [vmem:[#allocation2 + $0x78] sm:$0xff] }
 0x2fe   : > { %v6886_v5 = vrot.slane %v6885_v10, 4  ;;  %v6899_v17 = vor.u32 %v6898_v35, %v6895_v24  ;;  %v6921_v15 = vshrl.u32 %v16121_v23, 16  ;;  %v6924_v57 = vshll.u32 %v16121_v23, 16  ;;  %v16134_v30 = vld [vmem:[#allocation2 + $0x110] sm:$0xff]  ;;  %v16141_v2 = vld [vmem:[#allocation2 + $0x108] sm:$0xff] }
 0x2ff   : > { %v6863_v33 = vsel %vm13814_vm5, %v6858_v4, %v6862_v13  ;;  %v6909_v42 = vrot.slane %v6907_v47, 4  ;;  %v6912_v50 = vrot.slane %v6910_v22, 5  ;;  %v6890_v39 = vrot.slane %v6888_v61, 5  ;;  %6702 = vst.msk [vmem:[#allocation3 + $0x2a0] sm:$0xff] %vm13730_vm15, %v16134_v30  ;;  %v6735_v54 = vld [vmem:[#allocation2 + $0xd0] sm:$0x11] }
 0x300   : > { %6978 = vrot.lane.b32.xlu0 %v6863_v33, %s13526_s18  ;;  %v6900_v0 = vrot.slane %v6899_v17, 4  ;;  %v6904_v62 = vrot.slane %v6902_v6, 5  ;;  %v6923_v31 = vrot.slane %v6921_v15, 4  ;;  %v6926_v32 = vrot.slane %v6924_v57, 5  ;;  %18216 = vst [vmem:[#allocation16_spill] sm:$0xff] %v16141_v2  ;;  %v16149_v10 = vld [vmem:[#allocation2 + $0xf0] sm:$0xff] }
 0x301   : > { %v6913_v14 = vor.u32 %v6912_v50, %v6909_v42  ;;  %v6930_v46 = vshll.u32 %v6733_v48, 16  ;;  %v6935_v41 = vshrl.u32 %v16127_v25, 16  ;;  %v6891_v36 = vsel %vm13814_vm5, %v6886_v5, %v6890_v39  ;;  %v6151_v7 = vld [vmem:[#allocation2 + $0x60] sm:$0x22]  ;;  %18217 = vst [vmem:[#allocation20_spill] sm:$0xff] %v16149_v10  ;;  %6704 = vst.msk [vmem:[#allocation3 + $0x310] sm:$0xff] %vm13730_vm15, %v16141_v2 }
 0x302   : > { %v6905_v63 = vsel %vm13814_vm5, %v6900_v0, %v6904_v62  ;;  %v6938_v20 = vshll.u32 %v16127_v25, 16  ;;  %v6949_v61 = vshrl.u32 %v16132_v37, 16  ;;  %v6918_v35 = vrot.slane %v6916_v19, 5  ;;  %v6737_v13 = vld [vmem:[#allocation2 + $0x130] sm:$0x11]  ;;  %v16155_v47 = vld [vmem:[#allocation2 + $0x78] sm:$0xff] }
 0x303   : > { %6984 = vrot.lane.b32.xlu1 %v6905_v63, %s13526_s18  ;;  %v6914_v24 = vrot.slane %v6913_v14, 4  ;;  %v6927_v6 = vor.u32 %v6926_v32, %v6923_v31  ;;  %v6937_v4 = vrot.slane %v6935_v41, 4  ;;  %18218 = vst [vmem:[#allocation23_spill] sm:$0xff] %v16155_v47  ;;  %6703 = vst.msk [vmem:[#allocation3 + $0x2d8] sm:$0xff] %vm13730_vm15, %v16149_v10  ;;  %v6944_v5 = vshll.u32 %v6735_v54, 16  ;;  %v6682_v14 = vld [vmem:[#allocation2 + $0x40] sm:$0xff] }
 0x304   : > { %6982 = vrot.lane.b32.xlu0 %v6891_v36, %s13526_s18  ;;  %v6940_v22 = vrot.slane %v6938_v20, 5  ;;  %v6951_v17 = vrot.slane %v6949_v61, 4  ;;  %v6952_v48 = vshll.u32 %v16132_v37, 16  ;;  %6705 = vst.msk [vmem:[#allocation3 + $0x348] sm:$0xff] %vm13730_vm15, %v16155_v47  ;;  %v6932_v33 = vrot.slane %v6930_v46, 5  ;;  %6698 = vst.msk [vmem:[#allocation3 + $0x1c0] sm:$0xff] %vm13730_vm15, %v6682_v14 }
 0x305   : > { %v6919_v19 = vsel %vm13814_vm5, %v6914_v24, %v6918_v35  ;;  %v6928_v15 = vrot.slane %v6927_v6, 4  ;;  %v6301_v42 = vld [vmem:[#allocation2 + $0x80] sm:$0x88]  ;;  %v13040_v50 = vld [vmem:[%s13591_s10 + $0x870] ss:$8 sps:$4 sm:$0xff]   ;;  %v6958_v0 = vshll.u32 %v6737_v13, 16 }
 0x306   : > { %v6941_v57 = vor.u32 %v6940_v22, %v6937_v4  ;;  %v6954_v39 = vrot.slane %v6952_v48, 5  ;;  %v11776_v62 = vrot.slane %v6151_v7, 9  ;;  %v13042_v31 = vld [vmem:[%s13591_s10 + $0x874] ss:$8 sps:$4 sm:$0xff]   ;;  %v6287_v54 = vld [vmem:[#allocation2 + $0x60] sm:$0x11] }
 0x307   : > { %v6933_v32 = vsel %vm13814_vm5, %v6928_v15, %v6932_v33  ;;  %v13043_v41 = vld [vmem:[%s13591_s10 + $0x760] ss:$8 sps:$4 sm:$0xff]   ;;  %v6946_v63 = vrot.slane %v6944_v5, 5  ;;  %v13045_v7 = vld [vmem:[%s13591_s10 + $0x764] ss:$8 sps:$4 sm:$0xff]   ;;  %v11786_v24 = vrot.slane %v6301_v42, 11  ;;  %10307 = vmatprep.subr.bf16.mxu0 %v13042_v31 }
 0x308   : > { %v16174_v36 = vld [vmem:[#allocation2 + $0x28] sm:$0xff]  ;;  %6986 = vrot.lane.b32.xlu0 %v6919_v19, %s13526_s18  ;;  %6988 = vrot.lane.b32.xlu1 %v6933_v32, %s13526_s18  ;;  %v6942_v46 = vrot.slane %v6941_v57, 4  ;;  %v6955_v20 = vor.u32 %v6954_v39, %v6951_v17  ;;  %v6288_v61 = vsel %vm13716_vm14, %v11776_v62, %v6287_v54  ;;  %v6960_v4 = vrot.slane %v6958_v0, 5  ;;  %v16186_v13 = vld [vmem:[#allocation2 + $0x80] sm:$0xff]  ;;  %v6417_v22 = vld [vmem:[#allocation2 + $0x30] sm:$0x11] }
 0x309   : > { %18219 = vst [vmem:[#allocation25_spill] sm:$0xff] %v16174_v36  ;;  %7879 = vst.msk [vmem:[#allocation3 + $0x13c] sm:$0xff] %vm13730_vm15, %v16174_v36  ;;  %10308 = vmatpush2.bf16.msra.mxu0 %v13040_v50  ;;  %10196 = vmatprep.subr.bf16.mxu1 %v13045_v7  ;;  %v13046_v5 = vld [vmem:[%s13591_s10 + $0x860] ss:$8 sps:$4 sm:$0xff]   ;;  %v13048_v17 = vld [vmem:[%s13591_s10 + $0x864] ss:$8 sps:$4 sm:$0xff]   ;;  %v6418_v42 = vsel %vm13748_vm2, %v11786_v24, %v6417_v22 }
 0x30a   : > { %6289 = vst [vmem:[#allocation2 + $0x60] sm:$0x11] %v6288_v61  ;;  %v6947_v35 = vsel %vm13814_vm5, %v6942_v46, %v6946_v63  ;;  %v6956_v6 = vrot.slane %v6955_v20, 4  ;;  %18220 = vst [vmem:[#allocation22_spill] sm:$0xff] %v16186_v13  ;;  %10197 = vmatpush2.bf16.msra.mxu1 %v13043_v41  ;;  %v6311_v19 = vld [vmem:[#allocation2 + $0x60] sm:$0x88]  ;;  %10309 = vmatprep.subr.bf16.mxu0 %v13048_v17 }
 0x30b   : > { %7880 = vst.msk [vmem:[#allocation3 + $0x174] sm:$0xff] %vm13730_vm15, %v16186_v13  ;;  %v13049_v15 = vld [vmem:[%s13591_s10 + $0x750] ss:$8 sps:$4 sm:$0xff]   ;;  %v13051_v33 = vld [vmem:[%s13591_s10 + $0x754] ss:$8 sps:$4 sm:$0xff]   ;;  %v11796_v39 = vrot.slane %v6311_v19, 11 }
 0x30c   : > { %6990 = vrot.lane.b32.xlu0 %v6947_v35, %s13526_s18  ;;  %v6961_v48 = vsel %vm13814_vm5, %v6956_v6, %v6960_v4  ;;  %6419 = vst [vmem:[#allocation2 + $0x30] sm:$0x11] %v6418_v42  ;;  %10198 = vmatprep.subr.bf16.mxu1 %v13051_v33  ;;  %v13052_v50 = vld [vmem:[%s13591_s10 + $0x850] ss:$8 sps:$4 sm:$0xff]   ;;  %v13054_v0 = vld [vmem:[%s13591_s10 + $0x854] ss:$8 sps:$4 sm:$0xff]  }
 0x30d   : > { %6992 = vrot.lane.b32.xlu1 %v6961_v48, %s13526_s18  ;;  %10310 = vmatpush2.bf16.msra.mxu0 %v13046_v5  ;;  %v16202_v57 = vld [vmem:[#allocation2 + $0xd8] sm:$0xff]  ;;  %v13457_v31 = vld [vmem:[#allocation2 + $0xe0] sm:$0xff]  ;;  %v16226_v61 = vld [vmem:[#allocation2 + $0xf0] sm:$0xff]  ;;  %v7951_v2 = vshrl.u32 %v15942_v60, 16  ;;  %v7937_v21 = vshrl.u32 %v15932_v28, 16 }
 0x30e   : > { %18221 = vst [vmem:[#allocation24_spill] sm:$0xff] %v16202_v57  ;;  %10199 = vmatpush2.bf16.msra.mxu1 %v13049_v15  ;;  %v16205_v62 = vld [vmem:[#allocation2 + $0x18] sm:$0xff]  ;;  %7883 = vst.msk [vmem:[#allocation3 + $0x21c] sm:$0xff] %vm13730_vm15, %v16202_v57  ;;  %v13055_v14 = vld [vmem:[%s13591_s10 + $0x740] ss:$8 sps:$4 sm:$0xff]   ;;  %10311 = vmatprep.subr.bf16.mxu0 %v13054_v0  ;;  %v7923_v57 = vshrl.u32 %v15924_v45, 16 }
 0x30f   : > { %18222 = vst [vmem:[#allocation29_spill] sm:$0xff] %v16205_v62  ;;  %7882 = vst.msk [vmem:[#allocation3 + $0x1e4] sm:$0xff] %vm13730_vm15, %v16205_v62  ;;  %v13057_v32 = vld [vmem:[%s13591_s10 + $0x744] ss:$8 sps:$4 sm:$0xff]   ;;  %v6447_v54 = vld [vmem:[#allocation2 + $0x118] sm:$0x11] }
 0x310   : > { %7250 = vrot.lane.b32.xlu0 %v13457_v31, %s13526_s18  ;;  %v6448_v41 = vsel %vm13748_vm2, %v11796_v39, %v6447_v54  ;;  %10200 = vmatprep.subr.bf16.mxu1 %v13057_v32  ;;  %v13058_v46 = vld [vmem:[%s13591_s10 + $0x840] ss:$8 sps:$4 sm:$0xff]   ;;  %v13060_v63 = vld [vmem:[%s13591_s10 + $0x844] ss:$8 sps:$4 sm:$0xff]   ;;  %18223 = vst [vmem:[#allocation30_spill] sm:$0xff] %v16226_v61  ;;  %7885 = vst.msk [vmem:[#allocation3 + $0x28c] sm:$0xff] %vm13730_vm15, %v16226_v61 }
 0x311   : > { %7252 = vrot.lane.b32.xlu1 %v15881_v59, %s13526_s18  ;;  %10312 = vmatpush2.bf16.msra.mxu0 %v13052_v50  ;;  %v16224_v20 = vld [vmem:[#allocation2 + $0xe0] sm:$0xee]  ;;  %6449 = vst [vmem:[#allocation2 + $0x118] sm:$0x11] %v6448_v41  ;;  %v16230_v59 = vld [vmem:[#allocation2 + $0x100] sm:$0x11] }
 0x312   : > { %10201 = vmatpush2.bf16.msra.mxu1 %v13055_v14  ;;  %v16232_v9 = vld [vmem:[#allocation2 + $0x90] sm:$0xee]  ;;  %v16234_v7 = vld [vmem:[#allocation2 + $0x20] sm:$0xee]  ;;  %v16236_v24 = vld [vmem:[#allocation2 + $0x58] sm:$0x11]  ;;  %10313 = vmatprep.subr.bf16.mxu0 %v13060_v63 }
 0x313   : > { %v16243_v35 = vld [vmem:[#allocation2 + $0xb0] sm:$0xee]  ;;  %v16245_v6 = vld [vmem:[#allocation2 + $0x128] sm:$0xee]  ;;  %v16250_v22 = vld [vmem:[#allocation2 + $0x8] sm:$0x11] }
 0x314   : > { %7254 = vrot.lane.b32.xlu0 %v15907_v16, %s13526_s18  ;;  %v16241_v16 = vld [vmem:[#allocation2 + $0x48] sm:$0x11]  ;;  %v13063_v4 = vld [vmem:[%s13591_s10 + $0x934] ss:$8 sps:$4 sm:$0xff]   ;;  %v16252_v5 = vld [vmem:[#allocation2 + $0x28] sm:$0xee] }
 0x315   : > { %7256 = vrot.lane.b32.xlu1 %v15934_v8, %s13526_s18  ;;  %v16247_v8 = vld [vmem:[#allocation2] sm:$0x11]  ;;  %10314 = vmatpush2.bf16.msra.mxu0 %v13058_v46  ;;  %v16254_v17 = vld [vmem:[#allocation2 + $0x138] sm:$0xee]  ;;  %v16258_v19 = vld [vmem:[#allocation2 + $0x110] sm:$0xff]  ;;  %v7925_v47 = vrot.slane %v7923_v57, 4 }
 0x316   : > { %v16256_v48 = vld [vmem:[#allocation2 + $0x120] sm:$0x11]  ;;  %18224 = vst [vmem:[#allocation21_spill] sm:$0xff] %v16258_v19  ;;  %v16262_v15 = vld [vmem:[#allocation2 + $0xf8] sm:$0x11]  ;;  %10396 = vmatprep.subr.bf16.mxu1 %v13063_v4  ;;  %7884 = vst.msk [vmem:[#allocation3 + $0x254] sm:$0xff] %vm13730_vm15, %v16258_v19 }
 0x317   : > { %v16264_v33 = vld [vmem:[#allocation2 + $0x98] sm:$0xee]  ;;  %v16266_v42 = vld [vmem:[#allocation2 + $0xa0] sm:$0x11]  ;;  %v16277_v0 = vld [vmem:[#allocation2 + $0x80] sm:$0xee] }
 0x318   : > { %7258 = vrot.lane.b32.xlu0 %v15971_v53, %s13526_s18  ;;  %v16268_v50 = vld [vmem:[#allocation2 + $0x78] sm:$0xff]  ;;  %v16281_v14 = vld [vmem:[#allocation2 + $0xc0] sm:$0x11]  ;;  %v16283_v32 = vld [vmem:[#allocation2 + $0x108] sm:$0xff]  ;;  %v7940_v57 = vshll.u32 %v15932_v28, 16 }
 0x319   : > { %18225 = vst [vmem:[#allocation26_spill] sm:$0xff] %v16268_v50  ;;  %7260 = vrot.lane.b32.xlu1 %v15986_v51, %s13526_s18  ;;  %v16279_v31 = vld [vmem:[#allocation2 + $0xd8] sm:$0xee]  ;;  %18226 = vst [vmem:[#allocation33_spill] sm:$0xff] %v16283_v32  ;;  %v16294_v4 = vld [vmem:[#allocation2 + $0x60] sm:$0xff] }
 0x31a   : > { %7887 = vst.msk [vmem:[#allocation3 + $0x2fc] sm:$0xff] %vm13730_vm15, %v16268_v50  ;;  %v16292_v63 = vld [vmem:[#allocation2 + $0x18] sm:$0xee]  ;;  %18227 = vst [vmem:[#allocation31_spill] sm:$0xff] %v16294_v4  ;;  %v16299_v39 = vld [vmem:[#allocation2 + $0x80] sm:$0xff] }
 0x31b   : > { %7886 = vst.msk [vmem:[#allocation3 + $0x2c4] sm:$0xff] %vm13730_vm15, %v16283_v32  ;;  %v16305_v34 = vld [vmem:[#allocation2 + $0xc8] sm:$0x11]  ;;  %v16307_v46 = vld [vmem:[#allocation2 + $0xf0] sm:$0xee]  ;;  %7888 = vst.msk [vmem:[#allocation3 + $0x334] sm:$0xff] %vm13730_vm15, %v16294_v4 }
 0x31c   : > { %18228 = vst [vmem:[#allocation27_spill] sm:$0xff] %v16307_v46  ;;  %7262 = vrot.lane.b32.xlu0 %v16001_v27, %s13526_s18  ;;  %v16318_v41 = vld [vmem:[#allocation2 + $0xa8] sm:$0x11]  ;;  %v16320_v50 = vld [vmem:[#allocation2 + $0x110] sm:$0xee]  ;;  %v7926_v4 = vshll.u32 %v15924_v45, 16 }
 0x31d   : > { %v16322_v19 = vld [vmem:[#allocation2 + $0xb8] sm:$0x11]  ;;  %7264 = vrot.lane.b32.xlu1 %v16299_v39, %s13526_s18  ;;  %v7058_v32 = vld [vmem:[#allocation2 + $0x68] sm:$0xee]  ;;  %v7059_v61 = vld [vmem:[#allocation2 + $0x88] sm:$0x11] }
 0x31e   : > { %v16331_v62 = vld [vmem:[#allocation2 + $0x78] sm:$0xee]  ;;  %v16335_v58 = vld [vmem:[#allocation2 + $0x130] sm:$0x11]  ;;  %v7060_v36 = vld [vmem:[#allocation2 + $0xe0] sm:$0xee] }
 0x31f   : > { %18229 = vst [vmem:[#allocation28_spill] sm:$0xff] %v16331_v62  ;;  %18230 = vst [vmem:[#allocation35_spill] sm:$0xff] %v16335_v58  ;;  %v7061_v27 = vld [vmem:[#allocation2 + $0x100] sm:$0x11]  ;;  %v16342_v51 = vld [vmem:[#allocation2 + $0x108] sm:$0xee] }
 0x320   : > { %7266 = vrot.lane.b32.xlu0 %v16068_v18, %s13526_s18  ;;  %18231 = vst [vmem:[#allocation37_spill] sm:$0xff] %v16342_v51  ;;  %v16344_v29 = vld [vmem:[#allocation2 + $0xd0] sm:$0x11]  ;;  %v12016_v43 = vrot.slane %v7058_v32, 9  ;;  %v7124_v52 = vrot.slane %v7059_v61, 5  ;;  %v12017_v46 = vrot.slane %v7060_v36, 9 }
 0x321   : > { %7268 = vrot.lane.b32.xlu1 %v16089_v56, %s13526_s18  ;;  %v7891_v53 = vld [vmem:[#allocation2 + $0x58] sm:$0x11]  ;;  %v7895_v54 = vld [vmem:[#allocation2] sm:$0x11]  ;;  %v7128_v32 = vrot.slane %v7061_v27, 5  ;;  %v7928_v61 = vrot.slane %v7926_v4, 5 }
 0x322   : > { %v7125_v10 = vsel %vm14109_vm8, %v12016_v43, %v7124_v52  ;;  %v7893_v56 = vld [vmem:[#allocation2 + $0x48] sm:$0x11]  ;;  %v7062_v13 = vld [vmem:[#allocation2 + $0x20] sm:$0xee]  ;;  %v7063_v45 = vld [vmem:[#allocation2 + $0x58] sm:$0x11] }
 0x323   : > { %7202 = vst.msk [vmem:[#allocation3 + $0xc] sm:$0xff] %vm13730_vm15, %v7125_v10  ;;  %v7954_v18 = vshll.u32 %v15942_v60, 16  ;;  %v7129_v52 = vsel %vm14109_vm8, %v12017_v46, %v7128_v32  ;;  %v7064_v43 = vld [vmem:[#allocation2 + $0x90] sm:$0xee]  ;;  %v7065_v36 = vld [vmem:[#allocation2 + $0x48] sm:$0x11]  ;;  %v7929_v62 = vor.u32 %v7928_v61, %v7925_v47 }
 0x324   : > { %7270 = vrot.lane.b32.xlu0 %v16108_v55, %s13526_s18  ;;  %v7932_v27 = vshll.u32 %v7891_v53, 16  ;;  %7203 = vst.msk [vmem:[#allocation3 + $0x44] sm:$0xff] %vm13730_vm15, %v7129_v52  ;;  %v6142_v55 = vld [vmem:[#allocation2 + $0x38] sm:$0x22]  ;;  %v7960_v60 = vshll.u32 %v7895_v54, 16  ;;  %v12018_v46 = vrot.slane %v7062_v13, 9 }
 0x325   : > { %7272 = vrot.lane.b32.xlu1 %v16119_v1, %s13526_s18  ;;  %v7132_v32 = vrot.slane %v7063_v45, 5  ;;  %v16371_v58 = vld [vmem:[#allocation2 + $0x60] sm:$0xee]  ;;  %v16373_v1 = vrot.slane %v7951_v2, 4  ;;  %v12019_v4 = vrot.slane %v7064_v43, 9  ;;  %v7136_v51 = vrot.slane %v7065_v36, 5 }
 0x326   : > { %v16377_v53 = vld [vmem:[#allocation2 + $0x30] sm:$0x11]  ;;  %v7956_v10 = vrot.slane %v7954_v18, 5  ;;  %v7946_v52 = vshll.u32 %v7893_v56, 16  ;;  %v11767_v28 = vrot.slane %v6142_v55, 9  ;;  %v7939_v47 = vrot.slane %v7937_v21, 4 }
 0x327   : > { %v7133_v54 = vsel %vm14109_vm8, %v12018_v46, %v7132_v32  ;;  %v7979_v2 = vshrl.u32 %v15989_v49, 16  ;;  %v7982_v13 = vshll.u32 %v15989_v49, 16  ;;  %v7137_v45 = vsel %vm14109_vm8, %v12019_v4, %v7136_v51  ;;  %v7233_v18 = vld [vmem:[#allocation2 + $0x60] sm:$0xff]  ;;  %v13373_v38 = vld [vmem:[%s13591_s10 + $0xcf0] ss:$8 sps:$4 sm:$0xff]  }
 0x328   : > { %7274 = vrot.lane.b32.xlu0 %v16121_v23, %s13526_s18  ;;  %7204 = vst.msk [vmem:[#allocation3 + $0x7c] sm:$0xff] %vm13730_vm15, %v7133_v54  ;;  %v6260_v23 = vld [vmem:[#allocation2 + $0x38] sm:$0x11]  ;;  %v7942_v61 = vrot.slane %v7940_v57, 5  ;;  %v7965_v56 = vshrl.u32 %v15975_v11, 16  ;;  %v7968_v43 = vshll.u32 %v15975_v11, 16 }
 0x329   : > { %7276 = vrot.lane.b32.xlu1 %v16127_v25, %s13526_s18  ;;  %7205 = vst.msk [vmem:[#allocation3 + $0xb4] sm:$0xff] %vm13730_vm15, %v7137_v45  ;;  %v6261_v21 = vsel %vm13716_vm14, %v11767_v28, %v6260_v23  ;;  %v7728_v49 = vrot.slane %v16377_v53, 5  ;;  %v16396_v25 = vrot.slane %v7932_v27, 5  ;;  %v16399_v36 = vrot.slane %v7960_v60, 5  ;;  %v7899_v4 = vld [vmem:[#allocation2 + $0x120] sm:$0x11] }
 0x32a   : > { %6262 = vst [vmem:[#allocation2 + $0x38] sm:$0x11] %v6261_v21  ;;  %v18233_v11 = vrot.slane %v16230_v59, 5  ;;  %v18234_v57 = vrot.slane %v16224_v20, 9  ;;  %v18235_v46 = vrot.slane %v16241_v16, 5  ;;  %v18236_v27 = vrot.slane %v16232_v9, 9 }
 0x32b   : > { %v16415_v32 = vrot.slane %v7929_v62, 4  ;;  %v16417_v54 = vrot.slane %v7946_v52, 5  ;;  %v7066_v28 = vld [vmem:[#allocation2 + $0x128] sm:$0xee]  ;;  %v18237_v20 = vrot.slane %v16236_v24, 5  ;;  %v18238_v59 = vrot.slane %v16234_v7, 9 }
 0x32c   : > { %7278 = vrot.lane.b32.xlu0 %v16132_v37, %s13526_s18  ;;  %v7701_v55 = vsel %vm14109_vm8, %v18234_v57, %v18233_v11  ;;  %v7709_v60 = vsel %vm14109_vm8, %v18236_v27, %v18235_v46  ;;  %v7067_v37 = vld [vmem:[#allocation2] sm:$0x11]  ;;  %v7957_v9 = vor.u32 %v7956_v10, %v16373_v1  ;;  %v7981_v45 = vrot.slane %v7979_v2, 4  ;;  %v7068_v21 = vld [vmem:[#allocation2 + $0xb0] sm:$0xee] }
 0x32d   : > { %7280 = vrot.lane.b32.xlu1 %v7233_v18, %s13526_s18  ;;  %v7705_v16 = vsel %vm14109_vm8, %v18238_v59, %v18237_v20  ;;  %v7984_v23 = vrot.slane %v7982_v13, 5  ;;  %v7069_v62 = vld [vmem:[#allocation2 + $0x8] sm:$0x11]  ;;  %v7943_v11 = vor.u32 %v7942_v61, %v7939_v47  ;;  %v7988_v52 = vshll.u32 %v7899_v4, 16  ;;  %v16430_v20 = vld [vmem:[#allocation2 + $0x118] sm:$0x11] }
 0x32e   : > { %v7967_v57 = vrot.slane %v7965_v56, 4  ;;  %v7970_v46 = vrot.slane %v7968_v43, 5  ;;  %v7897_v27 = vld [vmem:[#allocation2 + $0x8] sm:$0x11]  ;;  %v8007_v18 = vshrl.u32 %v16299_v39, 16  ;;  %v8010_v24 = vshll.u32 %v16299_v39, 16 }
 0x32f   : > { %v12020_v51 = vrot.slane %v7066_v28, 9  ;;  %v7140_v7 = vrot.slane %v7067_v37, 5  ;;  %v7993_v10 = vshrl.u32 %v16003_v40, 16  ;;  %v7996_v1 = vshll.u32 %v16003_v40, 16  ;;  %v7903_v61 = vld [vmem:[#allocation2 + $0x30] sm:$0x11] }
 0x330   : > { %7762 = vrot.lane.b32.xlu0 %v7701_v55, %s13526_s18  ;;  %v12021_v2 = vrot.slane %v7068_v21, 9  ;;  %v7144_v47 = vrot.slane %v7069_v62, 5  ;;  %v7985_v13 = vor.u32 %v7984_v23, %v7981_v45  ;;  %v8035_v56 = vshrl.u32 %v16098_v26, 16  ;;  %v7901_v21 = vld [vmem:[#allocation2 + $0xf8] sm:$0x11] }
 0x331   : > { %7764 = vrot.lane.b32.xlu1 %v7705_v16, %s13526_s18  ;;  %v8038_v39 = vshll.u32 %v16098_v26, 16  ;;  %v7141_v43 = vsel %vm14109_vm8, %v12020_v51, %v7140_v7  ;;  %v16439_v4 = vrot.slane %v7957_v9, 4  ;;  %v7971_v55 = vor.u32 %v7970_v46, %v7967_v57 }
 0x332   : > { %v7974_v28 = vshll.u32 %v7897_v27, 16  ;;  %v7145_v40 = vsel %vm14109_vm8, %v12021_v2, %v7144_v47  ;;  %7206 = vst.msk [vmem:[#allocation3 + $0xec] sm:$0xff] %vm13730_vm15, %v7141_v43  ;;  %v7760_v37 = vrot.slane %v16430_v20, 5  ;;  %v16446_v59 = vrot.slane %v7943_v11, 4  ;;  %v7865_v11 = vld [vmem:[#allocation2 + $0x38] sm:$0xff] }
 0x333   : > { %v8009_v16 = vrot.slane %v8007_v18, 4  ;;  %v8012_v45 = vrot.slane %v8010_v24, 5  ;;  %7207 = vst.msk [vmem:[#allocation3 + $0x124] sm:$0xff] %vm13730_vm15, %v7145_v40  ;;  %v18239_v26 = vrot.slane %v16247_v8, 5  ;;  %v18240_v51 = vrot.slane %v16245_v6, 9  ;;  %7881 = vst.msk [vmem:[#allocation3 + $0x1ac] sm:$0xff] %vm13730_vm15, %v7865_v11 }
 0x334   : > { %7766 = vrot.lane.b32.xlu0 %v7709_v60, %s13526_s18  ;;  %v8016_v23 = vshll.u32 %v7903_v61, 16  ;;  %v7995_v62 = vrot.slane %v7993_v10, 4  ;;  %v7998_v57 = vrot.slane %v7996_v1, 5  ;;  %v16458_v46 = vrot.slane %v7985_v13, 4  ;;  %v7907_v18 = vld [vmem:[#allocation2 + $0xc8] sm:$0x11] }
 0x335   : > { %v7713_v9 = vsel %vm14109_vm8, %v18240_v51, %v18239_v26  ;;  %v16460_v27 = vrot.slane %v7988_v52, 5  ;;  %v8037_v60 = vrot.slane %v8035_v56, 4  ;;  %v8040_v24 = vrot.slane %v8038_v39, 5  ;;  %v7905_v2 = vld [vmem:[#allocation2 + $0x10] sm:$0x11] }
 0x336   : > { %7768 = vrot.lane.b32.xlu1 %v7713_v9, %s13526_s18  ;;  %v18241_v6 = vrot.slane %v16250_v22, 5  ;;  %v18242_v8 = vrot.slane %v16243_v35, 9  ;;  %v16470_v10 = vrot.slane %v7971_v55, 4  ;;  %v16472_v1 = vrot.slane %v7974_v28, 5  ;;  %v7070_v52 = vld [vmem:[#allocation2 + $0x138] sm:$0xee] }
 0x337   : > { %v18243_v47 = vrot.slane %v16262_v15, 5  ;;  %v18244_v13 = vrot.slane %v16252_v5, 9  ;;  %v18245_v22 = vrot.slane %v16256_v48, 5  ;;  %v18246_v35 = vrot.slane %v16254_v17, 9  ;;  %v7071_v55 = vld [vmem:[#allocation2 + $0x120] sm:$0x11] }
 0x338   : > { %v7717_v7 = vsel %vm14109_vm8, %v18242_v8, %v18241_v6  ;;  %v18247_v39 = vrot.slane %v16277_v0, 9  ;;  %v8013_v15 = vor.u32 %v8012_v45, %v8009_v16  ;;  %v7072_v5 = vld [vmem:[#allocation2 + $0x28] sm:$0xee]  ;;  %v7073_v28 = vld [vmem:[#allocation2 + $0xf8] sm:$0x11]  ;;  %v16493_v40 = vrot.slane %v8016_v23, 5 }
 0x339   : > { %v7725_v61 = vsel %vm14109_vm8, %v18244_v13, %v18243_v47  ;;  %v7721_v56 = vsel %vm14109_vm8, %v18246_v35, %v18245_v22  ;;  %7770 = vrot.lane.b32.xlu0 %v7717_v7, %s13526_s18  ;;  %v7999_v48 = vor.u32 %v7998_v57, %v7995_v62  ;;  %v8002_v17 = vshll.u32 %v7901_v21, 16  ;;  %v16500_v23 = vld [vmem:[#allocation2 + $0xb8] sm:$0x11]  ;;  %v6290_v7 = vld [vmem:[#allocation2 + $0xe8] sm:$0x11] }
 0x33a   : > { %v7729_v43 = vsel %vm14109_vm8, %v18247_v39, %v7728_v49  ;;  %v8044_v26 = vshll.u32 %v7907_v18, 16  ;;  %7772 = vrot.lane.b32.xlu1 %v7721_v56, %s13526_s18  ;;  %v8041_v51 = vor.u32 %v8040_v24, %v8037_v60  ;;  %v8030_v53 = vshll.u32 %v7905_v2, 16  ;;  %v6152_v49 = vld [vmem:[#allocation2 + $0xe8] sm:$0x22]  ;;  %v7909_v47 = vld [vmem:[#allocation2 + $0xc0] sm:$0x11] }
 0x33b   : > { %v8063_v0 = vshrl.u32 %v16134_v30, 16  ;;  %v8066_v9 = vshll.u32 %v16134_v30, 16  ;;  %v12022_v16 = vrot.slane %v7070_v52, 9  ;;  %v7148_v45 = vrot.slane %v7071_v55, 5  ;;  %v13105_v13 = vld [vmem:[%s13591_s10 + $0xa34] ss:$8 sps:$4 sm:$0xff]  }
 0x33c   : > { %v12023_v11 = vrot.slane %v7072_v5, 9  ;;  %v7152_v6 = vrot.slane %v7073_v28, 5  ;;  %v16498_v8 = vrot.slane %v8013_v15, 4  ;;  %v8049_v21 = vshrl.u32 %v16110_v12, 16  ;;  %v7915_v39 = vld [vmem:[#allocation2 + $0xd0] sm:$0x11]  ;;  %10509 = vmatprep.subr.bf16.mxu0 %v13105_v13 }
 0x33d   : > { %v8052_v62 = vshll.u32 %v16110_v12, 16  ;;  %v11777_v57 = vrot.slane %v6152_v49, 9  ;;  %7774 = vrot.lane.b32.xlu0 %v7725_v61, %s13526_s18  ;;  %v16505_v18 = vrot.slane %v8002_v17, 5  ;;  %v16507_v30 = vrot.slane %v8044_v26, 5  ;;  %v7074_v28 = vld [vmem:[#allocation2 + $0x40] sm:$0xee] }
 0x33e   : > { %v7149_v60 = vsel %vm14109_vm8, %v12022_v16, %v7148_v45  ;;  %v7153_v24 = vsel %vm14109_vm8, %v12023_v11, %v7152_v6  ;;  %7776 = vrot.lane.b32.xlu1 %v7729_v43, %s13526_s18  ;;  %v8065_v2 = vrot.slane %v8063_v0, 4  ;;  %v8068_v52 = vrot.slane %v8066_v9, 5  ;;  %v7076_v0 = vld [vmem:[#allocation2 + $0x98] sm:$0xee]  ;;  %v7077_v9 = vld [vmem:[#allocation2 + $0xa0] sm:$0x11] }
 0x33f   : > { %7208 = vst.msk [vmem:[#allocation3 + $0x15c] sm:$0xff] %vm13730_vm15, %v7149_v60  ;;  %7209 = vst.msk [vmem:[#allocation3 + $0x194] sm:$0xff] %vm13730_vm15, %v7153_v24  ;;  %v6291_v12 = vsel %vm13716_vm14, %v11777_v57, %v6290_v7  ;;  %v16521_v61 = vrot.slane %v7999_v48, 4  ;;  %v16523_v22 = vrot.slane %v8041_v51, 4  ;;  %v16525_v35 = vrot.slane %v8030_v53, 5  ;;  %v18254_v6 = vld [vmem:[#allocation16_spill] sm:$0xff] }
 0x340   : > { %v8072_v56 = vshll.u32 %v16500_v23, 16  ;;  %6292 = vst [vmem:[#allocation2 + $0xe8] sm:$0x11] %v6291_v12  ;;  %v18248_v43 = vrot.slane %v16266_v42, 5  ;;  %v18249_v15 = vrot.slane %v16264_v33, 9  ;;  %v8051_v3 = vrot.slane %v8049_v21, 4 }
 0x341   : > { %v8054_v5 = vrot.slane %v8052_v62, 5  ;;  %v7075_v48 = vld [vmem:[#allocation2 + $0x50] sm:$0x11]  ;;  %v18250_v17 = vrot.slane %v16281_v14, 5  ;;  %v18251_v26 = vrot.slane %v16279_v31, 9  ;;  %v18252_v42 = vrot.slane %v16305_v34, 5 }
 0x342   : > { %v7733_v55 = vsel %vm14109_vm8, %v18249_v15, %v18248_v43  ;;  %v18253_v33 = vrot.slane %v16292_v63, 9  ;;  %v12024_v49 = vrot.slane %v7074_v28, 9  ;;  %v7156_v16 = vrot.slane %v7075_v48, 5  ;;  %v7078_v62 = vld [vmem:[#allocation2 + $0x18] sm:$0xee]  ;;  %v18256_v60 = vld [vmem:[#allocation27_spill] sm:$0xff]  ;;  %v6965_v15 = vpop.permute.xlu1 %6964 }
 0x343   : > { %7778 = vrot.lane.b32.xlu0 %v7733_v55, %s13526_s18  ;;  %v7741_v51 = vsel %vm14109_vm8, %v18251_v26, %v18250_v17  ;;  %v8069_v45 = vor.u32 %v8068_v52, %v8065_v2  ;;  %v8058_v14 = vshll.u32 %v7909_v47, 16  ;;  %v12025_v11 = vrot.slane %v7076_v0, 9  ;;  %v7081_v43 = vld [vmem:[#allocation2 + $0xc0] sm:$0x11] }
 0x344   : > { %v7737_v53 = vsel %vm14109_vm8, %v18253_v33, %v18252_v42  ;;  %v7160_v31 = vrot.slane %v7077_v9, 5  ;;  %v8091_v23 = vshrl.u32 %v18254_v6, 16  ;;  %v8094_v21 = vshll.u32 %v18254_v6, 16 }
 0x345   : > { %7780 = vrot.lane.b32.xlu1 %v7737_v53, %s13526_s18  ;;  %v8100_v34 = vshll.u32 %v7915_v39, 16  ;;  %v7157_v63 = vsel %vm14109_vm8, %v12024_v49, %v7156_v16  ;;  %v18255_v57 = vrot.slane %v16318_v41, 5  ;;  %v18257_v24 = vrot.slane %v18256_v60, 9  ;;  %v7079_v41 = vld [vmem:[#allocation2 + $0xc8] sm:$0x11] }
 0x346   : > { %v18258_v2 = vrot.slane %v16322_v19, 5  ;;  %v18259_v52 = vrot.slane %v16320_v50, 9  ;;  %v8055_v12 = vor.u32 %v8054_v5, %v8051_v3  ;;  %v7161_v13 = vsel %vm14109_vm8, %v12025_v11, %v7160_v31  ;;  %7210 = vst.msk [vmem:[#allocation3 + $0x1cc] sm:$0xff] %vm13730_vm15, %v7157_v63  ;;  %v7080_v39 = vld [vmem:[#allocation2 + $0xd8] sm:$0xee]  ;;  %v18262_v31 = vld [vmem:[#allocation35_spill] sm:$0xff] }
 0x347   : > { %v7749_v7 = vsel %vm14109_vm8, %v18257_v24, %v18255_v57  ;;  %7782 = vrot.lane.b32.xlu0 %v7741_v51, %s13526_s18  ;;  %7211 = vst.msk [vmem:[#allocation3 + $0x204] sm:$0xff] %vm13730_vm15, %v7161_v13  ;;  %v12026_v19 = vrot.slane %v7078_v62, 9  ;;  %v7164_v50 = vrot.slane %v7079_v41, 5  ;;  %v12027_v55 = vrot.slane %v7080_v39, 9  ;;  %v16572_v5 = vld [vmem:[#allocation2 + $0x38] sm:$0xff]  ;;  %v18267_v62 = vld [vmem:[#allocation37_spill] sm:$0xff] }
 0x348   : > { %v7745_v47 = vsel %vm14109_vm8, %v18259_v52, %v18258_v2  ;;  %v7168_v28 = vrot.slane %v7081_v43, 5  ;;  %v6995_v3 = vrot.slane %v6965_v15, 4  ;;  %v16574_v48 = vrot.slane %v8069_v45, 4  ;;  %v16591_v49 = vld [vmem:[#allocation2 + $0xa8] sm:$0x11] }
 0x349   : > { %7784 = vrot.lane.b32.xlu1 %v7745_v47, %s13526_s18  ;;  %v16576_v17 = vrot.slane %v8072_v56, 5  ;;  %v16578_v26 = vrot.slane %v8058_v14, 5  ;;  %v16580_v51 = vrot.slane %v8091_v23, 4  ;;  %v16582_v42 = vrot.slane %v8094_v21, 5  ;;  %v18260_v56 = vld [vmem:[#allocation20_spill] sm:$0xff]  ;;  %v16595_v14 = vld [vmem:[#allocation2 + $0x60] sm:$0xff]  ;;  %v6963_v47 = vpop.permute.xlu0 %6962 }
 0x34a   : > { %v7165_v33 = vsel %vm14109_vm8, %v12026_v19, %v7164_v50  ;;  %v7169_v53 = vsel %vm14109_vm8, %v12027_v55, %v7168_v28  ;;  %v7011_v0 = vsel %vm1663_vm12, %v6995_v3, %v6965_v15  ;;  %v16589_v9 = vrot.slane %v8100_v34, 5  ;;  %v18264_v23 = vld [vmem:[#allocation28_spill] sm:$0xff]  ;;  %v7082_v2 = vld [vmem:[#allocation2 + $0x110] sm:$0xee]  ;;  %v7083_v52 = vld [vmem:[#allocation2 + $0xb8] sm:$0x11] }
 0x34b   : > { %v8077_v16 = vshrl.u32 %v18260_v56, 16  ;;  %v8080_v45 = vshll.u32 %v18260_v56, 16  ;;  %7212 = vst.msk [vmem:[#allocation3 + $0x23c] sm:$0xff] %vm13730_vm15, %v7165_v33  ;;  %7213 = vst.msk [vmem:[#allocation3 + $0x274] sm:$0xff] %vm13730_vm15, %v7169_v53  ;;  %7786 = vrot.lane.b32.xlu0 %v7749_v7, %s13526_s18  ;;  %v18263_v6 = vrot.slane %v18262_v31, 5  ;;  %v18265_v21 = vrot.slane %v18264_v23, 9 }
 0x34c   : > { %7043 = vst.msk [vmem:[#allocation3 + $0x3c] sm:$0xff] %vm14288_vm13, %v7011_v0  ;;  %v18266_v63 = vrot.slane %v16344_v29, 5  ;;  %v18268_v57 = vrot.slane %v18267_v62, 9  ;;  %v8021_v24 = vshrl.u32 %v16572_v5, 16  ;;  %v16617_v7 = vrot.slane %v8055_v12, 4  ;;  %v7346_v33 = vld [vmem:[#allocation2 + $0xe0] sm:$0xff] }
 0x34d   : > { %v7757_v34 = vsel %vm14109_vm8, %v18265_v21, %v18263_v6  ;;  %v7935_v41 = vsel %vm13814_vm5, %v16415_v32, %v16396_v25  ;;  %v18270_v29 = vrot.slane %v16371_v58, 9  ;;  %v7084_v43 = vld [vmem:[#allocation2 + $0xf0] sm:$0xee]  ;;  %v7085_v12 = vld [vmem:[#allocation2 + $0xa8] sm:$0x11]  ;;  %v12028_v15 = vrot.slane %v7082_v2, 9 }
 0x34e   : > { %v7753_v60 = vsel %vm14109_vm8, %v18268_v57, %v18266_v63  ;;  %v7172_v19 = vrot.slane %v7083_v52, 5  ;;  %v6994_v50 = vrot.slane %v6963_v47, 4  ;;  %v8086_v55 = vshll.u32 %v16591_v49, 16  ;;  %v7873_v53 = vld [vmem:[#allocation2 + $0xe8] sm:$0xff]  ;;  %v16644_v56 = vld [vmem:[#allocation2 + $0x118] sm:$0x11]  ;;  %v6967_v63 = vpop.permute.xlu0 %6966 }
 0x34f   : > { %7788 = vrot.lane.b32.xlu1 %v7753_v60, %s13526_s18  ;;  %v7761_v39 = vsel %vm14109_vm8, %v18270_v29, %v7760_v37  ;;  %v12029_v28 = vrot.slane %v7084_v43, 9  ;;  %v7176_v3 = vrot.slane %v7085_v12, 5  ;;  %v8024_v25 = vshll.u32 %v16572_v5, 16  ;;  %7889 = vst.msk [vmem:[#allocation3 + $0x36c] sm:$0xff] %vm13730_vm15, %v7873_v53  ;;  %7790 = vrot.lane.b32.xlu0 %v7757_v34, %s13526_s18  ;;  %v18271_v31 = vld [vmem:[#allocation23_spill] sm:$0xff] }
 0x350   : > { %v16632_v32 = vrot.slane %v8077_v16, 4  ;;  %v16634_v20 = vrot.slane %v8080_v45, 5  ;;  %v7173_v58 = vsel %vm14109_vm8, %v12028_v15, %v7172_v19  ;;  %v7010_v37 = vsel %vm1663_vm12, %v6994_v50, %v6963_v47  ;;  %v7086_v23 = vld [vmem:[#allocation2 + $0x108] sm:$0xee]  ;;  %v7088_v2 = vld [vmem:[#allocation2 + $0x78] sm:$0xee] }
 0x351   : > { %v16642_v0 = vrot.slane %v8021_v24, 4  ;;  %v8119_v5 = vshrl.u32 %v16595_v14, 16  ;;  %v7177_v16 = vsel %vm14109_vm8, %v12029_v28, %v7176_v3  ;;  %7214 = vst.msk [vmem:[#allocation3 + $0x2ac] sm:$0xff] %vm13730_vm15, %v7173_v58  ;;  %v8122_v45 = vshll.u32 %v16595_v14, 16  ;;  %v7087_v24 = vld [vmem:[#allocation2 + $0xd0] sm:$0x11] }
 0x352   : > { %7042 = vst.msk [vmem:[#allocation3 + $0x4] sm:$0xff] %vm14288_vm13, %v7010_v37  ;;  %v8105_v6 = vshrl.u32 %v18271_v31, 16  ;;  %v7379_v21 = vshrl.u32 %v7346_v33, 16  ;;  %v7382_v34 = vshll.u32 %v7346_v33, 16  ;;  %v7963_v62 = vsel %vm13814_vm5, %v16439_v4, %v16399_v36  ;;  %v7089_v52 = vld [vmem:[#allocation2 + $0x130] sm:$0x11] }
 0x353   : > { %7792 = vrot.lane.b32.xlu1 %v7761_v39, %s13526_s18  ;;  %7215 = vst.msk [vmem:[#allocation3 + $0x2e4] sm:$0xff] %vm13730_vm15, %v7177_v16  ;;  %v7949_v57 = vsel %vm13814_vm5, %v16446_v59, %v16417_v54  ;;  %v7991_v14 = vsel %vm13814_vm5, %v16458_v46, %v16460_v27  ;;  %v8097_v60 = vor.u32 %v16582_v42, %v16580_v51  ;;  %v6996_v47 = vrot.slane %v6967_v63, 4  ;;  %v7920_v59 = vld [vmem:[#allocation2 + $0xe8] sm:$0xff]  ;;  %v7917_v50 = vld [vmem:[#allocation2 + $0x130] sm:$0x11] }
 0x354   : > { %v8108_v29 = vshll.u32 %v18271_v31, 16  ;;  %v12030_v36 = vrot.slane %v7086_v23, 9  ;;  %v7180_v4 = vrot.slane %v7087_v24, 5  ;;  %8146 = vrot.lane.b32.xlu0 %v7935_v41, %s13526_s18  ;;  %v8026_v39 = vrot.slane %v8024_v25, 5  ;;  %v13061_v53 = vld [vmem:[%s13591_s10 + $0x930] ss:$8 sps:$4 sm:$0xff]  }
 0x355   : > { %v8083_v54 = vor.u32 %v16634_v20, %v16632_v32  ;;  %v12031_v43 = vrot.slane %v7088_v2, 9  ;;  %v7184_v12 = vrot.slane %v7089_v52, 5  ;;  %v7012_v51 = vsel %vm1663_vm12, %v6996_v47, %v6967_v63  ;;  %v16692_v20 = vld [vmem:[#allocation2 + $0x70] sm:$0x11]  ;;  %v13075_v52 = vld [vmem:[%s13591_s10 + $0x920] ss:$8 sps:$4 sm:$0xff]  }
 0x356   : > { %v16678_v42 = vrot.slane %v8119_v5, 4  ;;  %v8128_v15 = vshll.u32 %v16644_v56, 16  ;;  %v7181_v19 = vsel %vm14109_vm8, %v12030_v36, %v7180_v4  ;;  %7044 = vst.msk [vmem:[#allocation3 + $0x74] sm:$0xff] %vm14288_vm13, %v7012_v51  ;;  %v16685_v41 = vrot.slane %v8122_v45, 5  ;;  %v6969_v56 = vpop.permute.xlu1 %6968  ;;  %v13064_v45 = vld [vmem:[#allocation3] ss:$56 sps:$4 sm:$0xff]  }
 0x357   : > { %8148 = vrot.lane.b32.xlu1 %v7949_v57, %s13526_s18  ;;  %v7185_v28 = vsel %vm14109_vm8, %v12031_v43, %v7184_v12  ;;  %7216 = vst.msk [vmem:[#allocation3 + $0x31c] sm:$0xff] %vm13730_vm15, %v7181_v19  ;;  %v7381_v3 = vrot.slane %v7379_v21, 4  ;;  %v7384_v33 = vrot.slane %v7382_v34, 5  ;;  %v8107_v25 = vrot.slane %v8105_v6, 4  ;;  %v13077_v6 = vld [vmem:[%s13591_s10 + $0x924] ss:$8 sps:$4 sm:$0xff]   ;;  %v6971_v12 = vpop.permute.xlu0 %6970 }
 0x358   : > { %v8110_v32 = vrot.slane %v8108_v29, 5  ;;  %v8133_v58 = vshrl.u32 %v7920_v59, 16  ;;  %v8136_v37 = vshll.u32 %v7920_v59, 16  ;;  %7217 = vst.msk [vmem:[#allocation3 + $0x354] sm:$0xff] %vm13730_vm15, %v7185_v28  ;;  %8150 = vrot.lane.b32.xlu0 %v7963_v62, %s13526_s18  ;;  %v7977_v5 = vsel %vm13814_vm5, %v16470_v10, %v16472_v1  ;;  %v18272_v21 = vld [vmem:[#allocation17_spill] sm:$0xff] }
 0x359   : > { %v8019_v16 = vsel %vm13814_vm5, %v16498_v8, %v16493_v40  ;;  %v13066_v31 = vld [vmem:[#allocation3 + $0x4] ss:$56 sps:$4 sm:$0xff]   ;;  %v8027_v23 = vor.u32 %v8026_v39, %v16642_v0  ;;  %v7407_v34 = vshrl.u32 %v18272_v21, 16  ;;  %v6997_v63 = vrot.slane %v6969_v56, 4  ;;  %v13067_v62 = vld [vmem:[#allocation3 + $0x8] ss:$56 sps:$4 sm:$0xff]  }
 0x35a   : > { %v13069_v57 = vld [vmem:[#allocation3 + $0xc] ss:$56 sps:$4 sm:$0xff]   ;;  %v8005_v10 = vsel %vm13814_vm5, %v16521_v61, %v16505_v18  ;;  %v8047_v1 = vsel %vm13814_vm5, %v16523_v22, %v16507_v30  ;;  %v8075_v40 = vsel %vm13814_vm5, %v16574_v48, %v16576_v17  ;;  %10202 = vmatprep.mubr.bf16.mxu1 %v13066_v31  ;;  %v16721_v8 = vrot.slane %v8097_v60, 4  ;;  %v13103_v61 = vld [vmem:[%s13591_s10 + $0xa30] ss:$8 sps:$4 sm:$0xff]  }
 0x35b   : > { %8152 = vrot.lane.b32.xlu1 %v7977_v5, %s13526_s18  ;;  %v16725_v0 = vrot.slane %v8086_v55, 5  ;;  %v8114_v18 = vshll.u32 %v7917_v50, 16  ;;  %v7385_v24 = vor.u32 %v7384_v33, %v7381_v3  ;;  %v7013_v2 = vsel %vm1663_vm12, %v6997_v63, %v6969_v56  ;;  %10315 = vmatprep.mubr.bf16.mxu0 %v13069_v57  ;;  %v13111_v36 = vld [vmem:[%s13591_s10 + $0xa24] ss:$8 sps:$4 sm:$0xff]   ;;  %v13080_v55 = vld [vmem:[%s13591_s10 + $0x914] ss:$8 sps:$4 sm:$0xff]   ;;  %v6973_v57 = vpop.permute.xlu1 %6972 }
 0x35c   : > { %10203 = vmatmul.mubr.bf16.vlgmr.msra.gmra.mxu1 %v13064_v45  ;;  %v16730_v47 = vrot.slane %v8083_v54, 4  ;;  %v8125_v29 = vor.u32 %v16685_v41, %v16678_v42  ;;  %v8111_v60 = vor.u32 %v8110_v32, %v8107_v25  ;;  %7045 = vst.msk [vmem:[#allocation3 + $0xac] sm:$0xff] %vm14288_vm13, %v7013_v2  ;;  %8154 = vrot.lane.b32.xlu0 %v7991_v14, %s13526_s18  ;;  %v8028_v49 = vrot.slane %v8027_v23, 4  ;;  %v7347_v46 = vld [vmem:[#allocation2 + $0x100] sm:$0x11]  ;;  %v18273_v50 = vld [vmem:[#allocation14_spill] sm:$0xff] }
 0x35d   : > { %10316 = vmatmul.mubr.bf16.vlgmr.msra.gmra.mxu0 %v13067_v62  ;;  %v8135_v4 = vrot.slane %v8133_v58, 4  ;;  %v8138_v39 = vrot.slane %v8136_v37, 5  ;;  %v8142_v54 = vshll.u32 %v16692_v20, 16  ;;  %10397 = vmatpush1.bf16.msra.mxu1 %v13061_v53  ;;  %v8061_v59 = vsel %vm13814_vm5, %v16617_v7, %v16578_v26  ;;  %v13109_v42 = vld [vmem:[%s13591_s10 + $0xa20] ss:$8 sps:$4 sm:$0xff]   ;;  %v8416_v5 = vld [vmem:[#allocation3 + $0x70] sm:$0xff] }
 0x35e   : > { %v16750_v43 = vrot.slane %v8128_v15, 5  ;;  %v7409_v27 = vrot.slane %v7407_v34, 4  ;;  %v7410_v14 = vshll.u32 %v18272_v21, 16  ;;  %10398 = vmatprep.subr.bf16.mxu1 %v13077_v6  ;;  %v16753_v51 = vrot.slane %v8114_v18, 5  ;;  %10510 = vmatpush1.bf16.msra.mxu0 %v13103_v61  ;;  %v13123_v7 = vld [vmem:[%s13591_s10 + $0xa14] ss:$8 sps:$4 sm:$0xff]  }
 0x35f   : > { %8156 = vrot.lane.b32.xlu1 %v8005_v10, %s13526_s18  ;;  %v7386_v19 = vrot.slane %v7385_v24, 4  ;;  %v7388_v41 = vshll.u32 %v7347_v46, 16  ;;  %v7393_v28 = vshrl.u32 %v18273_v50, 16  ;;  %v6998_v3 = vrot.slane %v6971_v12, 4  ;;  %10511 = vmatprep.subr.bf16.mxu0 %v13111_v36  ;;  %v7351_v58 = vld [vmem:[#allocation2 + $0x48] sm:$0x11] }
 0x360   : > { %v16757_v33 = vrot.slane %v8125_v29, 4  ;;  %v16759_v26 = vrot.slane %v8111_v60, 4  ;;  %v7412_v15 = vrot.slane %v7410_v14, 5  ;;  %8158 = vrot.lane.b32.xlu0 %v8019_v16, %s13526_s18  ;;  %v8033_v53 = vsel %vm13814_vm5, %v8028_v49, %v16525_v35  ;;  %v7349_v37 = vld [vmem:[#allocation2 + $0x58] sm:$0x11]  ;;  %v18274_v63 = vld [vmem:[#allocation15_spill] sm:$0xff] }
 0x361   : > { %v8139_v25 = vor.u32 %v8138_v39, %v8135_v4  ;;  %v16766_v32 = vrot.slane %v8142_v54, 5  ;;  %v7390_v20 = vrot.slane %v7388_v41, 5  ;;  %v7014_v56 = vsel %vm1663_vm12, %v6998_v3, %v6971_v12  ;;  %10399 = vmatpush1.bf16.msra.mxu1 %v13075_v52  ;;  %v13078_v45 = vld [vmem:[%s13591_s10 + $0x910] ss:$8 sps:$4 sm:$0xff]   ;;  %v13088_v35 = vld [vmem:[%s13591_s10 + $0x904] ss:$8 sps:$4 sm:$0xff]  }
 0x362   : > { %v7413_v31 = vor.u32 %v7412_v15, %v7409_v27  ;;  %v7416_v16 = vshll.u32 %v7351_v58, 16  ;;  %v7396_v6 = vshll.u32 %v18273_v50, 16  ;;  %7046 = vst.msk [vmem:[#allocation3 + $0xe4] sm:$0xff] %vm14288_vm13, %v7014_v56  ;;  %10400 = vmatprep.subr.bf16.mxu1 %v13080_v55  ;;  %10512 = vmatpush1.bf16.msra.mxu0 %v13109_v42  ;;  %v7395_v21 = vrot.slane %v7393_v28, 4  ;;  %v13121_v2 = vld [vmem:[%s13591_s10 + $0xa10] ss:$8 sps:$4 sm:$0xff]   ;;  %v6975_v27 = vpop.permute.xlu0 %6974 }
 0x363   : > { %8160 = vrot.lane.b32.xlu1 %v8033_v53, %s13526_s18  ;;  %v7391_v23 = vsel %vm13814_vm5, %v7386_v19, %v7390_v20  ;;  %v7402_v34 = vshll.u32 %v7349_v37, 16  ;;  %v7435_v62 = vshrl.u32 %v18274_v63, 16  ;;  %v8423_v10 = vld [vmem:[#allocation3 + $0xa8] sm:$0xff]  ;;  %v8103_v61 = vsel %vm13814_vm5, %v16721_v8, %v16589_v9  ;;  %10513 = vmatprep.subr.bf16.mxu0 %v13123_v7  ;;  %v13074_v36 = vld [vmem:[#allocation3 + $0x7c] ss:$56 sps:$4 sm:$0xff]   ;;  %v6977_v7 = vpop.permute.xlu1 %6976 }
 0x364   : > { %v13070_v18 = vld [vmem:[#allocation3 + $0x74] ss:$56 sps:$4 sm:$0xff]   ;;  %v8089_v24 = vsel %vm13814_vm5, %v16730_v47, %v16725_v0  ;;  %7618 = vst.msk [vmem:[#allocation3 + $0x18] sm:$0xff] %vm13730_vm15, %v7391_v23  ;;  %v7414_v52 = vrot.slane %v7413_v31, 4  ;;  %v7418_v29 = vrot.slane %v7416_v16, 5  ;;  %v6999_v60 = vrot.slane %v6973_v57, 4  ;;  %8162 = vrot.lane.b32.xlu0 %v8047_v1, %s13526_s18  ;;  %10325 = vmatprep.mubr.bf16.mxu0 %v13074_v36 }
 0x365   : > { %v12078_v49 = vcombine.low %v8416_v5, %v8423_v10  ;;  %v16795_v55 = vrot.slane %v8139_v25, 4  ;;  %v7398_v0 = vrot.slane %v7396_v6, 5  ;;  %10212 = vmatprep.mubr.bf16.mxu1 %v13070_v18  ;;  %v13072_v47 = vld [vmem:[#allocation3 + $0x78] ss:$56 sps:$4 sm:$0xff]   ;;  %v13086_v4 = vld [vmem:[%s13591_s10 + $0x900] ss:$8 sps:$4 sm:$0xff]   ;;  %v8117_v39 = vsel %vm13814_vm5, %v16759_v26, %v16753_v51  ;;  %10401 = vmatpush1.bf16.msra.mxu1 %v13078_v45 }
 0x366   : > { %v7419_v30 = vsel %vm13814_vm5, %v7414_v52, %v7418_v29  ;;  %v7355_v22 = vld [vmem:[#allocation2 + $0x8] sm:$0x11]  ;;  %v7437_v1 = vrot.slane %v7435_v62, 4  ;;  %v7438_v54 = vshll.u32 %v18274_v63, 16  ;;  %v7015_v46 = vsel %vm1663_vm12, %v6999_v60, %v6973_v57  ;;  %v7353_v51 = vld [vmem:[#allocation2] sm:$0x11]  ;;  %10326 = vmatmul.mubr.bf16.gmra.mxu0 %v13072_v47  ;;  %10402 = vmatprep.subr.bf16.mxu1 %v13088_v35 }
 0x367   : > { %8164 = vrot.lane.b32.xlu1 %v8061_v59, %s13526_s18  ;;  %10213 = vmatmul.mubr.bf16.gmra.mxu1 %v12078_v49  ;;  %v13135_v59 = vld [vmem:[%s13591_s10 + $0xa04] ss:$8 sps:$4 sm:$0xff]   ;;  %7620 = vst.msk [vmem:[#allocation3 + $0x88] sm:$0xff] %vm13730_vm15, %v7419_v30  ;;  %v7399_v14 = vor.u32 %v7398_v0, %v7395_v21  ;;  %v7444_v12 = vshll.u32 %v7355_v22, 16  ;;  %v18275_v42 = vld [vmem:[#allocation18_spill] sm:$0xff]  ;;  %v7000_v41 = vrot.slane %v6975_v27, 4  ;;  %v8131_v30 = vsel %vm13814_vm5, %v16757_v33, %v16750_v43 }
 0x368   : > { %v7421_v19 = vshrl.u32 %v18275_v42, 16  ;;  %7047 = vst.msk [vmem:[#allocation3 + $0x11c] sm:$0xff] %vm14288_vm13, %v7015_v46  ;;  %v13091_v50 = vld [vmem:[%s13591_s10 + $0x8f4] ss:$8 sps:$4 sm:$0xff]   ;;  %v7404_v28 = vrot.slane %v7402_v34, 5  ;;  %v7440_v3 = vrot.slane %v7438_v54, 5  ;;  %8166 = vrot.lane.b32.xlu0 %v8075_v40, %s13526_s18  ;;  %10514 = vmatpush1.bf16.msra.mxu0 %v13121_v2  ;;  %v8145_v33 = vsel %vm13814_vm5, %v16795_v55, %v16766_v32 }
 0x369   : > { %v7424_v26 = vshll.u32 %v18275_v42, 16  ;;  %v13133_v15 = vld [vmem:[%s13591_s10 + $0xa00] ss:$8 sps:$4 sm:$0xff]   ;;  %v7400_v53 = vrot.slane %v7399_v14, 4  ;;  %v7430_v20 = vshll.u32 %v7353_v51, 16  ;;  %v18276_v58 = vld [vmem:[#allocation25_spill] sm:$0xff]  ;;  %v7016_v56 = vsel %vm1663_vm12, %v7000_v41, %v6975_v27  ;;  %10515 = vmatprep.subr.bf16.mxu0 %v13135_v59  ;;  %10403 = vmatpush1.bf16.msra.mxu1 %v13086_v4 }
 0x36a   : > { %v7423_v25 = vrot.slane %v7421_v19, 4  ;;  %v7463_v37 = vshrl.u32 %v18276_v58, 16  ;;  %v7001_v5 = vrot.slane %v6977_v7, 4  ;;  %v13141_v45 = vld [vmem:[%s13591_s10 + $0x9f4] ss:$8 sps:$4 sm:$0xff]   ;;  %v7441_v31 = vor.u32 %v7440_v3, %v7437_v1  ;;  %7048 = vst.msk [vmem:[#allocation3 + $0x154] sm:$0xff] %vm14288_vm13, %v7016_v56  ;;  %10404 = vmatprep.subr.bf16.mxu1 %v13091_v50 }
 0x36b   : > { %8168 = vrot.lane.b32.xlu1 %v8089_v24, %s13526_s18  ;;  %v7426_v16 = vrot.slane %v7424_v26, 5  ;;  %v7405_v48 = vsel %vm13814_vm5, %v7400_v53, %v7404_v28  ;;  %v7446_v17 = vrot.slane %v7444_v12, 5  ;;  %v7359_v40 = vld [vmem:[#allocation2 + $0xf8] sm:$0x11]  ;;  %v7466_v35 = vshll.u32 %v18276_v58, 16  ;;  %v18277_v18 = vld [vmem:[#allocation19_spill] sm:$0xff] }
 0x36c   : > { %v7465_v6 = vrot.slane %v7463_v37, 4  ;;  %v7017_v23 = vsel %vm1663_vm12, %v7001_v5, %v6977_v7  ;;  %v13089_v21 = vld [vmem:[%s13591_s10 + $0x8f0] ss:$8 sps:$4 sm:$0xff]   ;;  %7619 = vst.msk [vmem:[#allocation3 + $0x50] sm:$0xff] %vm13730_vm15, %v7405_v48  ;;  %v7442_v34 = vrot.slane %v7441_v31, 4  ;;  %v7472_v62 = vshll.u32 %v7359_v40, 16  ;;  %8170 = vrot.lane.b32.xlu0 %v8103_v61, %s13526_s18  ;;  %10516 = vmatpush1.bf16.msra.mxu0 %v13133_v15 }
 0x36d   : > { %v7427_v63 = vor.u32 %v7426_v16, %v7423_v25  ;;  %v7357_v57 = vld [vmem:[#allocation2 + $0x120] sm:$0x11]  ;;  %7049 = vst.msk [vmem:[#allocation3 + $0x18c] sm:$0xff] %vm14288_vm13, %v7017_v23  ;;  %v7468_v10 = vrot.slane %v7466_v35, 5  ;;  %v7449_v24 = vshrl.u32 %v18277_v18, 16  ;;  %v7452_v2 = vshll.u32 %v18277_v18, 16  ;;  %10517 = vmatprep.subr.bf16.mxu0 %v13141_v45  ;;  %10405 = vmatpush1.bf16.msra.mxu1 %v13089_v21  ;;  %v6981_v58 = vpop.permute.xlu1 %6980 }
 0x36e   : > { %v7458_v52 = vshll.u32 %v7357_v57, 16  ;;  %v7362_v29 = vld [vmem:[#allocation2 + $0x98] sm:$0xff]  ;;  %v8430_v60 = vld [vmem:[#allocation3 + $0xe0] sm:$0xff]  ;;  %v7447_v9 = vsel %vm13814_vm5, %v7442_v34, %v7446_v17  ;;  %v7432_v61 = vrot.slane %v7430_v20, 5  ;;  %v7474_v0 = vrot.slane %v7472_v62, 5 }
 0x36f   : > { %8172 = vrot.lane.b32.xlu1 %v8117_v39, %s13526_s18  ;;  %v13097_v36 = vld [vmem:[%s13591_s10 + $0x8e0] ss:$8 sps:$4 sm:$0xff]   ;;  %v13099_v49 = vld [vmem:[%s13591_s10 + $0x8e4] ss:$8 sps:$4 sm:$0xff]   ;;  %v7428_v8 = vrot.slane %v7427_v63, 4  ;;  %v8437_v47 = vld [vmem:[#allocation3 + $0x118] sm:$0xff]  ;;  %v7469_v39 = vor.u32 %v7468_v10, %v7465_v6 }
 0x370   : > { %v13081_v4 = vld [vmem:[#allocation3 + $0xe4] ss:$56 sps:$4 sm:$0xff]   ;;  %v13139_v1 = vld [vmem:[%s13591_s10 + $0x9f0] ss:$8 sps:$4 sm:$0xff]   ;;  %7622 = vst.msk [vmem:[#allocation3 + $0xf8] sm:$0xff] %vm13730_vm15, %v7447_v9  ;;  %v7451_v54 = vrot.slane %v7449_v24, 4  ;;  %v12092_v14 = vcombine.low %v8430_v60, %v8437_v47  ;;  %8174 = vrot.lane.b32.xlu0 %v8131_v30, %s13526_s18  ;;  %10406 = vmatprep.subr.bf16.mxu1 %v13099_v49 }
 0x371   : > { %v13102_v22 = vld [vmem:[%s13591_s10 + $0x8d4] ss:$8 sps:$4 sm:$0xff]   ;;  %v7454_v46 = vrot.slane %v7452_v2, 5  ;;  %v13083_v27 = vld [vmem:[#allocation3 + $0xe8] ss:$56 sps:$4 sm:$0xff]   ;;  %v7433_v51 = vsel %vm13814_vm5, %v7428_v8, %v7432_v61  ;;  %v7460_v42 = vrot.slane %v7458_v52, 5  ;;  %10222 = vmatprep.mubr.bf16.mxu1 %v13081_v4  ;;  %10407 = vmatpush1.bf16.msra.mxu1 %v13097_v36 }
 0x372   : > { %v13085_v59 = vld [vmem:[#allocation3 + $0xec] ss:$56 sps:$4 sm:$0xff]   ;;  %v7491_v43 = vshrl.u32 %v7362_v29, 16  ;;  %7621 = vst.msk [vmem:[#allocation3 + $0xc0] sm:$0xff] %vm13730_vm15, %v7433_v51  ;;  %v7470_v19 = vrot.slane %v7469_v39, 4  ;;  %v7494_v28 = vshll.u32 %v7362_v29, 16  ;;  %10223 = vmatmul.mubr.bf16.gmra.mxu1 %v12092_v14  ;;  %10408 = vmatprep.subr.bf16.mxu1 %v13102_v22  ;;  %v6979_v10 = vpop.permute.xlu0 %6978 }
 0x373   : > { %v13153_v12 = vld [vmem:[%s13591_s10 + $0x9e4] ss:$8 sps:$4 sm:$0xff]   ;;  %v7455_v41 = vor.u32 %v7454_v46, %v7451_v54  ;;  %v7361_v3 = vld [vmem:[#allocation2 + $0x30] sm:$0x11]  ;;  %10335 = vmatprep.mubr.bf16.mxu0 %v13085_v59  ;;  %v18278_v53 = vld [vmem:[#allocation22_spill] sm:$0xff]  ;;  %v7003_v45 = vrot.slane %v6981_v58, 4  ;;  %8176 = vrot.lane.b32.xlu1 %v8145_v33, %s13526_s18 }
 0x374   : > { %v7363_v50 = vld [vmem:[#allocation2 + $0xa0] sm:$0x11]  ;;  %v13100_v26 = vld [vmem:[%s13591_s10 + $0x8d0] ss:$8 sps:$4 sm:$0xff]   ;;  %v7493_v7 = vrot.slane %v7491_v43, 4  ;;  %v7477_v25 = vshrl.u32 %v18278_v53, 16  ;;  %10336 = vmatmul.mubr.bf16.gmra.mxu0 %v13083_v27  ;;  %v7475_v55 = vsel %vm13814_vm5, %v7470_v19, %v7474_v0 }
 0x375   : > { %v7500_v15 = vshll.u32 %v7363_v50, 16  ;;  %v7480_v20 = vshll.u32 %v18278_v53, 16  ;;  %v13108_v32 = vld [vmem:[%s13591_s10 + $0x8c4] ss:$8 sps:$4 sm:$0xff]   ;;  %v7456_v37 = vrot.slane %v7455_v41, 4  ;;  %v7496_v56 = vrot.slane %v7494_v28, 5  ;;  %10518 = vmatpush1.bf16.msra.mxu0 %v13139_v1  ;;  %10409 = vmatpush1.bf16.msra.mxu1 %v13100_v26  ;;  %v6985_v27 = vpop.permute.xlu1 %6984 }
 0x376   : > { %v7486_v5 = vshll.u32 %v7361_v3, 16  ;;  %v8451_v31 = vld [vmem:[#allocation3 + $0x188] sm:$0xff]  ;;  %7624 = vst.msk [vmem:[#allocation3 + $0x168] sm:$0xff] %vm13730_vm15, %v7475_v55  ;;  %v13096_v48 = vld [vmem:[#allocation3 + $0x15c] ss:$56 sps:$4 sm:$0xff]   ;;  %v7479_v35 = vrot.slane %v7477_v25, 4  ;;  %v7019_v23 = vsel %vm1663_vm12, %v7003_v45, %v6981_v58  ;;  %10519 = vmatprep.subr.bf16.mxu0 %v13153_v12  ;;  %10410 = vmatprep.subr.bf16.mxu1 %v13108_v32 }
 0x377   : > { %v13092_v16 = vld [vmem:[#allocation3 + $0x154] ss:$56 sps:$4 sm:$0xff]   ;;  %v13151_v17 = vld [vmem:[%s13591_s10 + $0x9e0] ss:$8 sps:$4 sm:$0xff]   ;;  %v7461_v40 = vsel %vm13814_vm5, %v7456_v37, %v7460_v42  ;;  %v7497_v6 = vor.u32 %v7496_v56, %v7493_v7  ;;  %v7502_v62 = vrot.slane %v7500_v15, 5  ;;  %v7482_v57 = vrot.slane %v7480_v20, 5  ;;  %10345 = vmatprep.mubr.bf16.mxu0 %v13096_v48  ;;  %v6983_v42 = vpop.permute.xlu0 %6982 }
 0x378   : > { %v8444_v21 = vld [vmem:[#allocation3 + $0x150] sm:$0xff]  ;;  %10232 = vmatprep.mubr.bf16.mxu1 %v13092_v16  ;;  %v13106_v34 = vld [vmem:[%s13591_s10 + $0x8c0] ss:$8 sps:$4 sm:$0xff]   ;;  %7623 = vst.msk [vmem:[#allocation3 + $0x130] sm:$0xff] %vm13730_vm15, %v7461_v40  ;;  %v7488_v29 = vrot.slane %v7486_v5, 5  ;;  %v7002_v9 = vrot.slane %v6979_v10, 4 }
 0x379   : > { %v13159_v63 = vld [vmem:[%s13591_s10 + $0x9d4] ss:$8 sps:$4 sm:$0xff]   ;;  %7051 = vst.msk [vmem:[#allocation3 + $0x1fc] sm:$0xff] %vm14288_vm13, %v7019_v23  ;;  %v12106_v18 = vcombine.low %v8444_v21, %v8451_v31  ;;  %v13157_v2 = vld [vmem:[%s13591_s10 + $0x9d0] ss:$8 sps:$4 sm:$0xff]   ;;  %v7498_v52 = vrot.slane %v7497_v6, 4  ;;  %v7483_v8 = vor.u32 %v7482_v57, %v7479_v35  ;;  %10520 = vmatpush1.bf16.msra.mxu0 %v13151_v17  ;;  %10411 = vmatpush1.bf16.msra.mxu1 %v13106_v34 }
 0x37a   : > { %v13120_v24 = vld [vmem:[%s13591_s10 + $0x9b4] ss:$8 sps:$4 sm:$0xff]   ;;  %v7367_v60 = vld [vmem:[#allocation2 + $0xc0] sm:$0x11]  ;;  %v18279_v36 = vld [vmem:[#allocation24_spill] sm:$0xff]  ;;  %v7018_v46 = vsel %vm1663_vm12, %v7002_v9, %v6979_v10  ;;  %10521 = vmatprep.subr.bf16.mxu0 %v13159_v63  ;;  %v7005_v43 = vrot.slane %v6985_v27, 4  ;;  %v6989_v17 = vpop.permute.xlu1 %6988 }
 0x37b   : > { %v7519_v49 = vshrl.u32 %v18279_v36, 16  ;;  %v7522_v61 = vshll.u32 %v18279_v36, 16  ;;  %v7528_v0 = vshll.u32 %v7367_v60, 16  ;;  %v7365_v47 = vld [vmem:[#allocation2 + $0xc8] sm:$0x11]  ;;  %v7503_v30 = vsel %vm13814_vm5, %v7498_v52, %v7502_v62  ;;  %v18280_v1 = vld [vmem:[#allocation29_spill] sm:$0xff]  ;;  %10233 = vmatmul.mubr.bf16.gmra.mxu1 %v12106_v18  ;;  %10412 = vmatprep.subr.bf16.mxu1 %v13120_v24  ;;  %v6987_v48 = vpop.permute.xlu0 %6986 }
 0x37c   : > { %v13094_v4 = vld [vmem:[#allocation3 + $0x158] ss:$56 sps:$4 sm:$0xff]   ;;  %v7505_v39 = vshrl.u32 %v18280_v1, 16  ;;  %v7508_v54 = vshll.u32 %v18280_v1, 16  ;;  %v13171_v59 = vld [vmem:[%s13591_s10 + $0x9c4] ss:$8 sps:$4 sm:$0xff]   ;;  %v7021_v20 = vsel %vm1663_vm12, %v7005_v43, %v6985_v27 }
 0x37d   : > { %v7521_v22 = vrot.slane %v7519_v49, 4  ;;  %7626 = vst.msk [vmem:[#allocation3 + $0x1d8] sm:$0xff] %vm13730_vm15, %v7503_v30  ;;  %v7484_v14 = vrot.slane %v7483_v8, 4  ;;  %v7524_v12 = vrot.slane %v7522_v61, 5  ;;  %v7530_v51 = vrot.slane %v7528_v0, 5  ;;  %10346 = vmatmul.mubr.bf16.gmra.mxu0 %v13094_v4  ;;  %v18281_v53 = vld [vmem:[#allocation30_spill] sm:$0xff] }
 0x37e   : > { %7050 = vst.msk [vmem:[#allocation3 + $0x1c4] sm:$0xff] %vm14288_vm13, %v7018_v46  ;;  %v13118_v33 = vld [vmem:[%s13591_s10 + $0x9b0] ss:$8 sps:$4 sm:$0xff]   ;;  %v7507_v19 = vrot.slane %v7505_v39, 4  ;;  %v7510_v41 = vrot.slane %v7508_v54, 5  ;;  %v7514_v50 = vshll.u32 %v7365_v47, 16  ;;  %10522 = vmatpush1.bf16.msra.mxu0 %v13157_v2 }
 0x37f   : > { %v7004_v28 = vrot.slane %v6983_v42, 4  ;;  %v13132_v3 = vld [vmem:[%s13591_s10 + $0x9a4] ss:$8 sps:$4 sm:$0xff]   ;;  %v7489_v26 = vsel %vm13814_vm5, %v7484_v14, %v7488_v29  ;;  %v7525_v7 = vor.u32 %v7524_v12, %v7521_v22  ;;  %v7547_v25 = vshrl.u32 %v18281_v53, 16  ;;  %v13169_v58 = vld [vmem:[%s13591_s10 + $0x9c0] ss:$8 sps:$4 sm:$0xff]   ;;  %10523 = vmatprep.subr.bf16.mxu0 %v13171_v59  ;;  %10413 = vmatpush2.bf16.msra.mxu1 %v13118_v33  ;;  %v6991_v22 = vpop.permute.xlu0 %6990  ;;  %v6993_v27 = vpop.permute.xlu1 %6992 }
 0x380   : > { %v7371_v15 = vld [vmem:[#allocation2 + $0xa8] sm:$0x11]  ;;  %v13177_v32 = vld [vmem:[%s13591_s10 + $0xab4] ss:$8 sps:$4 sm:$0xff]   ;;  %7625 = vst.msk [vmem:[#allocation3 + $0x1a0] sm:$0xff] %vm13730_vm15, %v7489_v26  ;;  %v7511_v55 = vor.u32 %v7510_v41, %v7507_v19  ;;  %v7516_v37 = vrot.slane %v7514_v50, 5  ;;  %10414 = vmatprep.subr.bf16.mxu1 %v13132_v3 }
 0x381   : > { %v7550_v56 = vshll.u32 %v18281_v53, 16  ;;  %v7020_v5 = vsel %vm1663_vm12, %v7004_v28, %v6983_v42  ;;  %7053 = vst.msk [vmem:[#allocation3 + $0x26c] sm:$0xff] %vm14288_vm13, %v7021_v20  ;;  %v7526_v45 = vrot.slane %v7525_v7, 4  ;;  %v7549_v31 = vrot.slane %v7547_v25, 4  ;;  %v7369_v35 = vld [vmem:[#allocation2 + $0xb8] sm:$0x11] }
 0x382   : > { %v7556_v16 = vshll.u32 %v7371_v15, 16  ;;  %7052 = vst.msk [vmem:[#allocation3 + $0x234] sm:$0xff] %vm14288_vm13, %v7020_v5  ;;  %v7512_v40 = vrot.slane %v7511_v55, 4  ;;  %v18282_v23 = vld [vmem:[#allocation21_spill] sm:$0xff]  ;;  %v7006_v63 = vrot.slane %v6987_v48, 4  ;;  %v7007_v62 = vrot.slane %v6989_v17, 4  ;;  %10524 = vmatpush1.bf16.msra.mxu0 %v13169_v58 }
 0x383   : > { %v7552_v6 = vrot.slane %v7550_v56, 5  ;;  %v7533_v21 = vshrl.u32 %v18282_v23, 16  ;;  %v7536_v34 = vshll.u32 %v18282_v23, 16  ;;  %v13130_v57 = vld [vmem:[%s13591_s10 + $0x9a0] ss:$8 sps:$4 sm:$0xff]   ;;  %v7531_v10 = vsel %vm13814_vm5, %v7526_v45, %v7530_v51  ;;  %10525 = vmatprep.subr.bf16.mxu0 %v13177_v32  ;;  %v18283_v12 = vld [vmem:[#allocation26_spill] sm:$0xff]  ;;  %v7251_v25 = vpop.permute.xlu0 %7250  ;;  %v7253_v5 = vpop.permute.xlu1 %7252 }
 0x384   : > { %v7558_v18 = vrot.slane %v7556_v16, 5  ;;  %v13138_v24 = vld [vmem:[%s13591_s10 + $0x994] ss:$8 sps:$4 sm:$0xff]   ;;  %v13175_v2 = vld [vmem:[%s13591_s10 + $0xab0] ss:$8 sps:$4 sm:$0xff]   ;;  %7628 = vst.msk [vmem:[#allocation3 + $0x248] sm:$0xff] %vm13730_vm15, %v7531_v10  ;;  %v7517_v52 = vsel %vm13814_vm5, %v7512_v40, %v7516_v37  ;;  %v7022_v49 = vsel %vm1663_vm12, %v7006_v63, %v6987_v48  ;;  %v7023_v9 = vsel %vm1663_vm12, %v7007_v62, %v6989_v17  ;;  %10415 = vmatpush2.bf16.msra.mxu1 %v13130_v57 }
 0x385   : > { %v7553_v29 = vor.u32 %v7552_v6, %v7549_v31  ;;  %v7535_v60 = vrot.slane %v7533_v21, 4  ;;  %v7538_v36 = vrot.slane %v7536_v34, 5  ;;  %v13112_v8 = vld [vmem:[#allocation3 + $0x1c0] ss:$56 sps:$4 sm:$0xff]   ;;  %v13114_v61 = vld [vmem:[#allocation3 + $0x1c4] ss:$56 sps:$4 sm:$0xff]   ;;  %10416 = vmatprep.subr.bf16.mxu1 %v13138_v24 }
 0x386   : > { %v13136_v0 = vld [vmem:[%s13591_s10 + $0x990] ss:$8 sps:$4 sm:$0xff]   ;;  %7627 = vst.msk [vmem:[#allocation3 + $0x210] sm:$0xff] %vm13730_vm15, %v7517_v52  ;;  %v7542_v47 = vshll.u32 %v7369_v35, 16  ;;  %v13115_v4 = vld [vmem:[#allocation3 + $0x1c8] ss:$56 sps:$4 sm:$0xff]   ;;  %10242 = vmatprep.mubr.bf16.mxu1 %v13114_v61  ;;  %10526 = vmatpush2.bf16.msra.mxu0 %v13175_v2 }
 0x387   : > { %7054 = vst.msk [vmem:[#allocation3 + $0x2a4] sm:$0xff] %vm14288_vm13, %v7022_v49  ;;  %7055 = vst.msk [vmem:[#allocation3 + $0x2dc] sm:$0xff] %vm14288_vm13, %v7023_v9  ;;  %v13117_v30 = vld [vmem:[#allocation3 + $0x1cc] ss:$56 sps:$4 sm:$0xff]   ;;  %v7554_v39 = vrot.slane %v7553_v29, 4  ;;  %v7539_v54 = vor.u32 %v7538_v36, %v7535_v60  ;;  %v7008_v46 = vrot.slane %v6991_v22, 4  ;;  %10243 = vmatmul.mubr.bf16.gmra.mxu1 %v13112_v8  ;;  %v7255_v10 = vpop.permute.xlu0 %7254  ;;  %v7257_v49 = vpop.permute.xlu1 %7256 }
 0x388   : > { %v13150_v1 = vld [vmem:[%s13591_s10 + $0x984] ss:$8 sps:$4 sm:$0xff]   ;;  %v7375_v14 = vld [vmem:[#allocation2 + $0x130] sm:$0x11]  ;;  %v7575_v51 = vshrl.u32 %v18283_v12, 16  ;;  %v7578_v42 = vshll.u32 %v18283_v12, 16  ;;  %10355 = vmatprep.mubr.bf16.mxu0 %v13117_v30  ;;  %10417 = vmatpush2.bf16.msra.mxu1 %v13136_v0 }
 0x389   : > { %v13186_v59 = vld [vmem:[%s13591_s10 + $0xaa4] ss:$8 sps:$4 sm:$0xff]   ;;  %v7009_v43 = vrot.slane %v6993_v27, 4  ;;  %v13184_v33 = vld [vmem:[%s13591_s10 + $0xaa0] ss:$8 sps:$4 sm:$0xff]   ;;  %v7559_v19 = vsel %vm13814_vm5, %v7554_v39, %v7558_v18  ;;  %v7540_v41 = vrot.slane %v7539_v54, 4  ;;  %10356 = vmatmul.mubr.bf16.gmra.mxu0 %v13115_v4  ;;  %v7024_v28 = vsel %vm1663_vm12, %v7008_v46, %v6991_v22  ;;  %10418 = vmatprep.subr.bf16.mxu1 %v13150_v1 }
 0x38a   : > { %v7544_v50 = vrot.slane %v7542_v47, 5  ;;  %v13126_v3 = vld [vmem:[#allocation3 + $0x234] ss:$56 sps:$4 sm:$0xff]   ;;  %v13148_v26 = vld [vmem:[%s13591_s10 + $0x980] ss:$8 sps:$4 sm:$0xff]   ;;  %7630 = vst.msk [vmem:[#allocation3 + $0x2b8] sm:$0xff] %vm13730_vm15, %v7559_v19  ;;  %10527 = vmatprep.subr.bf16.mxu0 %v13186_v59 }
 0x38b   : > { %v7577_v7 = vrot.slane %v7575_v51, 4  ;;  %v7373_v15 = vld [vmem:[#allocation2 + $0xd0] sm:$0x11]  ;;  %7056 = vst.msk [vmem:[#allocation3 + $0x314] sm:$0xff] %vm14288_vm13, %v7024_v28  ;;  %v7025_v20 = vsel %vm1663_vm12, %v7009_v43, %v6993_v27  ;;  %v7580_v55 = vrot.slane %v7578_v42, 5  ;;  %v7584_v37 = vshll.u32 %v7375_v14, 16  ;;  %10252 = vmatprep.mubr.bf16.mxu1 %v13126_v3  ;;  %10528 = vmatpush2.bf16.msra.mxu0 %v13184_v33  ;;  %v7259_v27 = vpop.permute.xlu0 %7258  ;;  %v7261_v43 = vpop.permute.xlu1 %7260 }
 0x38c   : > { %v13129_v53 = vld [vmem:[#allocation3 + $0x23c] ss:$56 sps:$4 sm:$0xff]   ;;  %v7545_v32 = vsel %vm13814_vm5, %v7540_v41, %v7544_v50  ;;  %v7282_v56 = vrot.slane %v7251_v25, 4  ;;  %7057 = vst.msk [vmem:[#allocation3 + $0x34c] sm:$0xff] %vm14288_vm13, %v7025_v20  ;;  %v13124_v17 = vld [vmem:[#allocation3 + $0x230] ss:$56 sps:$4 sm:$0xff]   ;;  %10419 = vmatpush2.bf16.msra.mxu1 %v13148_v26 }
 0x38d   : > { %v13156_v58 = vld [vmem:[%s13591_s10 + $0x974] ss:$8 sps:$4 sm:$0xff]   ;;  %7629 = vst.msk [vmem:[#allocation3 + $0x280] sm:$0xff] %vm13730_vm15, %v7545_v32  ;;  %10365 = vmatprep.mubr.bf16.mxu0 %v13129_v53  ;;  %v7283_v40 = vrot.slane %v7253_v5, 4  ;;  %v13190_v6 = vld [vmem:[%s13591_s10 + $0xa90] ss:$8 sps:$4 sm:$0xff]   ;;  %v7581_v35 = vor.u32 %v7580_v55, %v7577_v7 }
 0x38e   : > { %v13192_v45 = vld [vmem:[%s13591_s10 + $0xa94] ss:$8 sps:$4 sm:$0xff]   ;;  %v7298_v23 = vsel %vm1663_vm12, %v7282_v56, %v7251_v25  ;;  %v13154_v21 = vld [vmem:[%s13591_s10 + $0x970] ss:$8 sps:$4 sm:$0xff]   ;;  %v13201_v34 = vld [vmem:[%s13591_s10 + $0xa84] ss:$8 sps:$4 sm:$0xff]   ;;  %10420 = vmatprep.subr.bf16.mxu1 %v13156_v58 }
 0x38f   : > { %v18284_v31 = vld [vmem:[#allocation33_spill] sm:$0xff]  ;;  %v7570_v57 = vshll.u32 %v7373_v15, 16  ;;  %7330 = vst.msk [vmem:[#allocation3 + $0x10] sm:$0xff] %vm14288_vm13, %v7298_v23  ;;  %v7299_v18 = vsel %vm1663_vm12, %v7283_v40, %v7253_v5  ;;  %v13144_v24 = vld [vmem:[#allocation3 + $0x2a4] ss:$56 sps:$4 sm:$0xff]   ;;  %v7582_v2 = vrot.slane %v7581_v35, 4  ;;  %10529 = vmatprep.subr.bf16.mxu0 %v13192_v45  ;;  %10253 = vmatmul.mubr.bf16.gmra.mxu1 %v13124_v17  ;;  %v7263_v20 = vpop.permute.xlu0 %7262  ;;  %v7265_v45 = vpop.permute.xlu1 %7264 }
 0x390   : > { %v7561_v16 = vshrl.u32 %v18284_v31, 16  ;;  %v7564_v48 = vshll.u32 %v18284_v31, 16  ;;  %v7586_v52 = vrot.slane %v7584_v37, 5  ;;  %v13127_v29 = vld [vmem:[#allocation3 + $0x238] ss:$56 sps:$4 sm:$0xff]   ;;  %v7284_v60 = vrot.slane %v7255_v10, 4  ;;  %10262 = vmatprep.mubr.bf16.mxu1 %v13144_v24  ;;  %10530 = vmatpush2.bf16.msra.mxu0 %v13190_v6 }
 0x391   : > { %7331 = vst.msk [vmem:[#allocation3 + $0x48] sm:$0xff] %vm14288_vm13, %v7299_v18  ;;  %v13147_v36 = vld [vmem:[#allocation3 + $0x2ac] ss:$56 sps:$4 sm:$0xff]   ;;  %v7285_v0 = vrot.slane %v7257_v49, 4  ;;  %v7377_v30 = vld [vmem:[#allocation2 + $0x118] sm:$0x11]  ;;  %10366 = vmatmul.mubr.bf16.gmra.mxu0 %v13127_v29  ;;  %10421 = vmatpush2.bf16.msra.mxu1 %v13154_v21 }
 0x392   : > { %v7563_v63 = vrot.slane %v7561_v16, 4  ;;  %v7566_v62 = vrot.slane %v7564_v48, 5  ;;  %v18285_v8 = vld [vmem:[#allocation31_spill] sm:$0xff]  ;;  %v7587_v4 = vsel %vm13814_vm5, %v7582_v2, %v7586_v52  ;;  %v7300_v1 = vsel %vm1663_vm12, %v7284_v60, %v7255_v10  ;;  %10375 = vmatprep.mubr.bf16.mxu0 %v13147_v36  ;;  %10531 = vmatprep.subr.bf16.mxu0 %v13201_v34  ;;  %v13207_v19 = vld [vmem:[%s13591_s10 + $0xa74] ss:$8 sps:$4 sm:$0xff]  }
 0x393   : > { %v7589_v61 = vshrl.u32 %v18285_v8, 16  ;;  %v13168_v47 = vld [vmem:[%s13591_s10 + $0x964] ss:$8 sps:$4 sm:$0xff]   ;;  %v7592_v22 = vshll.u32 %v18285_v8, 16  ;;  %7632 = vst.msk [vmem:[#allocation3 + $0x328] sm:$0xff] %vm13730_vm15, %v7587_v4  ;;  %v7572_v54 = vrot.slane %v7570_v57, 5  ;;  %v7301_v59 = vsel %vm1663_vm12, %v7285_v0, %v7257_v49  ;;  %v7267_v6 = vpop.permute.xlu0 %7266  ;;  %v7269_v21 = vpop.permute.xlu1 %7268 }
 0x394   : > { %v7567_v9 = vor.u32 %v7566_v62, %v7563_v63  ;;  %7332 = vst.msk [vmem:[#allocation3 + $0x80] sm:$0xff] %vm14288_vm13, %v7300_v1  ;;  %v13199_v14 = vld [vmem:[%s13591_s10 + $0xa80] ss:$8 sps:$4 sm:$0xff]   ;;  %v7598_v51 = vshll.u32 %v7377_v30, 16  ;;  %v7286_v42 = vrot.slane %v7259_v27, 4  ;;  %7333 = vst.msk [vmem:[#allocation3 + $0xb8] sm:$0xff] %vm14288_vm13, %v7301_v59  ;;  %10422 = vmatprep.subr.bf16.mxu1 %v13168_v47 }
 0x395   : > { %v7591_v46 = vrot.slane %v7589_v61, 4  ;;  %v7594_v12 = vrot.slane %v7592_v22, 5  ;;  %v13166_v33 = vld [vmem:[%s13591_s10 + $0x960] ss:$8 sps:$4 sm:$0xff]   ;;  %v7287_v50 = vrot.slane %v7261_v43, 4  ;;  %10532 = vmatpush2.bf16.msra.mxu0 %v13199_v14  ;;  %v7288_v5 = vrot.slane %v7263_v20, 4 }
 0x396   : > { %v7568_v39 = vrot.slane %v7567_v9, 4  ;;  %v13174_v28 = vld [vmem:[%s13591_s10 + $0x954] ss:$8 sps:$4 sm:$0xff]   ;;  %v13205_v3 = vld [vmem:[%s13591_s10 + $0xa70] ss:$8 sps:$4 sm:$0xff]   ;;  %v7302_v15 = vsel %vm1663_vm12, %v7286_v42, %v7259_v27  ;;  %v7600_v37 = vrot.slane %v7598_v51, 5  ;;  %10423 = vmatpush2.bf16.msra.mxu1 %v13166_v33  ;;  %10533 = vmatprep.subr.bf16.mxu0 %v13207_v19 }
 0x397   : > { %v7595_v26 = vor.u32 %v7594_v12, %v7591_v46  ;;  %v13142_v7 = vld [vmem:[#allocation3 + $0x2a0] ss:$56 sps:$4 sm:$0xff]   ;;  %v13162_v53 = vld [vmem:[#allocation3 + $0x314] ss:$56 sps:$4 sm:$0xff]   ;;  %7334 = vst.msk [vmem:[#allocation3 + $0xf0] sm:$0xff] %vm14288_vm13, %v7302_v15  ;;  %v7303_v58 = vsel %vm1663_vm12, %v7287_v50, %v7261_v43  ;;  %v7289_v16 = vrot.slane %v7265_v45, 4  ;;  %10424 = vmatprep.subr.bf16.mxu1 %v13174_v28  ;;  %v7304_v40 = vsel %vm1663_vm12, %v7288_v5, %v7263_v20  ;;  %v7271_v2 = vpop.permute.xlu0 %7270  ;;  %v7273_v9 = vpop.permute.xlu1 %7272 }
 0x398   : > { %v7573_v41 = vsel %vm13814_vm5, %v7568_v39, %v7572_v54  ;;  %v13172_v25 = vld [vmem:[%s13591_s10 + $0x950] ss:$8 sps:$4 sm:$0xff]   ;;  %v13165_v32 = vld [vmem:[#allocation3 + $0x31c] ss:$56 sps:$4 sm:$0xff]   ;;  %v13145_v56 = vld [vmem:[#allocation3 + $0x2a8] ss:$56 sps:$4 sm:$0xff]   ;;  %10263 = vmatmul.mubr.bf16.gmra.mxu1 %v13142_v7 }
 0x399   : > { %7631 = vst.msk [vmem:[#allocation3 + $0x2f0] sm:$0xff] %vm13730_vm15, %v7573_v41  ;;  %v7596_v55 = vrot.slane %v7595_v26, 4  ;;  %v13216_v31 = vld [vmem:[%s13591_s10 + $0xa64] ss:$8 sps:$4 sm:$0xff]   ;;  %10376 = vmatmul.mubr.bf16.gmra.mxu0 %v13145_v56  ;;  %10272 = vmatprep.mubr.bf16.mxu1 %v13162_v53  ;;  %v7305_v35 = vsel %vm1663_vm12, %v7289_v16, %v7265_v45  ;;  %v13214_v13 = vld [vmem:[%s13591_s10 + $0xa60] ss:$8 sps:$4 sm:$0xff]  }
 0x39a   : > { %7335 = vst.msk [vmem:[#allocation3 + $0x128] sm:$0xff] %vm14288_vm13, %v7303_v58  ;;  %v13183_v48 = vld [vmem:[%s13591_s10 + $0x944] ss:$8 sps:$4 sm:$0xff]   ;;  %7336 = vst.msk [vmem:[#allocation3 + $0x160] sm:$0xff] %vm14288_vm13, %v7304_v40  ;;  %10385 = vmatprep.mubr.bf16.mxu0 %v13165_v32  ;;  %10534 = vmatpush2.bf16.msra.mxu0 %v13205_v3  ;;  %v7290_v23 = vrot.slane %v7267_v6, 4  ;;  %v7291_v62 = vrot.slane %v7269_v21, 4 }
 0x39b   : > { %v7601_v17 = vsel %vm13814_vm5, %v7596_v55, %v7600_v37  ;;  %7337 = vst.msk [vmem:[#allocation3 + $0x198] sm:$0xff] %vm14288_vm13, %v7305_v35  ;;  %10425 = vmatpush2.bf16.msra.mxu1 %v13172_v25  ;;  %v13181_v34 = vld [vmem:[%s13591_s10 + $0x940] ss:$8 sps:$4 sm:$0xff]   ;;  %10535 = vmatprep.subr.bf16.mxu0 %v13216_v31  ;;  %v13222_v63 = vld [vmem:[%s13591_s10 + $0xa54] ss:$8 sps:$4 sm:$0xff]   ;;  %v7292_v36 = vrot.slane %v7271_v2, 4  ;;  %v7275_v0 = vpop.permute.xlu0 %7274  ;;  %v7277_v22 = vpop.permute.xlu1 %7276 }
 0x39c   : > { %7633 = vst.msk [vmem:[#allocation3 + $0x360] sm:$0xff] %vm13730_vm15, %v7601_v17  ;;  %10426 = vmatprep.subr.bf16.mxu1 %v13183_v48  ;;  %v13189_v57 = vld [vmem:[%s13591_s10 + $0xb34] ss:$8 sps:$4 sm:$0xff]   ;;  %v7306_v10 = vsel %vm1663_vm12, %v7290_v23, %v7267_v6  ;;  %v13220_v18 = vld [vmem:[%s13591_s10 + $0xa50] ss:$8 sps:$4 sm:$0xff]   ;;  %v7307_v52 = vsel %vm1663_vm12, %v7291_v62, %v7269_v21  ;;  %v7293_v8 = vrot.slane %v7273_v9, 4 }
 0x39d   : > { %v13160_v24 = vld [vmem:[#allocation3 + $0x310] ss:$56 sps:$4 sm:$0xff]   ;;  %7338 = vst.msk [vmem:[#allocation3 + $0x1d0] sm:$0xff] %vm14288_vm13, %v7306_v10  ;;  %v13231_v29 = vld [vmem:[%s13591_s10 + $0xa44] ss:$8 sps:$4 sm:$0xff]   ;;  %7339 = vst.msk [vmem:[#allocation3 + $0x208] sm:$0xff] %vm14288_vm13, %v7307_v52  ;;  %v7308_v61 = vsel %vm1663_vm12, %v7292_v36, %v7271_v2 }
 0x39e   : > { %10536 = vmatpush2.bf16.msra.mxu0 %v13214_v13  ;;  %v13163_v60 = vld [vmem:[#allocation3 + $0x318] ss:$56 sps:$4 sm:$0xff]   ;;  %v13180_v49 = vld [vmem:[#allocation3 + $0x14] ss:$56 sps:$4 sm:$0xff]   ;;  %7340 = vst.msk [vmem:[#allocation3 + $0x240] sm:$0xff] %vm14288_vm13, %v7308_v61  ;;  %v7309_v47 = vsel %vm1663_vm12, %v7293_v8, %v7273_v9  ;;  %v7294_v30 = vrot.slane %v7275_v0, 4 }
 0x39f   : > { %10427 = vmatpush2.bf16.msra.mxu1 %v13181_v34  ;;  %10537 = vmatprep.subr.bf16.mxu0 %v13222_v63  ;;  %v13229_v4 = vld [vmem:[%s13591_s10 + $0xa40] ss:$8 sps:$4 sm:$0xff]   ;;  %7341 = vst.msk [vmem:[#allocation3 + $0x278] sm:$0xff] %vm14288_vm13, %v7309_v47  ;;  %v13240_v1 = vld [vmem:[%s13591_s10 + $0xc34] ss:$8 sps:$4 sm:$0xff]   ;;  %v7295_v39 = vrot.slane %v7277_v22, 4  ;;  %v7279_v59 = vpop.permute.xlu0 %7278  ;;  %v7281_v43 = vpop.permute.xlu1 %7280 }
 0x3a0   : > { %10273 = vmatmul.mubr.bf16.gmra.mxu1 %v13160_v24  ;;  %10622 = vmatprep.subr.bf16.mxu1 %v13189_v57  ;;  %v7310_v54 = vsel %vm1663_vm12, %v7294_v30, %v7275_v0  ;;  %v13187_v46 = vld [vmem:[%s13591_s10 + $0xb30] ss:$8 sps:$4 sm:$0xff]   ;;  %v13198_v12 = vld [vmem:[%s13591_s10 + $0xb24] ss:$8 sps:$4 sm:$0xff]   ;;  %v7296_v51 = vrot.slane %v7279_v59, 4  ;;  %v7297_v33 = vrot.slane %v7281_v43, 4 }
 0x3a1   : > { %10386 = vmatmul.mubr.bf16.gmra.mxu0 %v13163_v60  ;;  %10428 = vmatprep.mubr.bf16.mxu1 %v13180_v49  ;;  %v13178_v27 = vld [vmem:[#allocation3 + $0x10] ss:$56 sps:$4 sm:$0xff]   ;;  %7342 = vst.msk [vmem:[#allocation3 + $0x2b0] sm:$0xff] %vm14288_vm13, %v7310_v54  ;;  %v7311_v14 = vsel %vm1663_vm12, %v7295_v39, %v7277_v22  ;;  %v13195_v42 = vld [vmem:[#allocation3 + $0x84] ss:$56 sps:$4 sm:$0xff]  }
 0x3a2   : > { %10538 = vmatpush2.bf16.msra.mxu0 %v13220_v18  ;;  %7343 = vst.msk [vmem:[#allocation3 + $0x2e8] sm:$0xff] %vm14288_vm13, %v7311_v14  ;;  %v7312_v19 = vsel %vm1663_vm12, %v7296_v51, %v7279_v59  ;;  %v13196_v41 = vld [vmem:[%s13591_s10 + $0xb20] ss:$8 sps:$4 sm:$0xff]   ;;  %v7313_v28 = vsel %vm1663_vm12, %v7297_v33, %v7281_v43  ;;  %v13204_v3 = vld [vmem:[%s13591_s10 + $0xb14] ss:$8 sps:$4 sm:$0xff]  }
 0x3a3   : > { %10539 = vmatprep.subr.bf16.mxu0 %v13231_v29  ;;  %7344 = vst.msk [vmem:[#allocation3 + $0x320] sm:$0xff] %vm14288_vm13, %v7312_v19  ;;  %v7763_v50 = vpop.permute.xlu0 %7762  ;;  %7345 = vst.msk [vmem:[#allocation3 + $0x358] sm:$0xff] %vm14288_vm13, %v7313_v28  ;;  %v7765_v7 = vpop.permute.xlu1 %7764  ;;  %v13202_v25 = vld [vmem:[%s13591_s10 + $0xb10] ss:$8 sps:$4 sm:$0xff]   ;;  %v13213_v55 = vld [vmem:[%s13591_s10 + $0xb04] ss:$8 sps:$4 sm:$0xff]  }
 0x3a4   : > { %v7794_v26 = vrot.slane %v7763_v50, 4  ;;  %v7795_v15 = vrot.slane %v7765_v7, 4  ;;  %v13193_v20 = vld [vmem:[#allocation3 + $0x80] ss:$56 sps:$4 sm:$0xff]   ;;  %v13210_v56 = vld [vmem:[#allocation3 + $0xf4] ss:$56 sps:$4 sm:$0xff]  }
 0x3a5   : > { %v13211_v16 = vld [vmem:[%s13591_s10 + $0xb00] ss:$8 sps:$4 sm:$0xff]   ;;  %v13219_v40 = vld [vmem:[%s13591_s10 + $0xaf4] ss:$8 sps:$4 sm:$0xff]   ;;  %v13217_v13 = vld [vmem:[%s13591_s10 + $0xaf0] ss:$8 sps:$4 sm:$0xff]  }
 0x3a6   : > { %10540 = vmatpush2.bf16.msra.mxu0 %v13229_v4  ;;  %v7810_v53 = vsel %vm1663_vm12, %v7794_v26, %v7763_v50  ;;  %v7811_v32 = vsel %vm1663_vm12, %v7795_v15, %v7765_v7  ;;  %v13228_v21 = vld [vmem:[%s13591_s10 + $0xae4] ss:$8 sps:$4 sm:$0xff]   ;;  %v13208_v34 = vld [vmem:[#allocation3 + $0xf0] ss:$56 sps:$4 sm:$0xff]   ;;  %v13237_v0 = vld [vmem:[%s13591_s10 + $0xad4] ss:$8 sps:$4 sm:$0xff]  }
 0x3a7   : > { %10735 = vmatprep.subr.bf16.mxu0 %v13240_v1  ;;  %7842 = vst.msk [vmem:[#allocation3 + $0x1c] sm:$0xff] %vm14288_vm13, %v7810_v53  ;;  %v7767_v58 = vpop.permute.xlu0 %7766  ;;  %7843 = vst.msk [vmem:[#allocation3 + $0x54] sm:$0xff] %vm14288_vm13, %v7811_v32  ;;  %v13232_v10 = vld [vmem:[#allocation3 + $0x18] ss:$56 sps:$4 sm:$0xff]   ;;  %v13225_v2 = vld [vmem:[#allocation3 + $0x164] ss:$56 sps:$4 sm:$0xff]  }
 0x3a8   : > { %10429 = vmatmul.mubr.bf16.vlgmr.msra.gmra.mxu1 %v13178_v27  ;;  %v7796_v37 = vrot.slane %v7767_v58, 4  ;;  %v7769_v5 = vpop.permute.xlu1 %7768  ;;  %v13238_v29 = vld [vmem:[%s13591_s10 + $0xc30] ss:$8 sps:$4 sm:$0xff]   ;;  %v13252_v36 = vld [vmem:[%s13591_s10 + $0xc24] ss:$8 sps:$4 sm:$0xff]  }
 0x3a9   : > { %10623 = vmatpush1.bf16.msra.mxu1 %v13187_v46  ;;  %10438 = vmatprep.mubr.bf16.mxu1 %v13195_v42  ;;  %v7797_v45 = vrot.slane %v7769_v5, 4  ;;  %v13226_v9 = vld [vmem:[%s13591_s10 + $0xae0] ss:$8 sps:$4 sm:$0xff]   ;;  %v13235_v30 = vld [vmem:[%s13591_s10 + $0xad0] ss:$8 sps:$4 sm:$0xff]  }
 0x3aa   : > { %10624 = vmatprep.subr.bf16.mxu1 %v13198_v12  ;;  %v7812_v31 = vsel %vm1663_vm12, %v7796_v37, %v7767_v58  ;;  %v13250_v1 = vld [vmem:[%s13591_s10 + $0xc20] ss:$8 sps:$4 sm:$0xff]   ;;  %v13249_v54 = vld [vmem:[%s13591_s10 + $0xac4] ss:$8 sps:$4 sm:$0xff]   ;;  %v13258_v46 = vld [vmem:[%s13591_s10 + $0xc14] ss:$8 sps:$4 sm:$0xff]  }
 0x3ab   : > { %7844 = vst.msk [vmem:[#allocation3 + $0x8c] sm:$0xff] %vm14288_vm13, %v7812_v31  ;;  %v7771_v48 = vpop.permute.xlu0 %7770  ;;  %v7813_v17 = vsel %vm1663_vm12, %v7797_v45, %v7769_v5  ;;  %v13256_v59 = vld [vmem:[%s13591_s10 + $0xc10] ss:$8 sps:$4 sm:$0xff]   ;;  %v13270_v42 = vld [vmem:[%s13591_s10 + $0xc04] ss:$8 sps:$4 sm:$0xff]  }
 0x3ac   : > { %v7798_v6 = vrot.slane %v7771_v48, 4  ;;  %7845 = vst.msk [vmem:[#allocation3 + $0xc4] sm:$0xff] %vm14288_vm13, %v7813_v17  ;;  %v7773_v35 = vpop.permute.xlu1 %7772  ;;  %v13223_v14 = vld [vmem:[#allocation3 + $0x160] ss:$56 sps:$4 sm:$0xff]   ;;  %v13243_v33 = vld [vmem:[#allocation3 + $0x1d4] ss:$56 sps:$4 sm:$0xff]  }
 0x3ad   : > { %10625 = vmatpush1.bf16.msra.mxu1 %v13196_v41  ;;  %v7799_v23 = vrot.slane %v7773_v35, 4  ;;  %v13244_v19 = vld [vmem:[#allocation3 + $0x88] ss:$56 sps:$4 sm:$0xff]   ;;  %v8243_v15 = vld [vmem:[#allocation2 + $0x58] sm:$0x11] }
 0x3ae   : > { %10626 = vmatprep.subr.bf16.mxu1 %v13204_v3  ;;  %v7814_v63 = vsel %vm1663_vm12, %v7798_v6, %v7771_v48  ;;  %v13234_v18 = vld [vmem:[#allocation3 + $0x1c] ss:$56 sps:$4 sm:$0xff]   ;;  %v13247_v41 = vld [vmem:[%s13591_s10 + $0xac0] ss:$8 sps:$4 sm:$0xff]   ;;  %v8308_v32 = vrot.slane %v8243_v15, 5 }
 0x3af   : > { %7846 = vst.msk [vmem:[#allocation3 + $0xfc] sm:$0xff] %vm14288_vm13, %v7814_v63  ;;  %v7775_v62 = vpop.permute.xlu0 %7774  ;;  %v7815_v57 = vsel %vm1663_vm12, %v7799_v23, %v7773_v35  ;;  %10541 = vmatprep.mubr.bf16.mxu0 %v13234_v18  ;;  %v8242_v26 = vld [vmem:[#allocation2 + $0x20] sm:$0xee]  ;;  %v13253_v37 = vld [vmem:[%s13591_s10 + $0xbb0] ss:$8 sps:$4 sm:$0xff]  }
 0x3b0   : > { %10439 = vmatmul.mubr.bf16.gmra.mxu1 %v13193_v20  ;;  %v7800_v24 = vrot.slane %v7775_v62, 4  ;;  %7847 = vst.msk [vmem:[#allocation3 + $0x134] sm:$0xff] %vm14288_vm13, %v7815_v57  ;;  %v7777_v52 = vpop.permute.xlu1 %7776  ;;  %10542 = vmatmul.mubr.bf16.vlgmr.msra.gmra.mxu0 %v13232_v10  ;;  %v13255_v20 = vld [vmem:[%s13591_s10 + $0xbb4] ss:$8 sps:$4 sm:$0xff]   ;;  %v12048_v58 = vrot.slane %v8242_v26, 9 }
 0x3b1   : > { %10627 = vmatpush1.bf16.msra.mxu1 %v13202_v25  ;;  %10448 = vmatprep.mubr.bf16.mxu1 %v13210_v56  ;;  %v7801_v60 = vrot.slane %v7777_v52, 4  ;;  %v13268_v5 = vld [vmem:[%s13591_s10 + $0xc00] ss:$8 sps:$4 sm:$0xff]   ;;  %v13276_v45 = vld [vmem:[%s13591_s10 + $0xbf4] ss:$8 sps:$4 sm:$0xff]  }
 0x3b2   : > { %10628 = vmatprep.subr.bf16.mxu1 %v13213_v55  ;;  %v7816_v49 = vsel %vm1663_vm12, %v7800_v24, %v7775_v62  ;;  %10736 = vmatpush1.bf16.msra.mxu0 %v13238_v29  ;;  %v8244_v48 = vld [vmem:[#allocation2 + $0x90] sm:$0xee]  ;;  %v8245_v17 = vld [vmem:[#allocation2 + $0x48] sm:$0x11]  ;;  %v13261_v10 = vld [vmem:[#allocation3 + $0x244] ss:$56 sps:$4 sm:$0xff]  }
 0x3b3   : > { %7848 = vst.msk [vmem:[#allocation3 + $0x16c] sm:$0xff] %vm14288_vm13, %v7816_v49  ;;  %v7817_v61 = vsel %vm1663_vm12, %v7801_v60, %v7777_v52  ;;  %v13246_v47 = vld [vmem:[#allocation3 + $0x8c] ss:$56 sps:$4 sm:$0xff]   ;;  %10737 = vmatprep.subr.bf16.mxu0 %v13252_v36  ;;  %v13274_v35 = vld [vmem:[%s13591_s10 + $0xbf0] ss:$8 sps:$4 sm:$0xff]   ;;  %v8312_v23 = vrot.slane %v8245_v17, 5 }
 0x3b4   : > { %7849 = vst.msk [vmem:[#allocation3 + $0x1a4] sm:$0xff] %vm14288_vm13, %v7817_v61  ;;  %10551 = vmatprep.mubr.bf16.mxu0 %v13246_v47  ;;  %v13288_v62 = vld [vmem:[%s13591_s10 + $0xbe4] ss:$8 sps:$4 sm:$0xff]   ;;  %v13262_v18 = vld [vmem:[#allocation3 + $0xf8] ss:$56 sps:$4 sm:$0xff]  }
 0x3b5   : > { %10629 = vmatpush1.bf16.msra.mxu1 %v13211_v16  ;;  %v7779_v8 = vpop.permute.xlu0 %7778  ;;  %v13267_v16 = vld [vmem:[%s13591_s10 + $0xba4] ss:$8 sps:$4 sm:$0xff]   ;;  %v13265_v24 = vld [vmem:[%s13591_s10 + $0xba0] ss:$8 sps:$4 sm:$0xff]   ;;  %v13289_v17 = vld [vmem:[%s13591_s10 + $0xb70] ss:$8 sps:$4 sm:$0xff]  }
 0x3b6   : > { %10630 = vmatprep.subr.bf16.mxu1 %v13219_v40  ;;  %v7802_v4 = vrot.slane %v7779_v8, 4  ;;  %10738 = vmatpush1.bf16.msra.mxu0 %v13250_v1  ;;  %v8309_v40 = vsel %vm14109_vm8, %v12048_v58, %v8308_v32  ;;  %v8246_v36 = vld [vmem:[#allocation2 + $0x128] sm:$0xee] }
 0x3b7   : > { %v7781_v22 = vpop.permute.xlu1 %7780  ;;  %10739 = vmatprep.subr.bf16.mxu0 %v13258_v46  ;;  %v13264_v3 = vld [vmem:[#allocation3 + $0xfc] ss:$56 sps:$4 sm:$0xff]   ;;  %8386 = vst.msk [vmem:[#allocation3 + $0x30] sm:$0xff] %vm13730_vm15, %v8309_v40  ;;  %v12050_v47 = vrot.slane %v8246_v36, 9  ;;  %v8254_v36 = vld [vmem:[#allocation2 + $0x80] sm:$0xee] }
 0x3b8   : > { %10449 = vmatmul.mubr.bf16.gmra.mxu1 %v13208_v34  ;;  %v7803_v39 = vrot.slane %v7781_v22, 4  ;;  %v7818_v27 = vsel %vm1663_vm12, %v7802_v4, %v7779_v8  ;;  %10552 = vmatmul.mubr.bf16.gmra.mxu0 %v13244_v19  ;;  %v13259_v19 = vld [vmem:[#allocation3 + $0x240] ss:$56 sps:$4 sm:$0xff]   ;;  %v13279_v26 = vld [vmem:[#allocation3 + $0x2b4] ss:$56 sps:$4 sm:$0xff]  }
 0x3b9   : > { %10631 = vmatpush1.bf16.msra.mxu1 %v13217_v13  ;;  %10458 = vmatprep.mubr.bf16.mxu1 %v13225_v2  ;;  %7850 = vst.msk [vmem:[#allocation3 + $0x1dc] sm:$0xff] %vm14288_vm13, %v7818_v27  ;;  %v7783_v12 = vpop.permute.xlu0 %7782  ;;  %v12049_v13 = vrot.slane %v8244_v48, 9  ;;  %v13285_v27 = vld [vmem:[%s13591_s10 + $0xb84] ss:$8 sps:$4 sm:$0xff]   ;;  %v13358_v11 = vld [vmem:[%s13591_s10 + $0xd00] ss:$8 sps:$4 sm:$0xff]  }
 0x3ba   : > { %10632 = vmatprep.subr.bf16.mxu1 %v13228_v21  ;;  %v7819_v51 = vsel %vm1663_vm12, %v7803_v39, %v7781_v22  ;;  %v7804_v43 = vrot.slane %v7783_v12, 4  ;;  %10561 = vmatprep.mubr.bf16.mxu0 %v13264_v3  ;;  %v13241_v21 = vld [vmem:[#allocation3 + $0x1d0] ss:$56 sps:$4 sm:$0xff]  }
 0x3bb   : > { %7851 = vst.msk [vmem:[#allocation3 + $0x214] sm:$0xff] %vm14288_vm13, %v7819_v51  ;;  %v7785_v50 = vpop.permute.xlu1 %7784  ;;  %10740 = vmatpush1.bf16.msra.mxu0 %v13256_v59  ;;  %v8313_v52 = vsel %vm14109_vm8, %v12049_v13, %v8312_v23  ;;  %v13282_v60 = vld [vmem:[#allocation3 + $0x16c] ss:$56 sps:$4 sm:$0xff]   ;;  %v13271_v22 = vld [vmem:[%s13591_s10 + $0xb90] ss:$8 sps:$4 sm:$0xff]  }
 0x3bc   : > { %v7805_v28 = vrot.slane %v7785_v50, 4  ;;  %v7820_v7 = vsel %vm1663_vm12, %v7804_v43, %v7783_v12  ;;  %10741 = vmatprep.subr.bf16.mxu0 %v13270_v42  ;;  %8387 = vst.msk [vmem:[#allocation3 + $0x68] sm:$0xff] %vm13730_vm15, %v8313_v52  ;;  %v13286_v39 = vld [vmem:[%s13591_s10 + $0xbe0] ss:$8 sps:$4 sm:$0xff]   ;;  %v8248_v59 = vld [vmem:[#allocation2 + $0xb0] sm:$0xee] }
 0x3bd   : > { %10633 = vmatpush1.bf16.msra.mxu1 %v13226_v9  ;;  %7852 = vst.msk [vmem:[#allocation3 + $0x24c] sm:$0xff] %vm14288_vm13, %v7820_v7  ;;  %v7787_v53 = vpop.permute.xlu0 %7786  ;;  %v8247_v9 = vld [vmem:[#allocation2] sm:$0x11]  ;;  %v13292_v42 = vld [vmem:[%s13591_s10 + $0xbd0] ss:$8 sps:$4 sm:$0xff]   ;;  %v12051_v43 = vrot.slane %v8248_v59, 9 }
 0x3be   : > { %10634 = vmatprep.subr.bf16.mxu1 %v13237_v0  ;;  %v7821_v25 = vsel %vm1663_vm12, %v7805_v28, %v7785_v50  ;;  %v7806_v55 = vrot.slane %v7787_v53, 4  ;;  %v13273_v0 = vld [vmem:[%s13591_s10 + $0xb94] ss:$8 sps:$4 sm:$0xff]   ;;  %v8316_v4 = vrot.slane %v8247_v9, 5  ;;  %v13306_v28 = vld [vmem:[%s13591_s10 + $0xbc4] ss:$8 sps:$4 sm:$0xff]  }
 0x3bf   : > { %7853 = vst.msk [vmem:[#allocation3 + $0x284] sm:$0xff] %vm14288_vm13, %v7821_v25  ;;  %10742 = vmatpush1.bf16.msra.mxu0 %v13268_v5  ;;  %v13283_v7 = vld [vmem:[%s13591_s10 + $0xb80] ss:$8 sps:$4 sm:$0xff]   ;;  %v8250_v25 = vld [vmem:[#allocation2 + $0x138] sm:$0xee] }
 0x3c0   : > { %10459 = vmatmul.mubr.bf16.gmra.mxu1 %v13223_v14  ;;  %v7822_v6 = vsel %vm1663_vm12, %v7806_v55, %v7787_v53  ;;  %10743 = vmatprep.subr.bf16.mxu0 %v13276_v45  ;;  %v8249_v14 = vld [vmem:[#allocation2 + $0x8] sm:$0x11]  ;;  %v8317_v12 = vsel %vm14109_vm8, %v12050_v47, %v8316_v4  ;;  %v13291_v45 = vld [vmem:[%s13591_s10 + $0xb74] ss:$8 sps:$4 sm:$0xff]   ;;  %v13298_v9 = vld [vmem:[#allocation3 + $0x1d8] ss:$56 sps:$4 sm:$0xff]  }
 0x3c1   : > { %10635 = vmatpush1.bf16.msra.mxu1 %v13235_v30  ;;  %10468 = vmatprep.mubr.bf16.mxu1 %v13243_v33  ;;  %v7789_v56 = vpop.permute.xlu1 %7788  ;;  %7854 = vst.msk [vmem:[#allocation3 + $0x2bc] sm:$0xff] %vm14288_vm13, %v7822_v6  ;;  %v7791_v34 = vpop.permute.xlu0 %7790  ;;  %v8320_v33 = vrot.slane %v8249_v14, 5  ;;  %v13304_v6 = vld [vmem:[%s13591_s10 + $0xbc0] ss:$8 sps:$4 sm:$0xff]   ;;  %v13303_v23 = vld [vmem:[%s13591_s10 + $0xb64] ss:$8 sps:$4 sm:$0xff]  }
 0x3c2   : > { %10636 = vmatprep.subr.bf16.mxu1 %v13249_v54  ;;  %v7807_v31 = vrot.slane %v7789_v56, 4  ;;  %v7808_v57 = vrot.slane %v7791_v34, 4  ;;  %10562 = vmatmul.mubr.bf16.gmra.mxu0 %v13262_v18  ;;  %v13294_v54 = vld [vmem:[%s13591_s10 + $0xbd4] ss:$8 sps:$4 sm:$0xff]   ;;  %8388 = vst.msk [vmem:[#allocation3 + $0xa0] sm:$0xff] %vm13730_vm15, %v8317_v12 }
 0x3c3   : > { %10571 = vmatprep.mubr.bf16.mxu0 %v13282_v60  ;;  %10744 = vmatpush1.bf16.msra.mxu0 %v13274_v35  ;;  %v8321_v53 = vsel %vm14109_vm8, %v12051_v43, %v8320_v33  ;;  %v13300_v32 = vld [vmem:[#allocation3 + $0x1dc] ss:$56 sps:$4 sm:$0xff]   ;;  %v13324_v60 = vld [vmem:[%s13591_s10 + $0xca4] ss:$8 sps:$4 sm:$0xff]  }
 0x3c4   : > { %v7823_v63 = vsel %vm1663_vm12, %v7807_v31, %v7789_v56  ;;  %v7824_v49 = vsel %vm1663_vm12, %v7808_v57, %v7791_v34  ;;  %10745 = vmatprep.subr.bf16.mxu0 %v13288_v62  ;;  %8389 = vst.msk [vmem:[#allocation3 + $0xd8] sm:$0xff] %vm13730_vm15, %v8321_v53  ;;  %v12052_v31 = vrot.slane %v8250_v25, 9  ;;  %v13312_v35 = vld [vmem:[%s13591_s10 + $0xcb4] ss:$8 sps:$4 sm:$0xff]   ;;  %v13277_v62 = vld [vmem:[#allocation3 + $0x2b0] ss:$56 sps:$4 sm:$0xff]  }
 0x3c5   : > { %10637 = vmatpush1.bf16.msra.mxu1 %v13247_v41  ;;  %7855 = vst.msk [vmem:[#allocation3 + $0x2f4] sm:$0xff] %vm14288_vm13, %v7823_v63  ;;  %v7793_v2 = vpop.permute.xlu1 %7792  ;;  %7856 = vst.msk [vmem:[#allocation3 + $0x32c] sm:$0xff] %vm14288_vm13, %v7824_v49  ;;  %v8253_v34 = vld [vmem:[#allocation2 + $0xf8] sm:$0x11]  ;;  %v8260_v25 = vld [vmem:[#allocation2 + $0xd8] sm:$0xee] }
 0x3c6   : > { %10638 = vmatprep.subr.bf16.mxu1 %v13255_v20  ;;  %v7809_v29 = vrot.slane %v7793_v2, 4  ;;  %v8147_v8 = vpop.permute.xlu0 %8146  ;;  %v13280_v20 = vld [vmem:[#allocation3 + $0x168] ss:$56 sps:$4 sm:$0xff]   ;;  %v13297_v52 = vld [vmem:[#allocation3 + $0x324] ss:$56 sps:$4 sm:$0xff]  }
 0x3c7   : > { %v8178_v30 = vrot.slane %v8147_v8, 4  ;;  %10746 = vmatpush1.bf16.msra.mxu0 %v13286_v39 }
 0x3c8   : > { %10469 = vmatmul.mubr.bf16.gmra.mxu1 %v13241_v21  ;;  %v7825_v61 = vsel %vm1663_vm12, %v7809_v29, %v7793_v2  ;;  %10747 = vmatprep.subr.bf16.mxu0 %v13294_v54  ;;  %v8252_v21 = vld [vmem:[#allocation2 + $0x28] sm:$0xee] }
 0x3c9   : > { %10639 = vmatpush2.bf16.msra.mxu1 %v13253_v37  ;;  %10478 = vmatprep.mubr.bf16.mxu1 %v13261_v10  ;;  %7857 = vst.msk [vmem:[#allocation3 + $0x364] sm:$0xff] %vm14288_vm13, %v7825_v61  ;;  %v8149_v1 = vpop.permute.xlu1 %8148  ;;  %v8194_v51 = vsel %vm1663_vm12, %v8178_v30, %v8147_v8  ;;  %v8251_v37 = vld [vmem:[#allocation2 + $0x120] sm:$0x11]  ;;  %v13310_v10 = vld [vmem:[%s13591_s10 + $0xcb0] ss:$8 sps:$4 sm:$0xff]   ;;  %v12053_v18 = vrot.slane %v8252_v21, 9 }
 0x3ca   : > { %10640 = vmatprep.subr.bf16.mxu1 %v13267_v16  ;;  %v8179_v46 = vrot.slane %v8149_v1, 4  ;;  %8226 = vst.msk [vmem:[#allocation3 + $0x28] sm:$0xff] %vm14288_vm13, %v8194_v51  ;;  %v8151_v41 = vpop.permute.xlu0 %8150  ;;  %10572 = vmatmul.mubr.bf16.gmra.mxu0 %v13280_v20  ;;  %v8324_v16 = vrot.slane %v8251_v37, 5  ;;  %v13301_v8 = vld [vmem:[%s13591_s10 + $0xb60] ss:$8 sps:$4 sm:$0xff]  }
 0x3cb   : > { %v8180_v3 = vrot.slane %v8151_v41, 4  ;;  %10581 = vmatprep.mubr.bf16.mxu0 %v13300_v32  ;;  %10748 = vmatpush1.bf16.msra.mxu0 %v13292_v42  ;;  %v13309_v30 = vld [vmem:[%s13591_s10 + $0xb54] ss:$8 sps:$4 sm:$0xff]   ;;  %v13322_v54 = vld [vmem:[%s13591_s10 + $0xca0] ss:$8 sps:$4 sm:$0xff]  }
 0x3cc   : > { %v8195_v50 = vsel %vm1663_vm12, %v8179_v46, %v8149_v1  ;;  %10749 = vmatprep.subr.bf16.mxu0 %v13306_v28  ;;  %v8325_v63 = vsel %vm14109_vm8, %v12052_v31, %v8324_v16  ;;  %v8256_v1 = vld [vmem:[#allocation2 + $0x38] sm:$0xee]  ;;  %v8257_v46 = vld [vmem:[#allocation2 + $0x10] sm:$0x11]  ;;  %v8261_v20 = vld [vmem:[#allocation2 + $0xc0] sm:$0x11] }
 0x3cd   : > { %10641 = vmatpush2.bf16.msra.mxu1 %v13265_v24  ;;  %8227 = vst.msk [vmem:[#allocation3 + $0x60] sm:$0xff] %vm14288_vm13, %v8195_v50  ;;  %v8153_v15 = vpop.permute.xlu1 %8152  ;;  %v8196_v55 = vsel %vm1663_vm12, %v8180_v3, %v8151_v41  ;;  %v8328_v24 = vrot.slane %v8253_v34, 5  ;;  %v13330_v51 = vld [vmem:[%s13591_s10 + $0xc94] ss:$8 sps:$4 sm:$0xff]   ;;  %v12055_v42 = vrot.slane %v8256_v1, 9  ;;  %v8336_v43 = vrot.slane %v8257_v46, 5 }
 0x3ce   : > { %10642 = vmatprep.subr.bf16.mxu1 %v13273_v0  ;;  %v8181_v58 = vrot.slane %v8153_v15, 4  ;;  %8228 = vst.msk [vmem:[#allocation3 + $0x98] sm:$0xff] %vm14288_vm13, %v8196_v55  ;;  %v8155_v56 = vpop.permute.xlu0 %8154  ;;  %v13315_v0 = vld [vmem:[#allocation3 + $0x24c] ss:$56 sps:$4 sm:$0xff]   ;;  %v8258_v28 = vld [vmem:[#allocation2 + $0x18] sm:$0xee] }
 0x3cf   : > { %v8182_v48 = vrot.slane %v8155_v56, 4  ;;  %8390 = vst.msk [vmem:[#allocation3 + $0x110] sm:$0xff] %vm13730_vm15, %v8325_v63  ;;  %10750 = vmatpush1.bf16.msra.mxu0 %v13304_v6  ;;  %v8329_v47 = vsel %vm14109_vm8, %v12053_v18, %v8328_v24  ;;  %v8259_v3 = vld [vmem:[#allocation2 + $0xc8] sm:$0x11]  ;;  %v8337_v53 = vsel %vm14109_vm8, %v12055_v42, %v8336_v43  ;;  %v13318_v32 = vld [vmem:[#allocation3 + $0x24] ss:$56 sps:$4 sm:$0xff]  }
 0x3d0   : > { %10479 = vmatmul.mubr.bf16.gmra.mxu1 %v13259_v19  ;;  %v8197_v5 = vsel %vm1663_vm12, %v8181_v58, %v8153_v15  ;;  %10751 = vmatprep.subr.bf16.mxu0 %v13312_v35  ;;  %8391 = vst.msk [vmem:[#allocation3 + $0x148] sm:$0xff] %vm13730_vm15, %v8329_v47  ;;  %v13307_v19 = vld [vmem:[%s13591_s10 + $0xb50] ss:$8 sps:$4 sm:$0xff]   ;;  %v13321_v15 = vld [vmem:[%s13591_s10 + $0xb44] ss:$8 sps:$4 sm:$0xff]   ;;  %8393 = vst.msk [vmem:[#allocation3 + $0x1b8] sm:$0xff] %vm13730_vm15, %v8337_v53 }
 0x3d1   : > { %10643 = vmatpush2.bf16.msra.mxu1 %v13271_v22  ;;  %10488 = vmatprep.mubr.bf16.mxu1 %v13279_v26  ;;  %8229 = vst.msk [vmem:[#allocation3 + $0xd0] sm:$0xff] %vm14288_vm13, %v8197_v5  ;;  %v8157_v40 = vpop.permute.xlu1 %8156  ;;  %v8198_v57 = vsel %vm1663_vm12, %v8182_v48, %v8155_v56  ;;  %v8255_v22 = vld [vmem:[#allocation2 + $0x30] sm:$0x11]  ;;  %v13295_v26 = vld [vmem:[#allocation3 + $0x320] ss:$56 sps:$4 sm:$0xff]   ;;  %v12056_v37 = vrot.slane %v8258_v28, 9 }
 0x3d2   : > { %10644 = vmatprep.subr.bf16.mxu1 %v13285_v27  ;;  %v8183_v13 = vrot.slane %v8157_v40, 4  ;;  %8230 = vst.msk [vmem:[#allocation3 + $0x108] sm:$0xff] %vm14288_vm13, %v8198_v57  ;;  %v8159_v2 = vpop.permute.xlu0 %8158  ;;  %v12054_v27 = vrot.slane %v8254_v36, 9  ;;  %v8332_v59 = vrot.slane %v8255_v22, 5  ;;  %10582 = vmatmul.mubr.bf16.gmra.mxu0 %v13298_v9  ;;  %v13328_v55 = vld [vmem:[%s13591_s10 + $0xc90] ss:$8 sps:$4 sm:$0xff]  }
 0x3d3   : > { %v8184_v49 = vrot.slane %v8159_v2, 4  ;;  %10591 = vmatprep.mubr.bf16.mxu0 %v13315_v0  ;;  %10752 = vmatpush2.bf16.msra.mxu0 %v13310_v10  ;;  %v8340_v56 = vrot.slane %v8259_v3, 5  ;;  %v13339_v31 = vld [vmem:[%s13591_s10 + $0xc84] ss:$8 sps:$4 sm:$0xff]   ;;  %v12057_v16 = vrot.slane %v8260_v25, 9  ;;  %v8344_v48 = vrot.slane %v8261_v20, 5 }
 0x3d4   : > { %v8199_v29 = vsel %vm1663_vm12, %v8183_v13, %v8157_v40  ;;  %v8333_v50 = vsel %vm14109_vm8, %v12054_v27, %v8332_v59  ;;  %10753 = vmatprep.subr.bf16.mxu0 %v13324_v60  ;;  %v13313_v6 = vld [vmem:[#allocation3 + $0x248] ss:$56 sps:$4 sm:$0xff]   ;;  %v13327_v63 = vld [vmem:[%s13591_s10 + $0xd34] ss:$8 sps:$4 sm:$0xff]   ;;  %v13343_v59 = vld [vmem:[%s13591_s10 + $0xc70] ss:$8 sps:$4 sm:$0xff]  }
 0x3d5   : > { %10645 = vmatpush2.bf16.msra.mxu1 %v13283_v7  ;;  %8231 = vst.msk [vmem:[#allocation3 + $0x140] sm:$0xff] %vm14288_vm13, %v8199_v29  ;;  %v8161_v61 = vpop.permute.xlu1 %8160  ;;  %v8200_v39 = vsel %vm1663_vm12, %v8184_v49, %v8159_v2  ;;  %v13319_v35 = vld [vmem:[%s13591_s10 + $0xb40] ss:$8 sps:$4 sm:$0xff]   ;;  %v8341_v21 = vsel %vm14109_vm8, %v12056_v37, %v8340_v56  ;;  %v8263_v57 = vld [vmem:[#allocation2 + $0xb8] sm:$0x11] }
 0x3d6   : > { %10646 = vmatprep.subr.bf16.mxu1 %v13291_v45  ;;  %v8185_v4 = vrot.slane %v8161_v61, 4  ;;  %8232 = vst.msk [vmem:[#allocation3 + $0x178] sm:$0xff] %vm14288_vm13, %v8200_v39  ;;  %v8163_v14 = vpop.permute.xlu0 %8162  ;;  %v8264_v10 = vld [vmem:[#allocation2 + $0xf0] sm:$0xee]  ;;  %v8265_v24 = vld [vmem:[#allocation2 + $0xa8] sm:$0x11] }
 0x3d7   : > { %v8186_v33 = vrot.slane %v8163_v14, 4  ;;  %8392 = vst.msk [vmem:[#allocation3 + $0x180] sm:$0xff] %vm13730_vm15, %v8333_v50  ;;  %10754 = vmatpush2.bf16.msra.mxu0 %v13322_v54  ;;  %8394 = vst.msk [vmem:[#allocation3 + $0x1f0] sm:$0xff] %vm13730_vm15, %v8341_v21  ;;  %v13337_v36 = vld [vmem:[%s13591_s10 + $0xc80] ss:$8 sps:$4 sm:$0xff]   ;;  %v12059_v49 = vrot.slane %v8264_v10, 9 }
 0x3d8   : > { %10489 = vmatmul.mubr.bf16.gmra.mxu1 %v13277_v62  ;;  %v8201_v12 = vsel %vm1663_vm12, %v8185_v4, %v8161_v61  ;;  %10755 = vmatprep.subr.bf16.mxu0 %v13330_v51  ;;  %v8345_v62 = vsel %vm14109_vm8, %v12057_v16, %v8344_v48  ;;  %v8352_v9 = vrot.slane %v8265_v24, 5  ;;  %v13325_v61 = vld [vmem:[%s13591_s10 + $0xd30] ss:$8 sps:$4 sm:$0xff]   ;;  %v8266_v4 = vld [vmem:[#allocation2 + $0x108] sm:$0xee] }
 0x3d9   : > { %10647 = vmatpush2.bf16.msra.mxu1 %v13289_v17  ;;  %10498 = vmatprep.mubr.bf16.mxu1 %v13297_v52  ;;  %8233 = vst.msk [vmem:[#allocation3 + $0x1b0] sm:$0xff] %vm14288_vm13, %v8201_v12  ;;  %v8165_v41 = vpop.permute.xlu1 %8164  ;;  %v8202_v58 = vsel %vm1663_vm12, %v8186_v33, %v8163_v14  ;;  %v8262_v17 = vld [vmem:[#allocation2 + $0x110] sm:$0xee]  ;;  %v8348_v52 = vrot.slane %v8263_v57, 5  ;;  %v13316_v22 = vld [vmem:[#allocation3 + $0x20] ss:$56 sps:$4 sm:$0xff]  }
 0x3da   : > { %10648 = vmatprep.subr.bf16.mxu1 %v13303_v23  ;;  %v8187_v7 = vrot.slane %v8165_v41, 4  ;;  %8234 = vst.msk [vmem:[#allocation3 + $0x1e8] sm:$0xff] %vm14288_vm13, %v8202_v58  ;;  %v8167_v5 = vpop.permute.xlu0 %8166  ;;  %v13333_v23 = vld [vmem:[#allocation3 + $0x2bc] ss:$56 sps:$4 sm:$0xff]   ;;  %v12058_v2 = vrot.slane %v8262_v17, 9  ;;  %10592 = vmatmul.mubr.bf16.gmra.mxu0 %v13313_v6  ;;  %v8353_v46 = vsel %vm14109_vm8, %v12059_v49, %v8352_v9 }
 0x3db   : > { %v8188_v40 = vrot.slane %v8167_v5, 4  ;;  %8395 = vst.msk [vmem:[#allocation3 + $0x228] sm:$0xff] %vm13730_vm15, %v8345_v62  ;;  %10601 = vmatprep.mubr.bf16.mxu0 %v13333_v23  ;;  %10756 = vmatpush2.bf16.msra.mxu0 %v13328_v55  ;;  %v13342_v39 = vld [vmem:[%s13591_s10 + $0xd24] ss:$8 sps:$4 sm:$0xff]   ;;  %v13345_v54 = vld [vmem:[%s13591_s10 + $0xc74] ss:$8 sps:$4 sm:$0xff]  }
 0x3dc   : > { %v8203_v45 = vsel %vm1663_vm12, %v8187_v7, %v8165_v41  ;;  %v8349_v47 = vsel %vm14109_vm8, %v12058_v2, %v8348_v52  ;;  %10757 = vmatprep.subr.bf16.mxu0 %v13339_v31  ;;  %8397 = vst.msk [vmem:[#allocation3 + $0x298] sm:$0xff] %vm13730_vm15, %v8353_v46  ;;  %v8268_v14 = vld [vmem:[#allocation2 + $0x78] sm:$0xee]  ;;  %v8269_v12 = vld [vmem:[#allocation2 + $0x130] sm:$0x11] }
 0x3dd   : > { %10649 = vmatpush2.bf16.msra.mxu1 %v13301_v8  ;;  %8235 = vst.msk [vmem:[#allocation3 + $0x220] sm:$0xff] %vm14288_vm13, %v8203_v45  ;;  %v8169_v13 = vpop.permute.xlu1 %8168  ;;  %v8204_v18 = vsel %vm1663_vm12, %v8188_v40, %v8167_v5  ;;  %v13336_v42 = vld [vmem:[#allocation3 + $0x94] ss:$56 sps:$4 sm:$0xff]   ;;  %v13331_v28 = vld [vmem:[#allocation3 + $0x2b8] ss:$56 sps:$4 sm:$0xff]   ;;  %v8360_v7 = vrot.slane %v8269_v12, 5 }
 0x3de   : > { %10650 = vmatprep.subr.bf16.mxu1 %v13309_v30  ;;  %v8189_v34 = vrot.slane %v8169_v13, 4  ;;  %8236 = vst.msk [vmem:[#allocation3 + $0x258] sm:$0xff] %vm14288_vm13, %v8204_v18  ;;  %v8171_v29 = vpop.permute.xlu0 %8170  ;;  %v8267_v30 = vld [vmem:[#allocation2 + $0xd0] sm:$0x11]  ;;  %v13357_v33 = vld [vmem:[%s13591_s10 + $0xc64] ss:$8 sps:$4 sm:$0xff]  }
 0x3df   : > { %v8190_v8 = vrot.slane %v8171_v29, 4  ;;  %8396 = vst.msk [vmem:[#allocation3 + $0x260] sm:$0xff] %vm13730_vm15, %v8349_v47  ;;  %v8356_v41 = vrot.slane %v8267_v30, 5  ;;  %10758 = vmatpush2.bf16.msra.mxu0 %v13337_v36  ;;  %v13340_v3 = vld [vmem:[%s13591_s10 + $0xd20] ss:$8 sps:$4 sm:$0xff]  }
 0x3e0   : > { %10499 = vmatmul.mubr.bf16.gmra.mxu1 %v13295_v26  ;;  %v8205_v60 = vsel %vm1663_vm12, %v8189_v34, %v8169_v13  ;;  %v12061_v26 = vrot.slane %v8268_v14, 9  ;;  %10759 = vmatprep.subr.bf16.mxu0 %v13345_v54  ;;  %v8270_v25 = vld [vmem:[#allocation2 + $0x60] sm:$0xee]  ;;  %v8271_v55 = vld [vmem:[#allocation2 + $0x118] sm:$0x11] }
 0x3e1   : > { %10651 = vmatpush2.bf16.msra.mxu1 %v13307_v19  ;;  %10654 = vmatprep.mubr.bf16.mxu1 %v13318_v32  ;;  %8237 = vst.msk [vmem:[#allocation3 + $0x290] sm:$0xff] %vm14288_vm13, %v8205_v60  ;;  %v8173_v0 = vpop.permute.xlu1 %8172  ;;  %v8206_v27 = vsel %vm1663_vm12, %v8190_v8, %v8171_v29  ;;  %v12060_v19 = vrot.slane %v8266_v4, 9  ;;  %v8272_v37 = vld [vmem:[#allocation2 + $0xe8] sm:$0xee]  ;;  %v13354_v5 = vld [vmem:[%s13591_s10 + $0xd14] ss:$8 sps:$4 sm:$0xff]  }
 0x3e2   : > { %10652 = vmatprep.subr.bf16.mxu1 %v13321_v15  ;;  %v8191_v1 = vrot.slane %v8173_v0, 4  ;;  %8238 = vst.msk [vmem:[#allocation3 + $0x2c8] sm:$0xff] %vm14288_vm13, %v8206_v27  ;;  %v8175_v51 = vpop.permute.xlu0 %8174  ;;  %v13348_v15 = vld [vmem:[#allocation3 + $0x32c] ss:$56 sps:$4 sm:$0xff]   ;;  %v8361_v32 = vsel %vm14109_vm8, %v12061_v26, %v8360_v7  ;;  %10602 = vmatmul.mubr.bf16.gmra.mxu0 %v13331_v28  ;;  %v13355_v45 = vld [vmem:[%s13591_s10 + $0xc60] ss:$8 sps:$4 sm:$0xff]  }
 0x3e3   : > { %v8192_v50 = vrot.slane %v8175_v51, 4  ;;  %v8357_v53 = vsel %vm14109_vm8, %v12060_v19, %v8356_v41  ;;  %8399 = vst.msk [vmem:[#allocation3 + $0x308] sm:$0xff] %vm13730_vm15, %v8361_v32  ;;  %10611 = vmatprep.mubr.bf16.mxu0 %v13348_v15  ;;  %10760 = vmatpush2.bf16.msra.mxu0 %v13343_v59  ;;  %v8273_v31 = vld [vmem:[#allocation2 + $0x70] sm:$0x11]  ;;  %v12062_v16 = vrot.slane %v8270_v25, 9  ;;  %v8364_v48 = vrot.slane %v8271_v55, 5 }
 0x3e4   : > { %v8207_v43 = vsel %vm1663_vm12, %v8191_v1, %v8173_v0  ;;  %8398 = vst.msk [vmem:[#allocation3 + $0x2d0] sm:$0xff] %vm13730_vm15, %v8357_v53  ;;  %10761 = vmatprep.subr.bf16.mxu0 %v13357_v33  ;;  %v13363_v40 = vld [vmem:[%s13591_s10 + $0xc54] ss:$8 sps:$4 sm:$0xff]   ;;  %v12063_v6 = vrot.slane %v8272_v37, 9  ;;  %v13352_v13 = vld [vmem:[%s13591_s10 + $0xd10] ss:$8 sps:$4 sm:$0xff]  }
 0x3e5   : > { %10653 = vmatpush2.bf16.msra.mxu1 %v13319_v35  ;;  %8239 = vst.msk [vmem:[#allocation3 + $0x300] sm:$0xff] %vm14288_vm13, %v8207_v43  ;;  %v8208_v20 = vsel %vm1663_vm12, %v8192_v50, %v8175_v51  ;;  %v8177_v58 = vpop.permute.xlu1 %8176  ;;  %v8368_v35 = vrot.slane %v8273_v31, 5  ;;  %v8365_v23 = vsel %vm14109_vm8, %v12062_v16, %v8364_v48  ;;  %v13334_v21 = vld [vmem:[#allocation3 + $0x90] ss:$56 sps:$4 sm:$0xff]   ;;  %v13360_v34 = vld [vmem:[%s13591_s10 + $0xd04] ss:$8 sps:$4 sm:$0xff]  }
 0x3e6   : > { %10848 = vmatprep.subr.bf16.mxu1 %v13327_v63  ;;  %8240 = vst.msk [vmem:[#allocation3 + $0x338] sm:$0xff] %vm14288_vm13, %v8208_v20  ;;  %v8193_v56 = vrot.slane %v8177_v58, 4  ;;  %v13351_v62 = vld [vmem:[#allocation3 + $0x104] ss:$56 sps:$4 sm:$0xff]   ;;  %v13361_v57 = vld [vmem:[%s13591_s10 + $0xc50] ss:$8 sps:$4 sm:$0xff]  }
 0x3e7   : > { %v8369_v63 = vsel %vm14109_vm8, %v12063_v6, %v8368_v35  ;;  %8400 = vst.msk [vmem:[#allocation3 + $0x340] sm:$0xff] %vm13730_vm15, %v8365_v23  ;;  %10762 = vmatpush2.bf16.msra.mxu0 %v13355_v45  ;;  %v13346_v10 = vld [vmem:[#allocation3 + $0x328] ss:$56 sps:$4 sm:$0xff]   ;;  %v13372_v18 = vld [vmem:[%s13591_s10 + $0xc44] ss:$8 sps:$4 sm:$0xff]  }
 0x3e8   : > { %10655 = vmatmul.mubr.bf16.vlgmr.msra.gmra.mxu1 %v13316_v22  ;;  %v8209_v17 = vsel %vm1663_vm12, %v8193_v56, %v8177_v58  ;;  %8401 = vst.msk [vmem:[#allocation3 + $0x378] sm:$0xff] %vm13730_vm15, %v8369_v63  ;;  %10763 = vmatprep.subr.bf16.mxu0 %v13363_v40  ;;  %v13369_v44 = vld [vmem:[#allocation3 + $0x2c] ss:$56 sps:$4 sm:$0xff]   ;;  %v13375_v24 = vld [vmem:[%s13591_s10 + $0xcf4] ss:$8 sps:$4 sm:$0xff]  }
 0x3e9   : > { %10849 = vmatpush1.bf16.msra.mxu1 %v13325_v61  ;;  %10664 = vmatprep.mubr.bf16.mxu1 %v13336_v42  ;;  %8241 = vst.msk [vmem:[#allocation3 + $0x370] sm:$0xff] %vm14288_vm13, %v8209_v17  ;;  %v13370_v2 = vld [vmem:[%s13591_s10 + $0xc40] ss:$8 sps:$4 sm:$0xff]   ;;  %v13384_v29 = vld [vmem:[%s13591_s10 + $0xce4] ss:$8 sps:$4 sm:$0xff]  }
 0x3ea   : > { %10850 = vmatprep.subr.bf16.mxu1 %v13342_v39  ;;  %10612 = vmatmul.mubr.bf16.gmra.mxu0 %v13346_v10  ;;  %v13349_v52 = vld [vmem:[#allocation3 + $0x100] ss:$56 sps:$4 sm:$0xff]   ;;  %v13366_v60 = vld [vmem:[#allocation3 + $0x174] ss:$56 sps:$4 sm:$0xff]   ;;  %v13364_v0 = vld [vmem:[#allocation3 + $0x170] ss:$56 sps:$4 sm:$0xff]  }
 0x3eb   : > { %10764 = vmatpush2.bf16.msra.mxu0 %v13361_v57  ;;  %10767 = vmatprep.mubr.bf16.mxu0 %v13369_v44  ;;  %v13367_v36 = vld [vmem:[#allocation3 + $0x28] ss:$56 sps:$4 sm:$0xff]   ;;  %v13381_v49 = vld [vmem:[#allocation3 + $0x9c] ss:$56 sps:$4 sm:$0xff]   ;;  %v13385_v61 = vld [vmem:[%s13591_s10 + $0xcd0] ss:$8 sps:$4 sm:$0xff]  }
 0x3ec   : > { %10765 = vmatprep.subr.bf16.mxu0 %v13372_v18  ;;  %v13382_v9 = vld [vmem:[%s13591_s10 + $0xce0] ss:$8 sps:$4 sm:$0xff]   ;;  %v13387_v8 = vld [vmem:[%s13591_s10 + $0xcd4] ss:$8 sps:$4 sm:$0xff]   ;;  %v13396_v47 = vld [vmem:[%s13591_s10 + $0xcc4] ss:$8 sps:$4 sm:$0xff]  }
 0x3ed   : > { %10851 = vmatpush1.bf16.msra.mxu1 %v13340_v3  ;;  %v13378_v4 = vld [vmem:[#allocation3 + $0x1e4] ss:$56 sps:$4 sm:$0xff]   ;;  %v13379_v30 = vld [vmem:[#allocation3 + $0x98] ss:$56 sps:$4 sm:$0xff]   ;;  %v13394_v1 = vld [vmem:[%s13591_s10 + $0xcc0] ss:$8 sps:$4 sm:$0xff]  }
 0x3ee   : > { %10852 = vmatprep.subr.bf16.mxu1 %v13354_v5  ;;  %v13393_v22 = vld [vmem:[#allocation3 + $0x10c] ss:$56 sps:$4 sm:$0xff]   ;;  %v13405_v39 = vld [vmem:[%s13591_s10 + $0xd74] ss:$8 sps:$4 sm:$0xff]   ;;  %v13403_v54 = vld [vmem:[%s13591_s10 + $0xd70] ss:$8 sps:$4 sm:$0xff]  }
 0x3ef   : > { %10766 = vmatpush2.bf16.msra.mxu0 %v13370_v2  ;;  %v13376_v46 = vld [vmem:[#allocation3 + $0x1e0] ss:$56 sps:$4 sm:$0xff]   ;;  %v13408_v27 = vld [vmem:[%s13591_s10 + $0xd64] ss:$8 sps:$4 sm:$0xff]   ;;  %v13402_v12 = vld [vmem:[#allocation3 + $0x17c] ss:$56 sps:$4 sm:$0xff]  }
 0x3f0   : > { %10665 = vmatmul.mubr.bf16.gmra.mxu1 %v13334_v21  ;;  %v13390_v59 = vld [vmem:[#allocation3 + $0x254] ss:$56 sps:$4 sm:$0xff]   ;;  %v13391_v14 = vld [vmem:[#allocation3 + $0x108] ss:$56 sps:$4 sm:$0xff]   ;;  %v13415_v43 = vld [vmem:[%s13591_s10 + $0xd50] ss:$8 sps:$4 sm:$0xff]  }
 0x3f1   : > { %10674 = vmatprep.mubr.bf16.mxu1 %v13351_v62  ;;  %10853 = vmatpush1.bf16.msra.mxu1 %v13352_v13  ;;  %v13406_v51 = vld [vmem:[%s13591_s10 + $0xd60] ss:$8 sps:$4 sm:$0xff]   ;;  %v13417_v42 = vld [vmem:[%s13591_s10 + $0xd54] ss:$8 sps:$4 sm:$0xff]   ;;  %v13426_v19 = vld [vmem:[%s13591_s10 + $0xd44] ss:$8 sps:$4 sm:$0xff]  }
 0x3f2   : > { %10854 = vmatprep.subr.bf16.mxu1 %v13360_v34  ;;  %10768 = vmatmul.mubr.bf16.vlgmr.msra.gmra.mxu0 %v13367_v36  ;;  %v13388_v33 = vld [vmem:[#allocation3 + $0x250] ss:$56 sps:$4 sm:$0xff]   ;;  %v13399_v41 = vld [vmem:[#allocation3 + $0x2c4] ss:$56 sps:$4 sm:$0xff]   ;;  %v13397_v26 = vld [vmem:[#allocation3 + $0x2c0] ss:$56 sps:$4 sm:$0xff]  }
 0x3f3   : > { %10777 = vmatprep.mubr.bf16.mxu0 %v13381_v49  ;;  %v13400_v50 = vld [vmem:[#allocation3 + $0x178] ss:$56 sps:$4 sm:$0xff]   ;;  %v13414_v28 = vld [vmem:[#allocation3 + $0x1ec] ss:$56 sps:$4 sm:$0xff]   ;;  %v13424_v3 = vld [vmem:[%s13591_s10 + $0xd40] ss:$8 sps:$4 sm:$0xff]  }
 0x3f4   : > { %v13411_v7 = vld [vmem:[#allocation3 + $0x334] ss:$56 sps:$4 sm:$0xff]   ;;  %v13412_v15 = vld [vmem:[#allocation3 + $0x1e8] ss:$56 sps:$4 sm:$0xff]   ;;  %v13418_v32 = vld [vmem:[#allocation3 + $0x258] ss:$56 sps:$4 sm:$0xff]  }
 0x3f5   : > { %10855 = vmatpush1.bf16.msra.mxu1 %v13358_v11  ;;  %v13420_v53 = vld [vmem:[#allocation3 + $0x25c] ss:$56 sps:$4 sm:$0xff]   ;;  %v13409_v25 = vld [vmem:[#allocation3 + $0x330] ss:$56 sps:$4 sm:$0xff]   ;;  %v13429_v56 = vld [vmem:[#allocation3 + $0x2cc] ss:$56 sps:$4 sm:$0xff]  }
 0x3f6   : > { %10856 = vmatprep.subr.bf16.mxu1 %v13375_v24  ;;  %v13423_v20 = vld [vmem:[#allocation3 + $0x34] ss:$56 sps:$4 sm:$0xff]   ;;  %v13421_v6 = vld [vmem:[#allocation3 + $0x30] ss:$56 sps:$4 sm:$0xff]   ;;  %v13430_v13 = vld [vmem:[#allocation3 + $0xa4] ss:$56 sps:$4 sm:$0xff]  }
 0x3f7   : > { %v13427_v21 = vld [vmem:[#allocation3 + $0x2c8] ss:$56 sps:$4 sm:$0xff]   ;;  %v13435_v34 = vld [vmem:[#allocation3 + $0x33c] ss:$56 sps:$4 sm:$0xff]  }
 0x3f8   : > { %10675 = vmatmul.mubr.bf16.gmra.mxu1 %v13349_v52  ;;  %v13432_v18 = vld [vmem:[#allocation3 + $0xa0] ss:$56 sps:$4 sm:$0xff]   ;;  %v13436_v2 = vld [vmem:[#allocation3 + $0x114] ss:$56 sps:$4 sm:$0xff]  }
 0x3f9   : > { %10684 = vmatprep.mubr.bf16.mxu1 %v13366_v60  ;;  %10857 = vmatpush1.bf16.msra.mxu1 %v13373_v38  ;;  %v13433_v52 = vld [vmem:[#allocation3 + $0x338] ss:$56 sps:$4 sm:$0xff]  }
 0x3fa   : > { %10858 = vmatprep.subr.bf16.mxu1 %v13384_v29  ;;  %10778 = vmatmul.mubr.bf16.gmra.mxu0 %v13379_v30 }
 0x3fb   : > { %10787 = vmatprep.mubr.bf16.mxu0 %v13393_v22 }
 0x3fd   : > { %10859 = vmatpush1.bf16.msra.mxu1 %v13382_v9 }
 0x3fe   : > { %10860 = vmatprep.subr.bf16.mxu1 %v13387_v8 }
 0x400   : > { %10685 = vmatmul.mubr.bf16.gmra.mxu1 %v13364_v0 }
 0x401   : > { %10694 = vmatprep.mubr.bf16.mxu1 %v13378_v4  ;;  %10861 = vmatpush1.bf16.msra.mxu1 %v13385_v61  ;;  %v13438_v61 = vld [vmem:[#allocation3 + $0x110] ss:$56 sps:$4 sm:$0xff]  }
 0x402   : > { %10862 = vmatprep.subr.bf16.mxu1 %v13396_v47  ;;  %10788 = vmatmul.mubr.bf16.gmra.mxu0 %v13391_v14  ;;  %v13439_v47 = vld [vmem:[#allocation3 + $0x184] ss:$56 sps:$4 sm:$0xff]  }
 0x403   : > { %10797 = vmatprep.mubr.bf16.mxu0 %v13402_v12 }
 0x405   : > { %10863 = vmatpush1.bf16.msra.mxu1 %v13394_v1 }
 0x406   : > { %10872 = vmatprep.subr.bf16.mxu1 %v13405_v39 }
 0x408   : > { %10695 = vmatmul.mubr.bf16.gmra.mxu1 %v13376_v46 }
 0x409   : > { %10704 = vmatprep.mubr.bf16.mxu1 %v13390_v59  ;;  %10873 = vmatpush2.bf16.msra.mxu1 %v13403_v54 }
 0x40a   : > { %10874 = vmatprep.subr.bf16.mxu1 %v13408_v27  ;;  %10798 = vmatmul.mubr.bf16.gmra.mxu0 %v13400_v50 }
 0x40b   : > { %10807 = vmatprep.mubr.bf16.mxu0 %v13414_v28 }
 0x40d   : > { %10875 = vmatpush2.bf16.msra.mxu1 %v13406_v51  ;;  %v13441_v51 = vld [vmem:[#allocation3 + $0x180] ss:$56 sps:$4 sm:$0xff]  }
 0x40e   : > { %10876 = vmatprep.subr.bf16.mxu1 %v13417_v42 }
 0x410   : > { %10705 = vmatmul.mubr.bf16.gmra.mxu1 %v13388_v33 }
 0x411   : > { %10714 = vmatprep.mubr.bf16.mxu1 %v13399_v41  ;;  %10877 = vmatpush2.bf16.msra.mxu1 %v13415_v43  ;;  %v13442_v43 = vld [vmem:[#allocation3 + $0x1f4] ss:$56 sps:$4 sm:$0xff]  }
 0x412   : > { %10878 = vmatprep.subr.bf16.mxu1 %v13426_v19  ;;  %10808 = vmatmul.mubr.bf16.gmra.mxu0 %v13412_v15 }
 0x413   : > { %10817 = vmatprep.mubr.bf16.mxu0 %v13420_v53  ;;  %v13444_v53 = vld [vmem:[#allocation3 + $0x1f0] ss:$56 sps:$4 sm:$0xff]  }
 0x415   : > { %10879 = vmatpush2.bf16.msra.mxu1 %v13424_v3 }
 0x418   : > { %10715 = vmatmul.mubr.bf16.gmra.mxu1 %v13397_v26 }
 0x419   : > { %10724 = vmatprep.mubr.bf16.mxu1 %v13411_v7 }
 0x41a   : > { %10818 = vmatmul.mubr.bf16.gmra.mxu0 %v13418_v32 }
 0x41b   : > { %10827 = vmatprep.mubr.bf16.mxu0 %v13429_v56 }
 0x41c   : > { %v10204_v58 = vpop.f32.mrf.mxu1 }
 0x41d   : > { %v10317_v55 = vpop.f32.mrf.mxu0 }
 0x41e   : > { %v17290_v37 = vadd.f32 %v10317_v55, %v10204_v58  ;;  %v10206_v5 = vpop.f32.mrf.mxu1 }
 0x41f   : > { %v10319_v45 = vpop.f32.mrf.mxu0 }
 0x420   : > { %10725 = vmatmul.mubr.bf16.gmra.mxu1 %v13409_v25  ;;  %v17292_v31 = vadd.f32 %v10319_v45, %v10206_v5  ;;  %v10208_v16 = vpop.f32.mrf.mxu1  ;;  %v13445_v25 = vld [vmem:[#allocation3 + $0x264] ss:$56 sps:$4 sm:$0xff]  }
 0x421   : > { %12392 = vmatprep.mubr.msk.bf16.mxu1 %vm1663_vm12, %v13423_v20  ;;  %v10321_v48 = vpop.f32.mrf.mxu0 }
 0x422   : > { %v17294_v17 = vadd.f32 %v10321_v48, %v10208_v16  ;;  %v10210_v40 = vpop.f32.mrf.mxu1  ;;  %10828 = vmatmul.mubr.bf16.gmra.mxu0 %v13427_v21 }
 0x423   : > { %v10323_v35 = vpop.f32.mrf.mxu0  ;;  %10837 = vmatprep.mubr.bf16.mxu0 %v13435_v34 }
 0x424   : > { %v17296_v23 = vadd.f32 %v10323_v35, %v10210_v40 }
 0x426   : > { %v10327_v62 = vpop.f32.mrf.mxu0 }
 0x427   : > { %v10214_v63 = vpop.f32.mrf.mxu1 }
 0x428   : > { %10881 = vmatmul.mubr.bf16.vlgmr.msra.gmra.mxu1 %v13421_v6  ;;  %v17299_v11 = vadd.f32 %v10327_v62, %v10214_v63  ;;  %v10329_v10 = vpop.f32.mrf.mxu0  ;;  %v13447_v6 = vld [vmem:[#allocation3 + $0x260] ss:$56 sps:$4 sm:$0xff]  }
 0x429   : > { %12393 = vmatprep.mubr.msk.bf16.mxu1 %vm1663_vm12, %v13430_v13  ;;  %v10216_v57 = vpop.f32.mrf.mxu1  ;;  %v13448_v13 = vld [vmem:[#allocation3 + $0x2d4] ss:$56 sps:$4 sm:$0xff]  }
 0x42a   : > { %v17301_v44 = vadd.f32 %v10329_v10, %v10216_v57  ;;  %v10331_v38 = vpop.f32.mrf.mxu0  ;;  %10838 = vmatmul.mubr.bf16.gmra.mxu0 %v13433_v52 }
 0x42b   : > { %v10218_v24 = vpop.f32.mrf.mxu1 }
 0x42c   : > { %v17303_v29 = vadd.f32 %v10331_v38, %v10218_v24  ;;  %v10333_v36 = vpop.f32.mrf.mxu0 }
 0x42d   : > { %v10220_v60 = vpop.f32.mrf.mxu1 }
 0x42e   : > { %v17306_v49 = vadd.f32 %v10333_v36, %v10220_v60  ;;  %v13450_v60 = vld [vmem:[#allocation3 + $0x2d0] ss:$56 sps:$4 sm:$0xff]  }
 0x430   : > { %10891 = vmatmul.mubr.bf16.gmra.mxu1 %v13432_v18 }
 0x431   : > { %12394 = vmatprep.mubr.msk.bf16.mxu1 %vm1663_vm12, %v13436_v2 }
 0x432   : > { %v10224_v9 = vpop.f32.mrf.mxu1 }
 0x434   : > { %v10337_v8 = vpop.f32.mrf.mxu0  ;;  %v10226_v4 = vpop.f32.mrf.mxu1 }
 0x435   : > { %v17308_v0 = vadd.f32 %v10337_v8, %v10224_v9  ;;  %v13451_v9 = vld [vmem:[#allocation3 + $0x344] ss:$56 sps:$4 sm:$0xff]  }
 0x436   : > { %v10339_v30 = vpop.f32.mrf.mxu0  ;;  %v10228_v1 = vpop.f32.mrf.mxu1 }
 0x437   : > { %v17311_v22 = vadd.f32 %v10339_v30, %v10226_v4 }
 0x438   : > { %10901 = vmatmul.mubr.bf16.gmra.mxu1 %v13438_v61  ;;  %v10341_v39 = vpop.f32.mrf.mxu0  ;;  %v10230_v46 = vpop.f32.mrf.mxu1 }
 0x439   : > { %12395 = vmatprep.mubr.msk.bf16.mxu1 %vm1663_vm12, %v13439_v47  ;;  %v17313_v54 = vadd.f32 %v10341_v39, %v10228_v1 }
 0x43a   : > { %v10343_v27 = vpop.f32.mrf.mxu0 }
 0x43b   : > { %v17315_v59 = vadd.f32 %v10343_v27, %v10230_v46  ;;  %v10234_v14 = vpop.f32.mrf.mxu1 }
 0x43d   : > { %v10347_v12 = vpop.f32.mrf.mxu0  ;;  %v10236_v33 = vpop.f32.mrf.mxu1 }
 0x43e   : > { %v17317_v42 = vadd.f32 %v10347_v12, %v10234_v14 }
 0x43f   : > { %v10349_v19 = vpop.f32.mrf.mxu0  ;;  %v10238_v50 = vpop.f32.mrf.mxu1 }
 0x440   : > { %10911 = vmatmul.mubr.bf16.gmra.mxu1 %v13441_v51  ;;  %v17320_v41 = vadd.f32 %v10349_v19, %v10236_v33  ;;  %v13453_v51 = vld [vmem:[#allocation3 + $0x340] ss:$56 sps:$4 sm:$0xff]  }
 0x441   : > { %12396 = vmatprep.mubr.msk.bf16.mxu1 %vm1663_vm12, %v13442_v43  ;;  %v10351_v28 = vpop.f32.mrf.mxu0  ;;  %v10240_v26 = vpop.f32.mrf.mxu1 }
 0x442   : > { %v17322_v3 = vadd.f32 %v10351_v28, %v10238_v50 }
 0x443   : > { %v10353_v7 = vpop.f32.mrf.mxu0 }
 0x444   : > { %v17324_v15 = vadd.f32 %v10353_v7, %v10240_v26 }
 0x447   : > { %v10244_v20 = vpop.f32.mrf.mxu1 }
 0x448   : > { %10921 = vmatmul.mubr.bf16.gmra.mxu1 %v13444_v53 }
 0x449   : > { %v10357_v58 = vpop.f32.mrf.mxu0  ;;  %12397 = vmatprep.mubr.msk.bf16.mxu1 %vm1663_vm12, %v13445_v25  ;;  %v10246_v55 = vpop.f32.mrf.mxu1 }
 0x44a   : > { %v17327_v32 = vadd.f32 %v10357_v58, %v10244_v20 }
 0x44b   : > { %v10359_v56 = vpop.f32.mrf.mxu0  ;;  %v10248_v45 = vpop.f32.mrf.mxu1 }
 0x44c   : > { %v17329_v5 = vadd.f32 %v10359_v56, %v10246_v55 }
 0x44d   : > { %v10361_v16 = vpop.f32.mrf.mxu0  ;;  %v10250_v40 = vpop.f32.mrf.mxu1 }
 0x44e   : > { %v17331_v48 = vadd.f32 %v10361_v16, %v10248_v45 }
 0x44f   : > { %v10363_v35 = vpop.f32.mrf.mxu0  ;;  %v10254_v34 = vpop.f32.mrf.mxu1 }
 0x450   : > { %v17333_v21 = vadd.f32 %v10363_v35, %v10250_v40  ;;  %10931 = vmatmul.mubr.bf16.gmra.mxu1 %v13447_v6 }
 0x451   : > { %v10367_v63 = vpop.f32.mrf.mxu0  ;;  %12398 = vmatprep.mubr.msk.bf16.mxu1 %vm1663_vm12, %v13448_v13  ;;  %v10256_v57 = vpop.f32.mrf.mxu1 }
 0x452   : > { %v17336_v62 = vadd.f32 %v10367_v63, %v10254_v34 }
 0x453   : > { %v10369_v10 = vpop.f32.mrf.mxu0  ;;  %v10258_v24 = vpop.f32.mrf.mxu1 }
 0x454   : > { %v17338_v18 = vadd.f32 %v10369_v10, %v10256_v57 }
 0x455   : > { %v10371_v2 = vpop.f32.mrf.mxu0  ;;  %v10260_v52 = vpop.f32.mrf.mxu1 }
 0x456   : > { %v17340_v38 = vadd.f32 %v10371_v2, %v10258_v24 }
 0x457   : > { %v10373_v36 = vpop.f32.mrf.mxu0 }
 0x458   : > { %v17342_v8 = vadd.f32 %v10373_v36, %v10260_v52  ;;  %v10264_v61 = vpop.f32.mrf.mxu1  ;;  %10941 = vmatmul.mubr.bf16.gmra.mxu1 %v13450_v60 }
 0x459   : > { %v10377_v47 = vpop.f32.mrf.mxu0  ;;  %12399 = vmatprep.mubr.msk.bf16.mxu1 %vm1663_vm12, %v13451_v9 }
 0x45a   : > { %v17345_v4 = vadd.f32 %v10377_v47, %v10264_v61  ;;  %v10266_v30 = vpop.f32.mrf.mxu1 }
 0x45b   : > { %v10379_v1 = vpop.f32.mrf.mxu0 }
 0x45c   : > { %v17347_v39 = vadd.f32 %v10379_v1, %v10266_v30  ;;  %v10268_v46 = vpop.f32.mrf.mxu1 }
 0x45d   : > { %v10381_v27 = vpop.f32.mrf.mxu0 }
 0x45e   : > { %v17349_v14 = vadd.f32 %v10381_v27, %v10268_v46  ;;  %v10270_v12 = vpop.f32.mrf.mxu1 }
 0x45f   : > { %v10383_v43 = vpop.f32.mrf.mxu0 }
 0x460   : > { %v17351_v33 = vadd.f32 %v10383_v43, %v10270_v12  ;;  %v10274_v19 = vpop.f32.mrf.mxu1  ;;  %10951 = vmatmul.mubr.bf16.gmra.mxu1 %v13453_v51 }
 0x461   : > { %v10387_v50 = vpop.f32.mrf.mxu0 }
 0x462   : > { %v17353_v28 = vadd.f32 %v10387_v50, %v10274_v19  ;;  %v10276_v26 = vpop.f32.mrf.mxu1 }
 0x463   : > { %v10389_v7 = vpop.f32.mrf.mxu0 }
 0x464   : > { %v17355_v53 = vadd.f32 %v10389_v7, %v10276_v26  ;;  %v10278_v25 = vpop.f32.mrf.mxu1 }
 0x465   : > { %v10391_v20 = vpop.f32.mrf.mxu0 }
 0x466   : > { %v17357_v58 = vadd.f32 %v10391_v20, %v10278_v25  ;;  %v10280_v55 = vpop.f32.mrf.mxu1 }
 0x467   : > { %v10393_v56 = vpop.f32.mrf.mxu0 }
 0x468   : > { %v17359_v45 = vadd.f32 %v10393_v56, %v10280_v55  ;;  %v10430_v16 = vpop.f32.mrf.mxu1 }
 0x469   : > { %v17362_v40 = vadd.f32 %v10430_v16, %v17290_v37 }
 0x46a   : > { %v10432_v6 = vpop.f32.mrf.mxu1 }
 0x46b   : > { %v17365_v35 = vadd.f32 %v10432_v6, %v17292_v31 }
 0x46c   : > { %v10434_v13 = vpop.f32.mrf.mxu1 }
 0x46d   : > { %v17368_v34 = vadd.f32 %v10434_v13, %v17294_v17 }
 0x46e   : > { %v10436_v63 = vpop.f32.mrf.mxu1 }
 0x46f   : > { %v17371_v57 = vadd.f32 %v10436_v63, %v17296_v23 }
 0x470   : > { %v10440_v10 = vpop.f32.mrf.mxu1  ;;  %v17388_v61 = vpop.f32.mrf.mxu0 }
 0x471   : > { %v17374_v24 = vadd.f32 %v10440_v10, %v17299_v11 }
 0x472   : > { %v10442_v2 = vpop.f32.mrf.mxu1  ;;  %v17393_v47 = vpop.f32.mrf.mxu0 }
 0x473   : > { %v17377_v37 = vadd.f32 %v10442_v2, %v17301_v44 }
 0x474   : > { %v10444_v52 = vpop.f32.mrf.mxu1  ;;  %v17398_v1 = vpop.f32.mrf.mxu0 }
 0x475   : > { %v17380_v31 = vadd.f32 %v10444_v52, %v17303_v29 }
 0x476   : > { %v10446_v60 = vpop.f32.mrf.mxu1  ;;  %v17403_v46 = vpop.f32.mrf.mxu0 }
 0x477   : > { %v17383_v17 = vadd.f32 %v10446_v60, %v17306_v49 }
 0x478   : > { %v10450_v36 = vpop.f32.mrf.mxu1  ;;  %v17408_v12 = vpop.f32.mrf.mxu0 }
 0x479   : > { %v17386_v23 = vadd.f32 %v10450_v36, %v17308_v0 }
 0x47a   : > { %v10452_v9 = vpop.f32.mrf.mxu1  ;;  %v17413_v43 = vpop.f32.mrf.mxu0 }
 0x47b   : > { %v17391_v11 = vadd.f32 %v10452_v9, %v17311_v22 }
 0x47c   : > { %v10454_v44 = vpop.f32.mrf.mxu1  ;;  %v17418_v50 = vpop.f32.mrf.mxu0 }
 0x47d   : > { %v17396_v29 = vadd.f32 %v10454_v44, %v17313_v54 }
 0x47e   : > { %v10456_v30 = vpop.f32.mrf.mxu1  ;;  %v17423_v7 = vpop.f32.mrf.mxu0 }
 0x47f   : > { %v17401_v49 = vadd.f32 %v10456_v30, %v17315_v59 }
 0x480   : > { %v10460_v0 = vpop.f32.mrf.mxu1 }
 0x481   : > { %v17406_v27 = vadd.f32 %v10460_v0, %v17317_v42 }
 0x482   : > { %v10462_v22 = vpop.f32.mrf.mxu1  ;;  %v17428_v20 = vpop.f32.mrf.mxu0 }
 0x483   : > { %v17411_v51 = vadd.f32 %v10462_v22, %v17320_v41 }
 0x484   : > { %v10464_v54 = vpop.f32.mrf.mxu1  ;;  %v17433_v56 = vpop.f32.mrf.mxu0 }
 0x485   : > { %v17416_v19 = vadd.f32 %v10464_v54, %v17322_v3 }
 0x486   : > { %v10466_v59 = vpop.f32.mrf.mxu1  ;;  %v17438_v6 = vpop.f32.mrf.mxu0 }
 0x487   : > { %18286 = vst [vmem:[#allocation32_spill] sm:$0xff] %v17416_v19  ;;  %v17421_v26 = vadd.f32 %v10466_v59, %v17324_v15 }
 0x488   : > { %v10470_v42 = vpop.f32.mrf.mxu1  ;;  %v17443_v63 = vpop.f32.mrf.mxu0 }
 0x489   : > { %18287 = vst [vmem:[#allocation34_spill] sm:$0xff] %v17421_v26  ;;  %v17426_v25 = vadd.f32 %v10470_v42, %v17327_v32 }
 0x48a   : > { %v10472_v41 = vpop.f32.mrf.mxu1  ;;  %v17448_v2 = vpop.f32.mrf.mxu0 }
 0x48b   : > { %18288 = vst [vmem:[#allocation36_spill] sm:$0xff] %v17426_v25  ;;  %v17431_v55 = vadd.f32 %v10472_v41, %v17329_v5 }
 0x48c   : > { %v10474_v3 = vpop.f32.mrf.mxu1  ;;  %v17453_v60 = vpop.f32.mrf.mxu0 }
 0x48d   : > { %18289 = vst [vmem:[#allocation38_spill] sm:$0xff] %v17431_v55  ;;  %v17436_v16 = vadd.f32 %v10474_v3, %v17331_v48 }
 0x48e   : > { %v10476_v15 = vpop.f32.mrf.mxu1  ;;  %v17458_v9 = vpop.f32.mrf.mxu0 }
 0x48f   : > { %18290 = vst [vmem:[#allocation46_spill] sm:$0xff] %v17436_v16  ;;  %v17441_v13 = vadd.f32 %v10476_v15, %v17333_v21  ;;  %18295 = vst [vmem:[#allocation44_spill] sm:$0xff] %v17458_v9 }
 0x490   : > { %v10480_v32 = vpop.f32.mrf.mxu1  ;;  %v17463_v30 = vpop.f32.mrf.mxu0 }
 0x491   : > { %18291 = vst [vmem:[#allocation40_spill] sm:$0xff] %v17441_v13  ;;  %v17446_v10 = vadd.f32 %v10480_v32, %v17336_v62  ;;  %18297 = vst [vmem:[#allocation47_spill] sm:$0xff] %v17463_v30 }
 0x492   : > { %v10482_v5 = vpop.f32.mrf.mxu1  ;;  %v17468_v22 = vpop.f32.mrf.mxu0 }
 0x493   : > { %18292 = vst [vmem:[#allocation41_spill] sm:$0xff] %v17446_v10  ;;  %v17451_v52 = vadd.f32 %v10482_v5, %v17338_v18  ;;  %18299 = vst [vmem:[#allocation49_spill] sm:$0xff] %v17468_v22 }
 0x494   : > { %v10484_v48 = vpop.f32.mrf.mxu1  ;;  %v17473_v59 = vpop.f32.mrf.mxu0 }
 0x495   : > { %18293 = vst [vmem:[#allocation48_spill] sm:$0xff] %v17451_v52  ;;  %v17456_v36 = vadd.f32 %v10484_v48, %v17340_v38  ;;  %18301 = vst [vmem:[#allocation51_spill] sm:$0xff] %v17473_v59 }
 0x496   : > { %v10486_v21 = vpop.f32.mrf.mxu1  ;;  %v17478_v41 = vpop.f32.mrf.mxu0 }
 0x497   : > { %18294 = vst [vmem:[#allocation43_spill] sm:$0xff] %v17456_v36  ;;  %v17461_v44 = vadd.f32 %v10486_v21, %v17342_v8  ;;  %18303 = vst [vmem:[#allocation45_spill] sm:$0xff] %v17478_v41 }
 0x498   : > { %v10490_v62 = vpop.f32.mrf.mxu1  ;;  %v17483_v15 = vpop.f32.mrf.mxu0 }
 0x499   : > { %18296 = vst [vmem:[#allocation39_spill] sm:$0xff] %v17461_v44  ;;  %v17466_v0 = vadd.f32 %v10490_v62, %v17345_v4  ;;  %18305 = vst [vmem:[#allocation53_spill] sm:$0xff] %v17483_v15 }
 0x49a   : > { %v10492_v18 = vpop.f32.mrf.mxu1  ;;  %v17488_v5 = vpop.f32.mrf.mxu0 }
 0x49b   : > { %18298 = vst [vmem:[#allocation50_spill] sm:$0xff] %v17466_v0  ;;  %v17471_v54 = vadd.f32 %v10492_v18, %v17347_v39  ;;  %18307 = vst [vmem:[#allocation58_spill] sm:$0xff] %v17488_v5 }
 0x49c   : > { %v10494_v38 = vpop.f32.mrf.mxu1  ;;  %v17493_v21 = vpop.f32.mrf.mxu0 }
 0x49d   : > { %18300 = vst [vmem:[#allocation42_spill] sm:$0xff] %v17471_v54  ;;  %v17476_v42 = vadd.f32 %v10494_v38, %v17349_v14  ;;  %18309 = vst [vmem:[#allocation55_spill] sm:$0xff] %v17493_v21 }
 0x49e   : > { %v10496_v8 = vpop.f32.mrf.mxu1  ;;  %v17498_v18 = vpop.f32.mrf.mxu0 }
 0x49f   : > { %18302 = vst [vmem:[#allocation52_spill] sm:$0xff] %v17476_v42  ;;  %v17481_v3 = vadd.f32 %v10496_v8, %v17351_v33  ;;  %18311 = vst [vmem:[#allocation62_spill] sm:$0xff] %v17498_v18 }
 0x4a0   : > { %v10500_v4 = vpop.f32.mrf.mxu1  ;;  %v17503_v8 = vpop.f32.mrf.mxu0 }
 0x4a1   : > { %18304 = vst [vmem:[#allocation56_spill] sm:$0xff] %v17481_v3  ;;  %v17486_v32 = vadd.f32 %v10500_v4, %v17353_v28  ;;  %18313 = vst [vmem:[#allocation60_spill] sm:$0xff] %v17503_v8 }
 0x4a2   : > { %v10502_v39 = vpop.f32.mrf.mxu1 }
 0x4a3   : > { %18306 = vst [vmem:[#allocation59_spill] sm:$0xff] %v17486_v32  ;;  %v17491_v48 = vadd.f32 %v10502_v39, %v17355_v53  ;;  %v17505_v32 = vpop.f32.mrf.mxu0 }
 0x4a4   : > { %v10504_v14 = vpop.f32.mrf.mxu1  ;;  %18314 = vst [vmem:[#allocation7_spill] sm:$0xff] %v17505_v32 }
 0x4a5   : > { %18308 = vst [vmem:[#allocation54_spill] sm:$0xff] %v17491_v48  ;;  %v17496_v62 = vadd.f32 %v10504_v14, %v17357_v58  ;;  %v17509_v39 = vpop.f32.mrf.mxu0 }
 0x4a6   : > { %v10506_v33 = vpop.f32.mrf.mxu1  ;;  %18315 = vst [vmem:[#allocation8_spill] sm:$0xff] %v17509_v39 }
 0x4a7   : > { %18310 = vst [vmem:[#allocation61_spill] sm:$0xff] %v17496_v62  ;;  %v17501_v38 = vadd.f32 %v10506_v33, %v17359_v45  ;;  %v17513_v58 = vpop.f32.mrf.mxu0 }
 0x4a8   : > { %v10656_v28 = vpop.f32.mrf.mxu1  ;;  %18316 = vst [vmem:[#allocation10_spill] sm:$0xff] %v17513_v58 }
 0x4a9   : > { %18312 = vst [vmem:[#allocation57_spill] sm:$0xff] %v17501_v38  ;;  %v17517_v62 = vpop.f32.mrf.mxu0 }
 0x4aa   : > { %v10658_v4 = vpop.f32.mrf.mxu1  ;;  %18317 = vst [vmem:[#allocation9_spill] sm:$0xff] %v17517_v62 }
 0x4ab   : > { %v17521_v33 = vpop.f32.mrf.mxu0 }
 0x4ac   : > { %v17507_v53 = vpop.f32.mrf.mxu1  ;;  %18318 = vst [vmem:[#allocation12_spill] sm:$0xff] %v17521_v33 }
 0x4ad   : > { %v17525_v3 = vpop.f32.mrf.mxu0 }
 0x4ae   : > { %v17511_v48 = vpop.f32.mrf.mxu1  ;;  %18319 = vst [vmem:[#allocation16_spill] sm:$0xff] %v17525_v3 }
 0x4af   : > { %v17529_v54 = vpop.f32.mrf.mxu0 }
 0x4b0   : > { %v17515_v14 = vpop.f32.mrf.mxu1  ;;  %18320 = vst [vmem:[#allocation27_spill] sm:$0xff] %v17529_v54 }
 0x4b1   : > { %v17533_v32 = vpop.f32.mrf.mxu0 }
 0x4b2   : > { %v17519_v45 = vpop.f32.mrf.mxu1  ;;  %18321 = vst [vmem:[#allocation20_spill] sm:$0xff] %v17533_v32 }
 0x4b3   : > { %v10769_v0 = vpop.f32.mrf.mxu0 }
 0x4b4   : > { %v17523_v38 = vpop.f32.mrf.mxu1 }
 0x4b5   : > { %v10771_v8 = vpop.f32.mrf.mxu0 }
 0x4b6   : > { %v17527_v42 = vpop.f32.mrf.mxu1 }
 0x4b7   : > { %v10773_v33 = vpop.f32.mrf.mxu0 }
 0x4b8   : > { %v17531_v39 = vpop.f32.mrf.mxu1 }
 0x4b9   : > { %v10775_v3 = vpop.f32.mrf.mxu0 }
 0x4ba   : > { %v17535_v58 = vpop.f32.mrf.mxu1 }
 0x4bb   : > { %v17545_v21 = vpop.f32.mrf.mxu0 }
 0x4bc   : > { %v17537_v62 = vpop.f32.mrf.mxu1 }
 0x4bd   : > { %v17549_v52 = vpop.f32.mrf.mxu0 }
 0x4be   : > { %v17539_v44 = vpop.f32.mrf.mxu1 }
 0x4bf   : > { %v17553_v5 = vpop.f32.mrf.mxu0 }
 0x4c0   : > { %v17541_v18 = vpop.f32.mrf.mxu1 }
 0x4c1   : > { %18322 = vst [vmem:[#allocation13_spill] sm:$0xff] %v17541_v18  ;;  %v17557_v15 = vpop.f32.mrf.mxu0 }
 0x4c2   : > { %v17543_v36 = vpop.f32.mrf.mxu1 }
 0x4c3   : > { %18323 = vst [vmem:[#allocation35_spill] sm:$0xff] %v17543_v36  ;;  %v17561_v41 = vpop.f32.mrf.mxu0 }
 0x4c4   : > { %v17547_v54 = vpop.f32.mrf.mxu1 }
 0x4c5   : > { %18324 = vst [vmem:[#allocation28_spill] sm:$0xff] %v17547_v54  ;;  %v17565_v59 = vpop.f32.mrf.mxu0 }
 0x4c6   : > { %v17551_v32 = vpop.f32.mrf.mxu1 }
 0x4c7   : > { %18325 = vst [vmem:[#allocation37_spill] sm:$0xff] %v17551_v32  ;;  %v17569_v22 = vpop.f32.mrf.mxu0 }
 0x4c8   : > { %v17555_v10 = vpop.f32.mrf.mxu1 }
 0x4c9   : > { %18326 = vst [vmem:[#allocation11_spill] sm:$0xff] %v17555_v10  ;;  %v17573_v32 = vpop.f32.mrf.mxu0 }
 0x4ca   : > { %v17559_v13 = vpop.f32.mrf.mxu1  ;;  %18331 = vst [vmem:[#allocation18_spill] sm:$0xff] %v17573_v32  ;;  %v18347_v32 = vld [vmem:[#allocation63_spill] sm:$0xff] }
 0x4cb   : > { %18327 = vst [vmem:[#allocation23_spill] sm:$0xff] %v17559_v13  ;;  %v17579_v13 = vpop.f32.mrf.mxu0 }
 0x4cc   : > { %v17563_v16 = vpop.f32.mrf.mxu1  ;;  %18334 = vst [vmem:[#allocation22_spill] sm:$0xff] %v17579_v13 }
 0x4cd   : > { %18328 = vst [vmem:[#allocation17_spill] sm:$0xff] %v17563_v16  ;;  %v17585_v26 = vpop.f32.mrf.mxu0 }
 0x4ce   : > { %v17567_v55 = vpop.f32.mrf.mxu1  ;;  %18337 = vst [vmem:[#allocation30_spill] sm:$0xff] %v17585_v26  ;;  %v12014_v26 = vld [vmem:[%s13581_s28 + $0x2] sm:$0x3] }
 0x4cf   : > { %18329 = vst [vmem:[#allocation14_spill] sm:$0xff] %v17567_v55  ;;  %v17616_v18 = vrot.slane %v12014_v26, %v18347_v32 }
 0x4d0   : > { %v17571_v25 = vpop.f32.mrf.mxu1 }
 0x4d1   : > { %18330 = vst [vmem:[#allocation15_spill] sm:$0xff] %v17571_v25  ;;  %v17591_v25 = vpop.f32.mrf.mxu0 }
 0x4d2   : > { %v17575_v10 = vpop.f32.mrf.mxu1  ;;  %18340 = vst [vmem:[#allocation33_spill] sm:$0xff] %v17591_v25  ;;  %v12015_v25 = vld [vmem:[%s13586_s7 + $0x2] sm:$0x3] }
 0x4d3   : > { %18332 = vst [vmem:[#allocation25_spill] sm:$0xff] %v17575_v10 }
 0x4d4   : > { %v17577_v54 = vpop.f32.mrf.mxu1 }
 0x4d5   : > { %18333 = vst [vmem:[#allocation19_spill] sm:$0xff] %v17577_v54  ;;  %v17597_v54 = vpop.f32.mrf.mxu0 }
 0x4d6   : > { %v17581_v30 = vpop.f32.mrf.mxu1  ;;  %18343 = vst [vmem:[#allocation66_spill] sm:$0xff] %v17597_v54 }
 0x4d7   : > { %18335 = vst [vmem:[#allocation24_spill] sm:$0xff] %v17581_v30  ;;  %v10544_v30 = vadd.f32 %v17388_v61, %v17362_v40  ;;  %v17608_v19 = vpop.f32.mrf.mxu0  ;;  %v17619_v61 = vrot.slane %v12015_v25, %v18347_v32 }
 0x4d8   : > { %v17583_v16 = vpop.f32.mrf.mxu1 }
 0x4d9   : > { %18336 = vst [vmem:[#allocation29_spill] sm:$0xff] %v17583_v16 }
 0x4da   : > { %v17587_v55 = vpop.f32.mrf.mxu1 }
 0x4db   : > { %18338 = vst [vmem:[#allocation21_spill] sm:$0xff] %v17587_v55  ;;  %v10546_v55 = vadd.f32 %v17393_v47, %v17365_v35  ;;  %v10550_v47 = vadd.f32 %v17403_v46, %v17371_v57  ;;  %v10556_v57 = vadd.f32 %v17413_v43, %v17377_v37  ;;  %v13458_v37 = vld [vmem:[#allocation4] sm:$0xff] }
 0x4dc   : > { %v17589_v36 = vpop.f32.mrf.mxu1 }
 0x4dd   : > { %18339 = vst [vmem:[#allocation26_spill] sm:$0xff] %v17589_v36  ;;  %v10657_v36 = vadd.f32 %v10656_v28, %v10544_v30  ;;  %v10659_v54 = vadd.f32 %v10658_v4, %v10546_v55 }
 0x4de   : > { %v17593_v9 = vpop.f32.mrf.mxu1 }
 0x4df   : > { %18341 = vst [vmem:[#allocation31_spill] sm:$0xff] %v17593_v9  ;;  %v10772_v28 = vadd.f32 %v10771_v8, %v10659_v54 }
 0x4e0   : > { %v17595_v10 = vpop.f32.mrf.mxu1 }
 0x4e1   : > { %18342 = vst [vmem:[#allocation65_spill] sm:$0xff] %v17595_v10  ;;  %v10548_v10 = vadd.f32 %v17398_v1, %v17368_v34  ;;  %v10554_v1 = vadd.f32 %v17408_v12, %v17374_v24 }
 0x4e2   : > { %v17599_v13 = vpop.f32.mrf.mxu1 }
 0x4e3   : > { %18344 = vst [vmem:[#allocation67_spill] sm:$0xff] %v17599_v13  ;;  %v10770_v13 = vadd.f32 %v10769_v0, %v10657_v36  ;;  %v10661_v30 = vadd.f32 %v17507_v53, %v10548_v10  ;;  %v10663_v0 = vadd.f32 %v17511_v48, %v10550_v47  ;;  %v10667_v46 = vadd.f32 %v17515_v14, %v10554_v1 }
 0x4e4   : > { %v17603_v16 = vpop.f32.mrf.mxu1  ;;  %v10669_v48 = vadd.f32 %v17519_v45, %v10556_v57  ;;  %v10566_v57 = vadd.f32 %v17433_v56, %v17391_v11  ;;  %v10568_v11 = vadd.f32 %v17438_v6, %v17396_v29 }
 0x4e5   : > { %18345 = vst [vmem:[#allocation68_spill] sm:$0xff] %v17603_v16  ;;  %v18348_v16 = vld [vmem:[#allocation64_spill] sm:$0xff]  ;;  %v10780_v8 = vadd.f32 %v17545_v21, %v10667_v46  ;;  %v13461_v46 = vld [vmem:[#allocation4 + $0x18] sm:$0xff] }
 0x4e6   : > { %v17611_v9 = vpop.f32.mrf.mxu1  ;;  %v17622_v35 = vrot.slane %v12014_v26, %v18348_v16  ;;  %v17632_v36 = vrot.slane %v12015_v25, %v18348_v16  ;;  %v10774_v26 = vadd.f32 %v10773_v33, %v10661_v30  ;;  %v10558_v16 = vadd.f32 %v17418_v50, %v17380_v31  ;;  %v13459_v21 = vld [vmem:[#allocation4 + $0x8] sm:$0xff] }
 0x4e7   : > { %18346 = vst [vmem:[#allocation69_spill] sm:$0xff] %v17611_v9  ;;  %v17627_v9 = vpop.f32.mrf.mxu0  ;;  %v10782_v31 = vadd.f32 %v17549_v52, %v10669_v48  ;;  %v10679_v56 = vadd.f32 %v17535_v58, %v10566_v57  ;;  %v10681_v29 = vadd.f32 %v17537_v62, %v10568_v11  ;;  %v18352_v57 = vld [vmem:[#allocation44_spill] sm:$0xff] }
 0x4e8   : > { %v10882_v40 = vpop.f32.mrf.mxu1  ;;  %v10671_v47 = vadd.f32 %v17523_v38, %v10558_v16 }
 0x4e9   : > { %v10883_v34 = vadd.f32 %v10882_v40, %v10770_v13  ;;  %v10776_v13 = vadd.f32 %v10775_v3, %v10663_v0  ;;  %v17639_v54 = vpop.f32.mrf.mxu0  ;;  %v10560_v40 = vadd.f32 %v17423_v7, %v17383_v17  ;;  %v10564_v17 = vadd.f32 %v17428_v20, %v17386_v23 }
 0x4ea   : > { %v10884_v55 = vpop.f32.mrf.mxu1  ;;  %v10784_v52 = vadd.f32 %v17553_v5, %v10671_v47  ;;  %v10792_v6 = vadd.f32 %v17565_v59, %v10679_v56  ;;  %v10794_v59 = vadd.f32 %v17569_v22, %v10681_v29 }
 0x4eb   : > { %v10972_v32 = vmul.f32 %v17616_v18, %v10883_v34  ;;  %v10885_v4 = vadd.f32 %v10884_v55, %v10772_v28  ;;  %v17655_v45 = vpop.f32.mrf.mxu0  ;;  %v10673_v7 = vadd.f32 %v17527_v42, %v10560_v40  ;;  %v13460_v55 = vld [vmem:[#allocation4 + $0x10] sm:$0xff]  ;;  %v10677_v23 = vadd.f32 %v17531_v39, %v10564_v17 }
 0x4ec   : > { %v10886_v10 = vpop.f32.mrf.mxu1 }
 0x4ed   : > { %v11015_v24 = vadd.f32 %v17619_v61, %v10972_v32  ;;  %v10973_v12 = vmul.f32 %v17622_v35, %v10885_v4  ;;  %v10887_v25 = vadd.f32 %v10886_v10, %v10774_v26  ;;  %v10786_v20 = vadd.f32 %v17557_v15, %v10673_v7  ;;  %v17676_v5 = vpop.f32.mrf.mxu0 }
 0x4ee   : > { %v10888_v53 = vpop.f32.mrf.mxu1  ;;  %v10790_v15 = vadd.f32 %v17561_v41, %v10677_v23 }
 0x4ef   : > { %v17647_v43 = vadd.f32 %v13458_v37, %v11015_v24  ;;  %v11016_v3 = vadd.f32 %v17632_v36, %v10973_v12  ;;  %v10974_v14 = vmul.f32 %v17616_v18, %v10887_v25  ;;  %v10889_v33 = vadd.f32 %v10888_v53, %v10776_v13  ;;  %v13462_v25 = vld [vmem:[#allocation4 + $0x20] sm:$0xff]  ;;  %v17697_v58 = vpop.f32.mrf.mxu0 }
 0x4f0   : > { %v10892_v50 = vpop.f32.mrf.mxu1  ;;  %v10570_v37 = vadd.f32 %v17443_v63, %v17401_v49  ;;  %v10574_v49 = vadd.f32 %v17448_v2, %v17406_v27  ;;  %v18349_v27 = vld [vmem:[#allocation13_spill] sm:$0xff] }
 0x4f1   : > { %11079 = vst [vmem:[#allocation4] sm:$0xff] %v17647_v43  ;;  %v17658_v30 = vadd.f32 %v13459_v21, %v11016_v3  ;;  %v11017_v28 = vadd.f32 %v17619_v61, %v10974_v14  ;;  %v10975_v34 = vmul.f32 %v17622_v35, %v10889_v33  ;;  %v10893_v1 = vadd.f32 %v10892_v50, %v10780_v8  ;;  %v13463_v3 = vld [vmem:[#allocation4 + $0x28] sm:$0xff]  ;;  %v17718_v7 = vpop.f32.mrf.mxu0 }
 0x4f2   : > { %v10894_v38 = vpop.f32.mrf.mxu1  ;;  %v10683_v63 = vadd.f32 %v17539_v44, %v10570_v37  ;;  %v10687_v2 = vadd.f32 %v18349_v27, %v10574_v49  ;;  %v18350_v44 = vld [vmem:[#allocation18_spill] sm:$0xff]  ;;  %v18359_v49 = vld [vmem:[#allocation36_spill] sm:$0xff] }
 0x4f3   : > { %11080 = vst.msk [vmem:[#allocation4 + $0x8] sm:$0xff] %vm1663_vm12, %v17658_v30  ;;  %v17668_v0 = vadd.f32 %v13460_v55, %v11017_v28  ;;  %v11018_v26 = vadd.f32 %v17632_v36, %v10975_v34  ;;  %v10976_v32 = vmul.f32 %v17616_v18, %v10893_v1  ;;  %v10895_v4 = vadd.f32 %v10894_v38, %v10782_v31  ;;  %v13464_v31 = vld [vmem:[#allocation4 + $0x30] sm:$0xff] }
 0x4f4   : > { %v10896_v42 = vpop.f32.mrf.mxu1  ;;  %v10576_v1 = vadd.f32 %v17453_v60, %v17411_v51  ;;  %v10796_v17 = vadd.f32 %v18350_v44, %v10683_v63  ;;  %v18353_v60 = vld [vmem:[#allocation35_spill] sm:$0xff]  ;;  %v18360_v63 = vld [vmem:[#allocation49_spill] sm:$0xff] }
 0x4f5   : > { %11081 = vst [vmem:[#allocation4 + $0x10] sm:$0xff] %v17668_v0  ;;  %v17679_v10 = vadd.f32 %v13461_v46, %v11018_v26  ;;  %v11019_v13 = vadd.f32 %v17619_v61, %v10976_v32  ;;  %v10977_v24 = vmul.f32 %v17622_v35, %v10895_v4  ;;  %v10897_v12 = vadd.f32 %v10896_v42, %v10784_v52  ;;  %v13465_v52 = vld [vmem:[#allocation4 + $0x38] sm:$0xff]  ;;  %v18351_v4 = vld [vmem:[#allocation32_spill] sm:$0xff] }
 0x4f6   : > { %v10898_v39 = vpop.f32.mrf.mxu1  ;;  %v10578_v51 = vadd.f32 %v18352_v57, %v18351_v4  ;;  %v10689_v23 = vadd.f32 %v18353_v60, %v10576_v1  ;;  %v13468_v1 = vld [vmem:[#allocation4 + $0x50] sm:$0xff]  ;;  %v18366_v4 = vld [vmem:[#allocation66_spill] sm:$0xff] }
 0x4f7   : > { %11082 = vst.msk [vmem:[#allocation4 + $0x18] sm:$0xff] %vm1663_vm12, %v17679_v10  ;;  %v17689_v16 = vadd.f32 %v13462_v25, %v11019_v13  ;;  %v11020_v48 = vadd.f32 %v17632_v36, %v10977_v24  ;;  %v10978_v8 = vmul.f32 %v17616_v18, %v10897_v12  ;;  %v10899_v53 = vadd.f32 %v10898_v39, %v10786_v20  ;;  %v18354_v20 = vld [vmem:[#allocation22_spill] sm:$0xff]  ;;  %v13466_v13 = vld [vmem:[#allocation4 + $0x40] sm:$0xff] }
 0x4f8   : > { %v10902_v41 = vpop.f32.mrf.mxu1  ;;  %v10800_v42 = vadd.f32 %v18354_v20, %v10687_v2  ;;  %v18356_v39 = vld [vmem:[#allocation47_spill] sm:$0xff] }
 0x4f9   : > { %11083 = vst [vmem:[#allocation4 + $0x20] sm:$0xff] %v17689_v16  ;;  %v17700_v14 = vadd.f32 %v13463_v3, %v11020_v48  ;;  %v11021_v33 = vadd.f32 %v17619_v61, %v10978_v8  ;;  %v10979_v40 = vmul.f32 %v17622_v35, %v10899_v53  ;;  %v10903_v47 = vadd.f32 %v10902_v41, %v10790_v15  ;;  %v18355_v15 = vld [vmem:[#allocation34_spill] sm:$0xff]  ;;  %v18357_v48 = vld [vmem:[#allocation28_spill] sm:$0xff] }
 0x4fa   : > { %v10904_v62 = vpop.f32.mrf.mxu1  ;;  %v10580_v25 = vadd.f32 %v18356_v39, %v18355_v15  ;;  %v10691_v8 = vadd.f32 %v18357_v48, %v10578_v51  ;;  %v18358_v53 = vld [vmem:[#allocation30_spill] sm:$0xff]  ;;  %v13467_v41 = vld [vmem:[#allocation4 + $0x48] sm:$0xff]  ;;  %v18369_v15 = vld [vmem:[#allocation23_spill] sm:$0xff] }
 0x4fb   : > { %11084 = vst.msk [vmem:[#allocation4 + $0x28] sm:$0xff] %vm1663_vm12, %v17700_v14  ;;  %v17710_v50 = vadd.f32 %v13464_v31, %v11021_v33  ;;  %v11022_v21 = vadd.f32 %v17632_v36, %v10979_v40  ;;  %v10980_v28 = vmul.f32 %v17616_v18, %v10903_v47  ;;  %v10905_v34 = vadd.f32 %v10904_v62, %v10792_v6  ;;  %v17739_v6 = vpop.f32.mrf.mxu0  ;;  %v18361_v62 = vld [vmem:[#allocation37_spill] sm:$0xff] }
 0x4fc   : > { %v10906_v22 = vpop.f32.mrf.mxu1  ;;  %v10802_v37 = vadd.f32 %v18358_v53, %v10689_v23  ;;  %v10693_v31 = vadd.f32 %v18361_v62, %v10580_v25  ;;  %v13469_v23 = vld [vmem:[#allocation4 + $0x58] sm:$0xff] }
 0x4fd   : > { %11085 = vst [vmem:[#allocation4 + $0x30] sm:$0xff] %v17710_v50  ;;  %v17721_v38 = vadd.f32 %v13465_v52, %v11022_v21  ;;  %v11023_v55 = vadd.f32 %v17619_v61, %v10980_v28  ;;  %v10981_v26 = vmul.f32 %v17622_v35, %v10905_v34  ;;  %v10907_v32 = vadd.f32 %v10906_v22, %v10794_v59  ;;  %v18362_v21 = vld [vmem:[#allocation33_spill] sm:$0xff]  ;;  %v18363_v22 = vld [vmem:[#allocation38_spill] sm:$0xff]  ;;  %v18364_v52 = vld [vmem:[#allocation51_spill] sm:$0xff]  ;;  %v17760_v60 = vpop.f32.mrf.mxu0 }
 0x4fe   : > { %v10908_v46 = vpop.f32.mrf.mxu1  ;;  %v10584_v59 = vadd.f32 %v18360_v63, %v18359_v49  ;;  %v10804_v28 = vadd.f32 %v18362_v21, %v10691_v8  ;;  %v10806_v57 = vadd.f32 %v18366_v4, %v10693_v31  ;;  %v13470_v8 = vld [vmem:[#allocation4 + $0x60] sm:$0xff]  ;;  %v18372_v49 = vld [vmem:[#allocation17_spill] sm:$0xff]  ;;  %v13471_v31 = vld [vmem:[#allocation4 + $0x68] sm:$0xff] }
 0x4ff   : > { %11086 = vst.msk [vmem:[#allocation4 + $0x38] sm:$0xff] %vm1663_vm12, %v17721_v38  ;;  %v17731_v24 = vadd.f32 %v13466_v13, %v11023_v55  ;;  %v11024_v12 = vadd.f32 %v17632_v36, %v10981_v26  ;;  %v10982_v11 = vmul.f32 %v17616_v18, %v10907_v32  ;;  %v10909_v56 = vadd.f32 %v10908_v46, %v10796_v17  ;;  %v18365_v26 = vld [vmem:[#allocation11_spill] sm:$0xff]  ;;  %v17781_v62 = vpop.f32.mrf.mxu0 }
 0x500   : > { %v10912_v29 = vpop.f32.mrf.mxu1  ;;  %v10586_v55 = vadd.f32 %v18364_v52, %v18363_v22  ;;  %v10697_v32 = vadd.f32 %v18365_v26, %v10584_v59  ;;  %v18375_v22 = vld [vmem:[#allocation14_spill] sm:$0xff]  ;;  %v13472_v26 = vld [vmem:[#allocation4 + $0x70] sm:$0xff] }
 0x501   : > { %11087 = vst [vmem:[#allocation4 + $0x40] sm:$0xff] %v17731_v24  ;;  %v17742_v3 = vadd.f32 %v13467_v41, %v11024_v12  ;;  %v11025_v33 = vadd.f32 %v17619_v61, %v10982_v11  ;;  %v10983_v40 = vmul.f32 %v17622_v35, %v10909_v56  ;;  %v10913_v47 = vadd.f32 %v10912_v29, %v10800_v42  ;;  %v18367_v12 = vld [vmem:[#allocation46_spill] sm:$0xff]  ;;  %v18368_v11 = vld [vmem:[#allocation45_spill] sm:$0xff] }
 0x502   : > { %v10914_v34 = vpop.f32.mrf.mxu1  ;;  %v10588_v56 = vadd.f32 %v18368_v11, %v18367_v12  ;;  %v10699_v39 = vadd.f32 %v18369_v15, %v10586_v55  ;;  %v10810_v25 = vadd.f32 %v17608_v19, %v10697_v32  ;;  %v13473_v15 = vld [vmem:[#allocation4 + $0x78] sm:$0xff] }
 0x503   : > { %11088 = vst.msk [vmem:[#allocation4 + $0x48] sm:$0xff] %vm1663_vm12, %v17742_v3  ;;  %v17752_v27 = vadd.f32 %v13468_v1, %v11025_v33  ;;  %v11026_v2 = vadd.f32 %v17632_v36, %v10983_v40  ;;  %v10984_v44 = vmul.f32 %v17616_v18, %v10913_v47  ;;  %v10915_v17 = vadd.f32 %v10914_v34, %v10802_v37  ;;  %v18370_v33 = vld [vmem:[#allocation40_spill] sm:$0xff]  ;;  %v18371_v40 = vld [vmem:[#allocation53_spill] sm:$0xff] }
 0x504   : > { %v10916_v51 = vpop.f32.mrf.mxu1  ;;  %v10590_v47 = vadd.f32 %v18371_v40, %v18370_v33  ;;  %v10701_v63 = vadd.f32 %v18372_v49, %v10588_v56  ;;  %v10812_v59 = vadd.f32 %v17627_v9, %v10699_v39  ;;  %v17802_v56 = vpop.f32.mrf.mxu0  ;;  %v18381_v33 = vld [vmem:[#allocation25_spill] sm:$0xff]  ;;  %v13474_v49 = vld [vmem:[#allocation4 + $0x80] sm:$0xff] }
 0x505   : > { %11089 = vst [vmem:[#allocation4 + $0x50] sm:$0xff] %v17752_v27  ;;  %v17763_v20 = vadd.f32 %v13469_v23, %v11026_v2  ;;  %v11027_v42 = vadd.f32 %v17619_v61, %v10984_v44  ;;  %v10985_v46 = vmul.f32 %v17622_v35, %v10915_v17  ;;  %v10917_v13 = vadd.f32 %v10916_v51, %v10804_v28  ;;  %v18373_v2 = vld [vmem:[#allocation41_spill] sm:$0xff]  ;;  %v18374_v44 = vld [vmem:[#allocation58_spill] sm:$0xff]  ;;  %v18376_v23 = vld [vmem:[#allocation48_spill] sm:$0xff] }
 0x506   : > { %v10918_v48 = vpop.f32.mrf.mxu1  ;;  %v10594_v17 = vadd.f32 %v18374_v44, %v18373_v2  ;;  %v10703_v52 = vadd.f32 %v18375_v22, %v10590_v47  ;;  %v10814_v9 = vadd.f32 %v17639_v54, %v10701_v63  ;;  %v18384_v2 = vld [vmem:[#allocation19_spill] sm:$0xff]  ;;  %v10835_v22 = vpop.f32.mrf.mxu0 }
 0x507   : > { %11090 = vst.msk [vmem:[#allocation4 + $0x58] sm:$0xff] %vm1663_vm12, %v17763_v20  ;;  %v17773_v53 = vadd.f32 %v13470_v8, %v11027_v42  ;;  %v11028_v37 = vadd.f32 %v17632_v36, %v10985_v46  ;;  %v10986_v29 = vmul.f32 %v17616_v18, %v10917_v13  ;;  %v10919_v41 = vadd.f32 %v10918_v48, %v10806_v57  ;;  %v18377_v42 = vld [vmem:[#allocation55_spill] sm:$0xff] }
 0x508   : > { %v10922_v19 = vpop.f32.mrf.mxu1  ;;  %v10596_v46 = vadd.f32 %v18377_v42, %v18376_v23  ;;  %v18378_v13 = vld [vmem:[#allocation15_spill] sm:$0xff]  ;;  %v10816_v11 = vadd.f32 %v17655_v45, %v10703_v52  ;;  %v13475_v52 = vld [vmem:[#allocation4 + $0x88] sm:$0xff] }
 0x509   : > { %11091 = vst [vmem:[#allocation4 + $0x60] sm:$0xff] %v17773_v53  ;;  %v17784_v21 = vadd.f32 %v13471_v31, %v11028_v37  ;;  %v11029_v28 = vadd.f32 %v17619_v61, %v10986_v29  ;;  %v10987_v34 = vmul.f32 %v17622_v35, %v10919_v41  ;;  %v10923_v1 = vadd.f32 %v10922_v19, %v10810_v25  ;;  %v18379_v37 = vld [vmem:[#allocation43_spill] sm:$0xff]  ;;  %v18380_v29 = vld [vmem:[#allocation62_spill] sm:$0xff]  ;;  %v18387_v42 = vld [vmem:[#allocation24_spill] sm:$0xff] }
 0x50a   : > { %v10924_v55 = vpop.f32.mrf.mxu1  ;;  %v10707_v12 = vadd.f32 %v18378_v13, %v10594_v17  ;;  %v10598_v41 = vadd.f32 %v18380_v29, %v18379_v37  ;;  %v10709_v40 = vadd.f32 %v18381_v33, %v10596_v46  ;;  %v18390_v29 = vld [vmem:[#allocation29_spill] sm:$0xff] }
 0x50b   : > { %11092 = vst.msk [vmem:[#allocation4 + $0x68] sm:$0xff] %vm1663_vm12, %v17784_v21  ;;  %v17794_v32 = vadd.f32 %v13472_v26, %v11029_v28  ;;  %v11030_v4 = vadd.f32 %v17632_v36, %v10987_v34  ;;  %v10988_v57 = vmul.f32 %v17616_v18, %v10923_v1  ;;  %v10925_v51 = vadd.f32 %v10924_v55, %v10812_v59  ;;  %v18382_v28 = vld [vmem:[#allocation39_spill] sm:$0xff]  ;;  %v18383_v34 = vld [vmem:[#allocation60_spill] sm:$0xff] }
 0x50c   : > { %v10926_v54 = vpop.f32.mrf.mxu1  ;;  %v10820_v45 = vadd.f32 %v17676_v5, %v10707_v12  ;;  %v10600_v1 = vadd.f32 %v18383_v34, %v18382_v28  ;;  %v10711_v44 = vadd.f32 %v18384_v2, %v10598_v41  ;;  %v10822_v17 = vadd.f32 %v17697_v58, %v10709_v40  ;;  %v13476_v12 = vld [vmem:[#allocation4 + $0x90] sm:$0xff]  ;;  %v10839_v40 = vpop.f32.mrf.mxu0  ;;  %v18392_v28 = vld [vmem:[#allocation10_spill] sm:$0xff] }
 0x50d   : > { %11093 = vst [vmem:[#allocation4 + $0x70] sm:$0xff] %v17794_v32  ;;  %v17805_v39 = vadd.f32 %v13473_v15, %v11030_v4  ;;  %v11031_v25 = vadd.f32 %v17619_v61, %v10988_v57  ;;  %v10989_v48 = vmul.f32 %v17622_v35, %v10925_v51  ;;  %v10927_v8 = vadd.f32 %v10926_v54, %v10814_v9  ;;  %v18385_v57 = vld [vmem:[#allocation50_spill] sm:$0xff]  ;;  %v18386_v51 = vld [vmem:[#allocation7_spill] sm:$0xff] }
 0x50e   : > { %v10928_v47 = vpop.f32.mrf.mxu1  ;;  %v10604_v23 = vadd.f32 %v18386_v51, %v18385_v57  ;;  %v10713_v46 = vadd.f32 %v18387_v42, %v10600_v1  ;;  %v10824_v13 = vadd.f32 %v17718_v7, %v10711_v44  ;;  %v18393_v1 = vld [vmem:[#allocation21_spill] sm:$0xff] }
 0x50f   : > { %11094 = vst.msk [vmem:[#allocation4 + $0x78] sm:$0xff] %vm1663_vm12, %v17805_v39  ;;  %v17815_v63 = vadd.f32 %v13474_v49, %v11031_v25  ;;  %v11032_v59 = vadd.f32 %v17632_v36, %v10989_v48  ;;  %v10990_v19 = vmul.f32 %v17616_v18, %v10927_v8  ;;  %v10929_v31 = vadd.f32 %v10928_v47, %v10816_v11  ;;  %v18388_v48 = vld [vmem:[#allocation42_spill] sm:$0xff]  ;;  %v18389_v8 = vld [vmem:[#allocation8_spill] sm:$0xff]  ;;  %v18395_v57 = vld [vmem:[#allocation9_spill] sm:$0xff] }
 0x510   : > { %v10932_v5 = vpop.f32.mrf.mxu1  ;;  %v10606_v37 = vadd.f32 %v18389_v8, %v18388_v48  ;;  %v10717_v41 = vadd.f32 %v18390_v29, %v10604_v23  ;;  %v10826_v33 = vadd.f32 %v17739_v6, %v10713_v46  ;;  %v18396_v23 = vld [vmem:[#allocation26_spill] sm:$0xff]  ;;  %v18397_v48 = vld [vmem:[#allocation59_spill] sm:$0xff]  ;;  %v18398_v8 = vld [vmem:[#allocation12_spill] sm:$0xff] }
 0x511   : > { %11095 = vst [vmem:[#allocation4 + $0x80] sm:$0xff] %v17815_v63  ;;  %v17824_v9 = vadd.f32 %v13475_v52, %v11032_v59  ;;  %v11033_v55 = vadd.f32 %v17619_v61, %v10990_v19  ;;  %v10991_v26 = vmul.f32 %v17622_v35, %v10929_v31  ;;  %v10933_v4 = vadd.f32 %v10932_v5, %v10820_v45  ;;  %v13477_v45 = vld [vmem:[#allocation4 + $0x98] sm:$0xff]  ;;  %v18391_v31 = vld [vmem:[#allocation52_spill] sm:$0xff]  ;;  %v18399_v29 = vld [vmem:[#allocation31_spill] sm:$0xff] }
 0x512   : > { %v10934_v58 = vpop.f32.mrf.mxu1  ;;  %v10608_v34 = vadd.f32 %v18392_v28, %v18391_v31  ;;  %v10719_v2 = vadd.f32 %v18393_v1, %v10606_v37  ;;  %v10830_v44 = vadd.f32 %v17760_v60, %v10717_v41  ;;  %v10614_v37 = vadd.f32 %v18398_v8, %v18397_v48  ;;  %v18400_v31 = vld [vmem:[#allocation54_spill] sm:$0xff]  ;;  %v18401_v28 = vld [vmem:[#allocation16_spill] sm:$0xff]  ;;  %v18402_v1 = vld [vmem:[#allocation65_spill] sm:$0xff] }
 0x513   : > { %11096 = vst.msk [vmem:[#allocation4 + $0x88] sm:$0xff] %vm1663_vm12, %v17824_v9  ;;  %v17834_v11 = vadd.f32 %v13476_v12, %v11033_v55  ;;  %v11034_v54 = vadd.f32 %v17632_v36, %v10991_v26  ;;  %v10992_v15 = vmul.f32 %v17616_v18, %v10933_v4  ;;  %v10935_v25 = vadd.f32 %v10934_v58, %v10822_v17  ;;  %v13478_v17 = vld [vmem:[#allocation4 + $0xa0] sm:$0xff]  ;;  %v18394_v4 = vld [vmem:[#allocation56_spill] sm:$0xff]  ;;  %v18406_v8 = vld [vmem:[#allocation57_spill] sm:$0xff] }
 0x514   : > { %v10936_v7 = vpop.f32.mrf.mxu1  ;;  %v10610_v51 = vadd.f32 %v18395_v57, %v18394_v4  ;;  %v10721_v42 = vadd.f32 %v18396_v23, %v10608_v34  ;;  %v10832_v46 = vadd.f32 %v17781_v62, %v10719_v2  ;;  %v13479_v58 = vld [vmem:[#allocation4 + $0xa8] sm:$0xff]  ;;  %v10616_v34 = vadd.f32 %v18401_v28, %v18400_v31  ;;  %v18403_v57 = vld [vmem:[#allocation61_spill] sm:$0xff] }
 0x515   : > { %11097 = vst [vmem:[#allocation4 + $0x90] sm:$0xff] %v17834_v11  ;;  %v17843_v47 = vadd.f32 %v13477_v45, %v11034_v54  ;;  %v11035_v49 = vadd.f32 %v17619_v61, %v10992_v15  ;;  %v10993_v59 = vmul.f32 %v17622_v35, %v10935_v25  ;;  %v10937_v19 = vadd.f32 %v10936_v7, %v10824_v13  ;;  %v10841_v13 = vpop.f32.mrf.mxu0  ;;  %v13480_v7 = vld [vmem:[#allocation4 + $0xb0] sm:$0xff] }
 0x516   : > { %v10938_v6 = vpop.f32.mrf.mxu1  ;;  %v10723_v41 = vadd.f32 %v18399_v29, %v10610_v51  ;;  %v10727_v2 = vadd.f32 %v18402_v1, %v10614_v37  ;;  %v18404_v51 = vld [vmem:[#allocation27_spill] sm:$0xff]  ;;  %v18407_v37 = vld [vmem:[#allocation20_spill] sm:$0xff] }
 0x517   : > { %11098 = vst.msk [vmem:[#allocation4 + $0x98] sm:$0xff] %vm1663_vm12, %v17843_v47  ;;  %v17853_v5 = vadd.f32 %v13478_v17, %v11035_v49  ;;  %v11036_v52 = vadd.f32 %v17632_v36, %v10993_v59  ;;  %v10994_v55 = vmul.f32 %v17616_v18, %v10937_v19  ;;  %v10939_v26 = vadd.f32 %v10938_v6, %v10826_v33  ;;  %v13481_v17 = vld [vmem:[#allocation4 + $0xb8] sm:$0xff] }
 0x518   : > { %v10942_v60 = vpop.f32.mrf.mxu1  ;;  %v10834_v33 = vadd.f32 %v17802_v56, %v10721_v42  ;;  %v10843_v56 = vpop.f32.mrf.mxu0  ;;  %v10618_v23 = vadd.f32 %v18404_v51, %v18403_v57  ;;  %v18405_v42 = vld [vmem:[#allocation67_spill] sm:$0xff]  ;;  %v10620_v29 = vadd.f32 %v18407_v37, %v18406_v8  ;;  %v13485_v51 = vld [vmem:[#allocation4 + $0xd8] sm:$0xff]  ;;  %v13487_v8 = vld [vmem:[#allocation4 + $0xe8] sm:$0xff] }
 0x519   : > { %11099 = vst [vmem:[#allocation4 + $0xa0] sm:$0xff] %v17853_v5  ;;  %v17862_v12 = vadd.f32 %v13479_v58, %v11036_v52  ;;  %v11037_v54 = vadd.f32 %v17619_v61, %v10994_v55  ;;  %v10995_v15 = vmul.f32 %v17622_v35, %v10939_v26  ;;  %v10943_v25 = vadd.f32 %v10942_v60, %v10830_v44 }
 0x51a   : > { %v10944_v62 = vpop.f32.mrf.mxu1  ;;  %v10836_v44 = vadd.f32 %v10835_v22, %v10723_v41  ;;  %v10840_v60 = vadd.f32 %v10839_v40, %v10727_v2  ;;  %v13482_v22 = vld [vmem:[#allocation4 + $0xc0] sm:$0xff]  ;;  %v18408_v41 = vld [vmem:[#allocation68_spill] sm:$0xff]  ;;  %v10845_v40 = vpop.f32.mrf.mxu0 }
 0x51b   : > { %11100 = vst.msk [vmem:[#allocation4 + $0xa8] sm:$0xff] %vm1663_vm12, %v17862_v12  ;;  %v17872_v45 = vadd.f32 %v13480_v7, %v11037_v54  ;;  %v11038_v49 = vadd.f32 %v17632_v36, %v10995_v15  ;;  %v10996_v59 = vmul.f32 %v17616_v18, %v10943_v25  ;;  %v10945_v19 = vadd.f32 %v10944_v62, %v10832_v46 }
 0x51c   : > { %v10946_v6 = vpop.f32.mrf.mxu1  ;;  %v10729_v46 = vadd.f32 %v18405_v42, %v10616_v34  ;;  %v18409_v34 = vld [vmem:[#allocation69_spill] sm:$0xff] }
 0x51d   : > { %11101 = vst [vmem:[#allocation4 + $0xb0] sm:$0xff] %v17872_v45  ;;  %v17880_v52 = vadd.f32 %v13481_v17, %v11038_v49  ;;  %v11039_v55 = vadd.f32 %v17619_v61, %v10996_v59  ;;  %v10997_v26 = vmul.f32 %v17622_v35, %v10945_v19  ;;  %v10947_v4 = vadd.f32 %v10946_v6, %v10834_v33  ;;  %v13483_v49 = vld [vmem:[#allocation4 + $0xc8] sm:$0xff]  ;;  %v13484_v6 = vld [vmem:[#allocation4 + $0xd0] sm:$0xff] }
 0x51e   : > { %v10948_v58 = vpop.f32.mrf.mxu1  ;;  %v10731_v33 = vadd.f32 %v18408_v41, %v10618_v23  ;;  %v10842_v62 = vadd.f32 %v10841_v13, %v10729_v46  ;;  %v10733_v1 = vadd.f32 %v18409_v34, %v10620_v29 }
 0x51f   : > { %11102 = vst.msk [vmem:[#allocation4 + $0xb8] sm:$0xff] %vm1663_vm12, %v17880_v52  ;;  %v17889_v54 = vadd.f32 %v13482_v22, %v11039_v55  ;;  %v11040_v15 = vadd.f32 %v17632_v36, %v10997_v26  ;;  %v10998_v25 = vmul.f32 %v17616_v18, %v10947_v4  ;;  %v10949_v48 = vadd.f32 %v10948_v58, %v10836_v44  ;;  %v13486_v58 = vld [vmem:[#allocation4 + $0xe0] sm:$0xff] }
 0x520   : > { %v10952_v7 = vpop.f32.mrf.mxu1  ;;  %v10844_v2 = vadd.f32 %v10843_v56, %v10731_v33  ;;  %v10846_v4 = vadd.f32 %v10845_v40, %v10733_v1  ;;  %v13488_v33 = vld [vmem:[#allocation4 + $0xf0] sm:$0xff]  ;;  %v13489_v40 = vld [vmem:[#allocation4 + $0xf8] sm:$0xff] }
 0x521   : > { %11103 = vst [vmem:[#allocation4 + $0xc0] sm:$0xff] %v17889_v54  ;;  %v11072_v59 = vadd.f32 %v13483_v49, %v11040_v15  ;;  %v11041_v19 = vadd.f32 %v17619_v61, %v10998_v25  ;;  %v10999_v31 = vmul.f32 %v17622_v35, %v10949_v48  ;;  %v10953_v28 = vadd.f32 %v10952_v7, %v10840_v60 }
 0x522   : > { %v10954_v44 = vpop.f32.mrf.mxu1 }
 0x523   : > { %11104 = vst.msk [vmem:[#allocation4 + $0xc8] sm:$0xff] %vm1663_vm12, %v11072_v59  ;;  %v11073_v17 = vadd.f32 %v13484_v6, %v11041_v19  ;;  %v11042_v13 = vadd.f32 %v17632_v36, %v10999_v31  ;;  %v11000_v55 = vmul.f32 %v17616_v18, %v10953_v28  ;;  %v10955_v26 = vadd.f32 %v10954_v44, %v10842_v62 }
 0x524   : > { %v10956_v57 = vpop.f32.mrf.mxu1 }
 0x525   : > { %11105 = vst [vmem:[#allocation4 + $0xd0] sm:$0xff] %v11073_v17  ;;  %v11074_v23 = vadd.f32 %v13485_v51, %v11042_v13  ;;  %v11043_v42 = vadd.f32 %v17619_v61, %v11000_v55  ;;  %v11001_v46 = vmul.f32 %v17622_v35, %v10955_v26  ;;  %v10957_v56 = vadd.f32 %v10956_v57, %v10844_v2 }
 0x526   : > { %v10958_v60 = vpop.f32.mrf.mxu1 }
 0x527   : > { %11106 = vst.msk [vmem:[#allocation4 + $0xd8] sm:$0xff] %vm1663_vm12, %v11074_v23  ;;  %v11075_v22 = vadd.f32 %v13486_v58, %v11043_v42  ;;  %v11044_v15 = vadd.f32 %v17632_v36, %v11001_v46  ;;  %v11002_v25 = vmul.f32 %v17616_v18, %v10957_v56  ;;  %v10959_v48 = vadd.f32 %v10958_v60, %v10846_v4 }
 0x529   : > { %11107 = vst [vmem:[#allocation4 + $0xe0] sm:$0xff] %v11075_v22  ;;  %v11076_v37 = vadd.f32 %v13487_v8, %v11044_v15  ;;  %v11045_v29 = vadd.f32 %v17619_v61, %v11002_v25  ;;  %v11003_v41 = vmul.f32 %v17622_v35, %v10959_v48 }
 0x52b   : > { %11108 = vst.msk [vmem:[#allocation4 + $0xe8] sm:$0xff] %vm1663_vm12, %v11076_v37  ;;  %v11077_v62 = vadd.f32 %v13488_v33, %v11045_v29  ;;  %v11046_v7 = vadd.f32 %v17632_v36, %v11003_v41  ;;  %11114 = sbr.rel (%p12400_p5) target bundleno = 1561 (0x619), region = 48 }
 0x52d   : > { %11109 = vst [vmem:[#allocation4 + $0xf0] sm:$0xff] %v11077_v62  ;;  %v11078_v49 = vadd.f32 %v13489_v40, %v11046_v7 }
 0x52f   : > { %11110 = vst.msk [vmem:[#allocation4 + $0xf8] sm:$0xff] %vm1663_vm12, %v11078_v49 }
 0x530   : > { %11119 = vmatprep.subr.mxu0 %v11078_v49  ;;  %12437 = vmatprep.subr.mxu1 %v11078_v49  ;;  %v11115_v18 = vld [vmem:[%s18023_s4] sm:$0xff]  ;;  %v11117_v61 = vld [vmem:[%s18023_s4 + $0x10] sm:$0xff]  ;;  %v13527_v35 = vmov 0.0   ;;  %v11116_v36 = vld [vmem:[%s18023_s4 + $0x8] sm:$0xff] }
 0x531   : > { %11120 = vmatpush1.msra.mxu0 %v11077_v62  ;;  %12453 = vmatpush1.msra.mxu1 %v11077_v62 }
 0x532   : > { %11121 = vmatprep.subr.mxu0 %v11076_v37  ;;  %12438 = vmatprep.subr.mxu1 %v11076_v37 }
 0x533   : > { %11122 = vmatpush1.msra.mxu0 %v11075_v22  ;;  %12454 = vmatpush1.msra.mxu1 %v11075_v22 }
 0x534   : > { %11123 = vmatprep.subr.mxu0 %v11074_v23  ;;  %12439 = vmatprep.subr.mxu1 %v11074_v23 }
 0x535   : > { %11124 = vmatpush1.msra.mxu0 %v11073_v17  ;;  %12455 = vmatpush1.msra.mxu1 %v11073_v17 }
 0x536   : > { %11125 = vmatprep.subr.mxu0 %v11072_v59  ;;  %12440 = vmatprep.subr.mxu1 %v11072_v59 }
 0x537   : > { %11126 = vmatpush1.msra.mxu0 %v17889_v54  ;;  %12456 = vmatpush1.msra.mxu1 %v17889_v54 }
 0x538   : > { %11127 = vmatprep.subr.mxu0 %v17880_v52  ;;  %12441 = vmatprep.subr.mxu1 %v17880_v52 }
 0x539   : > { %11128 = vmatpush1.msra.mxu0 %v17872_v45  ;;  %12457 = vmatpush1.msra.mxu1 %v17872_v45 }
 0x53a   : > { %11129 = vmatprep.subr.mxu0 %v17862_v12  ;;  %12442 = vmatprep.subr.mxu1 %v17862_v12 }
 0x53b   : > { %11130 = vmatpush1.msra.mxu0 %v17853_v5  ;;  %12458 = vmatpush1.msra.mxu1 %v17853_v5 }
 0x53c   : > { %11131 = vmatprep.subr.mxu0 %v17843_v47  ;;  %12443 = vmatprep.subr.mxu1 %v17843_v47 }
 0x53d   : > { %11132 = vmatpush1.msra.mxu0 %v17834_v11  ;;  %12459 = vmatpush1.msra.mxu1 %v17834_v11 }
 0x53e   : > { %11133 = vmatprep.subr.mxu0 %v17824_v9  ;;  %12444 = vmatprep.subr.mxu1 %v17824_v9 }
 0x53f   : > { %11134 = vmatpush1.msra.mxu0 %v17815_v63  ;;  %12460 = vmatpush1.msra.mxu1 %v17815_v63 }
 0x540   : > { %11135 = vmatprep.subr.mxu0 %v17805_v39  ;;  %12445 = vmatprep.subr.mxu1 %v17805_v39 }
 0x541   : > { %11136 = vmatpush1.msra.mxu0 %v17794_v32  ;;  %12461 = vmatpush1.msra.mxu1 %v17794_v32 }
 0x542   : > { %11137 = vmatprep.subr.mxu0 %v17784_v21  ;;  %12446 = vmatprep.subr.mxu1 %v17784_v21 }
 0x543   : > { %11138 = vmatpush1.msra.mxu0 %v17773_v53  ;;  %12462 = vmatpush1.msra.mxu1 %v17773_v53 }
 0x544   : > { %11139 = vmatprep.subr.mxu0 %v17763_v20  ;;  %12447 = vmatprep.subr.mxu1 %v17763_v20 }
 0x545   : > { %11140 = vmatpush1.msra.mxu0 %v17752_v27  ;;  %12463 = vmatpush1.msra.mxu1 %v17752_v27 }
 0x546   : > { %11141 = vmatprep.subr.mxu0 %v17742_v3  ;;  %12448 = vmatprep.subr.mxu1 %v17742_v3 }
 0x547   : > { %11142 = vmatpush1.msra.mxu0 %v17731_v24  ;;  %12464 = vmatpush1.msra.mxu1 %v17731_v24 }
 0x548   : > { %11143 = vmatprep.subr.mxu0 %v17721_v38  ;;  %12449 = vmatprep.subr.mxu1 %v17721_v38 }
 0x549   : > { %11144 = vmatpush1.msra.mxu0 %v17710_v50  ;;  %12465 = vmatpush1.msra.mxu1 %v17710_v50 }
 0x54a   : > { %11145 = vmatprep.subr.mxu0 %v17700_v14  ;;  %12450 = vmatprep.subr.mxu1 %v17700_v14 }
 0x54b   : > { %11146 = vmatpush1.msra.mxu0 %v17689_v16  ;;  %12466 = vmatpush1.msra.mxu1 %v17689_v16 }
 0x54c   : > { %11147 = vmatprep.subr.mxu0 %v17679_v10  ;;  %12451 = vmatprep.subr.mxu1 %v17679_v10 }
 0x54d   : > { %11148 = vmatpush1.msra.mxu0 %v17668_v0  ;;  %12467 = vmatpush1.msra.mxu1 %v17668_v0 }
 0x54e   : > { %11149 = vmatprep.subr.mxu0 %v17658_v30  ;;  %12452 = vmatprep.subr.mxu1 %v17658_v30  ;;  %v11118_v30 = vld [vmem:[%s18023_s4 + $0x18] sm:$0xff] }
 0x54f   : > { %11150 = vmatpush1.msra.mxu0 %v17647_v43  ;;  %12468 = vmatpush1.msra.mxu1 %v17647_v43 }
 0x550   : > { %11183 = vmatprep.mubr.f32.mxu0 %v13527_v35  ;;  %11195 = vmatprep.mubr.f32.mxu1 %v13527_v35 }
 0x551   : > { %11184 = vmatmul.mubr.f32.vlgmr.msra.gmra.mxu0 %v11115_v18  ;;  %11196 = vmatmul.mubr.f32.vlgmr.msra.gmra.mxu1 %v11117_v61 }
 0x552   : > { %11189 = vmatprep.mubr.f32.mxu0 %v13527_v35  ;;  %11201 = vmatprep.mubr.f32.mxu1 %v13527_v35 }
 0x555   : > { %11190 = vmatmul.mubr.f32.gmra.mxu0 %v11116_v36  ;;  %11202 = vmatmul.mubr.f32.gmra.mxu1 %v11118_v30 }
 0x611   : > { %v11185_v0 = vpop.f32.mrf.mxu0  ;;  %v11197_v10 = vpop.f32.mrf.mxu1 }
 0x612   : > { %11208 = vst [vmem:[%s18025_s6] sm:$0xff] %v11185_v0  ;;  %11212 = vst [vmem:[%s18025_s6 + $0x20] sm:$0xff] %v11197_v10 }
 0x613   : > { %v11187_v43 = vpop.f32.mrf.mxu0  ;;  %v11199_v16 = vpop.f32.mrf.mxu1 }
 0x614   : > { %11209 = vst.msk [vmem:[%s18025_s6 + $0x8] sm:$0xff] %vm1663_vm12, %v11187_v43  ;;  %11213 = vst.msk [vmem:[%s18025_s6 + $0x28] sm:$0xff] %vm1663_vm12, %v11199_v16 }
 0x615   : > { %v11191_v14 = vpop.f32.mrf.mxu0  ;;  %v11203_v50 = vpop.f32.mrf.mxu1 }
 0x616   : > { %11210 = vst [vmem:[%s18025_s6 + $0x10] sm:$0xff] %v11191_v14  ;;  %11214 = vst [vmem:[%s18025_s6 + $0x30] sm:$0xff] %v11203_v50 }
 0x617   : > { %v11193_v38 = vpop.f32.mrf.mxu0  ;;  %v11205_v24 = vpop.f32.mrf.mxu1 }
 0x618   : > { %11211 = vst.msk [vmem:[%s18025_s6 + $0x18] sm:$0xff] %vm1663_vm12, %v11193_v38  ;;  %11215 = vst.msk [vmem:[%s18025_s6 + $0x38] sm:$0xff] %vm1663_vm12, %v11205_v24 }
 0x619 PF: > { %p12474_p6 = scmp.eq.s32.totalorder %s13572_s22, 8  ;;  %s13528_s10 = smov [#allocation4]  }
 0x61a   : > { %s11222_s19 = sshll.u32 %s13528_s10, 4  ;;  %s11223_s19 = int_to_ptr.vmem [resolvable:$true] %s11222_s19 }
 0x61b   : > { %s13490_s20 = scalar_lea.vmem %s11223_s19, 4096  ;;  %p13497_p10 = scmp.lt.s32.totalorder %s11223_s19, %s11223_s19 }
 0x61c   : > { %p13491_p7 = scmp.ne.s32.totalorder %s11223_s19, %s13490_s20  ;;  %p13498_p11 = scmp.lt.s32.totalorder %s13490_s20, %s13490_s20 }
 0x61e   : > { %p13492_p8 = pnand %p13491_p7, %p12474_p6  ;;  %p13499_p12 = por %p13498_p11, %p13497_p10 }
 0x620   : > { %p13493_p9 = pneg %p13492_p8 }
 0x622   : > { %p13500_p13 = pnand %p13499_p12, %p13493_p9 }
 0x624   : > { %13503 = shalt.err (!%p13500_p13)
}
 0x625   : > { %s13529_s23 = smov 256   ;;  %s13530_s24 = smov 16  }
 0x626   : > { %12471 = dma.vmem_to_hbm [thread:$0]  (%p12474_p6), %s11223_s19, 4096, %s18024_s5, [#allocation5], %s13529_s23, %s13529_s23, %s13530_s24  }
 0x627   : > { %13519 = dma.done.wait (%p12474_p6), [#allocation5], 4096  }
 0x628   : > { %13521 = vsyncadd (%p12474_p6), [#allocation5], 4294963200 }
 0x629 PF: > { %s18_s21 = sadd.s32 1, %s13524_s21  }
 0x62a   : > { %p15_p0 = scmp.ge.s32.totalorder %s18_s21, 11  }
 0x62c   :  { %17 = sbr.rel (!%p15_p0) target bundleno = 1 (0x1), region = 95 }
 0x631   :  { %11244 = vsyncpa [#allocation5], 1 }
 0x632   :  { %11246 = vsyncpa [#allocation5 + $0x1], 1 }

</bundles_post_ra>
